<compile_context>
chip_gen: v7x
topology: tpu7x:2x2x1
jax: 0.10.0
libtpu: 0.0.40
codegen_flags: <defaults>
</compile_context>

<pallas_src>
import functools

import jax
import jax.numpy as jnp
from jax.experimental import pallas as pl
from jax.experimental.pallas import tpu as pltpu


def _round_up(x, m):
    return (x + m - 1) // m * m


def _row_tile(mp):
    # mp is always a multiple of 8 here; pick the largest convenient row tile.
    if mp % 256 == 0:
        return 256
    if mp % 128 == 0:
        return 128
    return mp


# ----------------------------------------------------------------------------
# Pallas kernel 1: fused matmul + per-channel affine (+relu/sigmoid) epilogue
#   out = act((A @ B) * scale + bias),  A/B in bf16, f32 accumulation.
#   K and N are full-extent blocks (no reduction grid axis, no K padding).
# ----------------------------------------------------------------------------
def _mm_affine_kernel(a_ref, b_ref, s_ref, c_ref, o_ref, *, act):
    y = jnp.dot(a_ref[...], b_ref[...], preferred_element_type=jnp.float32)
    y = y * s_ref[...] + c_ref[...]
    if act == "relu":
        y = jnp.maximum(y, 0.0)
    elif act == "sigmoid":
        y = jax.nn.sigmoid(y)
    o_ref[...] = y


def matmul_affine(a, b, scale=None, bias=None, act="none"):
    M, K = a.shape
    K2, N = b.shape
    assert K == K2
    if scale is None:
        scale = jnp.ones((N,), jnp.float32)
    if bias is None:
        bias = jnp.zeros((N,), jnp.float32)
    a = a.astype(jnp.bfloat16)
    b = b.astype(jnp.bfloat16)
    Mp = _round_up(M, 8)
    if Mp != M:                        # only the final fc (M=2) needs this
        a = jnp.pad(a, ((0, Mp - M), (0, 0)))
    tm = _row_tile(Mp)
    s2 = scale.astype(jnp.float32).reshape(1, N)
    c2 = bias.astype(jnp.float32).reshape(1, N)
    out = pl.pallas_call(
        functools.partial(_mm_affine_kernel, act=act),
        out_shape=jax.ShapeDtypeStruct((Mp, N), jnp.float32),
        grid=(Mp // tm,),
        in_specs=[pl.BlockSpec((tm, K), lambda i: (i, 0)),
                  pl.BlockSpec((K, N), lambda i: (0, 0)),
                  pl.BlockSpec((1, N), lambda i: (0, 0)),
                  pl.BlockSpec((1, N), lambda i: (0, 0))],
        out_specs=pl.BlockSpec((tm, N), lambda i: (i, 0)),
        compiler_params=pltpu.CompilerParams(
            dimension_semantics=("parallel",)),
    )(a, b, s2, c2)
    return out[:M] if Mp != M else out


# ----------------------------------------------------------------------------
# Pallas kernel 2: standalone per-channel affine (+act) — only used where there
# is no preceding matmul to fuse into (bn1 of SCCBasicBlock).
# ----------------------------------------------------------------------------
def _affine_kernel(x_ref, s_ref, b_ref, o_ref, *, act):
    y = x_ref[...] * s_ref[...] + b_ref[...]
    if act == "relu":
        y = jnp.maximum(y, 0.0)
    elif act == "sigmoid":
        y = jax.nn.sigmoid(y)
    o_ref[...] = y


def scale_bias_act_nhwc(x, scale, bias, act="none"):
    N, H, W, C = x.shape
    M = N * H * W
    assert M % 8 == 0
    tm = _row_tile(M)
    out = pl.pallas_call(
        functools.partial(_affine_kernel, act=act),
        out_shape=jax.ShapeDtypeStruct((M, C), jnp.float32),
        grid=(M // tm,),
        in_specs=[pl.BlockSpec((tm, C), lambda i: (i, 0)),
                  pl.BlockSpec((1, C), lambda i: (0, 0)),
                  pl.BlockSpec((1, C), lambda i: (0, 0))],
        out_specs=pl.BlockSpec((tm, C), lambda i: (i, 0)),
        compiler_params=pltpu.CompilerParams(
            dimension_semantics=("parallel",)),
    )(x.reshape(M, C),
      scale.astype(jnp.float32).reshape(1, C),
      bias.astype(jnp.float32).reshape(1, C))
    return out.reshape(N, H, W, C)


# ----------------------------------------------------------------------------
# Pallas kernel 3: self-calibration gate  out = k3x * sigmoid(x + up)
# ----------------------------------------------------------------------------
def _scgate_kernel(x_ref, up_ref, k3_ref, o_ref):
    o_ref[...] = k3_ref[...] * jax.nn.sigmoid(x_ref[...] + up_ref[...])


def sc_gate(identity, up, k3x):
    N, H, W, C = identity.shape
    M = N * H * W
    assert M % 8 == 0
    tm = _row_tile(M)
    r2 = lambda a: a.reshape(M, C)
    out = pl.pallas_call(
        _scgate_kernel,
        out_shape=jax.ShapeDtypeStruct((M, C), jnp.float32),
        grid=(M // tm,),
        in_specs=[pl.BlockSpec((tm, C), lambda i: (i, 0))] * 3,
        out_specs=pl.BlockSpec((tm, C), lambda i: (i, 0)),
        compiler_params=pltpu.CompilerParams(
            dimension_semantics=("parallel",)),
    )(r2(identity), r2(up), r2(k3x))
    return out.reshape(N, H, W, C)


# ----------------------------------------------------------------------------
# Pallas kernel 4: SRU gate with fused GroupNorm affine.
#   rw = sigmoid((xn*gamma + beta) * w_gamma)  [scale = gamma*w_gamma, bias = beta*w_gamma]
#   x1 = where(rw>t, 1, rw)*x ; x2 = where(rw>t, 0, rw)*x
# ----------------------------------------------------------------------------
def _sru_gate_kernel(x_ref, xn_ref, s_ref, b_ref, x1_ref, x2_ref, *, thresh):
    rw = jax.nn.sigmoid(xn_ref[...] * s_ref[...] + b_ref[...])
    gate = rw > thresh
    x = x_ref[...]
    x1_ref[...] = jnp.where(gate, jnp.ones_like(rw), rw) * x
    x2_ref[...] = jnp.where(gate, jnp.zeros_like(rw), rw) * x


def sru_gate(x, xn, scale, bias, thresh=0.5):
    N, H, W, C = x.shape
    M = N * H * W
    assert M % 8 == 0
    tm = _row_tile(M)
    x1, x2 = pl.pallas_call(
        functools.partial(_sru_gate_kernel, thresh=thresh),
        out_shape=(jax.ShapeDtypeStruct((M, C), jnp.float32),) * 2,
        grid=(M // tm,),
        in_specs=[pl.BlockSpec((tm, C), lambda i: (i, 0)),
                  pl.BlockSpec((tm, C), lambda i: (i, 0)),
                  pl.BlockSpec((1, C), lambda i: (0, 0)),
                  pl.BlockSpec((1, C), lambda i: (0, 0))],
        out_specs=(pl.BlockSpec((tm, C), lambda i: (i, 0)),
                   pl.BlockSpec((tm, C), lambda i: (i, 0))),
        compiler_params=pltpu.CompilerParams(
            dimension_semantics=("parallel",)),
    )(x.reshape(M, C), xn.reshape(M, C),
      scale.astype(jnp.float32).reshape(1, C),
      bias.astype(jnp.float32).reshape(1, C))
    return x1.reshape(N, H, W, C), x2.reshape(N, H, W, C)


# ----------------------------------------------------------------------------
# Pallas kernel 5: fused residual + BN + ReLU tail of SCCBasicBlock
#   out = relu(x*scale + bias + residual)
# ----------------------------------------------------------------------------
def _res_bn_relu_kernel(x_ref, r_ref, s_ref, b_ref, o_ref):
    o_ref[...] = jnp.maximum(x_ref[...] * s_ref[...] + b_ref[...] + r_ref[...], 0.0)


def residual_bn_relu(x, residual, scale, bias):
    N, H, W, C = x.shape
    M = N * H * W
    assert M % 8 == 0
    tm = _row_tile(M)
    out = pl.pallas_call(
        _res_bn_relu_kernel,
        out_shape=jax.ShapeDtypeStruct((M, C), jnp.float32),
        grid=(M // tm,),
        in_specs=[pl.BlockSpec((tm, C), lambda i: (i, 0)),
                  pl.BlockSpec((tm, C), lambda i: (i, 0)),
                  pl.BlockSpec((1, C), lambda i: (0, 0)),
                  pl.BlockSpec((1, C), lambda i: (0, 0))],
        out_specs=pl.BlockSpec((tm, C), lambda i: (i, 0)),
        compiler_params=pltpu.CompilerParams(
            dimension_semantics=("parallel",)),
    )(x.reshape(M, C), residual.reshape(M, C),
      scale.astype(jnp.float32).reshape(1, C),
      bias.astype(jnp.float32).reshape(1, C))
    return out.reshape(N, H, W, C)


# ----------------------------------------------------------------------------
# Convolutions via im2col (bf16) + fused Pallas matmul; pooling / norm glue.
# ----------------------------------------------------------------------------
def _im2col(x, kh, kw, stride, padding):
    N, H, W, C = x.shape
    xp = jnp.pad(x, ((0, 0), (padding, padding), (padding, padding), (0, 0)))
    Ho = (H + 2 * padding - kh) // stride + 1
    Wo = (W + 2 * padding - kw) // stride + 1
    patches = []
    for i in range(kh):
        for j in range(kw):
            patches.append(
                xp[:, i:i + stride * Ho:stride, j:j + stride * Wo:stride, :])
    cols = jnp.stack(patches, axis=3).reshape(N * Ho * Wo, kh * kw * C)
    return cols, Ho, Wo


def conv2d(x, w, kh=3, kw=3, stride=1, padding=1, scale=None, bias=None, act="none"):
    # w: (kh*kw*Cin, Cout) in tap-major / channel-minor row order.
    N, H, W, C = x.shape
    cols, Ho, Wo = _im2col(x.astype(jnp.bfloat16), kh, kw, stride, padding)
    y = matmul_affine(cols, w, scale, bias, act)
    return y.reshape(N, Ho, Wo, -1)


def conv1x1(x, w, scale=None, bias=None, act="none"):
    N, H, W, C = x.shape
    y = matmul_affine(x.reshape(N * H * W, C), w, scale, bias, act)
    return y.reshape(N, H, W, -1)


def maxpool2x2(x):
    N, H, W, C = x.shape
    return x.reshape(N, H // 2, 2, W // 2, 2, C).max(axis=(2, 4))


def avgpool(x, k):
    N, H, W, C = x.shape
    return x.reshape(N, H // k, k, W // k, k, C).mean(axis=(2, 4))


def group_norm_normalize(x, num_groups, eps=1e-5):
    # statistics in plain JAX (tiny reduction); affine is fused in sru_gate.
    N, H, W, C = x.shape
    xg = x.reshape(N, H, W, num_groups, C // num_groups)
    mean = xg.mean(axis=(1, 2, 4), keepdims=True)
    var = jnp.mean((xg - mean) ** 2, axis=(1, 2, 4), keepdims=True)
    return ((xg - mean) * jax.lax.rsqrt(var + eps)).reshape(N, H, W, C)


# ----------------------------------------------------------------------------
# Module forward passes
# ----------------------------------------------------------------------------
def self_calibrated_conv(x, p, final_act="none"):
    # k2: AvgPool(4,4) -> conv3x3+BN, nearest-upsample back to x's spatial size.
    y2 = avgpool(x, 4)
    y2 = conv2d(y2, p["k2_w"], scale=p["k2_bn"][0], bias=p["k2_bn"][1])
    rh = x.shape[1] // y2.shape[1]
    rw = x.shape[2] // y2.shape[2]
    up = jnp.repeat(jnp.repeat(y2, rh, axis=1), rw, axis=2)   # F.interpolate nearest
    y3 = conv2d(x, p["k3_w"], scale=p["k3_bn"][0], bias=p["k3_bn"][1])
    out = sc_gate(x, up, y3)                                  # k3(x) * sigmoid(x + up)
    # k4 conv + BN; the caller's ReLU (SCBottleneck) is fused into this epilogue.
    out = conv2d(out, p["k4_w"], scale=p["k4_bn"][0], bias=p["k4_bn"][1],
                 act=final_act)
    return out


def sc_bottleneck(x, p):
    # conv1_a / conv1_b share the input -> one fused 128->128 matmul + BN + ReLU.
    ab = conv1x1(x, p["conv1_ab"], scale=p["bn1_ab"][0], bias=p["bn1_ab"][1],
                 act="relu")
    gw = ab.shape[-1] // 2
    out_a, out_b = ab[..., :gw], ab[..., gw:]
    out_a = conv2d(out_a, p["k1_w"], scale=p["k1_bn"][0], bias=p["k1_bn"][1],
                   act="relu")
    out_b = self_calibrated_conv(out_b, p["scconv"], final_act="relu")
    return jnp.concatenate([out_a, out_b], axis=-1)


def sru(x, p, group_num=4, gate_treshold=0.5):
    xn = group_norm_normalize(x, group_num)
    w_gamma = p["gn_w"] / jnp.sum(p["gn_w"])
    # gn affine fused into the gate: rw = sigmoid(xn*(gamma*w_gamma) + beta*w_gamma)
    x1, x2 = sru_gate(x, xn, p["gn_w"] * w_gamma, p["gn_b"] * w_gamma,
                      gate_treshold)
    C = x.shape[-1]
    x11, x12 = x1[..., :C // 2], x1[..., C // 2:]
    x21, x22 = x2[..., :C // 2], x2[..., C // 2:]
    return jnp.concatenate([x11 + x22, x12 + x21], axis=-1)


def cru(x, p):
    # squeeze1/squeeze2 on disjoint channel halves -> one block-diagonal matmul.
    sq = conv1x1(x, p["squeeze_w"])
    up, low = sq[..., :16], sq[..., 16:]
    # GWC (groups=2, block-diag weight) + PWC1 (folded into center tap) + bias,
    # all in one matmul.
    y1 = conv2d(up, p["gwc_pwc1_w"], bias=p["gwc_b"])
    y2 = jnp.concatenate([conv1x1(low, p["pwc2"]), low], axis=-1)
    out = jnp.concatenate([y1, y2], axis=-1)
    pooled = out.mean(axis=(1, 2))                # AdaptiveAvgPool2d(1)
    attn = jax.nn.softmax(pooled, axis=-1)        # softmax over channels
    out = out * attn[:, None, None, :]
    C = out.shape[-1]
    return out[..., :C // 2] + out[..., C // 2:]


def spatial_channel_conv(x, p):
    x = sru(x, p["sru"])
    x = cru(x, p["cru"])
    return x


def scc_basic_block(x, p):
    residual = x
    out = spatial_channel_conv(x, p["scc1"])
    out = scale_bias_act_nhwc(out, p["bn1"][0], p["bn1"][1], "relu")
    out = spatial_channel_conv(out, p["scc2"])
    # bn2 + residual add + relu fused in one kernel
    return residual_bn_relu(out, residual, p["bn2"][0], p["bn2"][1])


def cnn_net(x, P):
    # x: (N, H, W, 1) NHWC   (PyTorch equivalent: (N, 1, H, W))
    x = conv2d(x, P["conv1_w"], stride=2, padding=1,
               scale=P["bn1"][0], bias=P["bn1"][1], act="relu")
    x = maxpool2x2(x)
    # dropout1: inference-mode identity
    x = sc_bottleneck(x, P["scb"])
    x = conv2d(x, P["conv2_w"], stride=1, padding=1,
               scale=P["bn2"][0], bias=P["bn2"][1], act="relu")
    x = maxpool2x2(x)
    # dropout2: inference-mode identity
    x = scc_basic_block(x, P["sccblock"])
    x = conv2d(x, P["conv3_w"], stride=1, padding=1,
               scale=P["bn3"][0], bias=P["bn3"][1], act="relu")
    x = maxpool2x2(x)
    # dropout3: inference-mode identity
    N = x.shape[0]
    flat = x.reshape(N, -1)   # flatten in (H, W, C) order; fc weight in same order
    return matmul_affine(flat, P["fc_w"], bias=P["fc_b"])   # fc bias fused


# ----------------------------------------------------------------------------
# Deterministic synthetic parameters (assembled directly in fused layouts)
# ----------------------------------------------------------------------------
class ParamGen:
    def __init__(self, seed):
        self.key = jax.random.PRNGKey(seed)

    def normal(self, shape, scale=0.1):
        self.key, sub = jax.random.split(self.key)
        return scale * jax.random.normal(sub, shape, dtype=jnp.float32)


def _block_diag(blocks):
    rows = sum(b.shape[0] for b in blocks)
    cols = sum(b.shape[1] for b in blocks)
    out = jnp.zeros((rows, cols), jnp.float32)
    r = c = 0
    for b in blocks:
        out = out.at[r:r + b.shape[0], c:c + b.shape[1]].set(b)
        r += b.shape[0]
        c += b.shape[1]
    return out


def _assemble_grouped_3x3(per_group, cin, groups, taps=9):
    # per_group[g]: (taps*cin_per_group, cout_per_group) tap-major rows ->
    # full (taps*cin, cout) weight matching the full-channel im2col layout.
    cg = cin // groups
    cout = sum(w.shape[1] for w in per_group)
    og = cout // groups
    W = jnp.zeros((taps * cin, cout), jnp.float32)
    for g, wg in enumerate(per_group):
        for t in range(taps):
            W = W.at[t * cin + g * cg:t * cin + (g + 1) * cg,
                     g * og:(g + 1) * og].set(wg[t * cg:(t + 1) * cg, :])
    return W


def init_params(seed=42, w_out=2):
    pg = ParamGen(seed)

    def w3x3(cin, cout):
        fan_in = 9 * cin
        return pg.normal((fan_in, cout), (2.0 / fan_in) ** 0.5)

    def w1x1(cin, cout):
        return pg.normal((cin, cout), (2.0 / cin) ** 0.5)

    def bn(c):
        gamma = 1.0 + pg.normal((c,), 0.05)
        beta = pg.normal((c,), 0.05)
        # eval-mode BatchNorm: running_mean=0, running_var=1, eps=1e-5
        return gamma / jnp.sqrt(1.0 + 1e-5), beta

    def scc_params():
        gwc_groups = [w3x3(8, 32) for _ in range(2)]   # groups=2, 16->64
        pwc1 = w1x1(16, 64)
        gwc_pwc1 = _assemble_grouped_3x3(gwc_groups, cin=16, groups=2)
        gwc_pwc1 = gwc_pwc1.at[4 * 16:5 * 16, :].add(pwc1)   # PWC1 -> center tap
        squeeze = _block_diag([w1x1(32, 16), w1x1(32, 16)])  # squeeze1 | squeeze2
        return {
            "sru": {"gn_w": 1.0 + pg.normal((64,), 0.05),
                    "gn_b": pg.normal((64,), 0.05)},
            "cru": {"squeeze_w": squeeze,
                    "gwc_pwc1_w": gwc_pwc1,
                    "gwc_b": pg.normal((64,), 0.05),
                    "pwc2": w1x1(16, 48)},
        }

    # SCBottleneck: conv1_a / conv1_b fused (weights and BN params concatenated)
    conv1_ab = jnp.concatenate([w1x1(128, 64), w1x1(128, 64)], axis=1)
    bn1_a, bn1_b = bn(64), bn(64)
    bn1_ab = (jnp.concatenate([bn1_a[0], bn1_b[0]]),
              jnp.concatenate([bn1_a[1], bn1_b[1]]))

    fc_in = w_out * 4 * 32   # nn.Linear(w*4*32, 128); requires H=64, w=W//16
    return {
        "conv1_w": w3x3(1, 128), "bn1": bn(128),
        "conv2_w": w3x3(128, 64), "bn2": bn(64),
        "conv3_w": w3x3(64, 32), "bn3": bn(32),
        "fc_w": pg.normal((fc_in, 128), (1.0 / fc_in) ** 0.5),
        "fc_b": pg.normal((128,), 0.05),
        "scb": {
            "conv1_ab": conv1_ab, "bn1_ab": bn1_ab,
            "k1_w": w3x3(64, 64), "k1_bn": bn(64),
            "scconv": {
                "k2_w": w3x3(64, 64), "k2_bn": bn(64),
                "k3_w": w3x3(64, 64), "k3_bn": bn(64),
                "k4_w": w3x3(64, 64), "k4_bn": bn(64),
            },
        },
        "sccblock": {
            "scc1": scc_params(),
            "scc2": scc_params(),
            "bn1": bn(64), "bn2": bn(64),
        },
    }


if __name__ == "__main__":
    # CNNNet(w=2): input of shape (N, 1, 64, 32) in NCHW, i.e. (2, 64, 32, 1)
    # in the NHWC layout used here (H=64 so H//16=4, w=W//16=2).
    N, H, W = 2, 64, 32
    x = jax.random.normal(jax.random.PRNGKey(0), (N, H, W, 1), dtype=jnp.float32)
    params = init_params(seed=42, w_out=W // 16)

    out = jax.jit(cnn_net)(x, params)
    out = jax.block_until_ready(out)
    assert out.shape == (N, 128), out.shape
    assert bool(jnp.all(jnp.isfinite(out)))
    print("KERNEL_OK")
</pallas_src>

<mosaic_0001>
module attributes {stable_mosaic.version = 11 : i64} {
  func.func @_mm_affine_kernel(%arg0: i32, %arg1: memref<256x9xbf16, #tpu.memory_space<vmem>>, %arg2: memref<9x128xbf16, #tpu.memory_space<vmem>>, %arg3: memref<1x128xf32, #tpu.memory_space<vmem>>, %arg4: memref<1x128xf32, #tpu.memory_space<vmem>>, %arg5: memref<256x128xf32, #tpu.memory_space<vmem>>) attributes {dimension_semantics = [#tpu.dimension_semantics<parallel>], iteration_bounds = array<i64: 4>, scalar_prefetch = 0 : i64, scratch_operands = 0 : i64, tpu.core_type = #tpu.core_type<tc>, window_params = [{transform_indices = @transform_0, window_bounds = array<i64: 256, 9>}, {pipeline_mode = #tpu.pipeline_mode<synchronous>, transform_indices = @transform_1, window_bounds = array<i64: 9, 128>}, {pipeline_mode = #tpu.pipeline_mode<synchronous>, transform_indices = @transform_2, window_bounds = array<i64: 1, 128>}, {pipeline_mode = #tpu.pipeline_mode<synchronous>, transform_indices = @transform_3, window_bounds = array<i64: 1, 128>}, {transform_indices = @transform_4, window_bounds = array<i64: 256, 128>}]} {
    %c0 = arith.constant 0 : index
    %c0_0 = arith.constant 0 : index
    %0 = vector.load %arg1[%c0, %c0_0] : memref<256x9xbf16, #tpu.memory_space<vmem>>, vector<256x9xbf16>
    %c0_1 = arith.constant 0 : index
    %c0_2 = arith.constant 0 : index
    %1 = vector.load %arg2[%c0_1, %c0_2] : memref<9x128xbf16, #tpu.memory_space<vmem>>, vector<9x128xbf16>
    %cst = arith.constant dense<0.000000e+00> : vector<256x128xf32>
    %2 = tpu.matmul %0, %1, %cst {dimension_numbers = #tpu.dot_dimension_numbers<[1], [0], [0], [1], [0, 0, 1, 1], [], []>} : vector<256x9xbf16>, vector<9x128xbf16>, vector<256x128xf32> -> vector<256x128xf32>
    %c0_3 = arith.constant 0 : index
    %c0_4 = arith.constant 0 : index
    %3 = vector.load %arg3[%c0_3, %c0_4] : memref<1x128xf32, #tpu.memory_space<vmem>>, vector<1x128xf32>
    %4 = vector.broadcast %3 : vector<1x128xf32> to vector<256x128xf32>
    %5 = arith.mulf %2, %4 : vector<256x128xf32>
    %c0_5 = arith.constant 0 : index
    %c0_6 = arith.constant 0 : index
    %6 = vector.load %arg4[%c0_5, %c0_6] : memref<1x128xf32, #tpu.memory_space<vmem>>, vector<1x128xf32>
    %7 = vector.broadcast %6 : vector<1x128xf32> to vector<256x128xf32>
    %8 = arith.addf %5, %7 : vector<256x128xf32>
    %cst_7 = arith.constant 0.000000e+00 : f32
    %9 = vector.broadcast %cst_7 : f32 to vector<256x128xf32>
    %10 = arith.maximumf %8, %9 : vector<256x128xf32>
    %c0_8 = arith.constant 0 : index
    %c0_9 = arith.constant 0 : index
    %11 = vector.load %arg5[%c0_8, %c0_9] : memref<256x128xf32, #tpu.memory_space<vmem>>, vector<256x128xf32>
    tpu.vector_store %arg5[%c0_8, %c0_9], %10 {strides = array<i32>} : memref<256x128xf32, #tpu.memory_space<vmem>>, vector<256x128xf32>,
    return
  }
  func.func @transform_0(%arg0: i32) -> (i32, i32) {
    %c0_i32 = arith.constant 0 : i32
    %c0_i32_0 = arith.constant 0 : i32
    return %arg0, %c0_i32 : i32, i32
  }
  func.func @transform_1(%arg0: i32) -> (i32, i32) {
    %c0_i32 = arith.constant 0 : i32
    %c0_i32_0 = arith.constant 0 : i32
    %c0_i32_1 = arith.constant 0 : i32
    return %c0_i32, %c0_i32_0 : i32, i32
  }
  func.func @transform_2(%arg0: i32) -> (i32, i32) {
    %c0_i32 = arith.constant 0 : i32
    %c0_i32_0 = arith.constant 0 : i32
    %c0_i32_1 = arith.constant 0 : i32
    return %c0_i32, %c0_i32_0 : i32, i32
  }
  func.func @transform_3(%arg0: i32) -> (i32, i32) {
    %c0_i32 = arith.constant 0 : i32
    %c0_i32_0 = arith.constant 0 : i32
    %c0_i32_1 = arith.constant 0 : i32
    return %c0_i32, %c0_i32_0 : i32, i32
  }
  func.func @transform_4(%arg0: i32) -> (i32, i32) {
    %c0_i32 = arith.constant 0 : i32
    %c0_i32_0 = arith.constant 0 : i32
    return %arg0, %c0_i32 : i32, i32
  }
}

module attributes {stable_mosaic.version = 11 : i64} {
  func.func @_mm_affine_kernel(%arg0: i32, %arg1: memref<256x128xbf16, #tpu.memory_space<vmem>>, %arg2: memref<128x128xbf16, #tpu.memory_space<vmem>>, %arg3: memref<1x128xf32, #tpu.memory_space<vmem>>, %arg4: memref<1x128xf32, #tpu.memory_space<vmem>>, %arg5: memref<256x128xf32, #tpu.memory_space<vmem>>) attributes {dimension_semantics = [#tpu.dimension_semantics<parallel>], iteration_bounds = array<i64: 1>, scalar_prefetch = 0 : i64, scratch_operands = 0 : i64, tpu.core_type = #tpu.core_type<tc>, window_params = [{transform_indices = @transform_0, window_bounds = array<i64: 256, 128>}, {pipeline_mode = #tpu.pipeline_mode<synchronous>, transform_indices = @transform_1, window_bounds = array<i64: 128, 128>}, {pipeline_mode = #tpu.pipeline_mode<synchronous>, transform_indices = @transform_2, window_bounds = array<i64: 1, 128>}, {pipeline_mode = #tpu.pipeline_mode<synchronous>, transform_indices = @transform_3, window_bounds = array<i64: 1, 128>}, {transform_indices = @transform_4, window_bounds = array<i64: 256, 128>}]} {
    %c0 = arith.constant 0 : index
    %c0_0 = arith.constant 0 : index
    %0 = vector.load %arg1[%c0, %c0_0] : memref<256x128xbf16, #tpu.memory_space<vmem>>, vector<256x128xbf16>
    %c0_1 = arith.constant 0 : index
    %c0_2 = arith.constant 0 : index
    %1 = vector.load %arg2[%c0_1, %c0_2] : memref<128x128xbf16, #tpu.memory_space<vmem>>, vector<128x128xbf16>
    %cst = arith.constant dense<0.000000e+00> : vector<256x128xf32>
    %2 = tpu.matmul %0, %1, %cst {dimension_numbers = #tpu.dot_dimension_numbers<[1], [0], [0], [1], [0, 0, 1, 1], [], []>} : vector<256x128xbf16>, vector<128x128xbf16>, vector<256x128xf32> -> vector<256x128xf32>
    %c0_3 = arith.constant 0 : index
    %c0_4 = arith.constant 0 : index
    %3 = vector.load %arg3[%c0_3, %c0_4] : memref<1x128xf32, #tpu.memory_space<vmem>>, vector<1x128xf32>
    %4 = vector.broadcast %3 : vector<1x128xf32> to vector<256x128xf32>
    %5 = arith.mulf %2, %4 : vector<256x128xf32>
    %c0_5 = arith.constant 0 : index
    %c0_6 = arith.constant 0 : index
    %6 = vector.load %arg4[%c0_5, %c0_6] : memref<1x128xf32, #tpu.memory_space<vmem>>, vector<1x128xf32>
    %7 = vector.broadcast %6 : vector<1x128xf32> to vector<256x128xf32>
    %8 = arith.addf %5, %7 : vector<256x128xf32>
    %cst_7 = arith.constant 0.000000e+00 : f32
    %9 = vector.broadcast %cst_7 : f32 to vector<256x128xf32>
    %10 = arith.maximumf %8, %9 : vector<256x128xf32>
    %c0_8 = arith.constant 0 : index
    %c0_9 = arith.constant 0 : index
    %11 = vector.load %arg5[%c0_8, %c0_9] : memref<256x128xf32, #tpu.memory_space<vmem>>, vector<256x128xf32>
    tpu.vector_store %arg5[%c0_8, %c0_9], %10 {strides = array<i32>} : memref<256x128xf32, #tpu.memory_space<vmem>>, vector<256x128xf32>,
    return
  }
  func.func @transform_0(%arg0: i32) -> (i32, i32) {
    %c0_i32 = arith.constant 0 : i32
    %c0_i32_0 = arith.constant 0 : i32
    return %arg0, %c0_i32 : i32, i32
  }
  func.func @transform_1(%arg0: i32) -> (i32, i32) {
    %c0_i32 = arith.constant 0 : i32
    %c0_i32_0 = arith.constant 0 : i32
    %c0_i32_1 = arith.constant 0 : i32
    return %c0_i32, %c0_i32_0 : i32, i32
  }
  func.func @transform_2(%arg0: i32) -> (i32, i32) {
    %c0_i32 = arith.constant 0 : i32
    %c0_i32_0 = arith.constant 0 : i32
    %c0_i32_1 = arith.constant 0 : i32
    return %c0_i32, %c0_i32_0 : i32, i32
  }
  func.func @transform_3(%arg0: i32) -> (i32, i32) {
    %c0_i32 = arith.constant 0 : i32
    %c0_i32_0 = arith.constant 0 : i32
    %c0_i32_1 = arith.constant 0 : i32
    return %c0_i32, %c0_i32_0 : i32, i32
  }
  func.func @transform_4(%arg0: i32) -> (i32, i32) {
    %c0_i32 = arith.constant 0 : i32
    %c0_i32_0 = arith.constant 0 : i32
    return %arg0, %c0_i32 : i32, i32
  }
}

module attributes {stable_mosaic.version = 11 : i64} {
  func.func @_mm_affine_kernel(%arg0: i32, %arg1: memref<256x576xbf16, #tpu.memory_space<vmem>>, %arg2: memref<576x64xbf16, #tpu.memory_space<vmem>>, %arg3: memref<1x64xf32, #tpu.memory_space<vmem>>, %arg4: memref<1x64xf32, #tpu.memory_space<vmem>>, %arg5: memref<256x64xf32, #tpu.memory_space<vmem>>) attributes {dimension_semantics = [#tpu.dimension_semantics<parallel>], iteration_bounds = array<i64: 1>, scalar_prefetch = 0 : i64, scratch_operands = 0 : i64, tpu.core_type = #tpu.core_type<tc>, window_params = [{transform_indices = @transform_0, window_bounds = array<i64: 256, 576>}, {pipeline_mode = #tpu.pipeline_mode<synchronous>, transform_indices = @transform_1, window_bounds = array<i64: 576, 64>}, {pipeline_mode = #tpu.pipeline_mode<synchronous>, transform_indices = @transform_2, window_bounds = array<i64: 1, 64>}, {pipeline_mode = #tpu.pipeline_mode<synchronous>, transform_indices = @transform_3, window_bounds = array<i64: 1, 64>}, {transform_indices = @transform_4, window_bounds = array<i64: 256, 64>}]} {
    %c0 = arith.constant 0 : index
    %c0_0 = arith.constant 0 : index
    %0 = vector.load %arg1[%c0, %c0_0] : memref<256x576xbf16, #tpu.memory_space<vmem>>, vector<256x576xbf16>
    %c0_1 = arith.constant 0 : index
    %c0_2 = arith.constant 0 : index
    %1 = vector.load %arg2[%c0_1, %c0_2] : memref<576x64xbf16, #tpu.memory_space<vmem>>, vector<576x64xbf16>
    %cst = arith.constant dense<0.000000e+00> : vector<256x64xf32>
    %2 = tpu.matmul %0, %1, %cst {dimension_numbers = #tpu.dot_dimension_numbers<[1], [0], [0], [1], [0, 0, 1, 1], [], []>} : vector<256x576xbf16>, vector<576x64xbf16>, vector<256x64xf32> -> vector<256x64xf32>
    %c0_3 = arith.constant 0 : index
    %c0_4 = arith.constant 0 : index
    %3 = vector.load %arg3[%c0_3, %c0_4] : memref<1x64xf32, #tpu.memory_space<vmem>>, vector<1x64xf32>
    %4 = vector.broadcast %3 : vector<1x64xf32> to vector<256x64xf32>
    %5 = arith.mulf %2, %4 : vector<256x64xf32>
    %c0_5 = arith.constant 0 : index
    %c0_6 = arith.constant 0 : index
    %6 = vector.load %arg4[%c0_5, %c0_6] : memref<1x64xf32, #tpu.memory_space<vmem>>, vector<1x64xf32>
    %7 = vector.broadcast %6 : vector<1x64xf32> to vector<256x64xf32>
    %8 = arith.addf %5, %7 : vector<256x64xf32>
    %c0_7 = arith.constant 0 : index
    %c0_8 = arith.constant 0 : index
    %9 = vector.load %arg5[%c0_7, %c0_8] : memref<256x64xf32, #tpu.memory_space<vmem>>, vector<256x64xf32>
    tpu.vector_store %arg5[%c0_7, %c0_8], %8 {strides = array<i32>} : memref<256x64xf32, #tpu.memory_space<vmem>>, vector<256x64xf32>,
    return
  }
  func.func @transform_0(%arg0: i32) -> (i32, i32) {
    %c0_i32 = arith.constant 0 : i32
    %c0_i32_0 = arith.constant 0 : i32
    return %arg0, %c0_i32 : i32, i32
  }
  func.func @transform_1(%arg0: i32) -> (i32, i32) {
    %c0_i32 = arith.constant 0 : i32
    %c0_i32_0 = arith.constant 0 : i32
    %c0_i32_1 = arith.constant 0 : i32
    return %c0_i32, %c0_i32_0 : i32, i32
  }
  func.func @transform_2(%arg0: i32) -> (i32, i32) {
    %c0_i32 = arith.constant 0 : i32
    %c0_i32_0 = arith.constant 0 : i32
    %c0_i32_1 = arith.constant 0 : i32
    return %c0_i32, %c0_i32_0 : i32, i32
  }
  func.func @transform_3(%arg0: i32) -> (i32, i32) {
    %c0_i32 = arith.constant 0 : i32
    %c0_i32_0 = arith.constant 0 : i32
    %c0_i32_1 = arith.constant 0 : i32
    return %c0_i32, %c0_i32_0 : i32, i32
  }
  func.func @transform_4(%arg0: i32) -> (i32, i32) {
    %c0_i32 = arith.constant 0 : i32
    %c0_i32_0 = arith.constant 0 : i32
    return %arg0, %c0_i32 : i32, i32
  }
}

module attributes {stable_mosaic.version = 11 : i64} {
  func.func @_mm_affine_kernel(%arg0: i32, %arg1: memref<16x576xbf16, #tpu.memory_space<vmem>>, %arg2: memref<576x64xbf16, #tpu.memory_space<vmem>>, %arg3: memref<1x64xf32, #tpu.memory_space<vmem>>, %arg4: memref<1x64xf32, #tpu.memory_space<vmem>>, %arg5: memref<16x64xf32, #tpu.memory_space<vmem>>) attributes {dimension_semantics = [#tpu.dimension_semantics<parallel>], iteration_bounds = array<i64: 1>, scalar_prefetch = 0 : i64, scratch_operands = 0 : i64, tpu.core_type = #tpu.core_type<tc>, window_params = [{transform_indices = @transform_0, window_bounds = array<i64: 16, 576>}, {pipeline_mode = #tpu.pipeline_mode<synchronous>, transform_indices = @transform_1, window_bounds = array<i64: 576, 64>}, {pipeline_mode = #tpu.pipeline_mode<synchronous>, transform_indices = @transform_2, window_bounds = array<i64: 1, 64>}, {pipeline_mode = #tpu.pipeline_mode<synchronous>, transform_indices = @transform_3, window_bounds = array<i64: 1, 64>}, {transform_indices = @transform_4, window_bounds = array<i64: 16, 64>}]} {
    %c0 = arith.constant 0 : index
    %c0_0 = arith.constant 0 : index
    %0 = vector.load %arg1[%c0, %c0_0] : memref<16x576xbf16, #tpu.memory_space<vmem>>, vector<16x576xbf16>
    %c0_1 = arith.constant 0 : index
    %c0_2 = arith.constant 0 : index
    %1 = vector.load %arg2[%c0_1, %c0_2] : memref<576x64xbf16, #tpu.memory_space<vmem>>, vector<576x64xbf16>
    %cst = arith.constant dense<0.000000e+00> : vector<16x64xf32>
    %2 = tpu.matmul %0, %1, %cst {dimension_numbers = #tpu.dot_dimension_numbers<[1], [0], [0], [1], [0, 0, 1, 1], [], []>} : vector<16x576xbf16>, vector<576x64xbf16>, vector<16x64xf32> -> vector<16x64xf32>
    %c0_3 = arith.constant 0 : index
    %c0_4 = arith.constant 0 : index
    %3 = vector.load %arg3[%c0_3, %c0_4] : memref<1x64xf32, #tpu.memory_space<vmem>>, vector<1x64xf32>
    %4 = vector.broadcast %3 : vector<1x64xf32> to vector<16x64xf32>
    %5 = arith.mulf %2, %4 : vector<16x64xf32>
    %c0_5 = arith.constant 0 : index
    %c0_6 = arith.constant 0 : index
    %6 = vector.load %arg4[%c0_5, %c0_6] : memref<1x64xf32, #tpu.memory_space<vmem>>, vector<1x64xf32>
    %7 = vector.broadcast %6 : vector<1x64xf32> to vector<16x64xf32>
    %8 = arith.addf %5, %7 : vector<16x64xf32>
    %c0_7 = arith.constant 0 : index
    %c0_8 = arith.constant 0 : index
    %9 = vector.load %arg5[%c0_7, %c0_8] : memref<16x64xf32, #tpu.memory_space<vmem>>, vector<16x64xf32>
    tpu.vector_store %arg5[%c0_7, %c0_8], %8 {strides = array<i32>} : memref<16x64xf32, #tpu.memory_space<vmem>>, vector<16x64xf32>,
    return
  }
  func.func @transform_0(%arg0: i32) -> (i32, i32) {
    %c0_i32 = arith.constant 0 : i32
    %c0_i32_0 = arith.constant 0 : i32
    return %arg0, %c0_i32 : i32, i32
  }
  func.func @transform_1(%arg0: i32) -> (i32, i32) {
    %c0_i32 = arith.constant 0 : i32
    %c0_i32_0 = arith.constant 0 : i32
    %c0_i32_1 = arith.constant 0 : i32
    return %c0_i32, %c0_i32_0 : i32, i32
  }
  func.func @transform_2(%arg0: i32) -> (i32, i32) {
    %c0_i32 = arith.constant 0 : i32
    %c0_i32_0 = arith.constant 0 : i32
    %c0_i32_1 = arith.constant 0 : i32
    return %c0_i32, %c0_i32_0 : i32, i32
  }
  func.func @transform_3(%arg0: i32) -> (i32, i32) {
    %c0_i32 = arith.constant 0 : i32
    %c0_i32_0 = arith.constant 0 : i32
    %c0_i32_1 = arith.constant 0 : i32
    return %c0_i32, %c0_i32_0 : i32, i32
  }
  func.func @transform_4(%arg0: i32) -> (i32, i32) {
    %c0_i32 = arith.constant 0 : i32
    %c0_i32_0 = arith.constant 0 : i32
    return %arg0, %c0_i32 : i32, i32
  }
}

module attributes {stable_mosaic.version = 11 : i64} {
  func.func @_scgate_kernel(%arg0: i32, %arg1: memref<256x64xf32, #tpu.memory_space<vmem>>, %arg2: memref<256x64xf32, #tpu.memory_space<vmem>>, %arg3: memref<256x64xf32, #tpu.memory_space<vmem>>, %arg4: memref<256x64xf32, #tpu.memory_space<vmem>>) attributes {dimension_semantics = [#tpu.dimension_semantics<parallel>], iteration_bounds = array<i64: 1>, scalar_prefetch = 0 : i64, scratch_operands = 0 : i64, tpu.core_type = #tpu.core_type<tc>, window_params = [{transform_indices = @transform_0, window_bounds = array<i64: 256, 64>}, {transform_indices = @transform_1, window_bounds = array<i64: 256, 64>}, {transform_indices = @transform_2, window_bounds = array<i64: 256, 64>}, {transform_indices = @transform_3, window_bounds = array<i64: 256, 64>}]} {
    %c0 = arith.constant 0 : index
    %c0_0 = arith.constant 0 : index
    %0 = vector.load %arg3[%c0, %c0_0] : memref<256x64xf32, #tpu.memory_space<vmem>>, vector<256x64xf32>
    %c0_1 = arith.constant 0 : index
    %c0_2 = arith.constant 0 : index
    %1 = vector.load %arg1[%c0_1, %c0_2] : memref<256x64xf32, #tpu.memory_space<vmem>>, vector<256x64xf32>
    %c0_3 = arith.constant 0 : index
    %c0_4 = arith.constant 0 : index
    %2 = vector.load %arg2[%c0_3, %c0_4] : memref<256x64xf32, #tpu.memory_space<vmem>>, vector<256x64xf32>
    %3 = arith.addf %1, %2 : vector<256x64xf32>
    %4 = arith.negf %3 : vector<256x64xf32>
    %5 = math.exp %4 : vector<256x64xf32>
    %cst = arith.constant 1.000000e+00 : f32
    %6 = vector.broadcast %cst : f32 to vector<256x64xf32>
    %7 = arith.addf %6, %5 : vector<256x64xf32>
    %8 = arith.divf %6, %7 : vector<256x64xf32>
    %9 = arith.mulf %0, %8 : vector<256x64xf32>
    %c0_5 = arith.constant 0 : index
    %c0_6 = arith.constant 0 : index
    %10 = vector.load %arg4[%c0_5, %c0_6] : memref<256x64xf32, #tpu.memory_space<vmem>>, vector<256x64xf32>
    tpu.vector_store %arg4[%c0_5, %c0_6], %9 {strides = array<i32>} : memref<256x64xf32, #tpu.memory_space<vmem>>, vector<256x64xf32>,
    return
  }
  func.func @transform_0(%arg0: i32) -> (i32, i32) {
    %c0_i32 = arith.constant 0 : i32
    %c0_i32_0 = arith.constant 0 : i32
    return %arg0, %c0_i32 : i32, i32
  }
  func.func @transform_1(%arg0: i32) -> (i32, i32) {
    %c0_i32 = arith.constant 0 : i32
    %c0_i32_0 = arith.constant 0 : i32
    return %arg0, %c0_i32 : i32, i32
  }
  func.func @transform_2(%arg0: i32) -> (i32, i32) {
    %c0_i32 = arith.constant 0 : i32
    %c0_i32_0 = arith.constant 0 : i32
    return %arg0, %c0_i32 : i32, i32
  }
  func.func @transform_3(%arg0: i32) -> (i32, i32) {
    %c0_i32 = arith.constant 0 : i32
    %c0_i32_0 = arith.constant 0 : i32
    return %arg0, %c0_i32 : i32, i32
  }
}

module attributes {stable_mosaic.version = 11 : i64} {
  func.func @_mm_affine_kernel(%arg0: i32, %arg1: memref<256x576xbf16, #tpu.memory_space<vmem>>, %arg2: memref<576x64xbf16, #tpu.memory_space<vmem>>, %arg3: memref<1x64xf32, #tpu.memory_space<vmem>>, %arg4: memref<1x64xf32, #tpu.memory_space<vmem>>, %arg5: memref<256x64xf32, #tpu.memory_space<vmem>>) attributes {dimension_semantics = [#tpu.dimension_semantics<parallel>], iteration_bounds = array<i64: 1>, scalar_prefetch = 0 : i64, scratch_operands = 0 : i64, tpu.core_type = #tpu.core_type<tc>, window_params = [{transform_indices = @transform_0, window_bounds = array<i64: 256, 576>}, {pipeline_mode = #tpu.pipeline_mode<synchronous>, transform_indices = @transform_1, window_bounds = array<i64: 576, 64>}, {pipeline_mode = #tpu.pipeline_mode<synchronous>, transform_indices = @transform_2, window_bounds = array<i64: 1, 64>}, {pipeline_mode = #tpu.pipeline_mode<synchronous>, transform_indices = @transform_3, window_bounds = array<i64: 1, 64>}, {transform_indices = @transform_4, window_bounds = array<i64: 256, 64>}]} {
    %c0 = arith.constant 0 : index
    %c0_0 = arith.constant 0 : index
    %0 = vector.load %arg1[%c0, %c0_0] : memref<256x576xbf16, #tpu.memory_space<vmem>>, vector<256x576xbf16>
    %c0_1 = arith.constant 0 : index
    %c0_2 = arith.constant 0 : index
    %1 = vector.load %arg2[%c0_1, %c0_2] : memref<576x64xbf16, #tpu.memory_space<vmem>>, vector<576x64xbf16>
    %cst = arith.constant dense<0.000000e+00> : vector<256x64xf32>
    %2 = tpu.matmul %0, %1, %cst {dimension_numbers = #tpu.dot_dimension_numbers<[1], [0], [0], [1], [0, 0, 1, 1], [], []>} : vector<256x576xbf16>, vector<576x64xbf16>, vector<256x64xf32> -> vector<256x64xf32>
    %c0_3 = arith.constant 0 : index
    %c0_4 = arith.constant 0 : index
    %3 = vector.load %arg3[%c0_3, %c0_4] : memref<1x64xf32, #tpu.memory_space<vmem>>, vector<1x64xf32>
    %4 = vector.broadcast %3 : vector<1x64xf32> to vector<256x64xf32>
    %5 = arith.mulf %2, %4 : vector<256x64xf32>
    %c0_5 = arith.constant 0 : index
    %c0_6 = arith.constant 0 : index
    %6 = vector.load %arg4[%c0_5, %c0_6] : memref<1x64xf32, #tpu.memory_space<vmem>>, vector<1x64xf32>
    %7 = vector.broadcast %6 : vector<1x64xf32> to vector<256x64xf32>
    %8 = arith.addf %5, %7 : vector<256x64xf32>
    %cst_7 = arith.constant 0.000000e+00 : f32
    %9 = vector.broadcast %cst_7 : f32 to vector<256x64xf32>
    %10 = arith.maximumf %8, %9 : vector<256x64xf32>
    %c0_8 = arith.constant 0 : index
    %c0_9 = arith.constant 0 : index
    %11 = vector.load %arg5[%c0_8, %c0_9] : memref<256x64xf32, #tpu.memory_space<vmem>>, vector<256x64xf32>
    tpu.vector_store %arg5[%c0_8, %c0_9], %10 {strides = array<i32>} : memref<256x64xf32, #tpu.memory_space<vmem>>, vector<256x64xf32>,
    return
  }
  func.func @transform_0(%arg0: i32) -> (i32, i32) {
    %c0_i32 = arith.constant 0 : i32
    %c0_i32_0 = arith.constant 0 : i32
    return %arg0, %c0_i32 : i32, i32
  }
  func.func @transform_1(%arg0: i32) -> (i32, i32) {
    %c0_i32 = arith.constant 0 : i32
    %c0_i32_0 = arith.constant 0 : i32
    %c0_i32_1 = arith.constant 0 : i32
    return %c0_i32, %c0_i32_0 : i32, i32
  }
  func.func @transform_2(%arg0: i32) -> (i32, i32) {
    %c0_i32 = arith.constant 0 : i32
    %c0_i32_0 = arith.constant 0 : i32
    %c0_i32_1 = arith.constant 0 : i32
    return %c0_i32, %c0_i32_0 : i32, i32
  }
  func.func @transform_3(%arg0: i32) -> (i32, i32) {
    %c0_i32 = arith.constant 0 : i32
    %c0_i32_0 = arith.constant 0 : i32
    %c0_i32_1 = arith.constant 0 : i32
    return %c0_i32, %c0_i32_0 : i32, i32
  }
  func.func @transform_4(%arg0: i32) -> (i32, i32) {
    %c0_i32 = arith.constant 0 : i32
    %c0_i32_0 = arith.constant 0 : i32
    return %arg0, %c0_i32 : i32, i32
  }
}

module attributes {stable_mosaic.version = 11 : i64} {
  func.func @_mm_affine_kernel(%arg0: i32, %arg1: memref<256x1152xbf16, #tpu.memory_space<vmem>>, %arg2: memref<1152x64xbf16, #tpu.memory_space<vmem>>, %arg3: memref<1x64xf32, #tpu.memory_space<vmem>>, %arg4: memref<1x64xf32, #tpu.memory_space<vmem>>, %arg5: memref<256x64xf32, #tpu.memory_space<vmem>>) attributes {dimension_semantics = [#tpu.dimension_semantics<parallel>], iteration_bounds = array<i64: 1>, scalar_prefetch = 0 : i64, scratch_operands = 0 : i64, tpu.core_type = #tpu.core_type<tc>, window_params = [{transform_indices = @transform_0, window_bounds = array<i64: 256, 1152>}, {pipeline_mode = #tpu.pipeline_mode<synchronous>, transform_indices = @transform_1, window_bounds = array<i64: 1152, 64>}, {pipeline_mode = #tpu.pipeline_mode<synchronous>, transform_indices = @transform_2, window_bounds = array<i64: 1, 64>}, {pipeline_mode = #tpu.pipeline_mode<synchronous>, transform_indices = @transform_3, window_bounds = array<i64: 1, 64>}, {transform_indices = @transform_4, window_bounds = array<i64: 256, 64>}]} {
    %c0 = arith.constant 0 : index
    %c0_0 = arith.constant 0 : index
    %0 = vector.load %arg1[%c0, %c0_0] : memref<256x1152xbf16, #tpu.memory_space<vmem>>, vector<256x1152xbf16>
    %c0_1 = arith.constant 0 : index
    %c0_2 = arith.constant 0 : index
    %1 = vector.load %arg2[%c0_1, %c0_2] : memref<1152x64xbf16, #tpu.memory_space<vmem>>, vector<1152x64xbf16>
    %cst = arith.constant dense<0.000000e+00> : vector<256x64xf32>
    %2 = tpu.matmul %0, %1, %cst {dimension_numbers = #tpu.dot_dimension_numbers<[1], [0], [0], [1], [0, 0, 1, 1], [], []>} : vector<256x1152xbf16>, vector<1152x64xbf16>, vector<256x64xf32> -> vector<256x64xf32>
    %c0_3 = arith.constant 0 : index
    %c0_4 = arith.constant 0 : index
    %3 = vector.load %arg3[%c0_3, %c0_4] : memref<1x64xf32, #tpu.memory_space<vmem>>, vector<1x64xf32>
    %4 = vector.broadcast %3 : vector<1x64xf32> to vector<256x64xf32>
    %5 = arith.mulf %2, %4 : vector<256x64xf32>
    %c0_5 = arith.constant 0 : index
    %c0_6 = arith.constant 0 : index
    %6 = vector.load %arg4[%c0_5, %c0_6] : memref<1x64xf32, #tpu.memory_space<vmem>>, vector<1x64xf32>
    %7 = vector.broadcast %6 : vector<1x64xf32> to vector<256x64xf32>
    %8 = arith.addf %5, %7 : vector<256x64xf32>
    %cst_7 = arith.constant 0.000000e+00 : f32
    %9 = vector.broadcast %cst_7 : f32 to vector<256x64xf32>
    %10 = arith.maximumf %8, %9 : vector<256x64xf32>
    %c0_8 = arith.constant 0 : index
    %c0_9 = arith.constant 0 : index
    %11 = vector.load %arg5[%c0_8, %c0_9] : memref<256x64xf32, #tpu.memory_space<vmem>>, vector<256x64xf32>
    tpu.vector_store %arg5[%c0_8, %c0_9], %10 {strides = array<i32>} : memref<256x64xf32, #tpu.memory_space<vmem>>, vector<256x64xf32>,
    return
  }
  func.func @transform_0(%arg0: i32) -> (i32, i32) {
    %c0_i32 = arith.constant 0 : i32
    %c0_i32_0 = arith.constant 0 : i32
    return %arg0, %c0_i32 : i32, i32
  }
  func.func @transform_1(%arg0: i32) -> (i32, i32) {
    %c0_i32 = arith.constant 0 : i32
    %c0_i32_0 = arith.constant 0 : i32
    %c0_i32_1 = arith.constant 0 : i32
    return %c0_i32, %c0_i32_0 : i32, i32
  }
  func.func @transform_2(%arg0: i32) -> (i32, i32) {
    %c0_i32 = arith.constant 0 : i32
    %c0_i32_0 = arith.constant 0 : i32
    %c0_i32_1 = arith.constant 0 : i32
    return %c0_i32, %c0_i32_0 : i32, i32
  }
  func.func @transform_3(%arg0: i32) -> (i32, i32) {
    %c0_i32 = arith.constant 0 : i32
    %c0_i32_0 = arith.constant 0 : i32
    %c0_i32_1 = arith.constant 0 : i32
    return %c0_i32, %c0_i32_0 : i32, i32
  }
  func.func @transform_4(%arg0: i32) -> (i32, i32) {
    %c0_i32 = arith.constant 0 : i32
    %c0_i32_0 = arith.constant 0 : i32
    return %arg0, %c0_i32 : i32, i32
  }
}

module attributes {stable_mosaic.version = 11 : i64} {
  func.func @_sru_gate_kernel(%arg0: i32, %arg1: memref<64x64xf32, #tpu.memory_space<vmem>>, %arg2: memref<64x64xf32, #tpu.memory_space<vmem>>, %arg3: memref<1x64xf32, #tpu.memory_space<vmem>>, %arg4: memref<1x64xf32, #tpu.memory_space<vmem>>, %arg5: memref<64x64xf32, #tpu.memory_space<vmem>>, %arg6: memref<64x64xf32, #tpu.memory_space<vmem>>) attributes {dimension_semantics = [#tpu.dimension_semantics<parallel>], iteration_bounds = array<i64: 1>, scalar_prefetch = 0 : i64, scratch_operands = 0 : i64, tpu.core_type = #tpu.core_type<tc>, window_params = [{transform_indices = @transform_0, window_bounds = array<i64: 64, 64>}, {transform_indices = @transform_1, window_bounds = array<i64: 64, 64>}, {pipeline_mode = #tpu.pipeline_mode<synchronous>, transform_indices = @transform_2, window_bounds = array<i64: 1, 64>}, {pipeline_mode = #tpu.pipeline_mode<synchronous>, transform_indices = @transform_3, window_bounds = array<i64: 1, 64>}, {transform_indices = @transform_4, window_bounds = array<i64: 64, 64>}, {transform_indices = @transform_5, window_bounds = array<i64: 64, 64>}]} {
    %c0 = arith.constant 0 : index
    %c0_0 = arith.constant 0 : index
    %0 = vector.load %arg2[%c0, %c0_0] : memref<64x64xf32, #tpu.memory_space<vmem>>, vector<64x64xf32>
    %c0_1 = arith.constant 0 : index
    %c0_2 = arith.constant 0 : index
    %1 = vector.load %arg3[%c0_1, %c0_2] : memref<1x64xf32, #tpu.memory_space<vmem>>, vector<1x64xf32>
    %2 = vector.broadcast %1 : vector<1x64xf32> to vector<64x64xf32>
    %3 = arith.mulf %0, %2 : vector<64x64xf32>
    %c0_3 = arith.constant 0 : index
    %c0_4 = arith.constant 0 : index
    %4 = vector.load %arg4[%c0_3, %c0_4] : memref<1x64xf32, #tpu.memory_space<vmem>>, vector<1x64xf32>
    %5 = vector.broadcast %4 : vector<1x64xf32> to vector<64x64xf32>
    %6 = arith.addf %3, %5 : vector<64x64xf32>
    %7 = arith.negf %6 : vector<64x64xf32>
    %8 = math.exp %7 : vector<64x64xf32>
    %cst = arith.constant 1.000000e+00 : f32
    %9 = vector.broadcast %cst : f32 to vector<64x64xf32>
    %10 = arith.addf %9, %8 : vector<64x64xf32>
    %11 = arith.divf %9, %10 : vector<64x64xf32>
    %cst_5 = arith.constant 5.000000e-01 : f32
    %12 = vector.broadcast %cst_5 : f32 to vector<64x64xf32>
    %13 = arith.cmpf ogt, %11, %12 : vector<64x64xf32>
    %c0_6 = arith.constant 0 : index
    %c0_7 = arith.constant 0 : index
    %14 = vector.load %arg1[%c0_6, %c0_7] : memref<64x64xf32, #tpu.memory_space<vmem>>, vector<64x64xf32>
    %cst_8 = arith.constant 1.000000e+00 : f32
    %15 = vector.broadcast %cst_8 : f32 to vector<64x64xf32>
    %16 = arith.select %13, %15, %11 : vector<64x64xi1>, vector<64x64xf32>
    %17 = arith.mulf %16, %14 : vector<64x64xf32>
    %c0_9 = arith.constant 0 : index
    %c0_10 = arith.constant 0 : index
    %18 = vector.load %arg5[%c0_9, %c0_10] : memref<64x64xf32, #tpu.memory_space<vmem>>, vector<64x64xf32>
    tpu.vector_store %arg5[%c0_9, %c0_10], %17 {strides = array<i32>} : memref<64x64xf32, #tpu.memory_space<vmem>>, vector<64x64xf32>,
    %cst_11 = arith.constant 0.000000e+00 : f32
    %19 = vector.broadcast %cst_11 : f32 to vector<64x64xf32>
    %20 = arith.select %13, %19, %11 : vector<64x64xi1>, vector<64x64xf32>
    %21 = arith.mulf %20, %14 : vector<64x64xf32>
    %c0_12 = arith.constant 0 : index
    %c0_13 = arith.constant 0 : index
    %22 = vector.load %arg6[%c0_12, %c0_13] : memref<64x64xf32, #tpu.memory_space<vmem>>, vector<64x64xf32>
    tpu.vector_store %arg6[%c0_12, %c0_13], %21 {strides = array<i32>} : memref<64x64xf32, #tpu.memory_space<vmem>>, vector<64x64xf32>,
    return
  }
  func.func @transform_0(%arg0: i32) -> (i32, i32) {
    %c0_i32 = arith.constant 0 : i32
    %c0_i32_0 = arith.constant 0 : i32
    return %arg0, %c0_i32 : i32, i32
  }
  func.func @transform_1(%arg0: i32) -> (i32, i32) {
    %c0_i32 = arith.constant 0 : i32
    %c0_i32_0 = arith.constant 0 : i32
    return %arg0, %c0_i32 : i32, i32
  }
  func.func @transform_2(%arg0: i32) -> (i32, i32) {
    %c0_i32 = arith.constant 0 : i32
    %c0_i32_0 = arith.constant 0 : i32
    %c0_i32_1 = arith.constant 0 : i32
    return %c0_i32, %c0_i32_0 : i32, i32
  }
  func.func @transform_3(%arg0: i32) -> (i32, i32) {
    %c0_i32 = arith.constant 0 : i32
    %c0_i32_0 = arith.constant 0 : i32
    %c0_i32_1 = arith.constant 0 : i32
    return %c0_i32, %c0_i32_0 : i32, i32
  }
  func.func @transform_4(%arg0: i32) -> (i32, i32) {
    %c0_i32 = arith.constant 0 : i32
    %c0_i32_0 = arith.constant 0 : i32
    return %arg0, %c0_i32 : i32, i32
  }
  func.func @transform_5(%arg0: i32) -> (i32, i32) {
    %c0_i32 = arith.constant 0 : i32
    %c0_i32_0 = arith.constant 0 : i32
    return %arg0, %c0_i32 : i32, i32
  }
}

module attributes {stable_mosaic.version = 11 : i64} {
  func.func @_mm_affine_kernel(%arg0: i32, %arg1: memref<64x64xbf16, #tpu.memory_space<vmem>>, %arg2: memref<64x32xbf16, #tpu.memory_space<vmem>>, %arg3: memref<1x32xf32, #tpu.memory_space<vmem>>, %arg4: memref<1x32xf32, #tpu.memory_space<vmem>>, %arg5: memref<64x32xf32, #tpu.memory_space<vmem>>) attributes {dimension_semantics = [#tpu.dimension_semantics<parallel>], iteration_bounds = array<i64: 1>, scalar_prefetch = 0 : i64, scratch_operands = 0 : i64, tpu.core_type = #tpu.core_type<tc>, window_params = [{transform_indices = @transform_0, window_bounds = array<i64: 64, 64>}, {pipeline_mode = #tpu.pipeline_mode<synchronous>, transform_indices = @transform_1, window_bounds = array<i64: 64, 32>}, {pipeline_mode = #tpu.pipeline_mode<synchronous>, transform_indices = @transform_2, window_bounds = array<i64: 1, 32>}, {pipeline_mode = #tpu.pipeline_mode<synchronous>, transform_indices = @transform_3, window_bounds = array<i64: 1, 32>}, {transform_indices = @transform_4, window_bounds = array<i64: 64, 32>}]} {
    %c0 = arith.constant 0 : index
    %c0_0 = arith.constant 0 : index
    %0 = vector.load %arg1[%c0, %c0_0] : memref<64x64xbf16, #tpu.memory_space<vmem>>, vector<64x64xbf16>
    %c0_1 = arith.constant 0 : index
    %c0_2 = arith.constant 0 : index
    %1 = vector.load %arg2[%c0_1, %c0_2] : memref<64x32xbf16, #tpu.memory_space<vmem>>, vector<64x32xbf16>
    %cst = arith.constant dense<0.000000e+00> : vector<64x32xf32>
    %2 = tpu.matmul %0, %1, %cst {dimension_numbers = #tpu.dot_dimension_numbers<[1], [0], [0], [1], [0, 0, 1, 1], [], []>} : vector<64x64xbf16>, vector<64x32xbf16>, vector<64x32xf32> -> vector<64x32xf32>
    %c0_3 = arith.constant 0 : index
    %c0_4 = arith.constant 0 : index
    %3 = vector.load %arg3[%c0_3, %c0_4] : memref<1x32xf32, #tpu.memory_space<vmem>>, vector<1x32xf32>
    %4 = vector.broadcast %3 : vector<1x32xf32> to vector<64x32xf32>
    %5 = arith.mulf %2, %4 : vector<64x32xf32>
    %c0_5 = arith.constant 0 : index
    %c0_6 = arith.constant 0 : index
    %6 = vector.load %arg4[%c0_5, %c0_6] : memref<1x32xf32, #tpu.memory_space<vmem>>, vector<1x32xf32>
    %7 = vector.broadcast %6 : vector<1x32xf32> to vector<64x32xf32>
    %8 = arith.addf %5, %7 : vector<64x32xf32>
    %c0_7 = arith.constant 0 : index
    %c0_8 = arith.constant 0 : index
    %9 = vector.load %arg5[%c0_7, %c0_8] : memref<64x32xf32, #tpu.memory_space<vmem>>, vector<64x32xf32>
    tpu.vector_store %arg5[%c0_7, %c0_8], %8 {strides = array<i32>} : memref<64x32xf32, #tpu.memory_space<vmem>>, vector<64x32xf32>,
    return
  }
  func.func @transform_0(%arg0: i32) -> (i32, i32) {
    %c0_i32 = arith.constant 0 : i32
    %c0_i32_0 = arith.constant 0 : i32
    return %arg0, %c0_i32 : i32, i32
  }
  func.func @transform_1(%arg0: i32) -> (i32, i32) {
    %c0_i32 = arith.constant 0 : i32
    %c0_i32_0 = arith.constant 0 : i32
    %c0_i32_1 = arith.constant 0 : i32
    return %c0_i32, %c0_i32_0 : i32, i32
  }
  func.func @transform_2(%arg0: i32) -> (i32, i32) {
    %c0_i32 = arith.constant 0 : i32
    %c0_i32_0 = arith.constant 0 : i32
    %c0_i32_1 = arith.constant 0 : i32
    return %c0_i32, %c0_i32_0 : i32, i32
  }
  func.func @transform_3(%arg0: i32) -> (i32, i32) {
    %c0_i32 = arith.constant 0 : i32
    %c0_i32_0 = arith.constant 0 : i32
    %c0_i32_1 = arith.constant 0 : i32
    return %c0_i32, %c0_i32_0 : i32, i32
  }
  func.func @transform_4(%arg0: i32) -> (i32, i32) {
    %c0_i32 = arith.constant 0 : i32
    %c0_i32_0 = arith.constant 0 : i32
    return %arg0, %c0_i32 : i32, i32
  }
}

module attributes {stable_mosaic.version = 11 : i64} {
  func.func @_mm_affine_kernel(%arg0: i32, %arg1: memref<64x144xbf16, #tpu.memory_space<vmem>>, %arg2: memref<144x64xbf16, #tpu.memory_space<vmem>>, %arg3: memref<1x64xf32, #tpu.memory_space<vmem>>, %arg4: memref<1x64xf32, #tpu.memory_space<vmem>>, %arg5: memref<64x64xf32, #tpu.memory_space<vmem>>) attributes {dimension_semantics = [#tpu.dimension_semantics<parallel>], iteration_bounds = array<i64: 1>, scalar_prefetch = 0 : i64, scratch_operands = 0 : i64, tpu.core_type = #tpu.core_type<tc>, window_params = [{transform_indices = @transform_0, window_bounds = array<i64: 64, 144>}, {pipeline_mode = #tpu.pipeline_mode<synchronous>, transform_indices = @transform_1, window_bounds = array<i64: 144, 64>}, {pipeline_mode = #tpu.pipeline_mode<synchronous>, transform_indices = @transform_2, window_bounds = array<i64: 1, 64>}, {pipeline_mode = #tpu.pipeline_mode<synchronous>, transform_indices = @transform_3, window_bounds = array<i64: 1, 64>}, {transform_indices = @transform_4, window_bounds = array<i64: 64, 64>}]} {
    %c0 = arith.constant 0 : index
    %c0_0 = arith.constant 0 : index
    %0 = vector.load %arg1[%c0, %c0_0] : memref<64x144xbf16, #tpu.memory_space<vmem>>, vector<64x144xbf16>
    %c0_1 = arith.constant 0 : index
    %c0_2 = arith.constant 0 : index
    %1 = vector.load %arg2[%c0_1, %c0_2] : memref<144x64xbf16, #tpu.memory_space<vmem>>, vector<144x64xbf16>
    %cst = arith.constant dense<0.000000e+00> : vector<64x64xf32>
    %2 = tpu.matmul %0, %1, %cst {dimension_numbers = #tpu.dot_dimension_numbers<[1], [0], [0], [1], [0, 0, 1, 1], [], []>} : vector<64x144xbf16>, vector<144x64xbf16>, vector<64x64xf32> -> vector<64x64xf32>
    %c0_3 = arith.constant 0 : index
    %c0_4 = arith.constant 0 : index
    %3 = vector.load %arg3[%c0_3, %c0_4] : memref<1x64xf32, #tpu.memory_space<vmem>>, vector<1x64xf32>
    %4 = vector.broadcast %3 : vector<1x64xf32> to vector<64x64xf32>
    %5 = arith.mulf %2, %4 : vector<64x64xf32>
    %c0_5 = arith.constant 0 : index
    %c0_6 = arith.constant 0 : index
    %6 = vector.load %arg4[%c0_5, %c0_6] : memref<1x64xf32, #tpu.memory_space<vmem>>, vector<1x64xf32>
    %7 = vector.broadcast %6 : vector<1x64xf32> to vector<64x64xf32>
    %8 = arith.addf %5, %7 : vector<64x64xf32>
    %c0_7 = arith.constant 0 : index
    %c0_8 = arith.constant 0 : index
    %9 = vector.load %arg5[%c0_7, %c0_8] : memref<64x64xf32, #tpu.memory_space<vmem>>, vector<64x64xf32>
    tpu.vector_store %arg5[%c0_7, %c0_8], %8 {strides = array<i32>} : memref<64x64xf32, #tpu.memory_space<vmem>>, vector<64x64xf32>,
    return
  }
  func.func @transform_0(%arg0: i32) -> (i32, i32) {
    %c0_i32 = arith.constant 0 : i32
    %c0_i32_0 = arith.constant 0 : i32
    return %arg0, %c0_i32 : i32, i32
  }
  func.func @transform_1(%arg0: i32) -> (i32, i32) {
    %c0_i32 = arith.constant 0 : i32
    %c0_i32_0 = arith.constant 0 : i32
    %c0_i32_1 = arith.constant 0 : i32
    return %c0_i32, %c0_i32_0 : i32, i32
  }
  func.func @transform_2(%arg0: i32) -> (i32, i32) {
    %c0_i32 = arith.constant 0 : i32
    %c0_i32_0 = arith.constant 0 : i32
    %c0_i32_1 = arith.constant 0 : i32
    return %c0_i32, %c0_i32_0 : i32, i32
  }
  func.func @transform_3(%arg0: i32) -> (i32, i32) {
    %c0_i32 = arith.constant 0 : i32
    %c0_i32_0 = arith.constant 0 : i32
    %c0_i32_1 = arith.constant 0 : i32
    return %c0_i32, %c0_i32_0 : i32, i32
  }
  func.func @transform_4(%arg0: i32) -> (i32, i32) {
    %c0_i32 = arith.constant 0 : i32
    %c0_i32_0 = arith.constant 0 : i32
    return %arg0, %c0_i32 : i32, i32
  }
}

module attributes {stable_mosaic.version = 11 : i64} {
  func.func @_mm_affine_kernel(%arg0: i32, %arg1: memref<64x16xbf16, #tpu.memory_space<vmem>>, %arg2: memref<16x48xbf16, #tpu.memory_space<vmem>>, %arg3: memref<1x48xf32, #tpu.memory_space<vmem>>, %arg4: memref<1x48xf32, #tpu.memory_space<vmem>>, %arg5: memref<64x48xf32, #tpu.memory_space<vmem>>) attributes {dimension_semantics = [#tpu.dimension_semantics<parallel>], iteration_bounds = array<i64: 1>, scalar_prefetch = 0 : i64, scratch_operands = 0 : i64, tpu.core_type = #tpu.core_type<tc>, window_params = [{transform_indices = @transform_0, window_bounds = array<i64: 64, 16>}, {pipeline_mode = #tpu.pipeline_mode<synchronous>, transform_indices = @transform_1, window_bounds = array<i64: 16, 48>}, {pipeline_mode = #tpu.pipeline_mode<synchronous>, transform_indices = @transform_2, window_bounds = array<i64: 1, 48>}, {pipeline_mode = #tpu.pipeline_mode<synchronous>, transform_indices = @transform_3, window_bounds = array<i64: 1, 48>}, {transform_indices = @transform_4, window_bounds = array<i64: 64, 48>}]} {
    %c0 = arith.constant 0 : index
    %c0_0 = arith.constant 0 : index
    %0 = vector.load %arg1[%c0, %c0_0] : memref<64x16xbf16, #tpu.memory_space<vmem>>, vector<64x16xbf16>
    %c0_1 = arith.constant 0 : index
    %c0_2 = arith.constant 0 : index
    %1 = vector.load %arg2[%c0_1, %c0_2] : memref<16x48xbf16, #tpu.memory_space<vmem>>, vector<16x48xbf16>
    %cst = arith.constant dense<0.000000e+00> : vector<64x48xf32>
    %2 = tpu.matmul %0, %1, %cst {dimension_numbers = #tpu.dot_dimension_numbers<[1], [0], [0], [1], [0, 0, 1, 1], [], []>} : vector<64x16xbf16>, vector<16x48xbf16>, vector<64x48xf32> -> vector<64x48xf32>
    %c0_3 = arith.constant 0 : index
    %c0_4 = arith.constant 0 : index
    %3 = vector.load %arg3[%c0_3, %c0_4] : memref<1x48xf32, #tpu.memory_space<vmem>>, vector<1x48xf32>
    %4 = vector.broadcast %3 : vector<1x48xf32> to vector<64x48xf32>
    %5 = arith.mulf %2, %4 : vector<64x48xf32>
    %c0_5 = arith.constant 0 : index
    %c0_6 = arith.constant 0 : index
    %6 = vector.load %arg4[%c0_5, %c0_6] : memref<1x48xf32, #tpu.memory_space<vmem>>, vector<1x48xf32>
    %7 = vector.broadcast %6 : vector<1x48xf32> to vector<64x48xf32>
    %8 = arith.addf %5, %7 : vector<64x48xf32>
    %c0_7 = arith.constant 0 : index
    %c0_8 = arith.constant 0 : index
    %9 = vector.load %arg5[%c0_7, %c0_8] : memref<64x48xf32, #tpu.memory_space<vmem>>, vector<64x48xf32>
    tpu.vector_store %arg5[%c0_7, %c0_8], %8 {strides = array<i32>} : memref<64x48xf32, #tpu.memory_space<vmem>>, vector<64x48xf32>,
    return
  }
  func.func @transform_0(%arg0: i32) -> (i32, i32) {
    %c0_i32 = arith.constant 0 : i32
    %c0_i32_0 = arith.constant 0 : i32
    return %arg0, %c0_i32 : i32, i32
  }
  func.func @transform_1(%arg0: i32) -> (i32, i32) {
    %c0_i32 = arith.constant 0 : i32
    %c0_i32_0 = arith.constant 0 : i32
    %c0_i32_1 = arith.constant 0 : i32
    return %c0_i32, %c0_i32_0 : i32, i32
  }
  func.func @transform_2(%arg0: i32) -> (i32, i32) {
    %c0_i32 = arith.constant 0 : i32
    %c0_i32_0 = arith.constant 0 : i32
    %c0_i32_1 = arith.constant 0 : i32
    return %c0_i32, %c0_i32_0 : i32, i32
  }
  func.func @transform_3(%arg0: i32) -> (i32, i32) {
    %c0_i32 = arith.constant 0 : i32
    %c0_i32_0 = arith.constant 0 : i32
    %c0_i32_1 = arith.constant 0 : i32
    return %c0_i32, %c0_i32_0 : i32, i32
  }
  func.func @transform_4(%arg0: i32) -> (i32, i32) {
    %c0_i32 = arith.constant 0 : i32
    %c0_i32_0 = arith.constant 0 : i32
    return %arg0, %c0_i32 : i32, i32
  }
}

module attributes {stable_mosaic.version = 11 : i64} {
  func.func @_affine_kernel(%arg0: i32, %arg1: memref<64x64xf32, #tpu.memory_space<vmem>>, %arg2: memref<1x64xf32, #tpu.memory_space<vmem>>, %arg3: memref<1x64xf32, #tpu.memory_space<vmem>>, %arg4: memref<64x64xf32, #tpu.memory_space<vmem>>) attributes {dimension_semantics = [#tpu.dimension_semantics<parallel>], iteration_bounds = array<i64: 1>, scalar_prefetch = 0 : i64, scratch_operands = 0 : i64, tpu.core_type = #tpu.core_type<tc>, window_params = [{transform_indices = @transform_0, window_bounds = array<i64: 64, 64>}, {pipeline_mode = #tpu.pipeline_mode<synchronous>, transform_indices = @transform_1, window_bounds = array<i64: 1, 64>}, {pipeline_mode = #tpu.pipeline_mode<synchronous>, transform_indices = @transform_2, window_bounds = array<i64: 1, 64>}, {transform_indices = @transform_3, window_bounds = array<i64: 64, 64>}]} {
    %c0 = arith.constant 0 : index
    %c0_0 = arith.constant 0 : index
    %0 = vector.load %arg1[%c0, %c0_0] : memref<64x64xf32, #tpu.memory_space<vmem>>, vector<64x64xf32>
    %c0_1 = arith.constant 0 : index
    %c0_2 = arith.constant 0 : index
    %1 = vector.load %arg2[%c0_1, %c0_2] : memref<1x64xf32, #tpu.memory_space<vmem>>, vector<1x64xf32>
    %2 = vector.broadcast %1 : vector<1x64xf32> to vector<64x64xf32>
    %3 = arith.mulf %0, %2 : vector<64x64xf32>
    %c0_3 = arith.constant 0 : index
    %c0_4 = arith.constant 0 : index
    %4 = vector.load %arg3[%c0_3, %c0_4] : memref<1x64xf32, #tpu.memory_space<vmem>>, vector<1x64xf32>
    %5 = vector.broadcast %4 : vector<1x64xf32> to vector<64x64xf32>
    %6 = arith.addf %3, %5 : vector<64x64xf32>
    %cst = arith.constant 0.000000e+00 : f32
    %7 = vector.broadcast %cst : f32 to vector<64x64xf32>
    %8 = arith.maximumf %6, %7 : vector<64x64xf32>
    %c0_5 = arith.constant 0 : index
    %c0_6 = arith.constant 0 : index
    %9 = vector.load %arg4[%c0_5, %c0_6] : memref<64x64xf32, #tpu.memory_space<vmem>>, vector<64x64xf32>
    tpu.vector_store %arg4[%c0_5, %c0_6], %8 {strides = array<i32>} : memref<64x64xf32, #tpu.memory_space<vmem>>, vector<64x64xf32>,
    return
  }
  func.func @transform_0(%arg0: i32) -> (i32, i32) {
    %c0_i32 = arith.constant 0 : i32
    %c0_i32_0 = arith.constant 0 : i32
    return %arg0, %c0_i32 : i32, i32
  }
  func.func @transform_1(%arg0: i32) -> (i32, i32) {
    %c0_i32 = arith.constant 0 : i32
    %c0_i32_0 = arith.constant 0 : i32
    %c0_i32_1 = arith.constant 0 : i32
    return %c0_i32, %c0_i32_0 : i32, i32
  }
  func.func @transform_2(%arg0: i32) -> (i32, i32) {
    %c0_i32 = arith.constant 0 : i32
    %c0_i32_0 = arith.constant 0 : i32
    %c0_i32_1 = arith.constant 0 : i32
    return %c0_i32, %c0_i32_0 : i32, i32
  }
  func.func @transform_3(%arg0: i32) -> (i32, i32) {
    %c0_i32 = arith.constant 0 : i32
    %c0_i32_0 = arith.constant 0 : i32
    return %arg0, %c0_i32 : i32, i32
  }
}

module attributes {stable_mosaic.version = 11 : i64} {
  func.func @_res_bn_relu_kernel(%arg0: i32, %arg1: memref<64x64xf32, #tpu.memory_space<vmem>>, %arg2: memref<64x64xf32, #tpu.memory_space<vmem>>, %arg3: memref<1x64xf32, #tpu.memory_space<vmem>>, %arg4: memref<1x64xf32, #tpu.memory_space<vmem>>, %arg5: memref<64x64xf32, #tpu.memory_space<vmem>>) attributes {dimension_semantics = [#tpu.dimension_semantics<parallel>], iteration_bounds = array<i64: 1>, scalar_prefetch = 0 : i64, scratch_operands = 0 : i64, tpu.core_type = #tpu.core_type<tc>, window_params = [{transform_indices = @transform_0, window_bounds = array<i64: 64, 64>}, {transform_indices = @transform_1, window_bounds = array<i64: 64, 64>}, {pipeline_mode = #tpu.pipeline_mode<synchronous>, transform_indices = @transform_2, window_bounds = array<i64: 1, 64>}, {pipeline_mode = #tpu.pipeline_mode<synchronous>, transform_indices = @transform_3, window_bounds = array<i64: 1, 64>}, {transform_indices = @transform_4, window_bounds = array<i64: 64, 64>}]} {
    %c0 = arith.constant 0 : index
    %c0_0 = arith.constant 0 : index
    %0 = vector.load %arg1[%c0, %c0_0] : memref<64x64xf32, #tpu.memory_space<vmem>>, vector<64x64xf32>
    %c0_1 = arith.constant 0 : index
    %c0_2 = arith.constant 0 : index
    %1 = vector.load %arg3[%c0_1, %c0_2] : memref<1x64xf32, #tpu.memory_space<vmem>>, vector<1x64xf32>
    %2 = vector.broadcast %1 : vector<1x64xf32> to vector<64x64xf32>
    %3 = arith.mulf %0, %2 : vector<64x64xf32>
    %c0_3 = arith.constant 0 : index
    %c0_4 = arith.constant 0 : index
    %4 = vector.load %arg4[%c0_3, %c0_4] : memref<1x64xf32, #tpu.memory_space<vmem>>, vector<1x64xf32>
    %5 = vector.broadcast %4 : vector<1x64xf32> to vector<64x64xf32>
    %6 = arith.addf %3, %5 : vector<64x64xf32>
    %c0_5 = arith.constant 0 : index
    %c0_6 = arith.constant 0 : index
    %7 = vector.load %arg2[%c0_5, %c0_6] : memref<64x64xf32, #tpu.memory_space<vmem>>, vector<64x64xf32>
    %8 = arith.addf %6, %7 : vector<64x64xf32>
    %cst = arith.constant 0.000000e+00 : f32
    %9 = vector.broadcast %cst : f32 to vector<64x64xf32>
    %10 = arith.maximumf %8, %9 : vector<64x64xf32>
    %c0_7 = arith.constant 0 : index
    %c0_8 = arith.constant 0 : index
    %11 = vector.load %arg5[%c0_7, %c0_8] : memref<64x64xf32, #tpu.memory_space<vmem>>, vector<64x64xf32>
    tpu.vector_store %arg5[%c0_7, %c0_8], %10 {strides = array<i32>} : memref<64x64xf32, #tpu.memory_space<vmem>>, vector<64x64xf32>,
    return
  }
  func.func @transform_0(%arg0: i32) -> (i32, i32) {
    %c0_i32 = arith.constant 0 : i32
    %c0_i32_0 = arith.constant 0 : i32
    return %arg0, %c0_i32 : i32, i32
  }
  func.func @transform_1(%arg0: i32) -> (i32, i32) {
    %c0_i32 = arith.constant 0 : i32
    %c0_i32_0 = arith.constant 0 : i32
    return %arg0, %c0_i32 : i32, i32
  }
  func.func @transform_2(%arg0: i32) -> (i32, i32) {
    %c0_i32 = arith.constant 0 : i32
    %c0_i32_0 = arith.constant 0 : i32
    %c0_i32_1 = arith.constant 0 : i32
    return %c0_i32, %c0_i32_0 : i32, i32
  }
  func.func @transform_3(%arg0: i32) -> (i32, i32) {
    %c0_i32 = arith.constant 0 : i32
    %c0_i32_0 = arith.constant 0 : i32
    %c0_i32_1 = arith.constant 0 : i32
    return %c0_i32, %c0_i32_0 : i32, i32
  }
  func.func @transform_4(%arg0: i32) -> (i32, i32) {
    %c0_i32 = arith.constant 0 : i32
    %c0_i32_0 = arith.constant 0 : i32
    return %arg0, %c0_i32 : i32, i32
  }
}

module attributes {stable_mosaic.version = 11 : i64} {
  func.func @_mm_affine_kernel(%arg0: i32, %arg1: memref<64x576xbf16, #tpu.memory_space<vmem>>, %arg2: memref<576x32xbf16, #tpu.memory_space<vmem>>, %arg3: memref<1x32xf32, #tpu.memory_space<vmem>>, %arg4: memref<1x32xf32, #tpu.memory_space<vmem>>, %arg5: memref<64x32xf32, #tpu.memory_space<vmem>>) attributes {dimension_semantics = [#tpu.dimension_semantics<parallel>], iteration_bounds = array<i64: 1>, scalar_prefetch = 0 : i64, scratch_operands = 0 : i64, tpu.core_type = #tpu.core_type<tc>, window_params = [{transform_indices = @transform_0, window_bounds = array<i64: 64, 576>}, {pipeline_mode = #tpu.pipeline_mode<synchronous>, transform_indices = @transform_1, window_bounds = array<i64: 576, 32>}, {pipeline_mode = #tpu.pipeline_mode<synchronous>, transform_indices = @transform_2, window_bounds = array<i64: 1, 32>}, {pipeline_mode = #tpu.pipeline_mode<synchronous>, transform_indices = @transform_3, window_bounds = array<i64: 1, 32>}, {transform_indices = @transform_4, window_bounds = array<i64: 64, 32>}]} {
    %c0 = arith.constant 0 : index
    %c0_0 = arith.constant 0 : index
    %0 = vector.load %arg1[%c0, %c0_0] : memref<64x576xbf16, #tpu.memory_space<vmem>>, vector<64x576xbf16>
    %c0_1 = arith.constant 0 : index
    %c0_2 = arith.constant 0 : index
    %1 = vector.load %arg2[%c0_1, %c0_2] : memref<576x32xbf16, #tpu.memory_space<vmem>>, vector<576x32xbf16>
    %cst = arith.constant dense<0.000000e+00> : vector<64x32xf32>
    %2 = tpu.matmul %0, %1, %cst {dimension_numbers = #tpu.dot_dimension_numbers<[1], [0], [0], [1], [0, 0, 1, 1], [], []>} : vector<64x576xbf16>, vector<576x32xbf16>, vector<64x32xf32> -> vector<64x32xf32>
    %c0_3 = arith.constant 0 : index
    %c0_4 = arith.constant 0 : index
    %3 = vector.load %arg3[%c0_3, %c0_4] : memref<1x32xf32, #tpu.memory_space<vmem>>, vector<1x32xf32>
    %4 = vector.broadcast %3 : vector<1x32xf32> to vector<64x32xf32>
    %5 = arith.mulf %2, %4 : vector<64x32xf32>
    %c0_5 = arith.constant 0 : index
    %c0_6 = arith.constant 0 : index
    %6 = vector.load %arg4[%c0_5, %c0_6] : memref<1x32xf32, #tpu.memory_space<vmem>>, vector<1x32xf32>
    %7 = vector.broadcast %6 : vector<1x32xf32> to vector<64x32xf32>
    %8 = arith.addf %5, %7 : vector<64x32xf32>
    %cst_7 = arith.constant 0.000000e+00 : f32
    %9 = vector.broadcast %cst_7 : f32 to vector<64x32xf32>
    %10 = arith.maximumf %8, %9 : vector<64x32xf32>
    %c0_8 = arith.constant 0 : index
    %c0_9 = arith.constant 0 : index
    %11 = vector.load %arg5[%c0_8, %c0_9] : memref<64x32xf32, #tpu.memory_space<vmem>>, vector<64x32xf32>
    tpu.vector_store %arg5[%c0_8, %c0_9], %10 {strides = array<i32>} : memref<64x32xf32, #tpu.memory_space<vmem>>, vector<64x32xf32>,
    return
  }
  func.func @transform_0(%arg0: i32) -> (i32, i32) {
    %c0_i32 = arith.constant 0 : i32
    %c0_i32_0 = arith.constant 0 : i32
    return %arg0, %c0_i32 : i32, i32
  }
  func.func @transform_1(%arg0: i32) -> (i32, i32) {
    %c0_i32 = arith.constant 0 : i32
    %c0_i32_0 = arith.constant 0 : i32
    %c0_i32_1 = arith.constant 0 : i32
    return %c0_i32, %c0_i32_0 : i32, i32
  }
  func.func @transform_2(%arg0: i32) -> (i32, i32) {
    %c0_i32 = arith.constant 0 : i32
    %c0_i32_0 = arith.constant 0 : i32
    %c0_i32_1 = arith.constant 0 : i32
    return %c0_i32, %c0_i32_0 : i32, i32
  }
  func.func @transform_3(%arg0: i32) -> (i32, i32) {
    %c0_i32 = arith.constant 0 : i32
    %c0_i32_0 = arith.constant 0 : i32
    %c0_i32_1 = arith.constant 0 : i32
    return %c0_i32, %c0_i32_0 : i32, i32
  }
  func.func @transform_4(%arg0: i32) -> (i32, i32) {
    %c0_i32 = arith.constant 0 : i32
    %c0_i32_0 = arith.constant 0 : i32
    return %arg0, %c0_i32 : i32, i32
  }
}

module attributes {stable_mosaic.version = 11 : i64} {
  func.func @_mm_affine_kernel(%arg0: i32, %arg1: memref<8x256xbf16, #tpu.memory_space<vmem>>, %arg2: memref<256x128xbf16, #tpu.memory_space<vmem>>, %arg3: memref<1x128xf32, #tpu.memory_space<vmem>>, %arg4: memref<1x128xf32, #tpu.memory_space<vmem>>, %arg5: memref<8x128xf32, #tpu.memory_space<vmem>>) attributes {dimension_semantics = [#tpu.dimension_semantics<parallel>], iteration_bounds = array<i64: 1>, scalar_prefetch = 0 : i64, scratch_operands = 0 : i64, tpu.core_type = #tpu.core_type<tc>, window_params = [{transform_indices = @transform_0, window_bounds = array<i64: 8, 256>}, {pipeline_mode = #tpu.pipeline_mode<synchronous>, transform_indices = @transform_1, window_bounds = array<i64: 256, 128>}, {pipeline_mode = #tpu.pipeline_mode<synchronous>, transform_indices = @transform_2, window_bounds = array<i64: 1, 128>}, {pipeline_mode = #tpu.pipeline_mode<synchronous>, transform_indices = @transform_3, window_bounds = array<i64: 1, 128>}, {transform_indices = @transform_4, window_bounds = array<i64: 8, 128>}]} {
    %c0 = arith.constant 0 : index
    %c0_0 = arith.constant 0 : index
    %0 = vector.load %arg1[%c0, %c0_0] : memref<8x256xbf16, #tpu.memory_space<vmem>>, vector<8x256xbf16>
    %c0_1 = arith.constant 0 : index
    %c0_2 = arith.constant 0 : index
    %1 = vector.load %arg2[%c0_1, %c0_2] : memref<256x128xbf16, #tpu.memory_space<vmem>>, vector<256x128xbf16>
    %cst = arith.constant dense<0.000000e+00> : vector<8x128xf32>
    %2 = tpu.matmul %0, %1, %cst {dimension_numbers = #tpu.dot_dimension_numbers<[1], [0], [0], [1], [0, 0, 1, 1], [], []>} : vector<8x256xbf16>, vector<256x128xbf16>, vector<8x128xf32> -> vector<8x128xf32>
    %c0_3 = arith.constant 0 : index
    %c0_4 = arith.constant 0 : index
    %3 = vector.load %arg3[%c0_3, %c0_4] : memref<1x128xf32, #tpu.memory_space<vmem>>, vector<1x128xf32>
    %4 = vector.broadcast %3 : vector<1x128xf32> to vector<8x128xf32>
    %5 = arith.mulf %2, %4 : vector<8x128xf32>
    %c0_5 = arith.constant 0 : index
    %c0_6 = arith.constant 0 : index
    %6 = vector.load %arg4[%c0_5, %c0_6] : memref<1x128xf32, #tpu.memory_space<vmem>>, vector<1x128xf32>
    %7 = vector.broadcast %6 : vector<1x128xf32> to vector<8x128xf32>
    %8 = arith.addf %5, %7 : vector<8x128xf32>
    %c0_7 = arith.constant 0 : index
    %c0_8 = arith.constant 0 : index
    %9 = vector.load %arg5[%c0_7, %c0_8] : memref<8x128xf32, #tpu.memory_space<vmem>>, vector<8x128xf32>
    tpu.vector_store %arg5[%c0_7, %c0_8], %8 {strides = array<i32>} : memref<8x128xf32, #tpu.memory_space<vmem>>, vector<8x128xf32>,
    return
  }
  func.func @transform_0(%arg0: i32) -> (i32, i32) {
    %c0_i32 = arith.constant 0 : i32
    %c0_i32_0 = arith.constant 0 : i32
    return %arg0, %c0_i32 : i32, i32
  }
  func.func @transform_1(%arg0: i32) -> (i32, i32) {
    %c0_i32 = arith.constant 0 : i32
    %c0_i32_0 = arith.constant 0 : i32
    %c0_i32_1 = arith.constant 0 : i32
    return %c0_i32, %c0_i32_0 : i32, i32
  }
  func.func @transform_2(%arg0: i32) -> (i32, i32) {
    %c0_i32 = arith.constant 0 : i32
    %c0_i32_0 = arith.constant 0 : i32
    %c0_i32_1 = arith.constant 0 : i32
    return %c0_i32, %c0_i32_0 : i32, i32
  }
  func.func @transform_3(%arg0: i32) -> (i32, i32) {
    %c0_i32 = arith.constant 0 : i32
    %c0_i32_0 = arith.constant 0 : i32
    %c0_i32_1 = arith.constant 0 : i32
    return %c0_i32, %c0_i32_0 : i32, i32
  }
  func.func @transform_4(%arg0: i32) -> (i32, i32) {
    %c0_i32 = arith.constant 0 : i32
    %c0_i32_0 = arith.constant 0 : i32
    return %arg0, %c0_i32 : i32, i32
  }
}

</mosaic_0001>

<bundles_post_ra>
// kernel: cnn_net.21
= control target key start
LH: loop header
LB: loop body
LE: loop exit
PB: predicated region body
PF: predicated region fallthrough
CT: control target
= control target key end

     0   :  { %s922_s1 = inlined_call_operand.vmem [shape: bf16[128,128], index: 1, kind: input, shape index: {}]   ;;  %s923_s0 = inlined_call_operand.vmem [shape: bf16[256,128], index: 0, kind: input, shape index: {}]   ;;  %s924_s2 = inlined_call_operand.vmem [shape: f32[1,128], index: 2, kind: input, shape index: {}]   ;;  %s925_s3 = inlined_call_operand.vmem [shape: f32[1,128], index: 3, kind: input, shape index: {}]   ;;  %s926_s4 = inlined_call_operand.vmem [shape: f32[256,128], index: 4, kind: output, shape index: {}]  }
   0x1   :  { %v631_v0 = vld [vmem:[%s922_s1] sm:$0xff]   ;;  %v632_v1 = vld [vmem:[%s922_s1 + $0x8] sm:$0xff]   ;;  %v633_v2 = vld [vmem:[%s922_s1 + $0x10] sm:$0xff]  }
   0x2   :  { %567 = vmatprep.subr.bf16.mxu0 %v631_v0  ;;  %615 = vmatprep.subr.bf16.mxu1 %v631_v0  ;;  %v634_v3 = vld [vmem:[%s922_s1 + $0x18] sm:$0xff]   ;;  %v639_v4 = vld [vmem:[%s923_s0] sm:$0xff]   ;;  %v636_v7 = vld [vmem:[%s922_s1 + $0x28] sm:$0xff]  }
   0x3   :  { %568 = vmatpush3.bf16.msra.mxu0 %v631_v0  ;;  %623 = vmatpush3.bf16.msra.mxu1 %v631_v0  ;;  %v640_v5 = vld [vmem:[%s923_s0 + $0x40] sm:$0xff]   ;;  %v637_v8 = vld [vmem:[%s922_s1 + $0x30] sm:$0xff]   ;;  %v638_v9 = vld [vmem:[%s922_s1 + $0x38] sm:$0xff]  }
   0x4   :  { %569 = vmatprep.subr.bf16.mxu0 %v632_v1  ;;  %616 = vmatprep.subr.bf16.mxu1 %v632_v1  ;;  %v635_v6 = vld [vmem:[%s922_s1 + $0x20] sm:$0xff]   ;;  %v641_v10 = vld [vmem:[%s923_s0 + $0x8] sm:$0xff]   ;;  %v643_v12 = vld [vmem:[%s923_s0 + $0x10] sm:$0xff]  }
   0x5   :  { %583 = vmatprep.mubr.bf16.mxu0 %v639_v4  ;;  %599 = vmatprep.mubr.bf16.mxu1 %v640_v5  ;;  %v642_v11 = vld [vmem:[%s923_s0 + $0x48] sm:$0xff]   ;;  %v644_v13 = vld [vmem:[%s923_s0 + $0x50] sm:$0xff]   ;;  %v645_v14 = vld [vmem:[%s923_s0 + $0x18] sm:$0xff]  }
   0x6   :  { %v646_v15 = vld [vmem:[%s923_s0 + $0x58] sm:$0xff]   ;;  %v647_v16 = vld [vmem:[%s923_s0 + $0x20] sm:$0xff]   ;;  %v649_v18 = vld [vmem:[%s923_s0 + $0x28] sm:$0xff]  }
   0x7   :  { %570 = vmatpush3.bf16.msra.mxu0 %v632_v1  ;;  %624 = vmatpush3.bf16.msra.mxu1 %v632_v1  ;;  %v648_v17 = vld [vmem:[%s923_s0 + $0x60] sm:$0xff]   ;;  %v650_v19 = vld [vmem:[%s923_s0 + $0x68] sm:$0xff]   ;;  %v651_v20 = vld [vmem:[%s923_s0 + $0x30] sm:$0xff]  }
   0x8   :  { %571 = vmatprep.subr.bf16.mxu0 %v633_v2  ;;  %617 = vmatprep.subr.bf16.mxu1 %v633_v2  ;;  %v652_v21 = vld [vmem:[%s923_s0 + $0x70] sm:$0xff]   ;;  %v653_v22 = vld [vmem:[%s923_s0 + $0x38] sm:$0xff]   ;;  %v755_v24 = vld [vmem:[%s924_s2] ss:$0 sm:$0xff] }
   0x9   :  { %v654_v23 = vld [vmem:[%s923_s0 + $0x78] sm:$0xff]   ;;  %v760_v26 = vld [vmem:[%s925_s3] ss:$0 sm:$0xff] }
   0xb   :  { %572 = vmatpush3.bf16.msra.mxu0 %v633_v2  ;;  %625 = vmatpush3.bf16.msra.mxu1 %v633_v2 }
   0xc   :  { %573 = vmatprep.subr.bf16.mxu0 %v634_v3  ;;  %618 = vmatprep.subr.bf16.mxu1 %v634_v3 }
   0xf   :  { %574 = vmatpush3.bf16.msra.mxu0 %v634_v3  ;;  %626 = vmatpush3.bf16.msra.mxu1 %v634_v3 }
  0x10   :  { %575 = vmatprep.subr.bf16.mxu0 %v635_v6  ;;  %619 = vmatprep.subr.bf16.mxu1 %v635_v6 }
  0x13   :  { %576 = vmatpush3.bf16.msra.mxu0 %v635_v6  ;;  %627 = vmatpush3.bf16.msra.mxu1 %v635_v6 }
  0x14   :  { %577 = vmatprep.subr.bf16.mxu0 %v636_v7  ;;  %620 = vmatprep.subr.bf16.mxu1 %v636_v7 }
  0x17   :  { %578 = vmatpush3.bf16.msra.mxu0 %v636_v7  ;;  %628 = vmatpush3.bf16.msra.mxu1 %v636_v7 }
  0x18   :  { %579 = vmatprep.subr.bf16.mxu0 %v637_v8  ;;  %621 = vmatprep.subr.bf16.mxu1 %v637_v8 }
  0x1b   :  { %580 = vmatpush3.bf16.msra.mxu0 %v637_v8  ;;  %629 = vmatpush3.bf16.msra.mxu1 %v637_v8 }
  0x1c   :  { %581 = vmatprep.subr.bf16.mxu0 %v638_v9  ;;  %622 = vmatprep.subr.bf16.mxu1 %v638_v9 }
  0x1f   :  { %582 = vmatpush3.bf16.msra.mxu0 %v638_v9  ;;  %630 = vmatpush3.bf16.msra.mxu1 %v638_v9 }
  0x22   :  { %584 = vmatmul.mubr.bf16.vlgmr.msra.gmra.mrb[0].mxu0 %v641_v10  ;;  %600 = vmatmul.mubr.bf16.vlgmr.msra.gmra.mrb[0].mxu1 %v642_v11 }
  0x23   :  { %587 = vmatprep.mubr.bf16.mxu0 %v643_v12  ;;  %603 = vmatprep.mubr.bf16.mxu1 %v644_v13 }
  0x2a   :  { %588 = vmatmul.mubr.bf16.gmra.mrb[4].mxu0 %v645_v14  ;;  %604 = vmatmul.mubr.bf16.gmra.mrb[4].mxu1 %v646_v15 }
  0x2b   :  { %591 = vmatprep.mubr.bf16.mxu0 %v647_v16  ;;  %607 = vmatprep.mubr.bf16.mxu1 %v648_v17 }
  0x32   :  { %592 = vmatmul.mubr.bf16.gmra.mrb[8].mxu0 %v649_v18  ;;  %608 = vmatmul.mubr.bf16.gmra.mrb[8].mxu1 %v650_v19 }
  0x33   :  { %595 = vmatprep.mubr.bf16.mxu0 %v651_v20  ;;  %611 = vmatprep.mubr.bf16.mxu1 %v652_v21 }
  0x3a   :  { %596 = vmatmul.mubr.bf16.gmra.mrb[12].mxu0 %v653_v22  ;;  %612 = vmatmul.mubr.bf16.gmra.mrb[12].mxu1 %v654_v23 }
  0xf5   :  { %v585_v25 = vpop.f32.mrb[0].mxu0  ;;  %v601_v27 = vpop.f32.mrb[0].mxu1 }
  0xf6   :  { %v380_v28 = vmul.f32 %v585_v25, %v755_v24  ;;  %v396_v29 = vmul.f32 %v601_v27, %v755_v24  ;;  %v244_v30 = vpop.f32.mrb[1].mxu0  ;;  %v308_v31 = vpop.f32.mrb[1].mxu1 }
  0xf7   :  { %v378_v32 = vmul.f32 %v755_v24, %v244_v30  ;;  %v394_v33 = vmul.f32 %v755_v24, %v308_v31  ;;  %v586_v34 = vpop.f32.mrb[2].mxu0  ;;  %v602_v35 = vpop.f32.mrb[2].mxu1 }
  0xf8   :  { %v419_v36 = vadd.f32 %v760_v26, %v380_v28  ;;  %v435_v37 = vadd.f32 %v760_v26, %v396_v29  ;;  %v381_v38 = vmul.f32 %v586_v34, %v755_v24  ;;  %v397_v39 = vmul.f32 %v602_v35, %v755_v24  ;;  %v247_v40 = vpop.f32.mrb[3].mxu0  ;;  %v311_v41 = vpop.f32.mrb[3].mxu1 }
  0xf9   :  { %v417_v42 = vadd.f32 %v760_v26, %v378_v32  ;;  %v433_v43 = vadd.f32 %v760_v26, %v394_v33  ;;  %v379_v44 = vmul.f32 %v755_v24, %v247_v40  ;;  %v395_v45 = vmul.f32 %v755_v24, %v311_v41 }
  0xfa   :  { %v451_v46 = vmax.f32 %v419_v36, 0.0  ;;  %v467_v47 = vmax.f32 %v435_v37, 0.0  ;;  %v420_v48 = vadd.f32 %v760_v26, %v381_v38  ;;  %v436_v49 = vadd.f32 %v760_v26, %v397_v39 }
  0xfb   :  { %v449_v50 = vmax.f32 %v417_v42, 0.0  ;;  %v465_v51 = vmax.f32 %v433_v43, 0.0  ;;  %v418_v52 = vadd.f32 %v760_v26, %v379_v44  ;;  %v434_v53 = vadd.f32 %v760_v26, %v395_v45 }
  0xfc   :  { %483 = vst [vmem:[%s926_s4 + $0x10] sm:$0xff] %v451_v46  ;;  %499 = vst [vmem:[%s926_s4 + $0x90] sm:$0xff] %v467_v47  ;;  %v452_v54 = vmax.f32 %v420_v48, 0.0  ;;  %v468_v55 = vmax.f32 %v436_v49, 0.0 }
  0xfd   :  { %481 = vst [vmem:[%s926_s4] sm:$0xff] %v449_v50  ;;  %497 = vst [vmem:[%s926_s4 + $0x80] sm:$0xff] %v465_v51  ;;  %v450_v56 = vmax.f32 %v418_v52, 0.0  ;;  %v466_v57 = vmax.f32 %v434_v53, 0.0  ;;  %v589_v58 = vpop.f32.mrb[4].mxu0  ;;  %v605_v59 = vpop.f32.mrb[4].mxu1 }
  0xfe   :  { %484 = vst [vmem:[%s926_s4 + $0x18] sm:$0xff] %v452_v54  ;;  %500 = vst [vmem:[%s926_s4 + $0x98] sm:$0xff] %v468_v55  ;;  %v384_v60 = vmul.f32 %v589_v58, %v755_v24  ;;  %v400_v61 = vmul.f32 %v605_v59, %v755_v24  ;;  %v260_v62 = vpop.f32.mrb[5].mxu0  ;;  %v324_v63 = vpop.f32.mrb[5].mxu1 }
  0xff   :  { %482 = vst [vmem:[%s926_s4 + $0x8] sm:$0xff] %v450_v56  ;;  %498 = vst [vmem:[%s926_s4 + $0x88] sm:$0xff] %v466_v57  ;;  %v382_v0 = vmul.f32 %v755_v24, %v260_v62  ;;  %v398_v1 = vmul.f32 %v755_v24, %v324_v63  ;;  %v590_v2 = vpop.f32.mrb[6].mxu0  ;;  %v606_v3 = vpop.f32.mrb[6].mxu1 }
 0x100   :  { %v423_v4 = vadd.f32 %v760_v26, %v384_v60  ;;  %v439_v5 = vadd.f32 %v760_v26, %v400_v61  ;;  %v385_v6 = vmul.f32 %v590_v2, %v755_v24  ;;  %v401_v7 = vmul.f32 %v606_v3, %v755_v24  ;;  %v263_v8 = vpop.f32.mrb[7].mxu0  ;;  %v327_v9 = vpop.f32.mrb[7].mxu1 }
 0x101   :  { %v421_v10 = vadd.f32 %v760_v26, %v382_v0  ;;  %v437_v11 = vadd.f32 %v760_v26, %v398_v1  ;;  %v383_v12 = vmul.f32 %v755_v24, %v263_v8  ;;  %v399_v13 = vmul.f32 %v755_v24, %v327_v9 }
 0x102   :  { %v455_v14 = vmax.f32 %v423_v4, 0.0  ;;  %v471_v15 = vmax.f32 %v439_v5, 0.0  ;;  %v424_v16 = vadd.f32 %v760_v26, %v385_v6  ;;  %v440_v17 = vadd.f32 %v760_v26, %v401_v7 }
 0x103   :  { %v453_v18 = vmax.f32 %v421_v10, 0.0  ;;  %v469_v19 = vmax.f32 %v437_v11, 0.0  ;;  %v422_v20 = vadd.f32 %v760_v26, %v383_v12  ;;  %v438_v21 = vadd.f32 %v760_v26, %v399_v13 }
 0x104   :  { %487 = vst [vmem:[%s926_s4 + $0x30] sm:$0xff] %v455_v14  ;;  %503 = vst [vmem:[%s926_s4 + $0xb0] sm:$0xff] %v471_v15  ;;  %v456_v22 = vmax.f32 %v424_v16, 0.0  ;;  %v472_v23 = vmax.f32 %v440_v17, 0.0 }
 0x105   :  { %485 = vst [vmem:[%s926_s4 + $0x20] sm:$0xff] %v453_v18  ;;  %501 = vst [vmem:[%s926_s4 + $0xa0] sm:$0xff] %v469_v19  ;;  %v454_v25 = vmax.f32 %v422_v20, 0.0  ;;  %v470_v27 = vmax.f32 %v438_v21, 0.0  ;;  %v593_v28 = vpop.f32.mrb[8].mxu0  ;;  %v609_v29 = vpop.f32.mrb[8].mxu1 }
 0x106   :  { %488 = vst [vmem:[%s926_s4 + $0x38] sm:$0xff] %v456_v22  ;;  %504 = vst [vmem:[%s926_s4 + $0xb8] sm:$0xff] %v472_v23  ;;  %v388_v30 = vmul.f32 %v593_v28, %v755_v24  ;;  %v404_v31 = vmul.f32 %v609_v29, %v755_v24  ;;  %v276_v32 = vpop.f32.mrb[9].mxu0  ;;  %v340_v33 = vpop.f32.mrb[9].mxu1 }
 0x107   :  { %486 = vst [vmem:[%s926_s4 + $0x28] sm:$0xff] %v454_v25  ;;  %502 = vst [vmem:[%s926_s4 + $0xa8] sm:$0xff] %v470_v27  ;;  %v386_v34 = vmul.f32 %v755_v24, %v276_v32  ;;  %v402_v35 = vmul.f32 %v755_v24, %v340_v33  ;;  %v594_v36 = vpop.f32.mrb[10].mxu0  ;;  %v610_v37 = vpop.f32.mrb[10].mxu1 }
 0x108   :  { %v427_v38 = vadd.f32 %v760_v26, %v388_v30  ;;  %v443_v39 = vadd.f32 %v760_v26, %v404_v31  ;;  %v389_v40 = vmul.f32 %v594_v36, %v755_v24  ;;  %v405_v41 = vmul.f32 %v610_v37, %v755_v24  ;;  %v279_v42 = vpop.f32.mrb[11].mxu0  ;;  %v343_v43 = vpop.f32.mrb[11].mxu1 }
 0x109   :  { %v425_v44 = vadd.f32 %v760_v26, %v386_v34  ;;  %v441_v45 = vadd.f32 %v760_v26, %v402_v35  ;;  %v387_v46 = vmul.f32 %v755_v24, %v279_v42  ;;  %v403_v47 = vmul.f32 %v755_v24, %v343_v43 }
 0x10a   :  { %v459_v48 = vmax.f32 %v427_v38, 0.0  ;;  %v475_v49 = vmax.f32 %v443_v39, 0.0  ;;  %v428_v50 = vadd.f32 %v760_v26, %v389_v40  ;;  %v444_v51 = vadd.f32 %v760_v26, %v405_v41 }
 0x10b   :  { %v457_v52 = vmax.f32 %v425_v44, 0.0  ;;  %v473_v53 = vmax.f32 %v441_v45, 0.0  ;;  %v426_v54 = vadd.f32 %v760_v26, %v387_v46  ;;  %v442_v55 = vadd.f32 %v760_v26, %v403_v47 }
 0x10c   :  { %491 = vst [vmem:[%s926_s4 + $0x50] sm:$0xff] %v459_v48  ;;  %507 = vst [vmem:[%s926_s4 + $0xd0] sm:$0xff] %v475_v49  ;;  %v460_v56 = vmax.f32 %v428_v50, 0.0  ;;  %v476_v57 = vmax.f32 %v444_v51, 0.0 }
 0x10d   :  { %489 = vst [vmem:[%s926_s4 + $0x40] sm:$0xff] %v457_v52  ;;  %505 = vst [vmem:[%s926_s4 + $0xc0] sm:$0xff] %v473_v53  ;;  %v458_v58 = vmax.f32 %v426_v54, 0.0  ;;  %v474_v59 = vmax.f32 %v442_v55, 0.0  ;;  %v597_v60 = vpop.f32.mrb[12].mxu0  ;;  %v613_v61 = vpop.f32.mrb[12].mxu1 }
 0x10e   :  { %492 = vst [vmem:[%s926_s4 + $0x58] sm:$0xff] %v460_v56  ;;  %508 = vst [vmem:[%s926_s4 + $0xd8] sm:$0xff] %v476_v57  ;;  %v392_v62 = vmul.f32 %v597_v60, %v755_v24  ;;  %v408_v63 = vmul.f32 %v613_v61, %v755_v24  ;;  %v292_v0 = vpop.f32.mrb[13].mxu0  ;;  %v356_v1 = vpop.f32.mrb[13].mxu1 }
 0x10f   :  { %490 = vst [vmem:[%s926_s4 + $0x48] sm:$0xff] %v458_v58  ;;  %506 = vst [vmem:[%s926_s4 + $0xc8] sm:$0xff] %v474_v59  ;;  %v390_v2 = vmul.f32 %v755_v24, %v292_v0  ;;  %v406_v3 = vmul.f32 %v755_v24, %v356_v1  ;;  %v598_v4 = vpop.f32.mrb[14].mxu0  ;;  %v614_v5 = vpop.f32.mrb[14].mxu1 }
 0x110   :  { %v431_v6 = vadd.f32 %v760_v26, %v392_v62  ;;  %v447_v7 = vadd.f32 %v760_v26, %v408_v63  ;;  %v393_v8 = vmul.f32 %v598_v4, %v755_v24  ;;  %v409_v9 = vmul.f32 %v614_v5, %v755_v24  ;;  %v295_v10 = vpop.f32.mrb[15].mxu0  ;;  %v359_v11 = vpop.f32.mrb[15].mxu1 }
 0x111   :  { %v429_v12 = vadd.f32 %v760_v26, %v390_v2  ;;  %v445_v13 = vadd.f32 %v760_v26, %v406_v3  ;;  %v391_v14 = vmul.f32 %v755_v24, %v295_v10  ;;  %v407_v15 = vmul.f32 %v755_v24, %v359_v11 }
 0x112   :  { %v463_v16 = vmax.f32 %v431_v6, 0.0  ;;  %v479_v17 = vmax.f32 %v447_v7, 0.0  ;;  %v432_v18 = vadd.f32 %v760_v26, %v393_v8  ;;  %v448_v19 = vadd.f32 %v760_v26, %v409_v9 }
 0x113   :  { %v461_v20 = vmax.f32 %v429_v12, 0.0  ;;  %v477_v21 = vmax.f32 %v445_v13, 0.0  ;;  %v430_v22 = vadd.f32 %v760_v26, %v391_v14  ;;  %v446_v23 = vadd.f32 %v760_v26, %v407_v15 }
 0x114   :  { %495 = vst [vmem:[%s926_s4 + $0x70] sm:$0xff] %v463_v16  ;;  %511 = vst [vmem:[%s926_s4 + $0xf0] sm:$0xff] %v479_v17  ;;  %v464_v24 = vmax.f32 %v432_v18, 0.0  ;;  %v480_v25 = vmax.f32 %v448_v19, 0.0 }
 0x115   :  { %493 = vst [vmem:[%s926_s4 + $0x60] sm:$0xff] %v461_v20  ;;  %509 = vst [vmem:[%s926_s4 + $0xe0] sm:$0xff] %v477_v21  ;;  %v462_v27 = vmax.f32 %v430_v22, 0.0  ;;  %v478_v26 = vmax.f32 %v446_v23, 0.0 }
 0x116   :  { %496 = vst [vmem:[%s926_s4 + $0x78] sm:$0xff] %v464_v24  ;;  %512 = vst [vmem:[%s926_s4 + $0xf8] sm:$0xff] %v480_v25 }
 0x117   :  { %494 = vst [vmem:[%s926_s4 + $0x68] sm:$0xff] %v462_v27  ;;  %510 = vst [vmem:[%s926_s4 + $0xe8] sm:$0xff] %v478_v26 }

// kernel: cnn_net.20
= control target key start
LH: loop header
LB: loop body
LE: loop exit
PB: predicated region body
PF: predicated region fallthrough
CT: control target
= control target key end

     0   :  { %s895_s15 = smov 0   ;;  %s1061_s0 = inlined_call_operand.vmem [shape: bf16[1024,9], index: 0, kind: input, shape index: {}]   ;;  %s1062_s1 = inlined_call_operand.vmem [shape: bf16[9,128], index: 1, kind: input, shape index: {}]   ;;  %s1063_s2 = inlined_call_operand.vmem [shape: f32[1,128], index: 2, kind: input, shape index: {}]   ;;  %s1064_s3 = inlined_call_operand.vmem [shape: f32[1,128], index: 3, kind: input, shape index: {}]   ;;  %s1065_s4 = inlined_call_operand.vmem [shape: f32[1024,128], index: 4, kind: output, shape index: {}]  }
   0x1 LB: > { %s736_s16 = sadd.s32 4294967295, %s867_s15   ;;  %p740_p0 = scmp.ge.s32.totalorder %s867_s15, 1  ;;  %s867_s15 = sphi %s895_s15, %s14_s15  }
   0x2   : > { %p163_p1 = scmp.lt.s32.totalorder %s867_s15, 5 }
   0x4   : > { %p164_p2 = pnand %p740_p0, %p163_p1 }
   0x5   : > { %v844_v0 = vld [vmem:[%s1062_s1] sm:$0x1f] (!%p164_p2)   ;;  %vm370_vm0 = vcmask (!%p164_p2), 1043456   ;;  %vm371_vm1 = vcmask (!%p164_p2), 1044480   ;;  %s741_s19 = sshll.u32 (!%p164_p2), %s736_s16, 5  ;;  %v869_v1 = vmov (!%p164_p2), 65535  }
   0x6   : > { %167 = sbr.rel (%p164_p2) target bundleno = 265 (0x109), region = 36  ;;  %v372_v2 = vsel (!%p164_p2), %vm370_vm0, 4294967295, %v869_v1  ;;  %p190_p3 = scmp.lt.s32.totalorder (!%p164_p2), %s741_s19, 127  ;;  %vm321_vm2 = vcmask (!%p164_p2), 72704   ;;  %v949_v21 = vld [vmem:[%s1063_s2] ss:$0 sm:$0xff] (!%p164_p2) }
   0x7   : > { %v373_v3 = vsel (!%p164_p2), %vm371_vm1, %v372_v2, 0  ;;  %v954_v23 = vld [vmem:[%s1064_s3] ss:$0 sm:$0xff] (!%p164_p2) }
   0x8   : > { %v375_v4 = vand.u32 (!%p164_p2), %v844_v0, %v373_v3 }
   0xa   : > { %799 = vmatprep.subr.bf16.mxu0 (!%p164_p2), %v375_v4  ;;  %833 = vmatprep.subr.bf16.mxu1 (!%p164_p2), %v375_v4 }
   0xb   : > { %800 = vmatpush3.bf16.msra.mxu0 (!%p164_p2), %v375_v4  ;;  %834 = vmatpush3.bf16.msra.mxu1 (!%p164_p2), %v375_v4 }
   0xd   : > { %s1067_s19 = smov (!%p190_p3, %s741_s19), 127 }
   0xe   : > { %s742_s20 = sshll.u32 %s1067_s19, 2  ;;  %s744_s28 = sshll.u32 %s1067_s19, 3 }
   0xf   : > { %s912_s23 = scalar_lea.vmem %s1061_s0, %s742_s20  ;;  %s966_s5 = scalar_lea.vmem %s1065_s4, %s744_s28 }
  0x10   : > { %v845_v5 = vld [vmem:[%s912_s23] sm:$0xff]   ;;  %v847_v7 = vld [vmem:[%s912_s23 + $0x8] sm:$0xff]   ;;  %v849_v9 = vld [vmem:[%s912_s23 + $0x10] sm:$0xff]  }
  0x11   : > { %v846_v6 = vld [vmem:[%s912_s23 + $0x40] sm:$0xff]   ;;  %801 = vmatprep.mubr.msk.bf16.mxu0 %vm321_vm2, %v845_v5  ;;  %v848_v8 = vld [vmem:[%s912_s23 + $0x48] sm:$0xff]   ;;  %v850_v10 = vld [vmem:[%s912_s23 + $0x50] sm:$0xff]  }
  0x12   : > { %817 = vmatprep.mubr.msk.bf16.mxu1 %vm321_vm2, %v846_v6  ;;  %802 = vmatmul.mubr.msk.bf16.vlgmr.msra.gmra.mrb[0].mxu0 %vm321_vm2, %v847_v7  ;;  %v851_v11 = vld [vmem:[%s912_s23 + $0x18] sm:$0xff]   ;;  %v853_v13 = vld [vmem:[%s912_s23 + $0x20] sm:$0xff]   ;;  %v855_v15 = vld [vmem:[%s912_s23 + $0x28] sm:$0xff]  }
  0x13   : > { %818 = vmatmul.mubr.msk.bf16.vlgmr.msra.gmra.mrb[0].mxu1 %vm321_vm2, %v848_v8  ;;  %805 = vmatprep.mubr.msk.bf16.mxu0 %vm321_vm2, %v849_v9  ;;  %v852_v12 = vld [vmem:[%s912_s23 + $0x58] sm:$0xff]   ;;  %v854_v14 = vld [vmem:[%s912_s23 + $0x60] sm:$0xff]   ;;  %v856_v16 = vld [vmem:[%s912_s23 + $0x68] sm:$0xff]  }
  0x14   : > { %821 = vmatprep.mubr.msk.bf16.mxu1 %vm321_vm2, %v850_v10  ;;  %v857_v17 = vld [vmem:[%s912_s23 + $0x30] sm:$0xff]   ;;  %v859_v19 = vld [vmem:[%s912_s23 + $0x38] sm:$0xff]  }
  0x15   : > { %v858_v18 = vld [vmem:[%s912_s23 + $0x70] sm:$0xff]   ;;  %v860_v20 = vld [vmem:[%s912_s23 + $0x78] sm:$0xff]  }
  0x1a   : > { %806 = vmatmul.mubr.msk.bf16.gmra.mrb[4].mxu0 %vm321_vm2, %v851_v11 }
  0x1b   : > { %822 = vmatmul.mubr.msk.bf16.gmra.mrb[4].mxu1 %vm321_vm2, %v852_v12  ;;  %809 = vmatprep.mubr.msk.bf16.mxu0 %vm321_vm2, %v853_v13 }
  0x1c   : > { %825 = vmatprep.mubr.msk.bf16.mxu1 %vm321_vm2, %v854_v14 }
  0x22   : > { %810 = vmatmul.mubr.msk.bf16.gmra.mrb[8].mxu0 %vm321_vm2, %v855_v15 }
  0x23   : > { %826 = vmatmul.mubr.msk.bf16.gmra.mrb[8].mxu1 %vm321_vm2, %v856_v16  ;;  %813 = vmatprep.mubr.msk.bf16.mxu0 %vm321_vm2, %v857_v17 }
  0x24   : > { %829 = vmatprep.mubr.msk.bf16.mxu1 %vm321_vm2, %v858_v18 }
  0x2a   : > { %814 = vmatmul.mubr.msk.bf16.gmra.mrb[12].mxu0 %vm321_vm2, %v859_v19 }
  0x2b   : > { %830 = vmatmul.mubr.msk.bf16.gmra.mrb[12].mxu1 %vm321_vm2, %v860_v20 }
  0xe5   : > { %v803_v22 = vpop.f32.mrb[0].mxu0 }
  0xe6   : > { %v547_v24 = vmul.f32 %v803_v22, %v949_v21  ;;  %v819_v25 = vpop.f32.mrb[0].mxu1  ;;  %v411_v26 = vpop.f32.mrb[1].mxu0 }
  0xe7   : > { %v563_v27 = vmul.f32 %v819_v25, %v949_v21  ;;  %v545_v28 = vmul.f32 %v949_v21, %v411_v26  ;;  %v475_v29 = vpop.f32.mrb[1].mxu1  ;;  %v804_v30 = vpop.f32.mrb[2].mxu0 }
  0xe8   : > { %v586_v31 = vadd.f32 %v954_v23, %v547_v24  ;;  %v561_v32 = vmul.f32 %v949_v21, %v475_v29  ;;  %v548_v33 = vmul.f32 %v804_v30, %v949_v21  ;;  %v820_v34 = vpop.f32.mrb[2].mxu1  ;;  %v414_v35 = vpop.f32.mrb[3].mxu0 }
  0xe9   : > { %v602_v36 = vadd.f32 %v954_v23, %v563_v27  ;;  %v584_v37 = vadd.f32 %v954_v23, %v545_v28  ;;  %v564_v38 = vmul.f32 %v820_v34, %v949_v21  ;;  %v546_v39 = vmul.f32 %v949_v21, %v414_v35  ;;  %v478_v40 = vpop.f32.mrb[3].mxu1 }
  0xea   : > { %v618_v41 = vmax.f32 %v586_v31, 0.0  ;;  %v600_v42 = vadd.f32 %v954_v23, %v561_v32  ;;  %v587_v43 = vadd.f32 %v954_v23, %v548_v33  ;;  %v562_v44 = vmul.f32 %v949_v21, %v478_v40 }
  0xeb   : > { %v634_v45 = vmax.f32 %v602_v36, 0.0  ;;  %v616_v46 = vmax.f32 %v584_v37, 0.0  ;;  %v603_v47 = vadd.f32 %v954_v23, %v564_v38  ;;  %v585_v48 = vadd.f32 %v954_v23, %v546_v39 }
  0xec   : > { %650 = vst [vmem:[%s966_s5 + $0x10] sm:$0xff] %v618_v41  ;;  %v632_v49 = vmax.f32 %v600_v42, 0.0  ;;  %v619_v50 = vmax.f32 %v587_v43, 0.0  ;;  %v601_v51 = vadd.f32 %v954_v23, %v562_v44 }
  0xed   : > { %666 = vst [vmem:[%s966_s5 + $0x90] sm:$0xff] %v634_v45  ;;  %648 = vst [vmem:[%s966_s5] sm:$0xff] %v616_v46  ;;  %v635_v52 = vmax.f32 %v603_v47, 0.0  ;;  %v617_v53 = vmax.f32 %v585_v48, 0.0  ;;  %v807_v54 = vpop.f32.mrb[4].mxu0 }
  0xee   : > { %664 = vst [vmem:[%s966_s5 + $0x80] sm:$0xff] %v632_v49  ;;  %651 = vst [vmem:[%s966_s5 + $0x18] sm:$0xff] %v619_v50  ;;  %v633_v55 = vmax.f32 %v601_v51, 0.0  ;;  %v551_v56 = vmul.f32 %v807_v54, %v949_v21  ;;  %v823_v57 = vpop.f32.mrb[4].mxu1  ;;  %v427_v58 = vpop.f32.mrb[5].mxu0 }
  0xef   : > { %667 = vst [vmem:[%s966_s5 + $0x98] sm:$0xff] %v635_v52  ;;  %649 = vst [vmem:[%s966_s5 + $0x8] sm:$0xff] %v617_v53  ;;  %v567_v59 = vmul.f32 %v823_v57, %v949_v21  ;;  %v549_v60 = vmul.f32 %v949_v21, %v427_v58  ;;  %v491_v61 = vpop.f32.mrb[5].mxu1  ;;  %v808_v62 = vpop.f32.mrb[6].mxu0 }
  0xf0   : > { %665 = vst [vmem:[%s966_s5 + $0x88] sm:$0xff] %v633_v55  ;;  %v590_v63 = vadd.f32 %v954_v23, %v551_v56  ;;  %v565_v0 = vmul.f32 %v949_v21, %v491_v61  ;;  %v552_v1 = vmul.f32 %v808_v62, %v949_v21  ;;  %v824_v2 = vpop.f32.mrb[6].mxu1  ;;  %v430_v3 = vpop.f32.mrb[7].mxu0 }
  0xf1   : > { %v606_v4 = vadd.f32 %v954_v23, %v567_v59  ;;  %v588_v5 = vadd.f32 %v954_v23, %v549_v60  ;;  %v568_v6 = vmul.f32 %v824_v2, %v949_v21  ;;  %v550_v7 = vmul.f32 %v949_v21, %v430_v3  ;;  %v494_v8 = vpop.f32.mrb[7].mxu1 }
  0xf2   : > { %v622_v9 = vmax.f32 %v590_v63, 0.0  ;;  %v604_v10 = vadd.f32 %v954_v23, %v565_v0  ;;  %v591_v11 = vadd.f32 %v954_v23, %v552_v1  ;;  %v566_v12 = vmul.f32 %v949_v21, %v494_v8 }
  0xf3   : > { %v638_v13 = vmax.f32 %v606_v4, 0.0  ;;  %v620_v14 = vmax.f32 %v588_v5, 0.0  ;;  %v607_v15 = vadd.f32 %v954_v23, %v568_v6  ;;  %v589_v16 = vadd.f32 %v954_v23, %v550_v7 }
  0xf4   : > { %654 = vst [vmem:[%s966_s5 + $0x30] sm:$0xff] %v622_v9  ;;  %v636_v17 = vmax.f32 %v604_v10, 0.0  ;;  %v623_v18 = vmax.f32 %v591_v11, 0.0  ;;  %v605_v19 = vadd.f32 %v954_v23, %v566_v12 }
  0xf5   : > { %670 = vst [vmem:[%s966_s5 + $0xb0] sm:$0xff] %v638_v13  ;;  %652 = vst [vmem:[%s966_s5 + $0x20] sm:$0xff] %v620_v14  ;;  %v639_v20 = vmax.f32 %v607_v15, 0.0  ;;  %v621_v22 = vmax.f32 %v589_v16, 0.0  ;;  %v811_v24 = vpop.f32.mrb[8].mxu0 }
  0xf6   : > { %668 = vst [vmem:[%s966_s5 + $0xa0] sm:$0xff] %v636_v17  ;;  %655 = vst [vmem:[%s966_s5 + $0x38] sm:$0xff] %v623_v18  ;;  %v637_v25 = vmax.f32 %v605_v19, 0.0  ;;  %v555_v26 = vmul.f32 %v811_v24, %v949_v21  ;;  %v827_v27 = vpop.f32.mrb[8].mxu1  ;;  %v443_v28 = vpop.f32.mrb[9].mxu0 }
  0xf7   : > { %671 = vst [vmem:[%s966_s5 + $0xb8] sm:$0xff] %v639_v20  ;;  %653 = vst [vmem:[%s966_s5 + $0x28] sm:$0xff] %v621_v22  ;;  %v571_v29 = vmul.f32 %v827_v27, %v949_v21  ;;  %v553_v30 = vmul.f32 %v949_v21, %v443_v28  ;;  %v507_v31 = vpop.f32.mrb[9].mxu1  ;;  %v812_v32 = vpop.f32.mrb[10].mxu0 }
  0xf8   : > { %669 = vst [vmem:[%s966_s5 + $0xa8] sm:$0xff] %v637_v25  ;;  %v594_v33 = vadd.f32 %v954_v23, %v555_v26  ;;  %v569_v34 = vmul.f32 %v949_v21, %v507_v31  ;;  %v556_v35 = vmul.f32 %v812_v32, %v949_v21  ;;  %v828_v36 = vpop.f32.mrb[10].mxu1  ;;  %v446_v37 = vpop.f32.mrb[11].mxu0 }
  0xf9   : > { %v610_v38 = vadd.f32 %v954_v23, %v571_v29  ;;  %v592_v39 = vadd.f32 %v954_v23, %v553_v30  ;;  %v572_v40 = vmul.f32 %v828_v36, %v949_v21  ;;  %v554_v41 = vmul.f32 %v949_v21, %v446_v37  ;;  %v510_v42 = vpop.f32.mrb[11].mxu1 }
  0xfa   : > { %v626_v43 = vmax.f32 %v594_v33, 0.0  ;;  %v608_v44 = vadd.f32 %v954_v23, %v569_v34  ;;  %v595_v45 = vadd.f32 %v954_v23, %v556_v35  ;;  %v570_v46 = vmul.f32 %v949_v21, %v510_v42 }
  0xfb   : > { %v642_v47 = vmax.f32 %v610_v38, 0.0  ;;  %v624_v48 = vmax.f32 %v592_v39, 0.0  ;;  %v611_v49 = vadd.f32 %v954_v23, %v572_v40  ;;  %v593_v50 = vadd.f32 %v954_v23, %v554_v41 }
  0xfc   : > { %658 = vst [vmem:[%s966_s5 + $0x50] sm:$0xff] %v626_v43  ;;  %v640_v51 = vmax.f32 %v608_v44, 0.0  ;;  %v627_v52 = vmax.f32 %v595_v45, 0.0  ;;  %v609_v53 = vadd.f32 %v954_v23, %v570_v46 }
  0xfd   : > { %674 = vst [vmem:[%s966_s5 + $0xd0] sm:$0xff] %v642_v47  ;;  %656 = vst [vmem:[%s966_s5 + $0x40] sm:$0xff] %v624_v48  ;;  %v643_v54 = vmax.f32 %v611_v49, 0.0  ;;  %v625_v55 = vmax.f32 %v593_v50, 0.0  ;;  %v815_v56 = vpop.f32.mrb[12].mxu0 }
  0xfe   : > { %672 = vst [vmem:[%s966_s5 + $0xc0] sm:$0xff] %v640_v51  ;;  %659 = vst [vmem:[%s966_s5 + $0x58] sm:$0xff] %v627_v52  ;;  %v641_v57 = vmax.f32 %v609_v53, 0.0  ;;  %v559_v58 = vmul.f32 %v815_v56, %v949_v21  ;;  %v831_v59 = vpop.f32.mrb[12].mxu1  ;;  %v459_v60 = vpop.f32.mrb[13].mxu0 }
  0xff   : > { %675 = vst [vmem:[%s966_s5 + $0xd8] sm:$0xff] %v643_v54  ;;  %657 = vst [vmem:[%s966_s5 + $0x48] sm:$0xff] %v625_v55  ;;  %v575_v61 = vmul.f32 %v831_v59, %v949_v21  ;;  %v557_v62 = vmul.f32 %v949_v21, %v459_v60  ;;  %v523_v63 = vpop.f32.mrb[13].mxu1  ;;  %v816_v0 = vpop.f32.mrb[14].mxu0 }
 0x100   : > { %673 = vst [vmem:[%s966_s5 + $0xc8] sm:$0xff] %v641_v57  ;;  %v598_v1 = vadd.f32 %v954_v23, %v559_v58  ;;  %v573_v2 = vmul.f32 %v949_v21, %v523_v63  ;;  %v560_v3 = vmul.f32 %v816_v0, %v949_v21  ;;  %v832_v4 = vpop.f32.mrb[14].mxu1  ;;  %v462_v5 = vpop.f32.mrb[15].mxu0 }
 0x101   : > { %v614_v6 = vadd.f32 %v954_v23, %v575_v61  ;;  %v596_v7 = vadd.f32 %v954_v23, %v557_v62  ;;  %v576_v8 = vmul.f32 %v832_v4, %v949_v21  ;;  %v558_v9 = vmul.f32 %v949_v21, %v462_v5  ;;  %v526_v10 = vpop.f32.mrb[15].mxu1 }
 0x102   : > { %v630_v11 = vmax.f32 %v598_v1, 0.0  ;;  %v612_v12 = vadd.f32 %v954_v23, %v573_v2  ;;  %v599_v13 = vadd.f32 %v954_v23, %v560_v3  ;;  %v574_v14 = vmul.f32 %v949_v21, %v526_v10 }
 0x103   : > { %v646_v15 = vmax.f32 %v614_v6, 0.0  ;;  %v628_v16 = vmax.f32 %v596_v7, 0.0  ;;  %v615_v17 = vadd.f32 %v954_v23, %v576_v8  ;;  %v597_v18 = vadd.f32 %v954_v23, %v558_v9 }
 0x104   : > { %662 = vst [vmem:[%s966_s5 + $0x70] sm:$0xff] %v630_v11  ;;  %v644_v19 = vmax.f32 %v612_v12, 0.0  ;;  %v631_v20 = vmax.f32 %v599_v13, 0.0  ;;  %v613_v22 = vadd.f32 %v954_v23, %v574_v14 }
 0x105   : > { %678 = vst [vmem:[%s966_s5 + $0xf0] sm:$0xff] %v646_v15  ;;  %660 = vst [vmem:[%s966_s5 + $0x60] sm:$0xff] %v628_v16  ;;  %v647_v24 = vmax.f32 %v615_v17, 0.0  ;;  %v629_v25 = vmax.f32 %v597_v18, 0.0 }
 0x106   : > { %676 = vst [vmem:[%s966_s5 + $0xe0] sm:$0xff] %v644_v19  ;;  %663 = vst [vmem:[%s966_s5 + $0x78] sm:$0xff] %v631_v20  ;;  %v645_v21 = vmax.f32 %v613_v22, 0.0 }
 0x107   : > { %679 = vst [vmem:[%s966_s5 + $0xf8] sm:$0xff] %v647_v24  ;;  %661 = vst [vmem:[%s966_s5 + $0x68] sm:$0xff] %v629_v25 }
 0x108   : > { %677 = vst [vmem:[%s966_s5 + $0xe8] sm:$0xff] %v645_v21 }
 0x109 PF: > { %s14_s15 = sadd.s32 1, %s867_s15  }
 0x10a   : > { %p11_p4 = scmp.ge.s32.totalorder %s14_s15, 6  }
 0x10c   :  { %13 = sbr.rel (!%p11_p4) target bundleno = 1 (0x1), region = 66 }

// kernel: cnn_net.24
= control target key start
LH: loop header
LB: loop body
LE: loop exit
PB: predicated region body
PF: predicated region fallthrough
CT: control target
= control target key end

     0   :  { %vm802_vm0 = vcmask 523264   ;;  %s2735_s1 = inlined_call_operand.vmem [shape: bf16[576,64], index: 1, kind: input, shape index: {}]   ;;  %s2736_s0 = inlined_call_operand.vmem [shape: bf16[256,576], index: 0, kind: input, shape index: {}]   ;;  %s2737_s2 = inlined_call_operand.vmem [shape: f32[1,64], index: 2, kind: input, shape index: {}]   ;;  %s2738_s3 = inlined_call_operand.vmem [shape: f32[1,64], index: 3, kind: input, shape index: {}]   ;;  %s2739_s4 = inlined_call_operand.vmem [shape: f32[256,64], index: 4, kind: output, shape index: {}]  }
   0x1   :  { %v1882_v0 = vld [vmem:[%s2735_s1 + $0x40] sm:$0xff]   ;;  %v1884_v2 = vld [vmem:[%s2735_s1 + $0x48] sm:$0xff]   ;;  %v1886_v4 = vld [vmem:[%s2735_s1 + $0x50] sm:$0xff]  }
   0x2   :  { %v1883_v1 = vld [vmem:[%s2735_s1] sm:$0xff]   ;;  %1582 = vmatprep.subr.bf16.mxu0 %v1882_v0  ;;  %1866 = vmatprep.subr.bf16.mxu1 %v1882_v0  ;;  %v1885_v3 = vld [vmem:[%s2735_s1 + $0x8] sm:$0xff]   ;;  %v1887_v5 = vld [vmem:[%s2735_s1 + $0x10] sm:$0xff]  }
   0x3   :  { %1583 = vmatpush3.bf16.msra.mxu0 %v1883_v1  ;;  %1874 = vmatpush3.bf16.msra.mxu1 %v1883_v1  ;;  %v1888_v6 = vld [vmem:[%s2735_s1 + $0x58] sm:$0xff]   ;;  %v1890_v8 = vld [vmem:[%s2735_s1 + $0x60] sm:$0xff]   ;;  %v1892_v10 = vld [vmem:[%s2735_s1 + $0x68] sm:$0xff]  }
   0x4   :  { %1584 = vmatprep.subr.bf16.mxu0 %v1884_v2  ;;  %1867 = vmatprep.subr.bf16.mxu1 %v1884_v2  ;;  %v1889_v7 = vld [vmem:[%s2735_s1 + $0x18] sm:$0xff]   ;;  %v1891_v9 = vld [vmem:[%s2735_s1 + $0x20] sm:$0xff]   ;;  %v1893_v13 = vld [vmem:[%s2735_s1 + $0x28] sm:$0xff]  }
   0x5   :  { %v1900_v11 = vld [vmem:[%s2736_s0 + $0x4] ss:$20 sps:$4 sm:$0xff]   ;;  %v1894_v14 = vld [vmem:[%s2735_s1 + $0x70] sm:$0xff]   ;;  %v1906_v23 = vld [vmem:[%s2735_s1 + $0xc8] sm:$0xff]  }
   0x6   :  { %v1903_v12 = vld [vmem:[%s2736_s0 + $0x1e4] ss:$20 sps:$4 sm:$0xff]   ;;  %883 = vmatprep.mubr.bf16.mxu0 %v1900_v11  ;;  %v1895_v15 = vld [vmem:[%s2735_s1 + $0x30] sm:$0xff]   ;;  %v1909_v24 = vld [vmem:[%s2736_s0 + $0x2c] ss:$20 sps:$4 sm:$0xff]  }
   0x7   :  { %1585 = vmatpush3.bf16.msra.mxu0 %v1885_v3  ;;  %1875 = vmatpush3.bf16.msra.mxu1 %v1885_v3  ;;  %v1896_v16 = vld [vmem:[%s2735_s1 + $0x78] sm:$0xff]   ;;  %v1904_v18 = vld [vmem:[%s2735_s1 + $0xc0] sm:$0xff]   ;;  %v1908_v26 = vld [vmem:[%s2735_s1 + $0x88] sm:$0xff]  }
   0x8   :  { %1586 = vmatprep.subr.bf16.mxu0 %v1886_v4  ;;  %1868 = vmatprep.subr.bf16.mxu1 %v1886_v4  ;;  %v1897_v17 = vld [vmem:[%s2735_s1 + $0x38] sm:$0xff]   ;;  %v1907_v19 = vld [vmem:[%s2735_s1 + $0x100] sm:$0xff]   ;;  %v1915_v28 = vld [vmem:[%s2735_s1 + $0xd0] sm:$0xff]  }
   0x9   :  { %979 = vmatprep.mubr.bf16.mxu1 %v1903_v12  ;;  %v1898_v20 = vld [vmem:[%s2736_s0] ss:$20 sps:$4 sm:$0xff]   ;;  %v1913_v27 = vld [vmem:[%s2736_s0 + $0x28] ss:$20 sps:$4 sm:$0xff]   ;;  %v1923_v36 = vld [vmem:[%s2736_s0 + $0x50] ss:$20 sps:$4 sm:$0xff]  }
   0xa   :  { %v1901_v21 = vld [vmem:[%s2736_s0 + $0x1e0] ss:$20 sps:$4 sm:$0xff]   ;;  %v1914_v29 = vld [vmem:[%s2736_s0 + $0x208] ss:$20 sps:$4 sm:$0xff]   ;;  %v1924_v38 = vld [vmem:[%s2736_s0 + $0x230] ss:$20 sps:$4 sm:$0xff]  }
   0xb   :  { %1587 = vmatpush3.bf16.msra.mxu0 %v1887_v5  ;;  %1876 = vmatpush3.bf16.msra.mxu1 %v1887_v5  ;;  %v1905_v22 = vld [vmem:[%s2735_s1 + $0x80] sm:$0xff]   ;;  %v1916_v30 = vld [vmem:[%s2735_s1 + $0x90] sm:$0xff]   ;;  %v1917_v31 = vld [vmem:[%s2735_s1 + $0xd8] sm:$0xff]  }
   0xc   :  { %1588 = vmatprep.subr.bf16.mxu0 %v1888_v6  ;;  %1869 = vmatprep.subr.bf16.mxu1 %v1888_v6  ;;  %v1911_v25 = vld [vmem:[%s2736_s0 + $0x20c] ss:$20 sps:$4 sm:$0xff]   ;;  %v1919_v32 = vld [vmem:[%s2736_s0 + $0x54] ss:$20 sps:$4 sm:$0xff]   ;;  %v1918_v34 = vld [vmem:[%s2735_s1 + $0x98] sm:$0xff]  }
   0xd   :  { %v1921_v33 = vld [vmem:[%s2736_s0 + $0x234] ss:$20 sps:$4 sm:$0xff]   ;;  %v1925_v37 = vld [vmem:[%s2735_s1 + $0xe0] sm:$0xff]   ;;  %v1929_v41 = vld [vmem:[%s2736_s0 + $0x7c] ss:$20 sps:$4 sm:$0xff]  }
   0xe   :  { %v1938_v35 = vld [vmem:[%s2735_s1 + $0x108] sm:$0xff]   ;;  %v1926_v39 = vld [vmem:[%s2735_s1 + $0xa0] sm:$0xff]   ;;  %v1931_v42 = vld [vmem:[%s2736_s0 + $0x25c] ss:$20 sps:$4 sm:$0xff]  }
   0xf   :  { %1589 = vmatpush3.bf16.msra.mxu0 %v1889_v7  ;;  %1877 = vmatpush3.bf16.msra.mxu1 %v1889_v7  ;;  %v1927_v40 = vld [vmem:[%s2735_s1 + $0xe8] sm:$0xff]   ;;  %v1935_v46 = vld [vmem:[%s2735_s1 + $0xf0] sm:$0xff]   ;;  %v1937_v49 = vld [vmem:[%s2735_s1 + $0xf8] sm:$0xff]  }
  0x10   :  { %1590 = vmatprep.subr.bf16.mxu0 %v1890_v8  ;;  %1870 = vmatprep.subr.bf16.mxu1 %v1890_v8  ;;  %v1928_v43 = vld [vmem:[%s2735_s1 + $0xa8] sm:$0xff]   ;;  %v1958_v47 = vld [vmem:[%s2735_s1 + $0x110] sm:$0xff]   ;;  %v1940_v50 = vld [vmem:[%s2736_s0 + $0xa4] ss:$20 sps:$4 sm:$0xff]  }
  0x11   :  { %v1933_v44 = vld [vmem:[%s2736_s0 + $0x78] ss:$20 sps:$4 sm:$0xff]   ;;  %v1936_v48 = vld [vmem:[%s2735_s1 + $0xb0] sm:$0xff]   ;;  %v1942_v53 = vld [vmem:[%s2736_s0 + $0x8] ss:$20 sps:$4 sm:$0xff]  }
  0x12   :  { %v1934_v45 = vld [vmem:[%s2736_s0 + $0x258] ss:$20 sps:$4 sm:$0xff]   ;;  %v1945_v54 = vld [vmem:[%s2736_s0 + $0xa0] ss:$20 sps:$4 sm:$0xff]   ;;  %v1950_v58 = vld [vmem:[%s2736_s0 + $0xc8] ss:$20 sps:$4 sm:$0xff]  }
  0x13   :  { %1591 = vmatpush3.bf16.msra.mxu0 %v1891_v9  ;;  %1878 = vmatpush3.bf16.msra.mxu1 %v1891_v9  ;;  %v1944_v51 = vld [vmem:[%s2736_s0 + $0xc] ss:$20 sps:$4 sm:$0xff]   ;;  %v1939_v52 = vld [vmem:[%s2735_s1 + $0xb8] sm:$0xff]   ;;  %v1948_v57 = vld [vmem:[%s2736_s0 + $0x34] ss:$20 sps:$4 sm:$0xff]  }
  0x14   :  { %1592 = vmatprep.subr.bf16.mxu0 %v1892_v10  ;;  %1871 = vmatprep.subr.bf16.mxu1 %v1892_v10  ;;  %v1946_v55 = vld [vmem:[%s2736_s0 + $0xcc] ss:$20 sps:$4 sm:$0xff]   ;;  %v1977_v56 = vld [vmem:[%s2735_s1 + $0x118] sm:$0xff]   ;;  %v1951_v59 = vld [vmem:[%s2736_s0 + $0x30] ss:$20 sps:$4 sm:$0xff]  }
  0x15   :  { %v1952_v60 = vld [vmem:[%s2736_s0 + $0xf4] ss:$20 sps:$4 sm:$0xff]   ;;  %v1954_v61 = vld [vmem:[%s2736_s0 + $0x5c] ss:$20 sps:$4 sm:$0xff]   ;;  %v1957_v63 = vld [vmem:[%s2736_s0 + $0x58] ss:$20 sps:$4 sm:$0xff]  }
  0x16   :  { %v1956_v62 = vld [vmem:[%s2736_s0 + $0xf0] ss:$20 sps:$4 sm:$0xff]   ;;  %v1963_v2 = vld [vmem:[%s2736_s0 + $0x118] ss:$20 sps:$4 sm:$0xff]   ;;  %v1964_v3 = vld [vmem:[%s2736_s0 + $0x80] ss:$20 sps:$4 sm:$0xff]  }
  0x17   :  { %1593 = vmatpush3.bf16.msra.mxu0 %v1893_v13  ;;  %1879 = vmatpush3.bf16.msra.mxu1 %v1893_v13  ;;  %v1959_v0 = vld [vmem:[%s2736_s0 + $0x11c] ss:$20 sps:$4 sm:$0xff]   ;;  %v1961_v1 = vld [vmem:[%s2736_s0 + $0x84] ss:$20 sps:$4 sm:$0xff]   ;;  %v1967_v5 = vld [vmem:[%s2736_s0 + $0xac] ss:$20 sps:$4 sm:$0xff]  }
  0x18   :  { %1594 = vmatprep.subr.bf16.mxu0 %v1894_v14  ;;  %1872 = vmatprep.subr.bf16.mxu1 %v1894_v14  ;;  %v1965_v4 = vld [vmem:[%s2736_s0 + $0x144] ss:$20 sps:$4 sm:$0xff]   ;;  %v1969_v6 = vld [vmem:[%s2736_s0 + $0x140] ss:$20 sps:$4 sm:$0xff]   ;;  %v1970_v7 = vld [vmem:[%s2736_s0 + $0xa8] ss:$20 sps:$4 sm:$0xff]  }
  0x19   :  { %v1971_v8 = vld [vmem:[%s2736_s0 + $0x16c] ss:$20 sps:$4 sm:$0xff]   ;;  %v1973_v9 = vld [vmem:[%s2736_s0 + $0xd4] ss:$20 sps:$4 sm:$0xff]   ;;  %v1976_v11 = vld [vmem:[%s2736_s0 + $0xd0] ss:$20 sps:$4 sm:$0xff]  }
  0x1a   :  { %v1975_v10 = vld [vmem:[%s2736_s0 + $0x168] ss:$20 sps:$4 sm:$0xff]   ;;  %v1982_v14 = vld [vmem:[%s2736_s0 + $0x190] ss:$20 sps:$4 sm:$0xff]  }
  0x1b   :  { %1595 = vmatpush3.bf16.msra.mxu0 %v1895_v15  ;;  %1880 = vmatpush3.bf16.msra.mxu1 %v1895_v15  ;;  %v1978_v12 = vld [vmem:[%s2736_s0 + $0x194] ss:$20 sps:$4 sm:$0xff]   ;;  %v1980_v13 = vld [vmem:[%s2736_s0 + $0xfc] ss:$20 sps:$4 sm:$0xff]   ;;  %v1983_v15 = vld [vmem:[%s2736_s0 + $0xf8] ss:$20 sps:$4 sm:$0xff]  }
  0x1c   :  { %1596 = vmatprep.subr.bf16.mxu0 %v1896_v16  ;;  %1873 = vmatprep.subr.bf16.mxu1 %v1896_v16  ;;  %v1984_v16 = vld [vmem:[%s2736_s0 + $0x1bc] ss:$20 sps:$4 sm:$0xff]  }
  0x1f   :  { %1597 = vmatpush3.bf16.msra.mxu0 %v1897_v17  ;;  %1881 = vmatpush3.bf16.msra.mxu1 %v1897_v17  ;;  %v1986_v17 = vld [vmem:[%s2736_s0 + $0x124] ss:$20 sps:$4 sm:$0xff]  }
  0x20   :  { %1694 = vmatprep.subr.bf16.mxu1 %v1904_v18  ;;  %1826 = vmatprep.subr.bf16.mxu0 %v1907_v19  ;;  %v1988_v18 = vld [vmem:[%s2736_s0 + $0x1b8] ss:$20 sps:$4 sm:$0xff]  }
  0x22   :  { %884 = vmatmul.mubr.bf16.vlgmr.msra.gmra.mrb[0].mxu0 %v1898_v20  ;;  %980 = vmatmul.mubr.bf16.vlgmr.msra.gmra.mrb[0].mxu1 %v1901_v21  ;;  %v1990_v20 = vld [vmem:[%s2736_s0 + $0x14c] ss:$20 sps:$4 sm:$0xff]   ;;  %v1992_v21 = vld [vmem:[%s2736_s0 + $0x10] ss:$20 sps:$4 sm:$0xff]  }
  0x23   :  { %1695 = vmatpush3.bf16.msra.mxu1 %v1905_v22  ;;  %1827 = vmatpush3.bf16.msra.mxu0 %v1907_v19  ;;  %v1989_v19 = vld [vmem:[%s2736_s0 + $0x120] ss:$20 sps:$4 sm:$0xff]   ;;  %v1993_v22 = vld [vmem:[%s2736_s0 + $0x148] ss:$20 sps:$4 sm:$0xff]  }
  0x24   :  { %1696 = vmatprep.subr.bf16.mxu1 %v1906_v23  ;;  %891 = vmatprep.mubr.bf16.mxu0 %v1909_v24  ;;  %v1994_v23 = vld [vmem:[%s2736_s0 + $0x38] ss:$20 sps:$4 sm:$0xff]   ;;  %v1995_v24 = vld [vmem:[%s2736_s0 + $0x174] ss:$20 sps:$4 sm:$0xff]  }
  0x25   :  { %987 = vmatprep.mubr.bf16.mxu1 %v1911_v25  ;;  %1828 = vmatprep.subr.bf16.mxu0 %v1938_v35  ;;  %v1997_v25 = vld [vmem:[%s2736_s0 + $0x60] ss:$20 sps:$4 sm:$0xff]  }
  0x27   :  { %1697 = vmatpush3.bf16.msra.mxu1 %v1908_v26  ;;  %1829 = vmatpush3.bf16.msra.mxu0 %v1938_v35  ;;  %v1998_v26 = vld [vmem:[%s2736_s0 + $0x170] ss:$20 sps:$4 sm:$0xff]   ;;  %v2009_v35 = vld [vmem:[%s2736_s0 + $0x128] ss:$20 sps:$4 sm:$0xff]  }
  0x28   :  { %1698 = vmatprep.subr.bf16.mxu1 %v1915_v28  ;;  %1830 = vmatprep.subr.bf16.mxu0 %v1958_v47  ;;  %v2000_v28 = vld [vmem:[%s2736_s0 + $0x19c] ss:$20 sps:$4 sm:$0xff]  }
  0x2a   :  { %892 = vmatmul.mubr.bf16.gmra.mrb[4].mxu0 %v1913_v27  ;;  %988 = vmatmul.mubr.bf16.gmra.mrb[4].mxu1 %v1914_v29  ;;  %v1999_v27 = vld [vmem:[%s2736_s0 + $0x88] ss:$20 sps:$4 sm:$0xff]   ;;  %v2002_v29 = vld [vmem:[%s2736_s0 + $0xb0] ss:$20 sps:$4 sm:$0xff]  }
  0x2b   :  { %1699 = vmatpush3.bf16.msra.mxu1 %v1916_v30  ;;  %899 = vmatprep.mubr.bf16.mxu0 %v1919_v32  ;;  %v2003_v30 = vld [vmem:[%s2736_s0 + $0x198] ss:$20 sps:$4 sm:$0xff]  }
  0x2c   :  { %1700 = vmatprep.subr.bf16.mxu1 %v1917_v31  ;;  %995 = vmatprep.mubr.bf16.mxu1 %v1921_v33  ;;  %v2004_v31 = vld [vmem:[%s2736_s0 + $0xd8] ss:$20 sps:$4 sm:$0xff]   ;;  %v2007_v33 = vld [vmem:[%s2736_s0 + $0x100] ss:$20 sps:$4 sm:$0xff]  }
  0x2d   :  { %1831 = vmatpush3.bf16.msra.mxu0 %v1958_v47  ;;  %v2005_v32 = vld [vmem:[%s2736_s0 + $0x1c4] ss:$20 sps:$4 sm:$0xff]  }
  0x2e   :  { %1832 = vmatprep.subr.bf16.mxu0 %v1977_v56  ;;  %v2024_v47 = vld [vmem:[%s2736_s0 + $0x218] ss:$20 sps:$4 sm:$0xff]  }
  0x2f   :  { %1701 = vmatpush3.bf16.msra.mxu1 %v1918_v34  ;;  %v2008_v34 = vld [vmem:[%s2736_s0 + $0x1c0] ss:$20 sps:$4 sm:$0xff]  }
  0x30   :  { %1702 = vmatprep.subr.bf16.mxu1 %v1925_v37  ;;  %v2012_v37 = vld [vmem:[%s2736_s0 + $0x150] ss:$20 sps:$4 sm:$0xff]  }
  0x31   :  { %1833 = vmatpush3.bf16.msra.mxu0 %v1977_v56 }
  0x32   :  { %900 = vmatmul.mubr.bf16.gmra.mrb[8].mxu0 %v1923_v36  ;;  %996 = vmatmul.mubr.bf16.gmra.mrb[8].mxu1 %v1924_v38  ;;  %v2010_v36 = vld [vmem:[%s2736_s0 + $0x1ec] ss:$20 sps:$4 sm:$0xff]   ;;  %v2013_v38 = vld [vmem:[%s2736_s0 + $0x1e8] ss:$20 sps:$4 sm:$0xff]  }
  0x33   :  { %1703 = vmatpush3.bf16.msra.mxu1 %v1926_v39  ;;  %907 = vmatprep.mubr.bf16.mxu0 %v1929_v41  ;;  %v2014_v39 = vld [vmem:[%s2736_s0 + $0x178] ss:$20 sps:$4 sm:$0xff]   ;;  %v2017_v41 = vld [vmem:[%s2736_s0 + $0x1a0] ss:$20 sps:$4 sm:$0xff]  }
  0x34   :  { %1704 = vmatprep.subr.bf16.mxu1 %v1927_v40  ;;  %1003 = vmatprep.mubr.bf16.mxu1 %v1931_v42  ;;  %v2015_v40 = vld [vmem:[%s2736_s0 + $0x214] ss:$20 sps:$4 sm:$0xff]   ;;  %v2018_v42 = vld [vmem:[%s2736_s0 + $0x210] ss:$20 sps:$4 sm:$0xff]  }
  0x37   :  { %1705 = vmatpush3.bf16.msra.mxu1 %v1928_v43  ;;  %v2019_v43 = vld [vmem:[%s2736_s0 + $0x1c8] ss:$20 sps:$4 sm:$0xff]  }
  0x38   :  { %1706 = vmatprep.subr.bf16.mxu1 %v1935_v46  ;;  %v2023_v46 = vld [vmem:[%s2736_s0 + $0x238] ss:$20 sps:$4 sm:$0xff]  }
  0x3a   :  { %908 = vmatmul.mubr.bf16.gmra.mrb[12].mxu0 %v1933_v44  ;;  %1004 = vmatmul.mubr.bf16.gmra.mrb[12].mxu1 %v1934_v45  ;;  %v2020_v44 = vld [vmem:[%s2736_s0 + $0x23c] ss:$20 sps:$4 sm:$0xff]  }
  0x3b   :  { %1707 = vmatpush3.bf16.msra.mxu1 %v1936_v48  ;;  %915 = vmatprep.mubr.bf16.mxu0 %v1940_v50  ;;  %v2022_v45 = vld [vmem:[%s2736_s0 + $0x1f0] ss:$20 sps:$4 sm:$0xff]   ;;  %v2028_v50 = vld [vmem:[%s2736_s0 + $0x260] ss:$20 sps:$4 sm:$0xff]  }
  0x3c   :  { %1708 = vmatprep.subr.bf16.mxu1 %v1937_v49  ;;  %1044 = vmatprep.mubr.bf16.mxu1 %v1944_v51  ;;  %v2025_v48 = vld [vmem:[%s2736_s0 + $0x264] ss:$20 sps:$4 sm:$0xff]   ;;  %v2027_v49 = vld [vmem:[%s2736_s0 + $0x240] ss:$20 sps:$4 sm:$0xff]   ;;  %v2029_v51 = vld [vmem:[%s2736_s0 + $0x268] ss:$20 sps:$4 sm:$0xff]  }
  0x3f   :  { %1709 = vmatpush3.bf16.msra.mxu1 %v1939_v52 }
  0x42   :  { %916 = vmatmul.mubr.bf16.gmra.mrb[16].mxu0 %v1945_v54  ;;  %1045 = vmatmul.mubr.bf16.vlgmr.msra.gmra.mrb[16].mxu1 %v1942_v53 }
  0x43   :  { %923 = vmatprep.mubr.bf16.mxu0 %v1946_v55  ;;  %1052 = vmatprep.mubr.bf16.mxu1 %v1948_v57 }
  0x4a   :  { %924 = vmatmul.mubr.bf16.gmra.mrb[20].mxu0 %v1950_v58  ;;  %1053 = vmatmul.mubr.bf16.gmra.mrb[20].mxu1 %v1951_v59 }
  0x4b   :  { %931 = vmatprep.mubr.bf16.mxu0 %v1952_v60  ;;  %1060 = vmatprep.mubr.bf16.mxu1 %v1954_v61 }
  0x52   :  { %932 = vmatmul.mubr.bf16.gmra.mrb[24].mxu0 %v1956_v62  ;;  %1061 = vmatmul.mubr.bf16.gmra.mrb[24].mxu1 %v1957_v63 }
  0x53   :  { %939 = vmatprep.mubr.bf16.mxu0 %v1959_v0  ;;  %1068 = vmatprep.mubr.bf16.mxu1 %v1961_v1 }
  0x5a   :  { %940 = vmatmul.mubr.bf16.gmra.mrb[28].mxu0 %v1963_v2  ;;  %1069 = vmatmul.mubr.bf16.gmra.mrb[28].mxu1 %v1964_v3 }
  0x5b   :  { %947 = vmatprep.mubr.bf16.mxu0 %v1965_v4  ;;  %1076 = vmatprep.mubr.bf16.mxu1 %v1967_v5 }
  0x62   :  { %948 = vmatmul.mubr.bf16.gmra.mrb[32].mxu0 %v1969_v6  ;;  %1077 = vmatmul.mubr.bf16.gmra.mrb[32].mxu1 %v1970_v7 }
  0x63   :  { %955 = vmatprep.mubr.bf16.mxu0 %v1971_v8  ;;  %1084 = vmatprep.mubr.bf16.mxu1 %v1973_v9 }
  0x6a   :  { %956 = vmatmul.mubr.bf16.gmra.mrb[36].mxu0 %v1975_v10  ;;  %1085 = vmatmul.mubr.bf16.gmra.mrb[36].mxu1 %v1976_v11 }
  0x6b   :  { %963 = vmatprep.mubr.bf16.mxu0 %v1978_v12  ;;  %1092 = vmatprep.mubr.bf16.mxu1 %v1980_v13 }
  0x72   :  { %964 = vmatmul.mubr.bf16.gmra.mrb[40].mxu0 %v1982_v14  ;;  %1093 = vmatmul.mubr.bf16.gmra.mrb[40].mxu1 %v1983_v15 }
  0x73   :  { %971 = vmatprep.mubr.bf16.mxu0 %v1984_v16  ;;  %1100 = vmatprep.mubr.bf16.mxu1 %v1986_v17 }
  0x7a   :  { %972 = vmatmul.mubr.bf16.gmra.mrb[44].mxu0 %v1988_v18  ;;  %1101 = vmatmul.mubr.bf16.gmra.mrb[44].mxu1 %v1989_v19 }
  0x7b   :  { %1108 = vmatprep.mubr.bf16.mxu1 %v1990_v20  ;;  %1834 = vmatprep.mubr.msk.bf16.mxu0 %vm802_vm0, %v1992_v21 }
  0x82   :  { %1109 = vmatmul.mubr.bf16.gmra.mrb[48].mxu1 %v1993_v22  ;;  %1835 = vmatmul.mubr.msk.bf16.vlgmr.msra.gmra.mrb[48].mxu0 %vm802_vm0, %v1994_v23 }
  0x83   :  { %1116 = vmatprep.mubr.bf16.mxu1 %v1995_v24  ;;  %1838 = vmatprep.mubr.msk.bf16.mxu0 %vm802_vm0, %v1997_v25 }
  0x8a   :  { %1117 = vmatmul.mubr.bf16.gmra.mrb[52].mxu1 %v1998_v26  ;;  %1839 = vmatmul.mubr.msk.bf16.gmra.mrb[52].mxu0 %vm802_vm0, %v1999_v27 }
  0x8b   :  { %1124 = vmatprep.mubr.bf16.mxu1 %v2000_v28  ;;  %1842 = vmatprep.mubr.msk.bf16.mxu0 %vm802_vm0, %v2002_v29 }
  0x92   :  { %1125 = vmatmul.mubr.bf16.gmra.mrb[56].mxu1 %v2003_v30  ;;  %1843 = vmatmul.mubr.msk.bf16.gmra.mrb[56].mxu0 %vm802_vm0, %v2004_v31 }
  0x93   :  { %1132 = vmatprep.mubr.bf16.mxu1 %v2005_v32  ;;  %1846 = vmatprep.mubr.msk.bf16.mxu0 %vm802_vm0, %v2007_v33 }
  0x9a   :  { %1133 = vmatmul.mubr.bf16.gmra.mrb[60].mxu1 %v2008_v34  ;;  %1847 = vmatmul.mubr.msk.bf16.gmra.mrb[60].mxu0 %vm802_vm0, %v2009_v35 }
  0x9b   :  { %1140 = vmatprep.mubr.bf16.mxu1 %v2010_v36  ;;  %1850 = vmatprep.mubr.msk.bf16.mxu0 %vm802_vm0, %v2012_v37 }
  0xa2   :  { %1141 = vmatmul.mubr.bf16.gmra.mrb[64].mxu1 %v2013_v38  ;;  %1851 = vmatmul.mubr.msk.bf16.gmra.mrb[64].mxu0 %vm802_vm0, %v2014_v39 }
  0xa3   :  { %1148 = vmatprep.mubr.bf16.mxu1 %v2015_v40  ;;  %1854 = vmatprep.mubr.msk.bf16.mxu0 %vm802_vm0, %v2017_v41 }
  0xaa   :  { %1149 = vmatmul.mubr.bf16.gmra.mrb[68].mxu1 %v2018_v42  ;;  %1855 = vmatmul.mubr.msk.bf16.gmra.mrb[68].mxu0 %vm802_vm0, %v2019_v43 }
  0xab   :  { %1156 = vmatprep.mubr.bf16.mxu1 %v2020_v44  ;;  %1858 = vmatprep.mubr.msk.bf16.mxu0 %vm802_vm0, %v2022_v45 }
  0xb2   :  { %1157 = vmatmul.mubr.bf16.gmra.mrb[72].mxu1 %v2023_v46  ;;  %1859 = vmatmul.mubr.msk.bf16.gmra.mrb[72].mxu0 %vm802_vm0, %v2024_v47 }
  0xb3   :  { %1164 = vmatprep.mubr.bf16.mxu1 %v2025_v48  ;;  %1862 = vmatprep.mubr.msk.bf16.mxu0 %vm802_vm0, %v2027_v49 }
  0xba   :  { %1165 = vmatmul.mubr.bf16.gmra.mrb[76].mxu1 %v2028_v50  ;;  %1863 = vmatmul.mubr.msk.bf16.gmra.mrb[76].mxu0 %vm802_vm0, %v2029_v51 }
  0xf5   :  { %v1670_v52 = vpop.f32.mrb[0].mxu1  ;;  %v1598_v53 = vpop.f32.mrb[0].mxu0 }
  0xf6   :  { %v1671_v54 = vpop.f32.mrb[1].mxu1  ;;  %v1599_v55 = vpop.f32.mrb[1].mxu0 }
  0xf7   :  { %v2419_v56 = vadd.f32 %v1671_v54, %v1670_v52  ;;  %v1673_v57 = vpop.f32.mrb[2].mxu1  ;;  %v1600_v58 = vadd.f32 %v1599_v55, %v1598_v53  ;;  %v1601_v59 = vpop.f32.mrb[2].mxu0 }
  0xf8   :  { %v1674_v60 = vpop.f32.mrb[3].mxu1  ;;  %v1602_v61 = vpop.f32.mrb[3].mxu0 }
  0xf9   :  { %v2421_v62 = vadd.f32 %v1674_v60, %v1673_v57  ;;  %v1603_v63 = vadd.f32 %v1602_v61, %v1601_v59 }
  0xfd   :  { %v1676_v0 = vpop.f32.mrb[4].mxu1  ;;  %v1604_v1 = vpop.f32.mrb[4].mxu0 }
  0xfe   :  { %v1677_v2 = vpop.f32.mrb[5].mxu1  ;;  %v1605_v3 = vpop.f32.mrb[5].mxu0 }
  0xff   :  { %v2423_v4 = vadd.f32 %v1677_v2, %v1676_v0  ;;  %v1679_v5 = vpop.f32.mrb[6].mxu1  ;;  %v1606_v6 = vadd.f32 %v1605_v3, %v1604_v1  ;;  %v1607_v7 = vpop.f32.mrb[6].mxu0 }
 0x100   :  { %v1680_v8 = vpop.f32.mrb[7].mxu1  ;;  %v1608_v9 = vpop.f32.mrb[7].mxu0 }
 0x101   :  { %v2425_v10 = vadd.f32 %v1680_v8, %v1679_v5  ;;  %v1609_v11 = vadd.f32 %v1608_v9, %v1607_v7 }
 0x105   :  { %v1682_v12 = vpop.f32.mrb[8].mxu1  ;;  %v1610_v13 = vpop.f32.mrb[8].mxu0 }
 0x106   :  { %v1683_v14 = vpop.f32.mrb[9].mxu1  ;;  %v1611_v15 = vpop.f32.mrb[9].mxu0 }
 0x107   :  { %v2427_v16 = vadd.f32 %v1683_v14, %v1682_v12  ;;  %v1685_v17 = vpop.f32.mrb[10].mxu1  ;;  %v1612_v18 = vadd.f32 %v1611_v15, %v1610_v13  ;;  %v1613_v19 = vpop.f32.mrb[10].mxu0 }
 0x108   :  { %v1686_v20 = vpop.f32.mrb[11].mxu1  ;;  %v1614_v21 = vpop.f32.mrb[11].mxu0 }
 0x109   :  { %v2429_v22 = vadd.f32 %v1686_v20, %v1685_v17  ;;  %v1615_v23 = vadd.f32 %v1614_v21, %v1613_v19 }
 0x10d   :  { %v1688_v24 = vpop.f32.mrb[12].mxu1  ;;  %v1616_v25 = vpop.f32.mrb[12].mxu0 }
 0x10e   :  { %v1689_v26 = vpop.f32.mrb[13].mxu1  ;;  %v1617_v27 = vpop.f32.mrb[13].mxu0 }
 0x10f   :  { %v2431_v28 = vadd.f32 %v1689_v26, %v1688_v24  ;;  %v1691_v29 = vpop.f32.mrb[14].mxu1  ;;  %v1618_v30 = vadd.f32 %v1617_v27, %v1616_v25  ;;  %v1619_v31 = vpop.f32.mrb[14].mxu0 }
 0x110   :  { %v1692_v32 = vpop.f32.mrb[15].mxu1  ;;  %v1620_v33 = vpop.f32.mrb[15].mxu0 }
 0x111   :  { %v2433_v34 = vadd.f32 %v1692_v32, %v1691_v29  ;;  %v1621_v35 = vadd.f32 %v1620_v33, %v1619_v31 }
 0x115   :  { %v1710_v36 = vpop.f32.mrb[16].mxu1  ;;  %v1622_v37 = vpop.f32.mrb[16].mxu0 }
 0x116   :  { %v1711_v38 = vpop.f32.mrb[17].mxu1  ;;  %v1623_v39 = vpop.f32.mrb[17].mxu0 }
 0x117   :  { %v1712_v40 = vadd.f32 %v1711_v38, %v1710_v36  ;;  %v1713_v41 = vpop.f32.mrb[18].mxu1  ;;  %v1624_v42 = vadd.f32 %v1623_v39, %v1622_v37  ;;  %v1625_v43 = vpop.f32.mrb[18].mxu0 }
 0x118   :  { %v1714_v44 = vpop.f32.mrb[19].mxu1  ;;  %v1626_v45 = vpop.f32.mrb[19].mxu0 }
 0x119   :  { %v1715_v46 = vadd.f32 %v1714_v44, %v1713_v41  ;;  %v1627_v47 = vadd.f32 %v1626_v45, %v1625_v43  ;;  %v2435_v48 = vadd.f32 %v1712_v40, %v1600_v58 }
 0x11b   :  { %v2437_v49 = vadd.f32 %v1715_v46, %v1603_v63 }
 0x11d   :  { %v1716_v50 = vpop.f32.mrb[20].mxu1  ;;  %v1628_v51 = vpop.f32.mrb[20].mxu0 }
 0x11e   :  { %v1717_v52 = vpop.f32.mrb[21].mxu1  ;;  %v1629_v53 = vpop.f32.mrb[21].mxu0 }
 0x11f   :  { %v1718_v54 = vadd.f32 %v1717_v52, %v1716_v50  ;;  %v1719_v55 = vpop.f32.mrb[22].mxu1  ;;  %v1630_v57 = vadd.f32 %v1629_v53, %v1628_v51  ;;  %v1631_v59 = vpop.f32.mrb[22].mxu0 }
 0x120   :  { %v1720_v60 = vpop.f32.mrb[23].mxu1  ;;  %v1632_v61 = vpop.f32.mrb[23].mxu0 }
 0x121   :  { %v1721_v0 = vadd.f32 %v1720_v60, %v1719_v55  ;;  %v1633_v1 = vadd.f32 %v1632_v61, %v1631_v59  ;;  %v2439_v2 = vadd.f32 %v1718_v54, %v1606_v6 }
 0x123   :  { %v2441_v3 = vadd.f32 %v1721_v0, %v1609_v11 }
 0x125   :  { %v1722_v58 = vpop.f32.mrb[24].mxu1  ;;  %v1634_v5 = vpop.f32.mrb[24].mxu0 }
 0x126   :  { %v1723_v63 = vpop.f32.mrb[25].mxu1  ;;  %v1635_v7 = vpop.f32.mrb[25].mxu0 }
 0x127   :  { %v1724_v8 = vadd.f32 %v1723_v63, %v1722_v58  ;;  %v1725_v9 = vpop.f32.mrb[26].mxu1  ;;  %v1636_v12 = vadd.f32 %v1635_v7, %v1634_v5  ;;  %v1637_v13 = vpop.f32.mrb[26].mxu0 }
 0x128   :  { %v1726_v14 = vpop.f32.mrb[27].mxu1  ;;  %v1638_v15 = vpop.f32.mrb[27].mxu0 }
 0x129   :  { %v1727_v17 = vadd.f32 %v1726_v14, %v1725_v9  ;;  %v1639_v19 = vadd.f32 %v1638_v15, %v1637_v13  ;;  %v2443_v20 = vadd.f32 %v1724_v8, %v1612_v18 }
 0x12b   :  { %v2445_v21 = vadd.f32 %v1727_v17, %v1615_v23 }
 0x12d   :  { %v1728_v6 = vpop.f32.mrb[28].mxu1  ;;  %v1640_v24 = vpop.f32.mrb[28].mxu0 }
 0x12e   :  { %v1729_v11 = vpop.f32.mrb[29].mxu1  ;;  %v1641_v25 = vpop.f32.mrb[29].mxu0 }
 0x12f   :  { %v1730_v26 = vadd.f32 %v1729_v11, %v1728_v6  ;;  %v1731_v27 = vpop.f32.mrb[30].mxu1  ;;  %v1642_v29 = vadd.f32 %v1641_v25, %v1640_v24  ;;  %v1643_v31 = vpop.f32.mrb[30].mxu0 }
 0x130   :  { %v1732_v32 = vpop.f32.mrb[31].mxu1  ;;  %v1644_v33 = vpop.f32.mrb[31].mxu0 }
 0x131   :  { %v1733_v36 = vadd.f32 %v1732_v32, %v1731_v27  ;;  %v1645_v37 = vadd.f32 %v1644_v33, %v1643_v31  ;;  %v2447_v38 = vadd.f32 %v1730_v26, %v1618_v30 }
 0x133   :  { %v2449_v39 = vadd.f32 %v1733_v36, %v1621_v35 }
 0x135   :  { %v1734_v18 = vpop.f32.mrb[32].mxu1  ;;  %v1646_v40 = vpop.f32.mrb[32].mxu0 }
 0x136   :  { %v1735_v23 = vpop.f32.mrb[33].mxu1  ;;  %v1647_v41 = vpop.f32.mrb[33].mxu0 }
 0x137   :  { %v1736_v43 = vadd.f32 %v1735_v23, %v1734_v18  ;;  %v1737_v44 = vpop.f32.mrb[34].mxu1  ;;  %v2451_v45 = vadd.f32 %v1647_v41, %v1646_v40  ;;  %v1649_v46 = vpop.f32.mrb[34].mxu0 }
 0x138   :  { %v1738_v50 = vpop.f32.mrb[35].mxu1  ;;  %v1650_v51 = vpop.f32.mrb[35].mxu0 }
 0x139   :  { %v1739_v52 = vadd.f32 %v1738_v50, %v1737_v44  ;;  %v2453_v53 = vadd.f32 %v1650_v51, %v1649_v46  ;;  %v2455_v54 = vadd.f32 %v1736_v43, %v1624_v42 }
 0x13b   :  { %v2457_v30 = vadd.f32 %v1739_v52, %v1627_v47 }
 0x13d   :  { %v1740_v35 = vpop.f32.mrb[36].mxu1  ;;  %v1652_v55 = vpop.f32.mrb[36].mxu0 }
 0x13e   :  { %v1741_v59 = vpop.f32.mrb[37].mxu1  ;;  %v1653_v60 = vpop.f32.mrb[37].mxu0 }
 0x13f   :  { %v1742_v61 = vadd.f32 %v1741_v59, %v1740_v35  ;;  %v1743_v0 = vpop.f32.mrb[38].mxu1  ;;  %v2459_v58 = vadd.f32 %v1653_v60, %v1652_v55  ;;  %v1655_v5 = vpop.f32.mrb[38].mxu0  ;;  %v2486_v59 = vld [vmem:[%s2737_s2] ss:$0 sm:$0xff] }
 0x140   :  { %v1744_v63 = vpop.f32.mrb[39].mxu1  ;;  %v1656_v7 = vpop.f32.mrb[39].mxu0 }
 0x141   :  { %v1745_v8 = vadd.f32 %v1744_v63, %v1743_v0  ;;  %v2461_v9 = vadd.f32 %v1656_v7, %v1655_v5  ;;  %v2463_v13 = vadd.f32 %v1742_v61, %v1630_v57  ;;  %v2492_v5 = vld [vmem:[%s2738_s3] ss:$0 sm:$0xff] }
 0x143   :  { %v2465_v42 = vadd.f32 %v1745_v8, %v1633_v1 }
 0x145   :  { %v1746_v47 = vpop.f32.mrb[40].mxu1  ;;  %v1658_v14 = vpop.f32.mrb[40].mxu0 }
 0x146   :  { %v1747_v15 = vpop.f32.mrb[41].mxu1  ;;  %v1659_v17 = vpop.f32.mrb[41].mxu0 }
 0x147   :  { %v1748_v6 = vadd.f32 %v1747_v15, %v1746_v47  ;;  %v1749_v24 = vpop.f32.mrb[42].mxu1  ;;  %v2467_v11 = vadd.f32 %v1659_v17, %v1658_v14  ;;  %v1661_v25 = vpop.f32.mrb[42].mxu0 }
 0x148   :  { %v1750_v26 = vpop.f32.mrb[43].mxu1  ;;  %v1662_v27 = vpop.f32.mrb[43].mxu0 }
 0x149   :  { %v1751_v31 = vadd.f32 %v1750_v26, %v1749_v24  ;;  %v2469_v32 = vadd.f32 %v1662_v27, %v1661_v25  ;;  %v2471_v33 = vadd.f32 %v1748_v6, %v1636_v12 }
 0x14b   :  { %v2473_v57 = vadd.f32 %v1751_v31, %v1639_v19 }
 0x14d   :  { %v1752_v1 = vpop.f32.mrb[44].mxu1  ;;  %v1664_v36 = vpop.f32.mrb[44].mxu0 }
 0x14e   :  { %v1753_v18 = vpop.f32.mrb[45].mxu1  ;;  %v1665_v40 = vpop.f32.mrb[45].mxu0 }
 0x14f   :  { %v1754_v23 = vadd.f32 %v1753_v18, %v1752_v1  ;;  %v1755_v41 = vpop.f32.mrb[46].mxu1  ;;  %v2475_v43 = vadd.f32 %v1665_v40, %v1664_v36  ;;  %v1667_v44 = vpop.f32.mrb[46].mxu0 }
 0x150   :  { %v1756_v46 = vpop.f32.mrb[47].mxu1  ;;  %v1668_v50 = vpop.f32.mrb[47].mxu0 }
 0x151   :  { %v1757_v51 = vadd.f32 %v1756_v46, %v1755_v41  ;;  %v2477_v52 = vadd.f32 %v1668_v50, %v1667_v44  ;;  %v2479_v35 = vadd.f32 %v1754_v23, %v1642_v29 }
 0x153   :  { %v2481_v12 = vadd.f32 %v1757_v51, %v1645_v37 }
 0x155   :  { %v1758_v19 = vpop.f32.mrb[48].mxu1  ;;  %v1836_v55 = vpop.f32.mrb[48].mxu0 }
 0x156   :  { %v1216_v60 = vadd.f32 %v1836_v55, %v2439_v2  ;;  %v1759_v61 = vpop.f32.mrb[49].mxu1  ;;  %v1207_v0 = vpop.f32.mrb[49].mxu0 }
 0x157   :  { %v1760_v29 = vadd.f32 %v1759_v61, %v1758_v19  ;;  %v1208_v37 = vadd.f32 %v1207_v0, %v2435_v48  ;;  %v1761_v63 = vpop.f32.mrb[50].mxu1  ;;  %v1837_v7 = vpop.f32.mrb[50].mxu0 }
 0x158   :  { %v1343_v8 = vmul.f32 %v2486_v59, %v1216_v60  ;;  %v1219_v47 = vadd.f32 %v1837_v7, %v2441_v3  ;;  %v1762_v14 = vpop.f32.mrb[51].mxu1  ;;  %v1210_v15 = vpop.f32.mrb[51].mxu0 }
 0x159   :  { %v1341_v2 = vmul.f32 %v2486_v59, %v1208_v37  ;;  %v1763_v17 = vadd.f32 %v1762_v14, %v1761_v63  ;;  %v1211_v6 = vadd.f32 %v1210_v15, %v2437_v49  ;;  %v2500_v24 = vadd.f32 %v1760_v29, %v2451_v45 }
 0x15a   :  { %v1382_v25 = vadd.f32 %v2492_v5, %v1343_v8  ;;  %v1344_v48 = vmul.f32 %v2486_v59, %v1219_v47 }
 0x15b   :  { %v1380_v26 = vadd.f32 %v2492_v5, %v1341_v2  ;;  %v1342_v27 = vmul.f32 %v2486_v59, %v1211_v6  ;;  %v2507_v3 = vadd.f32 %v1763_v17, %v2453_v53 }
 0x15c   :  { %1414 = vst.msk [vmem:[%s2739_s4 + $0x10] sm:$0xff] %vm802_vm0, %v1382_v25  ;;  %v1383_v49 = vadd.f32 %v2492_v5, %v1344_v48 }
 0x15d   :  { %1412 = vst.msk [vmem:[%s2739_s4] sm:$0xff] %vm802_vm0, %v1380_v26  ;;  %v1381_v45 = vadd.f32 %v2492_v5, %v1342_v27  ;;  %v1764_v31 = vpop.f32.mrb[52].mxu1  ;;  %v1840_v1 = vpop.f32.mrb[52].mxu0 }
 0x15e   :  { %1415 = vst.msk [vmem:[%s2739_s4 + $0x18] sm:$0xff] %vm802_vm0, %v1383_v49  ;;  %v1232_v53 = vadd.f32 %v1840_v1, %v2447_v38  ;;  %v1765_v36 = vpop.f32.mrb[53].mxu1  ;;  %v1223_v18 = vpop.f32.mrb[53].mxu0 }
 0x15f   :  { %1413 = vst.msk [vmem:[%s2739_s4 + $0x8] sm:$0xff] %vm802_vm0, %v1381_v45  ;;  %v1766_v40 = vadd.f32 %v1765_v36, %v1764_v31  ;;  %v1224_v23 = vadd.f32 %v1223_v18, %v2443_v20  ;;  %v1767_v41 = vpop.f32.mrb[54].mxu1  ;;  %v1841_v44 = vpop.f32.mrb[54].mxu0 }
 0x160   :  { %v1347_v46 = vmul.f32 %v2486_v59, %v1232_v53  ;;  %v1235_v50 = vadd.f32 %v1841_v44, %v2449_v39  ;;  %v1768_v51 = vpop.f32.mrb[55].mxu1  ;;  %v1226_v19 = vpop.f32.mrb[55].mxu0 }
 0x161   :  { %v1345_v38 = vmul.f32 %v2486_v59, %v1224_v23  ;;  %v1769_v55 = vadd.f32 %v1768_v51, %v1767_v41  ;;  %v1227_v60 = vadd.f32 %v1226_v19, %v2445_v21  ;;  %v2534_v61 = vadd.f32 %v1766_v40, %v2459_v58 }
 0x162   :  { %v1386_v0 = vadd.f32 %v2492_v5, %v1347_v46  ;;  %v1348_v20 = vmul.f32 %v2486_v59, %v1235_v50 }
 0x163   :  { %v1384_v29 = vadd.f32 %v2492_v5, %v1345_v38  ;;  %v1346_v37 = vmul.f32 %v2486_v59, %v1227_v60  ;;  %v2541_v39 = vadd.f32 %v1769_v55, %v2461_v9 }
 0x164   :  { %1418 = vst.msk [vmem:[%s2739_s4 + $0x30] sm:$0xff] %vm802_vm0, %v1386_v0  ;;  %v1387_v21 = vadd.f32 %v2492_v5, %v1348_v20 }
 0x165   :  { %1416 = vst.msk [vmem:[%s2739_s4 + $0x20] sm:$0xff] %vm802_vm0, %v1384_v29  ;;  %v1385_v58 = vadd.f32 %v2492_v5, %v1346_v37  ;;  %v1770_v63 = vpop.f32.mrb[56].mxu1  ;;  %v1844_v7 = vpop.f32.mrb[56].mxu0 }
 0x166   :  { %1419 = vst.msk [vmem:[%s2739_s4 + $0x38] sm:$0xff] %vm802_vm0, %v1387_v21  ;;  %v1248_v9 = vadd.f32 %v1844_v7, %v2463_v13  ;;  %v1771_v8 = vpop.f32.mrb[57].mxu1  ;;  %v1239_v47 = vpop.f32.mrb[57].mxu0 }
 0x167   :  { %1417 = vst.msk [vmem:[%s2739_s4 + $0x28] sm:$0xff] %vm802_vm0, %v1385_v58  ;;  %v1772_v14 = vadd.f32 %v1771_v8, %v1770_v63  ;;  %v1240_v15 = vadd.f32 %v1239_v47, %v2455_v54  ;;  %v1773_v2 = vpop.f32.mrb[58].mxu1  ;;  %v1845_v17 = vpop.f32.mrb[58].mxu0 }
 0x168   :  { %v1351_v6 = vmul.f32 %v2486_v59, %v1248_v9  ;;  %v1251_v25 = vadd.f32 %v1845_v17, %v2465_v42  ;;  %v1774_v48 = vpop.f32.mrb[59].mxu1  ;;  %v1242_v26 = vpop.f32.mrb[59].mxu0 }
 0x169   :  { %v1349_v13 = vmul.f32 %v2486_v59, %v1240_v15  ;;  %v1775_v27 = vadd.f32 %v1774_v48, %v1773_v2  ;;  %v1243_v49 = vadd.f32 %v1242_v26, %v2457_v30  ;;  %v2568_v45 = vadd.f32 %v1772_v14, %v2467_v11 }
 0x16a   :  { %v1390_v31 = vadd.f32 %v2492_v5, %v1351_v6  ;;  %v1352_v54 = vmul.f32 %v2486_v59, %v1251_v25 }
 0x16b   :  { %v1388_v1 = vadd.f32 %v2492_v5, %v1349_v13  ;;  %v1350_v53 = vmul.f32 %v2486_v59, %v1243_v49  ;;  %v2575_v42 = vadd.f32 %v1775_v27, %v2469_v32 }
 0x16c   :  { %1422 = vst.msk [vmem:[%s2739_s4 + $0x50] sm:$0xff] %vm802_vm0, %v1390_v31  ;;  %v1391_v30 = vadd.f32 %v2492_v5, %v1352_v54 }
 0x16d   :  { %1420 = vst.msk [vmem:[%s2739_s4 + $0x40] sm:$0xff] %vm802_vm0, %v1388_v1  ;;  %v1389_v11 = vadd.f32 %v2492_v5, %v1350_v53  ;;  %v1776_v36 = vpop.f32.mrb[60].mxu1  ;;  %v1848_v18 = vpop.f32.mrb[60].mxu0 }
 0x16e   :  { %1423 = vst.msk [vmem:[%s2739_s4 + $0x58] sm:$0xff] %vm802_vm0, %v1391_v30  ;;  %v1264_v32 = vadd.f32 %v1848_v18, %v2479_v35  ;;  %v1777_v40 = vpop.f32.mrb[61].mxu1  ;;  %v1255_v23 = vpop.f32.mrb[61].mxu0 }
 0x16f   :  { %1421 = vst.msk [vmem:[%s2739_s4 + $0x48] sm:$0xff] %vm802_vm0, %v1389_v11  ;;  %v1778_v41 = vadd.f32 %v1777_v40, %v1776_v36  ;;  %v1256_v44 = vadd.f32 %v1255_v23, %v2471_v33  ;;  %v1779_v46 = vpop.f32.mrb[62].mxu1  ;;  %v1849_v50 = vpop.f32.mrb[62].mxu0 }
 0x170   :  { %v1355_v51 = vmul.f32 %v2486_v59, %v1264_v32  ;;  %v1267_v19 = vadd.f32 %v1849_v50, %v2481_v12  ;;  %v1780_v38 = vpop.f32.mrb[63].mxu1  ;;  %v1258_v55 = vpop.f32.mrb[63].mxu0 }
 0x171   :  { %v1353_v35 = vmul.f32 %v2486_v59, %v1256_v44  ;;  %v1781_v60 = vadd.f32 %v1780_v38, %v1779_v46  ;;  %v1259_v0 = vadd.f32 %v1258_v55, %v2473_v57  ;;  %v1135_v20 = vadd.f32 %v1778_v41, %v2475_v43 }
 0x172   :  { %v1394_v29 = vadd.f32 %v2492_v5, %v1355_v51  ;;  %v1356_v37 = vmul.f32 %v2486_v59, %v1267_v19 }
 0x173   :  { %v1392_v33 = vadd.f32 %v2492_v5, %v1353_v35  ;;  %v1354_v21 = vmul.f32 %v2486_v59, %v1259_v0  ;;  %v1138_v58 = vadd.f32 %v1781_v60, %v2477_v52 }
 0x174   :  { %1426 = vst.msk [vmem:[%s2739_s4 + $0x70] sm:$0xff] %vm802_vm0, %v1394_v29  ;;  %v1395_v12 = vadd.f32 %v2492_v5, %v1356_v37 }
 0x175   :  { %1424 = vst.msk [vmem:[%s2739_s4 + $0x60] sm:$0xff] %vm802_vm0, %v1392_v33  ;;  %v1393_v57 = vadd.f32 %v2492_v5, %v1354_v21  ;;  %v1782_v43 = vpop.f32.mrb[64].mxu1  ;;  %v1852_v63 = vpop.f32.mrb[64].mxu0 }
 0x176   :  { %1427 = vst.msk [vmem:[%s2739_s4 + $0x78] sm:$0xff] %vm802_vm0, %v1395_v12  ;;  %v1280_v52 = vadd.f32 %v1852_v63, %v2534_v61  ;;  %v1783_v7 = vpop.f32.mrb[65].mxu1  ;;  %v1271_v9 = vpop.f32.mrb[65].mxu0 }
 0x177   :  { %1425 = vst.msk [vmem:[%s2739_s4 + $0x68] sm:$0xff] %vm802_vm0, %v1393_v57  ;;  %v1784_v8 = vadd.f32 %v1783_v7, %v1782_v43  ;;  %v1272_v47 = vadd.f32 %v1271_v9, %v2500_v24  ;;  %v1785_v14 = vpop.f32.mrb[66].mxu1  ;;  %v1853_v15 = vpop.f32.mrb[66].mxu0 }
 0x178   :  { %v1359_v2 = vmul.f32 %v2486_v59, %v1280_v52  ;;  %v1283_v17 = vadd.f32 %v1853_v15, %v2541_v39  ;;  %v1786_v6 = vpop.f32.mrb[67].mxu1  ;;  %v1274_v25 = vpop.f32.mrb[67].mxu0 }
 0x179   :  { %v1357_v61 = vmul.f32 %v2486_v59, %v1272_v47  ;;  %v1787_v48 = vadd.f32 %v1786_v6, %v1785_v14  ;;  %v1275_v26 = vadd.f32 %v1274_v25, %v2507_v3  ;;  %v1143_v13 = vadd.f32 %v1784_v8, %v2419_v56 }
 0x17a   :  { %v1398_v27 = vadd.f32 %v2492_v5, %v1359_v2  ;;  %v1360_v49 = vmul.f32 %v2486_v59, %v1283_v17 }
 0x17b   :  { %v1396_v24 = vadd.f32 %v2492_v5, %v1357_v61  ;;  %v1358_v31 = vmul.f32 %v2486_v59, %v1275_v26  ;;  %v1146_v54 = vadd.f32 %v1787_v48, %v2421_v62 }
 0x17c   :  { %1430 = vst.msk [vmem:[%s2739_s4 + $0x90] sm:$0xff] %vm802_vm0, %v1398_v27  ;;  %v1399_v39 = vadd.f32 %v2492_v5, %v1360_v49 }
 0x17d   :  { %1428 = vst.msk [vmem:[%s2739_s4 + $0x80] sm:$0xff] %vm802_vm0, %v1396_v24  ;;  %v1397_v56 = vadd.f32 %v2492_v5, %v1358_v31  ;;  %v1788_v3 = vpop.f32.mrb[68].mxu1  ;;  %v1856_v1 = vpop.f32.mrb[68].mxu0 }
 0x17e   :  { %1431 = vst.msk [vmem:[%s2739_s4 + $0x98] sm:$0xff] %vm802_vm0, %v1399_v39  ;;  %v1296_v62 = vadd.f32 %v1856_v1, %v1135_v20  ;;  %v1789_v53 = vpop.f32.mrb[69].mxu1  ;;  %v1287_v30 = vpop.f32.mrb[69].mxu0 }
 0x17f   :  { %1429 = vst.msk [vmem:[%s2739_s4 + $0x88] sm:$0xff] %vm802_vm0, %v1397_v56  ;;  %v1790_v11 = vadd.f32 %v1789_v53, %v1788_v3  ;;  %v1288_v36 = vadd.f32 %v1287_v30, %v2568_v45  ;;  %v1791_v18 = vpop.f32.mrb[70].mxu1  ;;  %v1857_v32 = vpop.f32.mrb[70].mxu0 }
 0x180   :  { %v1363_v40 = vmul.f32 %v2486_v59, %v1296_v62  ;;  %v1299_v23 = vadd.f32 %v1857_v32, %v1138_v58  ;;  %v1792_v41 = vpop.f32.mrb[71].mxu1  ;;  %v1290_v44 = vpop.f32.mrb[71].mxu0 }
 0x181   :  { %v1361_v46 = vmul.f32 %v2486_v59, %v1288_v36  ;;  %v1793_v50 = vadd.f32 %v1792_v41, %v1791_v18  ;;  %v1291_v51 = vadd.f32 %v1290_v44, %v2575_v42  ;;  %v1151_v19 = vadd.f32 %v1790_v11, %v2423_v4 }
 0x182   :  { %v1402_v38 = vadd.f32 %v2492_v5, %v1363_v40  ;;  %v1364_v55 = vmul.f32 %v2486_v59, %v1299_v23 }
 0x183   :  { %v1400_v45 = vadd.f32 %v2492_v5, %v1361_v46  ;;  %v1362_v35 = vmul.f32 %v2486_v59, %v1291_v51  ;;  %v1154_v60 = vadd.f32 %v1793_v50, %v2425_v10 }
 0x184   :  { %1434 = vst.msk [vmem:[%s2739_s4 + $0xb0] sm:$0xff] %vm802_vm0, %v1402_v38  ;;  %v1403_v0 = vadd.f32 %v2492_v5, %v1364_v55 }
 0x185   :  { %1432 = vst.msk [vmem:[%s2739_s4 + $0xa0] sm:$0xff] %vm802_vm0, %v1400_v45  ;;  %v1401_v4 = vadd.f32 %v2492_v5, %v1362_v35  ;;  %v1794_v42 = vpop.f32.mrb[72].mxu1  ;;  %v1860_v20 = vpop.f32.mrb[72].mxu0 }
 0x186   :  { %1435 = vst.msk [vmem:[%s2739_s4 + $0xb8] sm:$0xff] %vm802_vm0, %v1403_v0  ;;  %v1312_v10 = vadd.f32 %v1860_v20, %v1151_v19  ;;  %v1795_v29 = vpop.f32.mrb[73].mxu1  ;;  %v1303_v37 = vpop.f32.mrb[73].mxu0 }
 0x187   :  { %1433 = vst.msk [vmem:[%s2739_s4 + $0xa8] sm:$0xff] %vm802_vm0, %v1401_v4  ;;  %v1796_v33 = vadd.f32 %v1795_v29, %v1794_v42  ;;  %v1304_v21 = vadd.f32 %v1303_v37, %v1143_v13  ;;  %v1797_v58 = vpop.f32.mrb[74].mxu1  ;;  %v1861_v12 = vpop.f32.mrb[74].mxu0 }
 0x188   :  { %v1367_v57 = vmul.f32 %v2486_v59, %v1312_v10  ;;  %v1315_v43 = vadd.f32 %v1861_v12, %v1154_v60  ;;  %v1798_v63 = vpop.f32.mrb[75].mxu1  ;;  %v1306_v52 = vpop.f32.mrb[75].mxu0 }
 0x189   :  { %v1365_v7 = vmul.f32 %v2486_v59, %v1304_v21  ;;  %v1799_v9 = vadd.f32 %v1798_v63, %v1797_v58  ;;  %v1307_v8 = vadd.f32 %v1306_v52, %v1146_v54  ;;  %v1159_v47 = vadd.f32 %v1796_v33, %v2427_v16 }
 0x18a   :  { %v1406_v14 = vadd.f32 %v2492_v5, %v1367_v57  ;;  %v1368_v15 = vmul.f32 %v2486_v59, %v1315_v43 }
 0x18b   :  { %v1404_v2 = vadd.f32 %v2492_v5, %v1365_v7  ;;  %v1366_v17 = vmul.f32 %v2486_v59, %v1307_v8  ;;  %v1162_v6 = vadd.f32 %v1799_v9, %v2429_v22 }
 0x18c   :  { %1438 = vst.msk [vmem:[%s2739_s4 + $0xd0] sm:$0xff] %vm802_vm0, %v1406_v14  ;;  %v1407_v25 = vadd.f32 %v2492_v5, %v1368_v15 }
 0x18d   :  { %1436 = vst.msk [vmem:[%s2739_s4 + $0xc0] sm:$0xff] %vm802_vm0, %v1404_v2  ;;  %v1405_v16 = vadd.f32 %v2492_v5, %v1366_v17  ;;  %v1800_v61 = vpop.f32.mrb[76].mxu1  ;;  %v1864_v48 = vpop.f32.mrb[76].mxu0 }
 0x18e   :  { %1439 = vst.msk [vmem:[%s2739_s4 + $0xd8] sm:$0xff] %vm802_vm0, %v1407_v25  ;;  %v1801_v22 = vpop.f32.mrb[77].mxu1  ;;  %v1319_v26 = vpop.f32.mrb[77].mxu0 }
 0x18f   :  { %1437 = vst.msk [vmem:[%s2739_s4 + $0xc8] sm:$0xff] %vm802_vm0, %v1405_v16  ;;  %v1802_v13 = vadd.f32 %v1801_v22, %v1800_v61  ;;  %v1320_v27 = vadd.f32 %v1319_v26, %v1159_v47  ;;  %v1803_v49 = vpop.f32.mrb[78].mxu1  ;;  %v1865_v24 = vpop.f32.mrb[78].mxu0 }
 0x190   :  { %v1804_v31 = vpop.f32.mrb[79].mxu1  ;;  %v1322_v54 = vpop.f32.mrb[79].mxu0 }
 0x191   :  { %v1167_v39 = vadd.f32 %v1802_v13, %v2431_v28  ;;  %v1369_v56 = vmul.f32 %v2486_v59, %v1320_v27  ;;  %v1805_v3 = vadd.f32 %v1804_v31, %v1803_v49  ;;  %v1323_v1 = vadd.f32 %v1322_v54, %v1162_v6 }
 0x193   :  { %v1328_v62 = vadd.f32 %v1864_v48, %v1167_v39  ;;  %v1408_v53 = vadd.f32 %v2492_v5, %v1369_v56  ;;  %v1170_v30 = vadd.f32 %v1805_v3, %v2433_v34  ;;  %v1370_v11 = vmul.f32 %v2486_v59, %v1323_v1 }
 0x195   :  { %v1371_v36 = vmul.f32 %v2486_v59, %v1328_v62  ;;  %1440 = vst.msk [vmem:[%s2739_s4 + $0xe0] sm:$0xff] %vm802_vm0, %v1408_v53  ;;  %v1331_v18 = vadd.f32 %v1865_v24, %v1170_v30  ;;  %v1409_v28 = vadd.f32 %v2492_v5, %v1370_v11 }
 0x197   :  { %v1410_v32 = vadd.f32 %v2492_v5, %v1371_v36  ;;  %v1372_v40 = vmul.f32 %v2486_v59, %v1331_v18  ;;  %1441 = vst.msk [vmem:[%s2739_s4 + $0xe8] sm:$0xff] %vm802_vm0, %v1409_v28 }
 0x199   :  { %1442 = vst.msk [vmem:[%s2739_s4 + $0xf0] sm:$0xff] %vm802_vm0, %v1410_v32  ;;  %v1411_v34 = vadd.f32 %v2492_v5, %v1372_v40 }
 0x19b   :  { %1443 = vst.msk [vmem:[%s2739_s4 + $0xf8] sm:$0xff] %vm802_vm0, %v1411_v34 }

// kernel: cnn_net.23
= control target key start
LH: loop header
LB: loop body
LE: loop exit
PB: predicated region body
PF: predicated region fallthrough
CT: control target
= control target key end

     0   :  { %v638_v34 = vmov 0.0   ;;  %vm639_vm0 = vmmov 0   ;;  %vm337_vm1 = vcmask 523264   ;;  %s803_s1 = inlined_call_operand.vmem [shape: bf16[576,64], index: 1, kind: input, shape index: {}]   ;;  %s804_s0 = inlined_call_operand.vmem [shape: bf16[16,576], index: 0, kind: input, shape index: {}]   ;;  %s805_s2 = inlined_call_operand.vmem [shape: f32[1,64], index: 2, kind: input, shape index: {}]   ;;  %s806_s3 = inlined_call_operand.vmem [shape: f32[1,64], index: 3, kind: input, shape index: {}]   ;;  %s807_s4 = inlined_call_operand.vmem [shape: f32[16,64], index: 4, kind: output, shape index: {}]  }
   0x1   :  { %v595_v0 = vld [vmem:[%s803_s1 + $0x40] sm:$0xff]   ;;  %v599_v4 = vld [vmem:[%s803_s1 + $0x48] sm:$0xff]   ;;  %v603_v8 = vld [vmem:[%s803_s1 + $0x50] sm:$0xff]  }
   0x2   :  { %v596_v1 = vld [vmem:[%s803_s1 + $0xc0] sm:$0xff]   ;;  %532 = vmatprep.subr.bf16.mxu0 %v595_v0  ;;  %v600_v5 = vld [vmem:[%s803_s1 + $0xc8] sm:$0xff]   ;;  %v604_v9 = vld [vmem:[%s803_s1 + $0xd0] sm:$0xff]  }
   0x3   :  { %v597_v2 = vld [vmem:[%s803_s1] sm:$0xff]   ;;  %554 = vmatprep.subr.bf16.mxu1 %v596_v1  ;;  %v601_v6 = vld [vmem:[%s803_s1 + $0x8] sm:$0xff]   ;;  %v605_v10 = vld [vmem:[%s803_s1 + $0x10] sm:$0xff]  }
   0x4   :  { %v598_v3 = vld [vmem:[%s803_s1 + $0x80] sm:$0xff]   ;;  %533 = vmatpush3.bf16.msra.mxu0 %v597_v2  ;;  %v602_v7 = vld [vmem:[%s803_s1 + $0x88] sm:$0xff]   ;;  %v606_v11 = vld [vmem:[%s803_s1 + $0x90] sm:$0xff]  }
   0x5   :  { %555 = vmatpush3.bf16.msra.mxu1 %v598_v3  ;;  %534 = vmatprep.subr.bf16.mxu0 %v599_v4  ;;  %v607_v12 = vld [vmem:[%s803_s1 + $0x58] sm:$0xff]   ;;  %v611_v16 = vld [vmem:[%s803_s1 + $0x60] sm:$0xff]   ;;  %v615_v20 = vld [vmem:[%s803_s1 + $0x68] sm:$0xff]  }
   0x6   :  { %556 = vmatprep.subr.bf16.mxu1 %v600_v5  ;;  %v608_v13 = vld [vmem:[%s803_s1 + $0xd8] sm:$0xff]   ;;  %v612_v17 = vld [vmem:[%s803_s1 + $0xe0] sm:$0xff]   ;;  %v616_v21 = vld [vmem:[%s803_s1 + $0xe8] sm:$0xff]  }
   0x7   :  { %v609_v14 = vld [vmem:[%s803_s1 + $0x18] sm:$0xff]   ;;  %v613_v18 = vld [vmem:[%s803_s1 + $0x20] sm:$0xff]   ;;  %v617_v22 = vld [vmem:[%s803_s1 + $0x28] sm:$0xff]  }
   0x8   :  { %535 = vmatpush3.bf16.msra.mxu0 %v601_v6  ;;  %v610_v15 = vld [vmem:[%s803_s1 + $0x98] sm:$0xff]   ;;  %v614_v19 = vld [vmem:[%s803_s1 + $0xa0] sm:$0xff]   ;;  %v618_v23 = vld [vmem:[%s803_s1 + $0xa8] sm:$0xff]  }
   0x9   :  { %557 = vmatpush3.bf16.msra.mxu1 %v602_v7  ;;  %536 = vmatprep.subr.bf16.mxu0 %v603_v8  ;;  %v619_v24 = vld [vmem:[%s803_s1 + $0x70] sm:$0xff]   ;;  %v623_v28 = vld [vmem:[%s803_s1 + $0x78] sm:$0xff]   ;;  %v632_v36 = vld [vmem:[%s804_s0 + $0xc] ss:$20 sps:$4 sm:$0xff]  }
   0xa   :  { %558 = vmatprep.subr.bf16.mxu1 %v604_v9  ;;  %v620_v25 = vld [vmem:[%s803_s1 + $0xf0] sm:$0xff]   ;;  %v624_v29 = vld [vmem:[%s803_s1 + $0xf8] sm:$0xff]   ;;  %v633_v37 = vld [vmem:[%s803_s1 + $0x100] sm:$0xff]   ;;  %414 = vmatprep.mubr.bf16.mxu1 %v632_v36 }
   0xb   :  { %v621_v26 = vld [vmem:[%s803_s1 + $0x30] sm:$0xff]   ;;  %v625_v30 = vld [vmem:[%s803_s1 + $0x38] sm:$0xff]   ;;  %v634_v38 = vld [vmem:[%s803_s1 + $0x108] sm:$0xff]  }
   0xc   :  { %537 = vmatpush3.bf16.msra.mxu0 %v605_v10  ;;  %v622_v27 = vld [vmem:[%s803_s1 + $0xb0] sm:$0xff]   ;;  %v626_v31 = vld [vmem:[%s803_s1 + $0xb8] sm:$0xff]   ;;  %v530_v57 = vld [vmem:[%s805_s2] ss:$0 sm:$0xff] }
   0xd   :  { %559 = vmatpush3.bf16.msra.mxu1 %v606_v11  ;;  %538 = vmatprep.subr.bf16.mxu0 %v607_v12  ;;  %v627_v32 = vld [vmem:[%s804_s0] ss:$20 sps:$4 sm:$0xff]   ;;  %v629_v33 = vld [vmem:[%s804_s0 + $0x4] ss:$20 sps:$4 sm:$0xff]   ;;  %v630_v35 = vld [vmem:[%s804_s0 + $0x8] ss:$20 sps:$4 sm:$0xff]  }
   0xe   :  { %560 = vmatprep.subr.bf16.mxu1 %v608_v13  ;;  %373 = vmatprep.mubr.bf16.mxu0 %v629_v33  ;;  %v635_v39 = vld [vmem:[%s803_s1 + $0x110] sm:$0xff]   ;;  %v636_v40 = vld [vmem:[%s803_s1 + $0x118] sm:$0xff]   ;;  %v531_v60 = vld [vmem:[%s806_s3] ss:$0 sm:$0xff] }
   0xf   :  { %v637_v41 = vld [vmem:[%s804_s0 + $0x10] ss:$20 sps:$4 sm:$0xff]  }
  0x10   :  { %539 = vmatpush3.bf16.msra.mxu0 %v609_v14 }
  0x11   :  { %561 = vmatpush3.bf16.msra.mxu1 %v610_v15  ;;  %540 = vmatprep.subr.bf16.mxu0 %v611_v16 }
  0x12   :  { %562 = vmatprep.subr.bf16.mxu1 %v612_v17 }
  0x14   :  { %541 = vmatpush3.bf16.msra.mxu0 %v613_v18 }
  0x15   :  { %563 = vmatpush3.bf16.msra.mxu1 %v614_v19  ;;  %542 = vmatprep.subr.bf16.mxu0 %v615_v20 }
  0x16   :  { %564 = vmatprep.subr.bf16.mxu1 %v616_v21 }
  0x18   :  { %543 = vmatpush3.bf16.msra.mxu0 %v617_v22 }
  0x19   :  { %565 = vmatpush3.bf16.msra.mxu1 %v618_v23  ;;  %544 = vmatprep.subr.bf16.mxu0 %v619_v24 }
  0x1a   :  { %566 = vmatprep.subr.bf16.mxu1 %v620_v25 }
  0x1c   :  { %545 = vmatpush3.bf16.msra.mxu0 %v621_v26 }
  0x1d   :  { %567 = vmatpush3.bf16.msra.mxu1 %v622_v27  ;;  %546 = vmatprep.subr.bf16.mxu0 %v623_v28 }
  0x1e   :  { %568 = vmatprep.subr.bf16.mxu1 %v624_v29 }
  0x20   :  { %547 = vmatpush3.bf16.msra.mxu0 %v625_v30 }
  0x21   :  { %569 = vmatpush3.bf16.msra.mxu1 %v626_v31  ;;  %581 = vmatprep.subr.bf16.mxu0 %v638_v34 }
  0x23   :  { %374 = vmatmul.mubr.bf16.vlgmr.msra.gmra.mrb[0].mxu0 %v627_v32 }
  0x24   :  { %415 = vmatmul.mubr.bf16.vlgmr.msra.gmra.mrb[0].mxu1 %v630_v35  ;;  %582 = vmatpush3.bf16.msra.mxu0 %v633_v37 }
  0x25   :  { %583 = vmatprep.subr.bf16.mxu0 %v638_v34  ;;  %589 = vmatprep.mubr.msk.bf16.mxu0 %vm639_vm0, %v638_v34 }
  0x28   :  { %584 = vmatpush3.bf16.msra.mxu0 %v634_v38 }
  0x29   :  { %585 = vmatprep.subr.bf16.mxu0 %v638_v34 }
  0x2c   :  { %586 = vmatpush3.bf16.msra.mxu0 %v635_v39 }
  0x2d   :  { %587 = vmatprep.subr.bf16.mxu0 %v638_v34 }
  0x30   :  { %588 = vmatpush3.bf16.msra.mxu0 %v636_v40 }
  0x33   :  { %590 = vmatmul.mubr.msk.bf16.vlgmr.msra.gmra.mrb[4].mxu0 %vm337_vm1, %v637_v41 }
  0xf6   :  { %v548_v42 = vpop.f32.mrb[0].mxu0 }
  0xf7   :  { %v570_v43 = vpop.f32.mrb[0].mxu1  ;;  %v549_v44 = vpop.f32.mrb[1].mxu0 }
  0xf8   :  { %v550_v45 = vadd.f32 %v549_v44, %v548_v42  ;;  %v571_v46 = vpop.f32.mrb[1].mxu1  ;;  %v551_v47 = vpop.f32.mrb[2].mxu0 }
  0xf9   :  { %v572_v48 = vadd.f32 %v571_v46, %v570_v43  ;;  %v573_v49 = vpop.f32.mrb[2].mxu1  ;;  %v552_v50 = vpop.f32.mrb[3].mxu0 }
  0xfa   :  { %v553_v51 = vadd.f32 %v552_v50, %v551_v47  ;;  %v574_v52 = vpop.f32.mrb[3].mxu1 }
  0xfb   :  { %v575_v53 = vadd.f32 %v574_v52, %v573_v49  ;;  %v417_v54 = vadd.f32 %v572_v48, %v550_v45 }
  0xfd   :  { %v420_v55 = vadd.f32 %v575_v53, %v553_v51 }
 0x106   :  { %v457_v56 = vpop.f32.mrb[4].mxu0 }
 0x107   :  { %v458_v58 = vadd.f32 %v457_v56, %v417_v54  ;;  %v591_v59 = vpop.f32.mrb[5].mxu0 }
 0x108   :  { %v460_v61 = vpop.f32.mrb[6].mxu0 }
 0x109   :  { %v471_v62 = vmul.f32 %v530_v57, %v458_v58  ;;  %v461_v63 = vadd.f32 %v460_v61, %v420_v55  ;;  %v592_v0 = vpop.f32.mrb[7].mxu0 }
 0x10b   :  { %v480_v1 = vadd.f32 %v531_v60, %v471_v62  ;;  %v472_v2 = vmul.f32 %v530_v57, %v461_v63 }
 0x10d   :  { %482 = vst.msk [vmem:[%s807_s4] sm:$0xff] %vm337_vm1, %v480_v1  ;;  %v481_v3 = vadd.f32 %v531_v60, %v472_v2 }
 0x10f   :  { %483 = vst.msk [vmem:[%s807_s4 + $0x8] sm:$0xff] %vm337_vm1, %v481_v3 }

// kernel: cnn_net.25
= control target key start
LH: loop header
LB: loop body
LE: loop exit
PB: predicated region body
PF: predicated region fallthrough
CT: control target
= control target key end

     0   :  { %vm366_vm0 = vcmask 523264   ;;  %s999_s0 = inlined_call_operand.vmem [shape: f32[256,64], index: 0, kind: input, shape index: {}]   ;;  %s1000_s1 = inlined_call_operand.vmem [shape: f32[256,64], index: 1, kind: input, shape index: {}]   ;;  %s1001_s2 = inlined_call_operand.vmem [shape: f32[256,64], index: 2, kind: input, shape index: {}]   ;;  %s1002_s3 = inlined_call_operand.vmem [shape: f32[256,64], index: 3, kind: output, shape index: {}]  }
   0x1   :  { %v46_v0 = vld [vmem:[%s999_s0] sm:$0xff]  ;;  %v47_v3 = vld [vmem:[%s999_s0 + $0x8] sm:$0xff]  ;;  %v48_v6 = vld [vmem:[%s999_s0 + $0x10] sm:$0xff] }
   0x2   :  { %v78_v1 = vld [vmem:[%s1000_s1] sm:$0xff]  ;;  %v79_v4 = vld [vmem:[%s1000_s1 + $0x8] sm:$0xff]  ;;  %v80_v7 = vld [vmem:[%s1000_s1 + $0x10] sm:$0xff] }
   0x3   :  { %v110_v2 = vadd.f32 %v78_v1, %v46_v0  ;;  %v111_v5 = vadd.f32 %v79_v4, %v47_v3  ;;  %v112_v9 = vadd.f32 %v80_v7, %v48_v6  ;;  %v49_v10 = vld [vmem:[%s999_s0 + $0x18] sm:$0xff]  ;;  %v50_v14 = vld [vmem:[%s999_s0 + $0x20] sm:$0xff]  ;;  %v51_v18 = vld [vmem:[%s999_s0 + $0x28] sm:$0xff] }
   0x4   :  { %v81_v11 = vld [vmem:[%s1000_s1 + $0x18] sm:$0xff]  ;;  %v82_v15 = vld [vmem:[%s1000_s1 + $0x20] sm:$0xff]  ;;  %v83_v19 = vld [vmem:[%s1000_s1 + $0x28] sm:$0xff] }
   0x5   :  { %v403_v8 = vmul.f32 -1.442695, %v110_v2  ;;  %v404_v12 = vmul.f32 -1.442695, %v111_v5  ;;  %v113_v13 = vadd.f32 %v81_v11, %v49_v10  ;;  %v405_v16 = vmul.f32 -1.442695, %v112_v9 }
   0x6   :  { %v114_v17 = vadd.f32 %v82_v15, %v50_v14  ;;  %v115_v21 = vadd.f32 %v83_v19, %v51_v18  ;;  %v52_v22 = vld [vmem:[%s999_s0 + $0x30] sm:$0xff]  ;;  %v53_v26 = vld [vmem:[%s999_s0 + $0x38] sm:$0xff]  ;;  %v54_v30 = vld [vmem:[%s999_s0 + $0x40] sm:$0xff] }
   0x7   :  { %435 = vpow2.f32 %v403_v8  ;;  %v406_v20 = vmul.f32 -1.442695, %v113_v13  ;;  %v84_v23 = vld [vmem:[%s1000_s1 + $0x30] sm:$0xff]  ;;  %v85_v27 = vld [vmem:[%s1000_s1 + $0x38] sm:$0xff]  ;;  %v86_v31 = vld [vmem:[%s1000_s1 + $0x40] sm:$0xff] }
   0x8   :  { %437 = vpow2.f32 %v404_v12  ;;  %v407_v24 = vmul.f32 -1.442695, %v114_v17  ;;  %v116_v25 = vadd.f32 %v84_v23, %v52_v22  ;;  %v408_v28 = vmul.f32 -1.442695, %v115_v21  ;;  %v55_v34 = vld [vmem:[%s999_s0 + $0x48] sm:$0xff]  ;;  %v56_v38 = vld [vmem:[%s999_s0 + $0x50] sm:$0xff] }
   0x9   :  { %439 = vpow2.f32 %v405_v16  ;;  %v117_v29 = vadd.f32 %v85_v27, %v53_v26  ;;  %v118_v33 = vadd.f32 %v86_v31, %v54_v30  ;;  %v87_v35 = vld [vmem:[%s1000_s1 + $0x48] sm:$0xff]  ;;  %v88_v39 = vld [vmem:[%s1000_s1 + $0x50] sm:$0xff]  ;;  %v57_v42 = vld [vmem:[%s999_s0 + $0x58] sm:$0xff] }
   0xa   :  { %441 = vpow2.f32 %v406_v20  ;;  %v409_v32 = vmul.f32 -1.442695, %v116_v25  ;;  %v119_v37 = vadd.f32 %v87_v35, %v55_v34  ;;  %v120_v41 = vadd.f32 %v88_v39, %v56_v38  ;;  %v89_v43 = vld [vmem:[%s1000_s1 + $0x58] sm:$0xff]  ;;  %v58_v46 = vld [vmem:[%s999_s0 + $0x60] sm:$0xff]  ;;  %v59_v63 = vld [vmem:[%s999_s0 + $0x68] sm:$0xff] }
   0xb   :  { %443 = vpow2.f32 %v407_v24  ;;  %v410_v36 = vmul.f32 -1.442695, %v117_v29  ;;  %v411_v40 = vmul.f32 -1.442695, %v118_v33  ;;  %v121_v45 = vadd.f32 %v89_v43, %v57_v42  ;;  %v90_v47 = vld [vmem:[%s1000_s1 + $0x60] sm:$0xff]  ;;  %v91_v0 = vld [vmem:[%s1000_s1 + $0x68] sm:$0xff] }
   0xc   :  { %445 = vpow2.f32 %v408_v28  ;;  %v412_v44 = vmul.f32 -1.442695, %v119_v37  ;;  %v413_v48 = vmul.f32 -1.442695, %v120_v41  ;;  %v122_v49 = vadd.f32 %v90_v47, %v58_v46  ;;  %v60_v3 = vld [vmem:[%s999_s0 + $0x70] sm:$0xff]  ;;  %v61_v7 = vld [vmem:[%s999_s0 + $0x78] sm:$0xff] }
   0xd   :  { %447 = vpow2.f32 %v409_v32  ;;  %v414_v50 = vmul.f32 -1.442695, %v121_v45  ;;  %v92_v4 = vld [vmem:[%s1000_s1 + $0x70] sm:$0xff]  ;;  %v93_v8 = vld [vmem:[%s1000_s1 + $0x78] sm:$0xff]  ;;  %v123_v11 = vadd.f32 %v91_v0, %v59_v63  ;;  %v62_v12 = vld [vmem:[%s999_s0 + $0x80] sm:$0xff] }
   0xe   :  { %449 = vpow2.f32 %v410_v36  ;;  %v415_v52 = vmul.f32 -1.442695, %v122_v49  ;;  %v94_v13 = vld [vmem:[%s1000_s1 + $0x80] sm:$0xff]  ;;  %v124_v16 = vadd.f32 %v92_v4, %v60_v3  ;;  %v63_v17 = vld [vmem:[%s999_s0 + $0x88] sm:$0xff]  ;;  %v125_v21 = vadd.f32 %v93_v8, %v61_v7  ;;  %v64_v22 = vld [vmem:[%s999_s0 + $0x90] sm:$0xff] }
   0xf   :  { %451 = vpow2.f32 %v411_v40  ;;  %v95_v18 = vld [vmem:[%s1000_s1 + $0x88] sm:$0xff]  ;;  %v96_v23 = vld [vmem:[%s1000_s1 + $0x90] sm:$0xff]  ;;  %v14_v25 = vld [vmem:[%s1001_s2] sm:$0xff]  ;;  %v126_v27 = vadd.f32 %v94_v13, %v62_v12  ;;  %v416_v33 = vmul.f32 -1.442695, %v123_v11 }
  0x10   :  { %453 = vpow2.f32 %v412_v44  ;;  %v65_v28 = vld [vmem:[%s999_s0 + $0x98] sm:$0xff]  ;;  %v15_v31 = vld [vmem:[%s1001_s2 + $0x8] sm:$0xff]  ;;  %v127_v34 = vadd.f32 %v95_v18, %v63_v17  ;;  %v66_v35 = vld [vmem:[%s999_s0 + $0xa0] sm:$0xff]  ;;  %v417_v40 = vmul.f32 -1.442695, %v124_v16  ;;  %v128_v41 = vadd.f32 %v96_v23, %v64_v22 }
  0x11   :  { %v436_v51 = vpop.eup %435  ;;  %455 = vpow2.f32 %v413_v48  ;;  %v97_v29 = vld [vmem:[%s1000_s1 + $0x98] sm:$0xff]  ;;  %v98_v36 = vld [vmem:[%s1000_s1 + $0xa0] sm:$0xff]  ;;  %v16_v38 = vld [vmem:[%s1001_s2 + $0x10] sm:$0xff]  ;;  %v418_v47 = vmul.f32 -1.442695, %v125_v21 }
  0x12   :  { %v438_v53 = vpop.eup %437  ;;  %v238_v54 = vadd.f32 1.0, %v436_v51  ;;  %457 = vpow2.f32 %v414_v50  ;;  %v67_v42 = vld [vmem:[%s999_s0 + $0xa8] sm:$0xff]  ;;  %v17_v46 = vld [vmem:[%s1001_s2 + $0x18] sm:$0xff]  ;;  %v129_v48 = vadd.f32 %v97_v29, %v65_v28  ;;  %v68_v49 = vld [vmem:[%s999_s0 + $0xb0] sm:$0xff]  ;;  %v421_v4 = vmul.f32 -1.442695, %v128_v41 }
  0x13   :  { %v440_v55 = vpop.eup %439  ;;  %v239_v56 = vadd.f32 1.0, %v438_v53  ;;  %459 = vpow2.f32 %v415_v52  ;;  %v99_v43 = vld [vmem:[%s1000_s1 + $0xa8] sm:$0xff]  ;;  %v100_v50 = vld [vmem:[%s1000_s1 + $0xb0] sm:$0xff]  ;;  %v18_v53 = vld [vmem:[%s1001_s2 + $0x20] sm:$0xff] }
  0x14   :  { %v442_v57 = vpop.eup %441  ;;  %461 = vrcp.f32 %v238_v54  ;;  %v240_v58 = vadd.f32 1.0, %v440_v55  ;;  %v419_v54 = vmul.f32 -1.442695, %v126_v27  ;;  %v130_v55 = vadd.f32 %v98_v36, %v66_v35  ;;  %v70_v63 = vld [vmem:[%s999_s0 + $0xc0] sm:$0xff]  ;;  %v20_v3 = vld [vmem:[%s1001_s2 + $0x30] sm:$0xff]  ;;  %v103_v7 = vld [vmem:[%s1000_s1 + $0xc8] sm:$0xff] }
  0x15   :  { %v444_v59 = vpop.eup %443  ;;  %463 = vrcp.f32 %v239_v56  ;;  %v241_v60 = vadd.f32 1.0, %v442_v57  ;;  %v69_v56 = vld [vmem:[%s999_s0 + $0xb8] sm:$0xff]  ;;  %v102_v0 = vld [vmem:[%s1000_s1 + $0xc0] sm:$0xff]  ;;  %v422_v11 = vmul.f32 -1.442695, %v129_v48 }
  0x16   :  { %v446_v61 = vpop.eup %445  ;;  %465 = vrcp.f32 %v240_v58  ;;  %v242_v62 = vadd.f32 1.0, %v444_v59  ;;  %v101_v57 = vld [vmem:[%s1000_s1 + $0xb8] sm:$0xff]  ;;  %v423_v16 = vmul.f32 -1.442695, %v130_v55  ;;  %v134_v17 = vadd.f32 %v102_v0, %v70_v63 }
  0x17   :  { %v448_v1 = vpop.eup %447  ;;  %467 = vrcp.f32 %v241_v60  ;;  %v243_v2 = vadd.f32 1.0, %v446_v61  ;;  %v19_v60 = vld [vmem:[%s1001_s2 + $0x28] sm:$0xff]  ;;  %v420_v61 = vmul.f32 -1.442695, %v127_v34  ;;  %v133_v12 = vadd.f32 %v101_v57, %v69_v56  ;;  %v25_v29 = vld [vmem:[%s1001_s2 + $0x58] sm:$0xff] }
  0x18   :  { %v450_v5 = vpop.eup %449  ;;  %469 = vrcp.f32 %v242_v62  ;;  %v244_v6 = vadd.f32 1.0, %v448_v1  ;;  %v131_v62 = vadd.f32 %v99_v43, %v67_v42  ;;  %v427_v34 = vmul.f32 -1.442695, %v134_v17  ;;  %v73_v56 = vld [vmem:[%s999_s0 + $0xd8] sm:$0xff] }
  0x19   :  { %v452_v9 = vpop.eup %451  ;;  %471 = vrcp.f32 %v243_v2  ;;  %v245_v10 = vadd.f32 1.0, %v450_v5  ;;  %v132_v5 = vadd.f32 %v100_v50, %v68_v49  ;;  %v105_v57 = vld [vmem:[%s1000_s1 + $0xd8] sm:$0xff] }
  0x1a   :  { %v454_v14 = vpop.eup %453  ;;  %473 = vrcp.f32 %v244_v6  ;;  %v246_v15 = vadd.f32 1.0, %v452_v9  ;;  %v71_v6 = vld [vmem:[%s999_s0 + $0xc8] sm:$0xff]  ;;  %v424_v21 = vmul.f32 -1.442695, %v131_v62 }
  0x1b   :  { %v456_v19 = vpop.eup %455  ;;  %475 = vrcp.f32 %v245_v10  ;;  %v247_v20 = vadd.f32 1.0, %v454_v14  ;;  %v21_v10 = vld [vmem:[%s1001_s2 + $0x38] sm:$0xff]  ;;  %v135_v22 = vadd.f32 %v103_v7, %v71_v6  ;;  %v76_v6 = vld [vmem:[%s999_s0 + $0xf0] sm:$0xff] }
  0x1c   :  { %v458_v24 = vpop.eup %457  ;;  %477 = vrcp.f32 %v246_v15  ;;  %v248_v26 = vadd.f32 1.0, %v456_v19  ;;  %v22_v15 = vld [vmem:[%s1001_s2 + $0x40] sm:$0xff]  ;;  %v108_v7 = vld [vmem:[%s1000_s1 + $0xf0] sm:$0xff] }
  0x1d   :  { %v460_v30 = vpop.eup %459  ;;  %479 = vrcp.f32 %v247_v20  ;;  %v249_v32 = vadd.f32 1.0, %v458_v24  ;;  %v23_v20 = vld [vmem:[%s1001_s2 + $0x48] sm:$0xff] }
  0x1e   :  { %v462_v37 = vpop.eup %461  ;;  %481 = vrcp.f32 %v248_v26  ;;  %v250_v39 = vadd.f32 1.0, %v460_v30  ;;  %v425_v26 = vmul.f32 -1.442695, %v132_v5  ;;  %v426_v30 = vmul.f32 -1.442695, %v133_v12  ;;  %v109_v12 = vld [vmem:[%s1000_s1 + $0xf8] sm:$0xff] }
  0x1f   :  { %v464_v44 = vpop.eup %463  ;;  %v334_v45 = vmul.f32 %v462_v37, %v14_v25  ;;  %483 = vrcp.f32 %v249_v32  ;;  %v24_v25 = vld [vmem:[%s1001_s2 + $0x50] sm:$0xff]  ;;  %v428_v37 = vmul.f32 -1.442695, %v135_v22  ;;  %v137_v5 = vadd.f32 %v105_v57, %v73_v56  ;;  %v38_v57 = vld [vmem:[%s1001_s2 + $0xc0] sm:$0xff] }
  0x20   :  { %v466_v51 = vpop.eup %465  ;;  %v335_v52 = vmul.f32 %v464_v44, %v15_v31  ;;  %485 = vrcp.f32 %v250_v39 }
  0x21   :  { %v468_v58 = vpop.eup %467  ;;  %367 = vst.msk [vmem:[%s1002_s3] sm:$0xff] %vm366_vm0, %v334_v45  ;;  %v336_v59 = vmul.f32 %v466_v51, %v16_v38  ;;  %487 = vpow2.f32 %v416_v33  ;;  %v26_v33 = vld [vmem:[%s1001_s2 + $0x60] sm:$0xff] }
  0x22   :  { %v470_v1 = vpop.eup %469  ;;  %368 = vst.msk [vmem:[%s1002_s3 + $0x8] sm:$0xff] %vm366_vm0, %v335_v52  ;;  %v337_v2 = vmul.f32 %v468_v58, %v17_v46  ;;  %489 = vpow2.f32 %v417_v40  ;;  %v72_v52 = vld [vmem:[%s999_s0 + $0xd0] sm:$0xff] }
  0x23   :  { %v472_v8 = vpop.eup %471  ;;  %369 = vst.msk [vmem:[%s1002_s3 + $0x10] sm:$0xff] %vm366_vm0, %v336_v59  ;;  %v338_v9 = vmul.f32 %v470_v1, %v18_v53  ;;  %491 = vpow2.f32 %v418_v47  ;;  %v104_v53 = vld [vmem:[%s1000_s1 + $0xd0] sm:$0xff]  ;;  %v75_v1 = vld [vmem:[%s999_s0 + $0xe8] sm:$0xff] }
  0x24   :  { %v474_v13 = vpop.eup %473  ;;  %370 = vst.msk [vmem:[%s1002_s3 + $0x18] sm:$0xff] %vm366_vm0, %v337_v2  ;;  %v339_v14 = vmul.f32 %v472_v8, %v19_v60  ;;  %493 = vpow2.f32 %v419_v54  ;;  %v74_v60 = vld [vmem:[%s999_s0 + $0xe0] sm:$0xff]  ;;  %v136_v0 = vadd.f32 %v104_v53, %v72_v52  ;;  %v107_v2 = vld [vmem:[%s1000_s1 + $0xe8] sm:$0xff] }
  0x25   :  { %v476_v18 = vpop.eup %475  ;;  %371 = vst.msk [vmem:[%s1002_s3 + $0x20] sm:$0xff] %vm366_vm0, %v338_v9  ;;  %v340_v19 = vmul.f32 %v474_v13, %v20_v3  ;;  %495 = vpow2.f32 %v420_v61  ;;  %v106_v61 = vld [vmem:[%s1000_s1 + $0xe0] sm:$0xff] }
  0x26   :  { %v478_v23 = vpop.eup %477  ;;  %372 = vst.msk [vmem:[%s1002_s3 + $0x28] sm:$0xff] %vm366_vm0, %v339_v14  ;;  %v341_v24 = vmul.f32 %v476_v18, %v21_v10  ;;  %497 = vpow2.f32 %v421_v4  ;;  %v138_v10 = vadd.f32 %v106_v61, %v74_v60  ;;  %v27_v14 = vld [vmem:[%s1001_s2 + $0x68] sm:$0xff]  ;;  %v28_v18 = vld [vmem:[%s1001_s2 + $0x70] sm:$0xff] }
  0x27   :  { %v480_v27 = vpop.eup %479  ;;  %373 = vst.msk [vmem:[%s1002_s3 + $0x30] sm:$0xff] %vm366_vm0, %v340_v19  ;;  %v342_v28 = vmul.f32 %v478_v23, %v22_v15  ;;  %499 = vpow2.f32 %v422_v11  ;;  %v77_v11 = vld [vmem:[%s999_s0 + $0xf8] sm:$0xff]  ;;  %v39_v60 = vld [vmem:[%s1001_s2 + $0xc8] sm:$0xff] }
  0x28   :  { %v482_v31 = vpop.eup %481  ;;  %374 = vst.msk [vmem:[%s1002_s3 + $0x38] sm:$0xff] %vm366_vm0, %v341_v24  ;;  %v343_v32 = vmul.f32 %v480_v27, %v23_v20  ;;  %501 = vpow2.f32 %v423_v16  ;;  %v139_v16 = vadd.f32 %v107_v2, %v75_v1  ;;  %v429_v20 = vmul.f32 -1.442695, %v136_v0  ;;  %v29_v23 = vld [vmem:[%s1001_s2 + $0x78] sm:$0xff] }
  0x29   :  { %v484_v35 = vpop.eup %483  ;;  %375 = vst.msk [vmem:[%s1002_s3 + $0x40] sm:$0xff] %vm366_vm0, %v342_v28  ;;  %v344_v36 = vmul.f32 %v482_v31, %v24_v25  ;;  %503 = vpow2.f32 %v424_v21  ;;  %v140_v21 = vadd.f32 %v108_v7, %v76_v6  ;;  %v430_v25 = vmul.f32 -1.442695, %v137_v5 }
  0x2a   :  { %v486_v38 = vpop.eup %485  ;;  %376 = vst.msk [vmem:[%s1002_s3 + $0x48] sm:$0xff] %vm366_vm0, %v343_v32  ;;  %v345_v39 = vmul.f32 %v484_v35, %v25_v29  ;;  %505 = vpow2.f32 %v425_v26  ;;  %v141_v26 = vadd.f32 %v109_v12, %v77_v11  ;;  %v30_v29 = vld [vmem:[%s1001_s2 + $0x80] sm:$0xff] }
  0x2b   :  { %v488_v40 = vpop.eup %487  ;;  %377 = vst.msk [vmem:[%s1002_s3 + $0x50] sm:$0xff] %vm366_vm0, %v344_v36  ;;  %v346_v41 = vmul.f32 %v486_v38, %v26_v33  ;;  %507 = vpow2.f32 %v426_v30  ;;  %v431_v30 = vmul.f32 -1.442695, %v138_v10  ;;  %v31_v33 = vld [vmem:[%s1001_s2 + $0x88] sm:$0xff]  ;;  %v433_v38 = vmul.f32 -1.442695, %v140_v21 }
  0x2c   :  { %v490_v42 = vpop.eup %489  ;;  %378 = vst.msk [vmem:[%s1002_s3 + $0x58] sm:$0xff] %vm366_vm0, %v345_v39  ;;  %v251_v43 = vadd.f32 1.0, %v488_v40  ;;  %509 = vpow2.f32 %v427_v34  ;;  %v432_v34 = vmul.f32 -1.442695, %v139_v16 }
  0x2d   :  { %v492_v44 = vpop.eup %491  ;;  %379 = vst.msk [vmem:[%s1002_s3 + $0x60] sm:$0xff] %vm366_vm0, %v346_v41  ;;  %v252_v45 = vadd.f32 1.0, %v490_v42  ;;  %511 = vpow2.f32 %v428_v37  ;;  %v32_v37 = vld [vmem:[%s1001_s2 + $0x90] sm:$0xff]  ;;  %v33_v41 = vld [vmem:[%s1001_s2 + $0x98] sm:$0xff]  ;;  %v434_v42 = vmul.f32 -1.442695, %v141_v26 }
  0x2e   :  { %v494_v46 = vpop.eup %493  ;;  %513 = vrcp.f32 %v251_v43  ;;  %v253_v47 = vadd.f32 1.0, %v492_v44  ;;  %v45_v26 = vld [vmem:[%s1001_s2 + $0xf8] sm:$0xff] }
  0x2f   :  { %v496_v48 = vpop.eup %495  ;;  %515 = vrcp.f32 %v252_v45  ;;  %v254_v49 = vadd.f32 1.0, %v494_v46  ;;  %v34_v45 = vld [vmem:[%s1001_s2 + $0xa0] sm:$0xff] }
  0x30   :  { %v498_v50 = vpop.eup %497  ;;  %517 = vrcp.f32 %v253_v47  ;;  %v255_v51 = vadd.f32 1.0, %v496_v48  ;;  %v35_v48 = vld [vmem:[%s1001_s2 + $0xa8] sm:$0xff] }
  0x31   :  { %v500_v54 = vpop.eup %499  ;;  %519 = vrcp.f32 %v254_v49  ;;  %v256_v55 = vadd.f32 1.0, %v498_v50 }
  0x32   :  { %v502_v58 = vpop.eup %501  ;;  %521 = vrcp.f32 %v255_v51  ;;  %v257_v59 = vadd.f32 1.0, %v500_v54  ;;  %v36_v51 = vld [vmem:[%s1001_s2 + $0xb0] sm:$0xff]  ;;  %v37_v54 = vld [vmem:[%s1001_s2 + $0xb8] sm:$0xff] }
  0x33   :  { %v504_v62 = vpop.eup %503  ;;  %523 = vrcp.f32 %v256_v55  ;;  %v258_v63 = vadd.f32 1.0, %v502_v58 }
  0x34   :  { %v506_v3 = vpop.eup %505  ;;  %525 = vrcp.f32 %v257_v59  ;;  %v259_v4 = vadd.f32 1.0, %v504_v62 }
  0x35   :  { %v508_v8 = vpop.eup %507  ;;  %527 = vrcp.f32 %v258_v63  ;;  %v260_v9 = vadd.f32 1.0, %v506_v3 }
  0x36   :  { %v510_v13 = vpop.eup %509  ;;  %529 = vrcp.f32 %v259_v4  ;;  %v261_v15 = vadd.f32 1.0, %v508_v8 }
  0x37   :  { %v512_v17 = vpop.eup %511  ;;  %531 = vrcp.f32 %v260_v9  ;;  %v262_v19 = vadd.f32 1.0, %v510_v13 }
  0x38   :  { %v514_v22 = vpop.eup %513  ;;  %533 = vrcp.f32 %v261_v15  ;;  %v263_v24 = vadd.f32 1.0, %v512_v17  ;;  %v41_v15 = vld [vmem:[%s1001_s2 + $0xd8] sm:$0xff]  ;;  %v42_v17 = vld [vmem:[%s1001_s2 + $0xe0] sm:$0xff] }
  0x39   :  { %v516_v27 = vpop.eup %515  ;;  %v347_v28 = vmul.f32 %v514_v22, %v27_v14  ;;  %535 = vrcp.f32 %v262_v19  ;;  %v40_v14 = vld [vmem:[%s1001_s2 + $0xd0] sm:$0xff] }
  0x3a   :  { %v518_v31 = vpop.eup %517  ;;  %v348_v32 = vmul.f32 %v516_v27, %v28_v18  ;;  %537 = vrcp.f32 %v263_v24 }
  0x3b   :  { %v520_v35 = vpop.eup %519  ;;  %380 = vst.msk [vmem:[%s1002_s3 + $0x68] sm:$0xff] %vm366_vm0, %v347_v28  ;;  %v349_v36 = vmul.f32 %v518_v31, %v29_v23  ;;  %539 = vpow2.f32 %v429_v20  ;;  %v43_v20 = vld [vmem:[%s1001_s2 + $0xe8] sm:$0xff]  ;;  %v44_v23 = vld [vmem:[%s1001_s2 + $0xf0] sm:$0xff] }
  0x3c   :  { %v522_v39 = vpop.eup %521  ;;  %381 = vst.msk [vmem:[%s1002_s3 + $0x70] sm:$0xff] %vm366_vm0, %v348_v32  ;;  %v350_v40 = vmul.f32 %v520_v35, %v30_v29  ;;  %541 = vpow2.f32 %v430_v25 }
  0x3d   :  { %v524_v43 = vpop.eup %523  ;;  %382 = vst.msk [vmem:[%s1002_s3 + $0x78] sm:$0xff] %vm366_vm0, %v349_v36  ;;  %v351_v44 = vmul.f32 %v522_v39, %v31_v33  ;;  %543 = vpow2.f32 %v431_v30 }
  0x3e   :  { %v526_v46 = vpop.eup %525  ;;  %383 = vst.msk [vmem:[%s1002_s3 + $0x80] sm:$0xff] %vm366_vm0, %v350_v40  ;;  %v352_v47 = vmul.f32 %v524_v43, %v32_v37  ;;  %545 = vpow2.f32 %v432_v34 }
  0x3f   :  { %v528_v49 = vpop.eup %527  ;;  %384 = vst.msk [vmem:[%s1002_s3 + $0x88] sm:$0xff] %vm366_vm0, %v351_v44  ;;  %v353_v50 = vmul.f32 %v526_v46, %v33_v41  ;;  %547 = vpow2.f32 %v433_v38 }
  0x40   :  { %v530_v52 = vpop.eup %529  ;;  %385 = vst.msk [vmem:[%s1002_s3 + $0x90] sm:$0xff] %vm366_vm0, %v352_v47  ;;  %v354_v53 = vmul.f32 %v528_v49, %v34_v45  ;;  %549 = vpow2.f32 %v434_v42 }
  0x41   :  { %v532_v55 = vpop.eup %531  ;;  %386 = vst.msk [vmem:[%s1002_s3 + $0x98] sm:$0xff] %vm366_vm0, %v353_v50  ;;  %v355_v56 = vmul.f32 %v530_v52, %v35_v48 }
  0x42   :  { %v534_v58 = vpop.eup %533  ;;  %387 = vst.msk [vmem:[%s1002_s3 + $0xa0] sm:$0xff] %vm366_vm0, %v354_v53  ;;  %v356_v59 = vmul.f32 %v532_v55, %v36_v51 }
  0x43   :  { %v536_v61 = vpop.eup %535  ;;  %388 = vst.msk [vmem:[%s1002_s3 + $0xa8] sm:$0xff] %vm366_vm0, %v355_v56  ;;  %v357_v62 = vmul.f32 %v534_v58, %v37_v54 }
  0x44   :  { %v538_v63 = vpop.eup %537  ;;  %389 = vst.msk [vmem:[%s1002_s3 + $0xb0] sm:$0xff] %vm366_vm0, %v356_v59  ;;  %v358_v0 = vmul.f32 %v536_v61, %v38_v57 }
  0x45   :  { %v540_v1 = vpop.eup %539  ;;  %390 = vst.msk [vmem:[%s1002_s3 + $0xb8] sm:$0xff] %vm366_vm0, %v357_v62  ;;  %v359_v2 = vmul.f32 %v538_v63, %v39_v60 }
  0x46   :  { %v542_v3 = vpop.eup %541  ;;  %391 = vst.msk [vmem:[%s1002_s3 + $0xc0] sm:$0xff] %vm366_vm0, %v358_v0  ;;  %v264_v4 = vadd.f32 1.0, %v540_v1 }
  0x47   :  { %v544_v5 = vpop.eup %543  ;;  %392 = vst.msk [vmem:[%s1002_s3 + $0xc8] sm:$0xff] %vm366_vm0, %v359_v2  ;;  %v265_v6 = vadd.f32 1.0, %v542_v3 }
  0x48   :  { %v546_v7 = vpop.eup %545  ;;  %551 = vrcp.f32 %v264_v4  ;;  %v266_v8 = vadd.f32 1.0, %v544_v5 }
  0x49   :  { %v548_v9 = vpop.eup %547  ;;  %553 = vrcp.f32 %v265_v6  ;;  %v267_v10 = vadd.f32 1.0, %v546_v7 }
  0x4a   :  { %v550_v11 = vpop.eup %549  ;;  %555 = vrcp.f32 %v266_v8  ;;  %v268_v12 = vadd.f32 1.0, %v548_v9 }
  0x4b   :  { %557 = vrcp.f32 %v267_v10  ;;  %v269_v13 = vadd.f32 1.0, %v550_v11 }
  0x4c   :  { %559 = vrcp.f32 %v268_v12 }
  0x4d   :  { %561 = vrcp.f32 %v269_v13 }
  0x52   :  { %v552_v16 = vpop.eup %551 }
  0x53   :  { %v554_v18 = vpop.eup %553  ;;  %v360_v19 = vmul.f32 %v552_v16, %v40_v14 }
  0x54   :  { %v556_v21 = vpop.eup %555  ;;  %v361_v22 = vmul.f32 %v554_v18, %v41_v15 }
  0x55   :  { %v558_v24 = vpop.eup %557  ;;  %393 = vst.msk [vmem:[%s1002_s3 + $0xd0] sm:$0xff] %vm366_vm0, %v360_v19  ;;  %v362_v25 = vmul.f32 %v556_v21, %v42_v17 }
  0x56   :  { %v560_v27 = vpop.eup %559  ;;  %394 = vst.msk [vmem:[%s1002_s3 + $0xd8] sm:$0xff] %vm366_vm0, %v361_v22  ;;  %v363_v28 = vmul.f32 %v558_v24, %v43_v20 }
  0x57   :  { %v562_v29 = vpop.eup %561  ;;  %395 = vst.msk [vmem:[%s1002_s3 + $0xe0] sm:$0xff] %vm366_vm0, %v362_v25  ;;  %v364_v30 = vmul.f32 %v560_v27, %v44_v23 }
  0x58   :  { %396 = vst.msk [vmem:[%s1002_s3 + $0xe8] sm:$0xff] %vm366_vm0, %v363_v28  ;;  %v365_v31 = vmul.f32 %v562_v29, %v45_v26 }
  0x59   :  { %397 = vst.msk [vmem:[%s1002_s3 + $0xf0] sm:$0xff] %vm366_vm0, %v364_v30 }
  0x5a   :  { %398 = vst.msk [vmem:[%s1002_s3 + $0xf8] sm:$0xff] %vm366_vm0, %v365_v31 }

// kernel: cnn_net.26
= control target key start
LH: loop header
LB: loop body
LE: loop exit
PB: predicated region body
PF: predicated region fallthrough
CT: control target
= control target key end

     0   :  { %vm802_vm0 = vcmask 523264   ;;  %s2767_s1 = inlined_call_operand.vmem [shape: bf16[576,64], index: 1, kind: input, shape index: {}]   ;;  %s2768_s0 = inlined_call_operand.vmem [shape: bf16[256,576], index: 0, kind: input, shape index: {}]   ;;  %s2769_s2 = inlined_call_operand.vmem [shape: f32[1,64], index: 2, kind: input, shape index: {}]   ;;  %s2770_s3 = inlined_call_operand.vmem [shape: f32[1,64], index: 3, kind: input, shape index: {}]   ;;  %s2771_s4 = inlined_call_operand.vmem [shape: f32[256,64], index: 4, kind: output, shape index: {}]  }
   0x1   :  { %v1914_v0 = vld [vmem:[%s2767_s1 + $0x40] sm:$0xff]   ;;  %v1916_v2 = vld [vmem:[%s2767_s1 + $0x48] sm:$0xff]   ;;  %v1918_v4 = vld [vmem:[%s2767_s1 + $0x50] sm:$0xff]  }
   0x2   :  { %v1915_v1 = vld [vmem:[%s2767_s1] sm:$0xff]   ;;  %1614 = vmatprep.subr.bf16.mxu0 %v1914_v0  ;;  %1898 = vmatprep.subr.bf16.mxu1 %v1914_v0  ;;  %v1917_v3 = vld [vmem:[%s2767_s1 + $0x8] sm:$0xff]   ;;  %v1919_v5 = vld [vmem:[%s2767_s1 + $0x10] sm:$0xff]  }
   0x3   :  { %1615 = vmatpush3.bf16.msra.mxu0 %v1915_v1  ;;  %1906 = vmatpush3.bf16.msra.mxu1 %v1915_v1  ;;  %v1920_v6 = vld [vmem:[%s2767_s1 + $0x58] sm:$0xff]   ;;  %v1922_v8 = vld [vmem:[%s2767_s1 + $0x60] sm:$0xff]   ;;  %v1924_v10 = vld [vmem:[%s2767_s1 + $0x68] sm:$0xff]  }
   0x4   :  { %1616 = vmatprep.subr.bf16.mxu0 %v1916_v2  ;;  %1899 = vmatprep.subr.bf16.mxu1 %v1916_v2  ;;  %v1921_v7 = vld [vmem:[%s2767_s1 + $0x18] sm:$0xff]   ;;  %v1923_v9 = vld [vmem:[%s2767_s1 + $0x20] sm:$0xff]   ;;  %v1925_v13 = vld [vmem:[%s2767_s1 + $0x28] sm:$0xff]  }
   0x5   :  { %v1932_v11 = vld [vmem:[%s2768_s0 + $0x4] ss:$20 sps:$4 sm:$0xff]   ;;  %v1926_v14 = vld [vmem:[%s2767_s1 + $0x70] sm:$0xff]   ;;  %v1938_v23 = vld [vmem:[%s2767_s1 + $0xc8] sm:$0xff]  }
   0x6   :  { %v1935_v12 = vld [vmem:[%s2768_s0 + $0x1e4] ss:$20 sps:$4 sm:$0xff]   ;;  %883 = vmatprep.mubr.bf16.mxu0 %v1932_v11  ;;  %v1927_v15 = vld [vmem:[%s2767_s1 + $0x30] sm:$0xff]   ;;  %v1941_v24 = vld [vmem:[%s2768_s0 + $0x2c] ss:$20 sps:$4 sm:$0xff]  }
   0x7   :  { %1617 = vmatpush3.bf16.msra.mxu0 %v1917_v3  ;;  %1907 = vmatpush3.bf16.msra.mxu1 %v1917_v3  ;;  %v1928_v16 = vld [vmem:[%s2767_s1 + $0x78] sm:$0xff]   ;;  %v1936_v18 = vld [vmem:[%s2767_s1 + $0xc0] sm:$0xff]   ;;  %v1940_v26 = vld [vmem:[%s2767_s1 + $0x88] sm:$0xff]  }
   0x8   :  { %1618 = vmatprep.subr.bf16.mxu0 %v1918_v4  ;;  %1900 = vmatprep.subr.bf16.mxu1 %v1918_v4  ;;  %v1929_v17 = vld [vmem:[%s2767_s1 + $0x38] sm:$0xff]   ;;  %v1939_v19 = vld [vmem:[%s2767_s1 + $0x100] sm:$0xff]   ;;  %v1947_v28 = vld [vmem:[%s2767_s1 + $0xd0] sm:$0xff]  }
   0x9   :  { %979 = vmatprep.mubr.bf16.mxu1 %v1935_v12  ;;  %v1930_v20 = vld [vmem:[%s2768_s0] ss:$20 sps:$4 sm:$0xff]   ;;  %v1945_v27 = vld [vmem:[%s2768_s0 + $0x28] ss:$20 sps:$4 sm:$0xff]   ;;  %v1955_v36 = vld [vmem:[%s2768_s0 + $0x50] ss:$20 sps:$4 sm:$0xff]  }
   0xa   :  { %v1933_v21 = vld [vmem:[%s2768_s0 + $0x1e0] ss:$20 sps:$4 sm:$0xff]   ;;  %v1946_v29 = vld [vmem:[%s2768_s0 + $0x208] ss:$20 sps:$4 sm:$0xff]   ;;  %v1956_v38 = vld [vmem:[%s2768_s0 + $0x230] ss:$20 sps:$4 sm:$0xff]  }
   0xb   :  { %1619 = vmatpush3.bf16.msra.mxu0 %v1919_v5  ;;  %1908 = vmatpush3.bf16.msra.mxu1 %v1919_v5  ;;  %v1937_v22 = vld [vmem:[%s2767_s1 + $0x80] sm:$0xff]   ;;  %v1948_v30 = vld [vmem:[%s2767_s1 + $0x90] sm:$0xff]   ;;  %v1949_v31 = vld [vmem:[%s2767_s1 + $0xd8] sm:$0xff]  }
   0xc   :  { %1620 = vmatprep.subr.bf16.mxu0 %v1920_v6  ;;  %1901 = vmatprep.subr.bf16.mxu1 %v1920_v6  ;;  %v1943_v25 = vld [vmem:[%s2768_s0 + $0x20c] ss:$20 sps:$4 sm:$0xff]   ;;  %v1951_v32 = vld [vmem:[%s2768_s0 + $0x54] ss:$20 sps:$4 sm:$0xff]   ;;  %v1950_v34 = vld [vmem:[%s2767_s1 + $0x98] sm:$0xff]  }
   0xd   :  { %v1953_v33 = vld [vmem:[%s2768_s0 + $0x234] ss:$20 sps:$4 sm:$0xff]   ;;  %v1957_v37 = vld [vmem:[%s2767_s1 + $0xe0] sm:$0xff]   ;;  %v1961_v41 = vld [vmem:[%s2768_s0 + $0x7c] ss:$20 sps:$4 sm:$0xff]  }
   0xe   :  { %v1970_v35 = vld [vmem:[%s2767_s1 + $0x108] sm:$0xff]   ;;  %v1958_v39 = vld [vmem:[%s2767_s1 + $0xa0] sm:$0xff]   ;;  %v1963_v42 = vld [vmem:[%s2768_s0 + $0x25c] ss:$20 sps:$4 sm:$0xff]  }
   0xf   :  { %1621 = vmatpush3.bf16.msra.mxu0 %v1921_v7  ;;  %1909 = vmatpush3.bf16.msra.mxu1 %v1921_v7  ;;  %v1959_v40 = vld [vmem:[%s2767_s1 + $0xe8] sm:$0xff]   ;;  %v1967_v46 = vld [vmem:[%s2767_s1 + $0xf0] sm:$0xff]   ;;  %v1969_v49 = vld [vmem:[%s2767_s1 + $0xf8] sm:$0xff]  }
  0x10   :  { %1622 = vmatprep.subr.bf16.mxu0 %v1922_v8  ;;  %1902 = vmatprep.subr.bf16.mxu1 %v1922_v8  ;;  %v1960_v43 = vld [vmem:[%s2767_s1 + $0xa8] sm:$0xff]   ;;  %v1990_v47 = vld [vmem:[%s2767_s1 + $0x110] sm:$0xff]   ;;  %v1972_v50 = vld [vmem:[%s2768_s0 + $0xa4] ss:$20 sps:$4 sm:$0xff]  }
  0x11   :  { %v1965_v44 = vld [vmem:[%s2768_s0 + $0x78] ss:$20 sps:$4 sm:$0xff]   ;;  %v1968_v48 = vld [vmem:[%s2767_s1 + $0xb0] sm:$0xff]   ;;  %v1974_v53 = vld [vmem:[%s2768_s0 + $0x8] ss:$20 sps:$4 sm:$0xff]  }
  0x12   :  { %v1966_v45 = vld [vmem:[%s2768_s0 + $0x258] ss:$20 sps:$4 sm:$0xff]   ;;  %v1977_v54 = vld [vmem:[%s2768_s0 + $0xa0] ss:$20 sps:$4 sm:$0xff]   ;;  %v1982_v58 = vld [vmem:[%s2768_s0 + $0xc8] ss:$20 sps:$4 sm:$0xff]  }
  0x13   :  { %1623 = vmatpush3.bf16.msra.mxu0 %v1923_v9  ;;  %1910 = vmatpush3.bf16.msra.mxu1 %v1923_v9  ;;  %v1976_v51 = vld [vmem:[%s2768_s0 + $0xc] ss:$20 sps:$4 sm:$0xff]   ;;  %v1971_v52 = vld [vmem:[%s2767_s1 + $0xb8] sm:$0xff]   ;;  %v1980_v57 = vld [vmem:[%s2768_s0 + $0x34] ss:$20 sps:$4 sm:$0xff]  }
  0x14   :  { %1624 = vmatprep.subr.bf16.mxu0 %v1924_v10  ;;  %1903 = vmatprep.subr.bf16.mxu1 %v1924_v10  ;;  %v1978_v55 = vld [vmem:[%s2768_s0 + $0xcc] ss:$20 sps:$4 sm:$0xff]   ;;  %v2009_v56 = vld [vmem:[%s2767_s1 + $0x118] sm:$0xff]   ;;  %v1983_v59 = vld [vmem:[%s2768_s0 + $0x30] ss:$20 sps:$4 sm:$0xff]  }
  0x15   :  { %v1984_v60 = vld [vmem:[%s2768_s0 + $0xf4] ss:$20 sps:$4 sm:$0xff]   ;;  %v1986_v61 = vld [vmem:[%s2768_s0 + $0x5c] ss:$20 sps:$4 sm:$0xff]   ;;  %v1989_v63 = vld [vmem:[%s2768_s0 + $0x58] ss:$20 sps:$4 sm:$0xff]  }
  0x16   :  { %v1988_v62 = vld [vmem:[%s2768_s0 + $0xf0] ss:$20 sps:$4 sm:$0xff]   ;;  %v1995_v2 = vld [vmem:[%s2768_s0 + $0x118] ss:$20 sps:$4 sm:$0xff]   ;;  %v1996_v3 = vld [vmem:[%s2768_s0 + $0x80] ss:$20 sps:$4 sm:$0xff]  }
  0x17   :  { %1625 = vmatpush3.bf16.msra.mxu0 %v1925_v13  ;;  %1911 = vmatpush3.bf16.msra.mxu1 %v1925_v13  ;;  %v1991_v0 = vld [vmem:[%s2768_s0 + $0x11c] ss:$20 sps:$4 sm:$0xff]   ;;  %v1993_v1 = vld [vmem:[%s2768_s0 + $0x84] ss:$20 sps:$4 sm:$0xff]   ;;  %v1999_v5 = vld [vmem:[%s2768_s0 + $0xac] ss:$20 sps:$4 sm:$0xff]  }
  0x18   :  { %1626 = vmatprep.subr.bf16.mxu0 %v1926_v14  ;;  %1904 = vmatprep.subr.bf16.mxu1 %v1926_v14  ;;  %v1997_v4 = vld [vmem:[%s2768_s0 + $0x144] ss:$20 sps:$4 sm:$0xff]   ;;  %v2001_v6 = vld [vmem:[%s2768_s0 + $0x140] ss:$20 sps:$4 sm:$0xff]   ;;  %v2002_v7 = vld [vmem:[%s2768_s0 + $0xa8] ss:$20 sps:$4 sm:$0xff]  }
  0x19   :  { %v2003_v8 = vld [vmem:[%s2768_s0 + $0x16c] ss:$20 sps:$4 sm:$0xff]   ;;  %v2005_v9 = vld [vmem:[%s2768_s0 + $0xd4] ss:$20 sps:$4 sm:$0xff]   ;;  %v2008_v11 = vld [vmem:[%s2768_s0 + $0xd0] ss:$20 sps:$4 sm:$0xff]  }
  0x1a   :  { %v2007_v10 = vld [vmem:[%s2768_s0 + $0x168] ss:$20 sps:$4 sm:$0xff]   ;;  %v2014_v14 = vld [vmem:[%s2768_s0 + $0x190] ss:$20 sps:$4 sm:$0xff]  }
  0x1b   :  { %1627 = vmatpush3.bf16.msra.mxu0 %v1927_v15  ;;  %1912 = vmatpush3.bf16.msra.mxu1 %v1927_v15  ;;  %v2010_v12 = vld [vmem:[%s2768_s0 + $0x194] ss:$20 sps:$4 sm:$0xff]   ;;  %v2012_v13 = vld [vmem:[%s2768_s0 + $0xfc] ss:$20 sps:$4 sm:$0xff]   ;;  %v2015_v15 = vld [vmem:[%s2768_s0 + $0xf8] ss:$20 sps:$4 sm:$0xff]  }
  0x1c   :  { %1628 = vmatprep.subr.bf16.mxu0 %v1928_v16  ;;  %1905 = vmatprep.subr.bf16.mxu1 %v1928_v16  ;;  %v2016_v16 = vld [vmem:[%s2768_s0 + $0x1bc] ss:$20 sps:$4 sm:$0xff]  }
  0x1f   :  { %1629 = vmatpush3.bf16.msra.mxu0 %v1929_v17  ;;  %1913 = vmatpush3.bf16.msra.mxu1 %v1929_v17  ;;  %v2018_v17 = vld [vmem:[%s2768_s0 + $0x124] ss:$20 sps:$4 sm:$0xff]  }
  0x20   :  { %1726 = vmatprep.subr.bf16.mxu1 %v1936_v18  ;;  %1858 = vmatprep.subr.bf16.mxu0 %v1939_v19  ;;  %v2020_v18 = vld [vmem:[%s2768_s0 + $0x1b8] ss:$20 sps:$4 sm:$0xff]  }
  0x22   :  { %884 = vmatmul.mubr.bf16.vlgmr.msra.gmra.mrb[0].mxu0 %v1930_v20  ;;  %980 = vmatmul.mubr.bf16.vlgmr.msra.gmra.mrb[0].mxu1 %v1933_v21  ;;  %v2022_v20 = vld [vmem:[%s2768_s0 + $0x14c] ss:$20 sps:$4 sm:$0xff]   ;;  %v2024_v21 = vld [vmem:[%s2768_s0 + $0x10] ss:$20 sps:$4 sm:$0xff]  }
  0x23   :  { %1727 = vmatpush3.bf16.msra.mxu1 %v1937_v22  ;;  %1859 = vmatpush3.bf16.msra.mxu0 %v1939_v19  ;;  %v2021_v19 = vld [vmem:[%s2768_s0 + $0x120] ss:$20 sps:$4 sm:$0xff]   ;;  %v2025_v22 = vld [vmem:[%s2768_s0 + $0x148] ss:$20 sps:$4 sm:$0xff]  }
  0x24   :  { %1728 = vmatprep.subr.bf16.mxu1 %v1938_v23  ;;  %891 = vmatprep.mubr.bf16.mxu0 %v1941_v24  ;;  %v2026_v23 = vld [vmem:[%s2768_s0 + $0x38] ss:$20 sps:$4 sm:$0xff]   ;;  %v2027_v24 = vld [vmem:[%s2768_s0 + $0x174] ss:$20 sps:$4 sm:$0xff]  }
  0x25   :  { %987 = vmatprep.mubr.bf16.mxu1 %v1943_v25  ;;  %1860 = vmatprep.subr.bf16.mxu0 %v1970_v35  ;;  %v2029_v25 = vld [vmem:[%s2768_s0 + $0x60] ss:$20 sps:$4 sm:$0xff]  }
  0x27   :  { %1729 = vmatpush3.bf16.msra.mxu1 %v1940_v26  ;;  %1861 = vmatpush3.bf16.msra.mxu0 %v1970_v35  ;;  %v2030_v26 = vld [vmem:[%s2768_s0 + $0x170] ss:$20 sps:$4 sm:$0xff]   ;;  %v2041_v35 = vld [vmem:[%s2768_s0 + $0x128] ss:$20 sps:$4 sm:$0xff]  }
  0x28   :  { %1730 = vmatprep.subr.bf16.mxu1 %v1947_v28  ;;  %1862 = vmatprep.subr.bf16.mxu0 %v1990_v47  ;;  %v2032_v28 = vld [vmem:[%s2768_s0 + $0x19c] ss:$20 sps:$4 sm:$0xff]  }
  0x2a   :  { %892 = vmatmul.mubr.bf16.gmra.mrb[4].mxu0 %v1945_v27  ;;  %988 = vmatmul.mubr.bf16.gmra.mrb[4].mxu1 %v1946_v29  ;;  %v2031_v27 = vld [vmem:[%s2768_s0 + $0x88] ss:$20 sps:$4 sm:$0xff]   ;;  %v2034_v29 = vld [vmem:[%s2768_s0 + $0xb0] ss:$20 sps:$4 sm:$0xff]  }
  0x2b   :  { %1731 = vmatpush3.bf16.msra.mxu1 %v1948_v30  ;;  %899 = vmatprep.mubr.bf16.mxu0 %v1951_v32  ;;  %v2035_v30 = vld [vmem:[%s2768_s0 + $0x198] ss:$20 sps:$4 sm:$0xff]  }
  0x2c   :  { %1732 = vmatprep.subr.bf16.mxu1 %v1949_v31  ;;  %995 = vmatprep.mubr.bf16.mxu1 %v1953_v33  ;;  %v2036_v31 = vld [vmem:[%s2768_s0 + $0xd8] ss:$20 sps:$4 sm:$0xff]   ;;  %v2039_v33 = vld [vmem:[%s2768_s0 + $0x100] ss:$20 sps:$4 sm:$0xff]  }
  0x2d   :  { %1863 = vmatpush3.bf16.msra.mxu0 %v1990_v47  ;;  %v2037_v32 = vld [vmem:[%s2768_s0 + $0x1c4] ss:$20 sps:$4 sm:$0xff]  }
  0x2e   :  { %1864 = vmatprep.subr.bf16.mxu0 %v2009_v56  ;;  %v2056_v47 = vld [vmem:[%s2768_s0 + $0x218] ss:$20 sps:$4 sm:$0xff]  }
  0x2f   :  { %1733 = vmatpush3.bf16.msra.mxu1 %v1950_v34  ;;  %v2040_v34 = vld [vmem:[%s2768_s0 + $0x1c0] ss:$20 sps:$4 sm:$0xff]  }
  0x30   :  { %1734 = vmatprep.subr.bf16.mxu1 %v1957_v37  ;;  %v2044_v37 = vld [vmem:[%s2768_s0 + $0x150] ss:$20 sps:$4 sm:$0xff]  }
  0x31   :  { %1865 = vmatpush3.bf16.msra.mxu0 %v2009_v56 }
  0x32   :  { %900 = vmatmul.mubr.bf16.gmra.mrb[8].mxu0 %v1955_v36  ;;  %996 = vmatmul.mubr.bf16.gmra.mrb[8].mxu1 %v1956_v38  ;;  %v2042_v36 = vld [vmem:[%s2768_s0 + $0x1ec] ss:$20 sps:$4 sm:$0xff]   ;;  %v2045_v38 = vld [vmem:[%s2768_s0 + $0x1e8] ss:$20 sps:$4 sm:$0xff]  }
  0x33   :  { %1735 = vmatpush3.bf16.msra.mxu1 %v1958_v39  ;;  %907 = vmatprep.mubr.bf16.mxu0 %v1961_v41  ;;  %v2046_v39 = vld [vmem:[%s2768_s0 + $0x178] ss:$20 sps:$4 sm:$0xff]   ;;  %v2049_v41 = vld [vmem:[%s2768_s0 + $0x1a0] ss:$20 sps:$4 sm:$0xff]  }
  0x34   :  { %1736 = vmatprep.subr.bf16.mxu1 %v1959_v40  ;;  %1003 = vmatprep.mubr.bf16.mxu1 %v1963_v42  ;;  %v2047_v40 = vld [vmem:[%s2768_s0 + $0x214] ss:$20 sps:$4 sm:$0xff]   ;;  %v2050_v42 = vld [vmem:[%s2768_s0 + $0x210] ss:$20 sps:$4 sm:$0xff]  }
  0x37   :  { %1737 = vmatpush3.bf16.msra.mxu1 %v1960_v43  ;;  %v2051_v43 = vld [vmem:[%s2768_s0 + $0x1c8] ss:$20 sps:$4 sm:$0xff]  }
  0x38   :  { %1738 = vmatprep.subr.bf16.mxu1 %v1967_v46  ;;  %v2055_v46 = vld [vmem:[%s2768_s0 + $0x238] ss:$20 sps:$4 sm:$0xff]  }
  0x3a   :  { %908 = vmatmul.mubr.bf16.gmra.mrb[12].mxu0 %v1965_v44  ;;  %1004 = vmatmul.mubr.bf16.gmra.mrb[12].mxu1 %v1966_v45  ;;  %v2052_v44 = vld [vmem:[%s2768_s0 + $0x23c] ss:$20 sps:$4 sm:$0xff]  }
  0x3b   :  { %1739 = vmatpush3.bf16.msra.mxu1 %v1968_v48  ;;  %915 = vmatprep.mubr.bf16.mxu0 %v1972_v50  ;;  %v2054_v45 = vld [vmem:[%s2768_s0 + $0x1f0] ss:$20 sps:$4 sm:$0xff]   ;;  %v2060_v50 = vld [vmem:[%s2768_s0 + $0x260] ss:$20 sps:$4 sm:$0xff]  }
  0x3c   :  { %1740 = vmatprep.subr.bf16.mxu1 %v1969_v49  ;;  %1044 = vmatprep.mubr.bf16.mxu1 %v1976_v51  ;;  %v2057_v48 = vld [vmem:[%s2768_s0 + $0x264] ss:$20 sps:$4 sm:$0xff]   ;;  %v2059_v49 = vld [vmem:[%s2768_s0 + $0x240] ss:$20 sps:$4 sm:$0xff]   ;;  %v2061_v51 = vld [vmem:[%s2768_s0 + $0x268] ss:$20 sps:$4 sm:$0xff]  }
  0x3f   :  { %1741 = vmatpush3.bf16.msra.mxu1 %v1971_v52 }
  0x42   :  { %916 = vmatmul.mubr.bf16.gmra.mrb[16].mxu0 %v1977_v54  ;;  %1045 = vmatmul.mubr.bf16.vlgmr.msra.gmra.mrb[16].mxu1 %v1974_v53 }
  0x43   :  { %923 = vmatprep.mubr.bf16.mxu0 %v1978_v55  ;;  %1052 = vmatprep.mubr.bf16.mxu1 %v1980_v57 }
  0x4a   :  { %924 = vmatmul.mubr.bf16.gmra.mrb[20].mxu0 %v1982_v58  ;;  %1053 = vmatmul.mubr.bf16.gmra.mrb[20].mxu1 %v1983_v59 }
  0x4b   :  { %931 = vmatprep.mubr.bf16.mxu0 %v1984_v60  ;;  %1060 = vmatprep.mubr.bf16.mxu1 %v1986_v61 }
  0x52   :  { %932 = vmatmul.mubr.bf16.gmra.mrb[24].mxu0 %v1988_v62  ;;  %1061 = vmatmul.mubr.bf16.gmra.mrb[24].mxu1 %v1989_v63 }
  0x53   :  { %939 = vmatprep.mubr.bf16.mxu0 %v1991_v0  ;;  %1068 = vmatprep.mubr.bf16.mxu1 %v1993_v1 }
  0x5a   :  { %940 = vmatmul.mubr.bf16.gmra.mrb[28].mxu0 %v1995_v2  ;;  %1069 = vmatmul.mubr.bf16.gmra.mrb[28].mxu1 %v1996_v3 }
  0x5b   :  { %947 = vmatprep.mubr.bf16.mxu0 %v1997_v4  ;;  %1076 = vmatprep.mubr.bf16.mxu1 %v1999_v5 }
  0x62   :  { %948 = vmatmul.mubr.bf16.gmra.mrb[32].mxu0 %v2001_v6  ;;  %1077 = vmatmul.mubr.bf16.gmra.mrb[32].mxu1 %v2002_v7 }
  0x63   :  { %955 = vmatprep.mubr.bf16.mxu0 %v2003_v8  ;;  %1084 = vmatprep.mubr.bf16.mxu1 %v2005_v9 }
  0x6a   :  { %956 = vmatmul.mubr.bf16.gmra.mrb[36].mxu0 %v2007_v10  ;;  %1085 = vmatmul.mubr.bf16.gmra.mrb[36].mxu1 %v2008_v11 }
  0x6b   :  { %963 = vmatprep.mubr.bf16.mxu0 %v2010_v12  ;;  %1092 = vmatprep.mubr.bf16.mxu1 %v2012_v13 }
  0x72   :  { %964 = vmatmul.mubr.bf16.gmra.mrb[40].mxu0 %v2014_v14  ;;  %1093 = vmatmul.mubr.bf16.gmra.mrb[40].mxu1 %v2015_v15 }
  0x73   :  { %971 = vmatprep.mubr.bf16.mxu0 %v2016_v16  ;;  %1100 = vmatprep.mubr.bf16.mxu1 %v2018_v17 }
  0x7a   :  { %972 = vmatmul.mubr.bf16.gmra.mrb[44].mxu0 %v2020_v18  ;;  %1101 = vmatmul.mubr.bf16.gmra.mrb[44].mxu1 %v2021_v19 }
  0x7b   :  { %1108 = vmatprep.mubr.bf16.mxu1 %v2022_v20  ;;  %1866 = vmatprep.mubr.msk.bf16.mxu0 %vm802_vm0, %v2024_v21 }
  0x82   :  { %1109 = vmatmul.mubr.bf16.gmra.mrb[48].mxu1 %v2025_v22  ;;  %1867 = vmatmul.mubr.msk.bf16.vlgmr.msra.gmra.mrb[48].mxu0 %vm802_vm0, %v2026_v23 }
  0x83   :  { %1116 = vmatprep.mubr.bf16.mxu1 %v2027_v24  ;;  %1870 = vmatprep.mubr.msk.bf16.mxu0 %vm802_vm0, %v2029_v25 }
  0x8a   :  { %1117 = vmatmul.mubr.bf16.gmra.mrb[52].mxu1 %v2030_v26  ;;  %1871 = vmatmul.mubr.msk.bf16.gmra.mrb[52].mxu0 %vm802_vm0, %v2031_v27 }
  0x8b   :  { %1124 = vmatprep.mubr.bf16.mxu1 %v2032_v28  ;;  %1874 = vmatprep.mubr.msk.bf16.mxu0 %vm802_vm0, %v2034_v29 }
  0x92   :  { %1125 = vmatmul.mubr.bf16.gmra.mrb[56].mxu1 %v2035_v30  ;;  %1875 = vmatmul.mubr.msk.bf16.gmra.mrb[56].mxu0 %vm802_vm0, %v2036_v31 }
  0x93   :  { %1132 = vmatprep.mubr.bf16.mxu1 %v2037_v32  ;;  %1878 = vmatprep.mubr.msk.bf16.mxu0 %vm802_vm0, %v2039_v33 }
  0x9a   :  { %1133 = vmatmul.mubr.bf16.gmra.mrb[60].mxu1 %v2040_v34  ;;  %1879 = vmatmul.mubr.msk.bf16.gmra.mrb[60].mxu0 %vm802_vm0, %v2041_v35 }
  0x9b   :  { %1140 = vmatprep.mubr.bf16.mxu1 %v2042_v36  ;;  %1882 = vmatprep.mubr.msk.bf16.mxu0 %vm802_vm0, %v2044_v37 }
  0xa2   :  { %1141 = vmatmul.mubr.bf16.gmra.mrb[64].mxu1 %v2045_v38  ;;  %1883 = vmatmul.mubr.msk.bf16.gmra.mrb[64].mxu0 %vm802_vm0, %v2046_v39 }
  0xa3   :  { %1148 = vmatprep.mubr.bf16.mxu1 %v2047_v40  ;;  %1886 = vmatprep.mubr.msk.bf16.mxu0 %vm802_vm0, %v2049_v41 }
  0xaa   :  { %1149 = vmatmul.mubr.bf16.gmra.mrb[68].mxu1 %v2050_v42  ;;  %1887 = vmatmul.mubr.msk.bf16.gmra.mrb[68].mxu0 %vm802_vm0, %v2051_v43 }
  0xab   :  { %1156 = vmatprep.mubr.bf16.mxu1 %v2052_v44  ;;  %1890 = vmatprep.mubr.msk.bf16.mxu0 %vm802_vm0, %v2054_v45 }
  0xb2   :  { %1157 = vmatmul.mubr.bf16.gmra.mrb[72].mxu1 %v2055_v46  ;;  %1891 = vmatmul.mubr.msk.bf16.gmra.mrb[72].mxu0 %vm802_vm0, %v2056_v47 }
  0xb3   :  { %1164 = vmatprep.mubr.bf16.mxu1 %v2057_v48  ;;  %1894 = vmatprep.mubr.msk.bf16.mxu0 %vm802_vm0, %v2059_v49 }
  0xba   :  { %1165 = vmatmul.mubr.bf16.gmra.mrb[76].mxu1 %v2060_v50  ;;  %1895 = vmatmul.mubr.msk.bf16.gmra.mrb[76].mxu0 %vm802_vm0, %v2061_v51 }
  0xf5   :  { %v1702_v52 = vpop.f32.mrb[0].mxu1  ;;  %v1630_v53 = vpop.f32.mrb[0].mxu0 }
  0xf6   :  { %v1703_v54 = vpop.f32.mrb[1].mxu1  ;;  %v1631_v55 = vpop.f32.mrb[1].mxu0 }
  0xf7   :  { %v2451_v56 = vadd.f32 %v1703_v54, %v1702_v52  ;;  %v1705_v57 = vpop.f32.mrb[2].mxu1  ;;  %v1632_v58 = vadd.f32 %v1631_v55, %v1630_v53  ;;  %v1633_v59 = vpop.f32.mrb[2].mxu0 }
  0xf8   :  { %v1706_v60 = vpop.f32.mrb[3].mxu1  ;;  %v1634_v61 = vpop.f32.mrb[3].mxu0 }
  0xf9   :  { %v2453_v62 = vadd.f32 %v1706_v60, %v1705_v57  ;;  %v1635_v63 = vadd.f32 %v1634_v61, %v1633_v59 }
  0xfd   :  { %v1708_v0 = vpop.f32.mrb[4].mxu1  ;;  %v1636_v1 = vpop.f32.mrb[4].mxu0 }
  0xfe   :  { %v1709_v2 = vpop.f32.mrb[5].mxu1  ;;  %v1637_v3 = vpop.f32.mrb[5].mxu0 }
  0xff   :  { %v2455_v4 = vadd.f32 %v1709_v2, %v1708_v0  ;;  %v1711_v5 = vpop.f32.mrb[6].mxu1  ;;  %v1638_v6 = vadd.f32 %v1637_v3, %v1636_v1  ;;  %v1639_v7 = vpop.f32.mrb[6].mxu0 }
 0x100   :  { %v1712_v8 = vpop.f32.mrb[7].mxu1  ;;  %v1640_v9 = vpop.f32.mrb[7].mxu0 }
 0x101   :  { %v2457_v10 = vadd.f32 %v1712_v8, %v1711_v5  ;;  %v1641_v11 = vadd.f32 %v1640_v9, %v1639_v7 }
 0x105   :  { %v1714_v12 = vpop.f32.mrb[8].mxu1  ;;  %v1642_v13 = vpop.f32.mrb[8].mxu0 }
 0x106   :  { %v1715_v14 = vpop.f32.mrb[9].mxu1  ;;  %v1643_v15 = vpop.f32.mrb[9].mxu0 }
 0x107   :  { %v2459_v16 = vadd.f32 %v1715_v14, %v1714_v12  ;;  %v1717_v17 = vpop.f32.mrb[10].mxu1  ;;  %v1644_v18 = vadd.f32 %v1643_v15, %v1642_v13  ;;  %v1645_v19 = vpop.f32.mrb[10].mxu0 }
 0x108   :  { %v1718_v20 = vpop.f32.mrb[11].mxu1  ;;  %v1646_v21 = vpop.f32.mrb[11].mxu0 }
 0x109   :  { %v2461_v22 = vadd.f32 %v1718_v20, %v1717_v17  ;;  %v1647_v23 = vadd.f32 %v1646_v21, %v1645_v19 }
 0x10d   :  { %v1720_v24 = vpop.f32.mrb[12].mxu1  ;;  %v1648_v25 = vpop.f32.mrb[12].mxu0 }
 0x10e   :  { %v1721_v26 = vpop.f32.mrb[13].mxu1  ;;  %v1649_v27 = vpop.f32.mrb[13].mxu0 }
 0x10f   :  { %v2463_v28 = vadd.f32 %v1721_v26, %v1720_v24  ;;  %v1723_v29 = vpop.f32.mrb[14].mxu1  ;;  %v1650_v30 = vadd.f32 %v1649_v27, %v1648_v25  ;;  %v1651_v31 = vpop.f32.mrb[14].mxu0 }
 0x110   :  { %v1724_v32 = vpop.f32.mrb[15].mxu1  ;;  %v1652_v33 = vpop.f32.mrb[15].mxu0 }
 0x111   :  { %v2465_v34 = vadd.f32 %v1724_v32, %v1723_v29  ;;  %v1653_v35 = vadd.f32 %v1652_v33, %v1651_v31 }
 0x115   :  { %v1742_v36 = vpop.f32.mrb[16].mxu1  ;;  %v1654_v37 = vpop.f32.mrb[16].mxu0 }
 0x116   :  { %v1743_v38 = vpop.f32.mrb[17].mxu1  ;;  %v1655_v39 = vpop.f32.mrb[17].mxu0 }
 0x117   :  { %v1744_v40 = vadd.f32 %v1743_v38, %v1742_v36  ;;  %v1745_v41 = vpop.f32.mrb[18].mxu1  ;;  %v1656_v42 = vadd.f32 %v1655_v39, %v1654_v37  ;;  %v1657_v43 = vpop.f32.mrb[18].mxu0 }
 0x118   :  { %v1746_v44 = vpop.f32.mrb[19].mxu1  ;;  %v1658_v45 = vpop.f32.mrb[19].mxu0 }
 0x119   :  { %v1747_v46 = vadd.f32 %v1746_v44, %v1745_v41  ;;  %v1659_v47 = vadd.f32 %v1658_v45, %v1657_v43  ;;  %v2467_v48 = vadd.f32 %v1744_v40, %v1632_v58 }
 0x11b   :  { %v2469_v49 = vadd.f32 %v1747_v46, %v1635_v63 }
 0x11d   :  { %v1748_v50 = vpop.f32.mrb[20].mxu1  ;;  %v1660_v51 = vpop.f32.mrb[20].mxu0 }
 0x11e   :  { %v1749_v52 = vpop.f32.mrb[21].mxu1  ;;  %v1661_v53 = vpop.f32.mrb[21].mxu0 }
 0x11f   :  { %v1750_v54 = vadd.f32 %v1749_v52, %v1748_v50  ;;  %v1751_v55 = vpop.f32.mrb[22].mxu1  ;;  %v1662_v57 = vadd.f32 %v1661_v53, %v1660_v51  ;;  %v1663_v59 = vpop.f32.mrb[22].mxu0 }
 0x120   :  { %v1752_v60 = vpop.f32.mrb[23].mxu1  ;;  %v1664_v61 = vpop.f32.mrb[23].mxu0 }
 0x121   :  { %v1753_v0 = vadd.f32 %v1752_v60, %v1751_v55  ;;  %v1665_v1 = vadd.f32 %v1664_v61, %v1663_v59  ;;  %v2471_v2 = vadd.f32 %v1750_v54, %v1638_v6 }
 0x123   :  { %v2473_v3 = vadd.f32 %v1753_v0, %v1641_v11 }
 0x125   :  { %v1754_v58 = vpop.f32.mrb[24].mxu1  ;;  %v1666_v5 = vpop.f32.mrb[24].mxu0 }
 0x126   :  { %v1755_v63 = vpop.f32.mrb[25].mxu1  ;;  %v1667_v7 = vpop.f32.mrb[25].mxu0 }
 0x127   :  { %v1756_v8 = vadd.f32 %v1755_v63, %v1754_v58  ;;  %v1757_v9 = vpop.f32.mrb[26].mxu1  ;;  %v1668_v12 = vadd.f32 %v1667_v7, %v1666_v5  ;;  %v1669_v13 = vpop.f32.mrb[26].mxu0 }
 0x128   :  { %v1758_v14 = vpop.f32.mrb[27].mxu1  ;;  %v1670_v15 = vpop.f32.mrb[27].mxu0 }
 0x129   :  { %v1759_v17 = vadd.f32 %v1758_v14, %v1757_v9  ;;  %v1671_v19 = vadd.f32 %v1670_v15, %v1669_v13  ;;  %v2475_v20 = vadd.f32 %v1756_v8, %v1644_v18 }
 0x12b   :  { %v2477_v21 = vadd.f32 %v1759_v17, %v1647_v23 }
 0x12d   :  { %v1760_v6 = vpop.f32.mrb[28].mxu1  ;;  %v1672_v24 = vpop.f32.mrb[28].mxu0 }
 0x12e   :  { %v1761_v11 = vpop.f32.mrb[29].mxu1  ;;  %v1673_v25 = vpop.f32.mrb[29].mxu0 }
 0x12f   :  { %v1762_v26 = vadd.f32 %v1761_v11, %v1760_v6  ;;  %v1763_v27 = vpop.f32.mrb[30].mxu1  ;;  %v1674_v29 = vadd.f32 %v1673_v25, %v1672_v24  ;;  %v1675_v31 = vpop.f32.mrb[30].mxu0 }
 0x130   :  { %v1764_v32 = vpop.f32.mrb[31].mxu1  ;;  %v1676_v33 = vpop.f32.mrb[31].mxu0 }
 0x131   :  { %v1765_v36 = vadd.f32 %v1764_v32, %v1763_v27  ;;  %v1677_v37 = vadd.f32 %v1676_v33, %v1675_v31  ;;  %v2479_v38 = vadd.f32 %v1762_v26, %v1650_v30 }
 0x133   :  { %v2481_v39 = vadd.f32 %v1765_v36, %v1653_v35 }
 0x135   :  { %v1766_v18 = vpop.f32.mrb[32].mxu1  ;;  %v1678_v40 = vpop.f32.mrb[32].mxu0 }
 0x136   :  { %v1767_v23 = vpop.f32.mrb[33].mxu1  ;;  %v1679_v41 = vpop.f32.mrb[33].mxu0 }
 0x137   :  { %v1768_v43 = vadd.f32 %v1767_v23, %v1766_v18  ;;  %v1769_v44 = vpop.f32.mrb[34].mxu1  ;;  %v2483_v45 = vadd.f32 %v1679_v41, %v1678_v40  ;;  %v1681_v46 = vpop.f32.mrb[34].mxu0 }
 0x138   :  { %v1770_v50 = vpop.f32.mrb[35].mxu1  ;;  %v1682_v51 = vpop.f32.mrb[35].mxu0 }
 0x139   :  { %v1771_v52 = vadd.f32 %v1770_v50, %v1769_v44  ;;  %v2485_v53 = vadd.f32 %v1682_v51, %v1681_v46  ;;  %v2487_v54 = vadd.f32 %v1768_v43, %v1656_v42 }
 0x13b   :  { %v2489_v30 = vadd.f32 %v1771_v52, %v1659_v47 }
 0x13d   :  { %v1772_v35 = vpop.f32.mrb[36].mxu1  ;;  %v1684_v55 = vpop.f32.mrb[36].mxu0 }
 0x13e   :  { %v1773_v59 = vpop.f32.mrb[37].mxu1  ;;  %v1685_v60 = vpop.f32.mrb[37].mxu0 }
 0x13f   :  { %v1774_v61 = vadd.f32 %v1773_v59, %v1772_v35  ;;  %v1775_v0 = vpop.f32.mrb[38].mxu1  ;;  %v2491_v58 = vadd.f32 %v1685_v60, %v1684_v55  ;;  %v1687_v5 = vpop.f32.mrb[38].mxu0  ;;  %v2518_v59 = vld [vmem:[%s2769_s2] ss:$0 sm:$0xff] }
 0x140   :  { %v1776_v63 = vpop.f32.mrb[39].mxu1  ;;  %v1688_v7 = vpop.f32.mrb[39].mxu0 }
 0x141   :  { %v1777_v8 = vadd.f32 %v1776_v63, %v1775_v0  ;;  %v2493_v9 = vadd.f32 %v1688_v7, %v1687_v5  ;;  %v2495_v13 = vadd.f32 %v1774_v61, %v1662_v57  ;;  %v2524_v5 = vld [vmem:[%s2770_s3] ss:$0 sm:$0xff] }
 0x143   :  { %v2497_v42 = vadd.f32 %v1777_v8, %v1665_v1 }
 0x145   :  { %v1778_v47 = vpop.f32.mrb[40].mxu1  ;;  %v1690_v14 = vpop.f32.mrb[40].mxu0 }
 0x146   :  { %v1779_v15 = vpop.f32.mrb[41].mxu1  ;;  %v1691_v17 = vpop.f32.mrb[41].mxu0 }
 0x147   :  { %v1780_v6 = vadd.f32 %v1779_v15, %v1778_v47  ;;  %v1781_v24 = vpop.f32.mrb[42].mxu1  ;;  %v2499_v11 = vadd.f32 %v1691_v17, %v1690_v14  ;;  %v1693_v25 = vpop.f32.mrb[42].mxu0 }
 0x148   :  { %v1782_v26 = vpop.f32.mrb[43].mxu1  ;;  %v1694_v27 = vpop.f32.mrb[43].mxu0 }
 0x149   :  { %v1783_v31 = vadd.f32 %v1782_v26, %v1781_v24  ;;  %v2501_v32 = vadd.f32 %v1694_v27, %v1693_v25  ;;  %v2503_v33 = vadd.f32 %v1780_v6, %v1668_v12 }
 0x14b   :  { %v2505_v57 = vadd.f32 %v1783_v31, %v1671_v19 }
 0x14d   :  { %v1784_v1 = vpop.f32.mrb[44].mxu1  ;;  %v1696_v36 = vpop.f32.mrb[44].mxu0 }
 0x14e   :  { %v1785_v18 = vpop.f32.mrb[45].mxu1  ;;  %v1697_v40 = vpop.f32.mrb[45].mxu0 }
 0x14f   :  { %v1786_v23 = vadd.f32 %v1785_v18, %v1784_v1  ;;  %v1787_v41 = vpop.f32.mrb[46].mxu1  ;;  %v2507_v43 = vadd.f32 %v1697_v40, %v1696_v36  ;;  %v1699_v44 = vpop.f32.mrb[46].mxu0 }
 0x150   :  { %v1788_v46 = vpop.f32.mrb[47].mxu1  ;;  %v1700_v50 = vpop.f32.mrb[47].mxu0 }
 0x151   :  { %v1789_v51 = vadd.f32 %v1788_v46, %v1787_v41  ;;  %v2509_v52 = vadd.f32 %v1700_v50, %v1699_v44  ;;  %v2511_v35 = vadd.f32 %v1786_v23, %v1674_v29 }
 0x153   :  { %v2513_v12 = vadd.f32 %v1789_v51, %v1677_v37 }
 0x155   :  { %v1790_v19 = vpop.f32.mrb[48].mxu1  ;;  %v1868_v55 = vpop.f32.mrb[48].mxu0 }
 0x156   :  { %v1216_v60 = vadd.f32 %v1868_v55, %v2471_v2  ;;  %v1791_v61 = vpop.f32.mrb[49].mxu1  ;;  %v1207_v0 = vpop.f32.mrb[49].mxu0 }
 0x157   :  { %v1792_v29 = vadd.f32 %v1791_v61, %v1790_v19  ;;  %v1208_v37 = vadd.f32 %v1207_v0, %v2467_v48  ;;  %v1793_v63 = vpop.f32.mrb[50].mxu1  ;;  %v1869_v7 = vpop.f32.mrb[50].mxu0 }
 0x158   :  { %v1343_v8 = vmul.f32 %v2518_v59, %v1216_v60  ;;  %v1219_v47 = vadd.f32 %v1869_v7, %v2473_v3  ;;  %v1794_v14 = vpop.f32.mrb[51].mxu1  ;;  %v1210_v15 = vpop.f32.mrb[51].mxu0 }
 0x159   :  { %v1341_v2 = vmul.f32 %v2518_v59, %v1208_v37  ;;  %v1795_v17 = vadd.f32 %v1794_v14, %v1793_v63  ;;  %v1211_v6 = vadd.f32 %v1210_v15, %v2469_v49  ;;  %v2532_v24 = vadd.f32 %v1792_v29, %v2483_v45 }
 0x15a   :  { %v1382_v25 = vadd.f32 %v2524_v5, %v1343_v8  ;;  %v1344_v48 = vmul.f32 %v2518_v59, %v1219_v47 }
 0x15b   :  { %v1380_v26 = vadd.f32 %v2524_v5, %v1341_v2  ;;  %v1342_v27 = vmul.f32 %v2518_v59, %v1211_v6  ;;  %v2539_v3 = vadd.f32 %v1795_v17, %v2485_v53 }
 0x15c   :  { %v1414_v31 = vmax.f32 %v1382_v25, 0.0  ;;  %v1383_v1 = vadd.f32 %v2524_v5, %v1344_v48 }
 0x15d   :  { %v1412_v36 = vmax.f32 %v1380_v26, 0.0  ;;  %v1381_v49 = vadd.f32 %v2524_v5, %v1342_v27  ;;  %v1796_v18 = vpop.f32.mrb[52].mxu1  ;;  %v1872_v45 = vpop.f32.mrb[52].mxu0 }
 0x15e   :  { %1446 = vst.msk [vmem:[%s2771_s4 + $0x10] sm:$0xff] %vm802_vm0, %v1414_v31  ;;  %v1415_v40 = vmax.f32 %v1383_v1, 0.0  ;;  %v1232_v23 = vadd.f32 %v1872_v45, %v2479_v38  ;;  %v1797_v41 = vpop.f32.mrb[53].mxu1  ;;  %v1223_v44 = vpop.f32.mrb[53].mxu0 }
 0x15f   :  { %1444 = vst.msk [vmem:[%s2771_s4] sm:$0xff] %vm802_vm0, %v1412_v36  ;;  %v1413_v53 = vmax.f32 %v1381_v49, 0.0  ;;  %v1798_v46 = vadd.f32 %v1797_v41, %v1796_v18  ;;  %v1224_v50 = vadd.f32 %v1223_v44, %v2475_v20  ;;  %v1799_v51 = vpop.f32.mrb[54].mxu1  ;;  %v1873_v19 = vpop.f32.mrb[54].mxu0 }
 0x160   :  { %1447 = vst.msk [vmem:[%s2771_s4 + $0x18] sm:$0xff] %vm802_vm0, %v1415_v40  ;;  %v1347_v38 = vmul.f32 %v2518_v59, %v1232_v23  ;;  %v1235_v55 = vadd.f32 %v1873_v19, %v2481_v39  ;;  %v1800_v60 = vpop.f32.mrb[55].mxu1  ;;  %v1226_v61 = vpop.f32.mrb[55].mxu0 }
 0x161   :  { %1445 = vst.msk [vmem:[%s2771_s4 + $0x8] sm:$0xff] %vm802_vm0, %v1413_v53  ;;  %v1345_v20 = vmul.f32 %v2518_v59, %v1224_v50  ;;  %v1801_v0 = vadd.f32 %v1800_v60, %v1799_v51  ;;  %v1227_v29 = vadd.f32 %v1226_v61, %v2477_v21  ;;  %v2566_v37 = vadd.f32 %v1798_v46, %v2491_v58 }
 0x162   :  { %v1386_v63 = vadd.f32 %v2524_v5, %v1347_v38  ;;  %v1348_v7 = vmul.f32 %v2518_v59, %v1235_v55 }
 0x163   :  { %v1384_v39 = vadd.f32 %v2524_v5, %v1345_v20  ;;  %v1346_v8 = vmul.f32 %v2518_v59, %v1227_v29  ;;  %v2573_v47 = vadd.f32 %v1801_v0, %v2493_v9 }
 0x164   :  { %v1418_v14 = vmax.f32 %v1386_v63, 0.0  ;;  %v1387_v15 = vadd.f32 %v2524_v5, %v1348_v7 }
 0x165   :  { %v1416_v2 = vmax.f32 %v1384_v39, 0.0  ;;  %v1385_v21 = vadd.f32 %v2524_v5, %v1346_v8  ;;  %v1802_v17 = vpop.f32.mrb[56].mxu1  ;;  %v1876_v58 = vpop.f32.mrb[56].mxu0 }
 0x166   :  { %1450 = vst.msk [vmem:[%s2771_s4 + $0x30] sm:$0xff] %vm802_vm0, %v1418_v14  ;;  %v1419_v6 = vmax.f32 %v1387_v15, 0.0  ;;  %v1248_v25 = vadd.f32 %v1876_v58, %v2495_v13  ;;  %v1803_v48 = vpop.f32.mrb[57].mxu1  ;;  %v1239_v26 = vpop.f32.mrb[57].mxu0 }
 0x167   :  { %1448 = vst.msk [vmem:[%s2771_s4 + $0x20] sm:$0xff] %vm802_vm0, %v1416_v2  ;;  %v1417_v9 = vmax.f32 %v1385_v21, 0.0  ;;  %v1804_v27 = vadd.f32 %v1803_v48, %v1802_v17  ;;  %v1240_v31 = vadd.f32 %v1239_v26, %v2487_v54  ;;  %v1805_v1 = vpop.f32.mrb[58].mxu1  ;;  %v1877_v36 = vpop.f32.mrb[58].mxu0 }
 0x168   :  { %1451 = vst.msk [vmem:[%s2771_s4 + $0x38] sm:$0xff] %vm802_vm0, %v1419_v6  ;;  %v1351_v13 = vmul.f32 %v2518_v59, %v1248_v25  ;;  %v1251_v49 = vadd.f32 %v1877_v36, %v2497_v42  ;;  %v1806_v18 = vpop.f32.mrb[59].mxu1  ;;  %v1242_v45 = vpop.f32.mrb[59].mxu0 }
 0x169   :  { %1449 = vst.msk [vmem:[%s2771_s4 + $0x28] sm:$0xff] %vm802_vm0, %v1417_v9  ;;  %v1349_v54 = vmul.f32 %v2518_v59, %v1240_v31  ;;  %v1807_v40 = vadd.f32 %v1806_v18, %v1805_v1  ;;  %v1243_v23 = vadd.f32 %v1242_v45, %v2489_v30  ;;  %v2600_v41 = vadd.f32 %v1804_v27, %v2499_v11 }
 0x16a   :  { %v1390_v44 = vadd.f32 %v2524_v5, %v1351_v13  ;;  %v1352_v53 = vmul.f32 %v2518_v59, %v1251_v49 }
 0x16b   :  { %v1388_v42 = vadd.f32 %v2524_v5, %v1349_v54  ;;  %v1350_v46 = vmul.f32 %v2518_v59, %v1243_v23  ;;  %v2607_v50 = vadd.f32 %v1807_v40, %v2501_v32 }
 0x16c   :  { %v1422_v51 = vmax.f32 %v1390_v44, 0.0  ;;  %v1391_v19 = vadd.f32 %v2524_v5, %v1352_v53 }
 0x16d   :  { %v1420_v38 = vmax.f32 %v1388_v42, 0.0  ;;  %v1389_v30 = vadd.f32 %v2524_v5, %v1350_v46  ;;  %v1808_v55 = vpop.f32.mrb[60].mxu1  ;;  %v1880_v11 = vpop.f32.mrb[60].mxu0 }
 0x16e   :  { %1454 = vst.msk [vmem:[%s2771_s4 + $0x50] sm:$0xff] %vm802_vm0, %v1422_v51  ;;  %v1423_v60 = vmax.f32 %v1391_v19, 0.0  ;;  %v1264_v61 = vadd.f32 %v1880_v11, %v2511_v35  ;;  %v1809_v20 = vpop.f32.mrb[61].mxu1  ;;  %v1255_v0 = vpop.f32.mrb[61].mxu0 }
 0x16f   :  { %1452 = vst.msk [vmem:[%s2771_s4 + $0x40] sm:$0xff] %vm802_vm0, %v1420_v38  ;;  %v1421_v32 = vmax.f32 %v1389_v30, 0.0  ;;  %v1810_v29 = vadd.f32 %v1809_v20, %v1808_v55  ;;  %v1256_v63 = vadd.f32 %v1255_v0, %v2503_v33  ;;  %v1811_v7 = vpop.f32.mrb[62].mxu1  ;;  %v1881_v39 = vpop.f32.mrb[62].mxu0 }
 0x170   :  { %1455 = vst.msk [vmem:[%s2771_s4 + $0x58] sm:$0xff] %vm802_vm0, %v1423_v60  ;;  %v1355_v35 = vmul.f32 %v2518_v59, %v1264_v61  ;;  %v1267_v8 = vadd.f32 %v1881_v39, %v2513_v12  ;;  %v1812_v14 = vpop.f32.mrb[63].mxu1  ;;  %v1258_v15 = vpop.f32.mrb[63].mxu0 }
 0x171   :  { %1453 = vst.msk [vmem:[%s2771_s4 + $0x48] sm:$0xff] %vm802_vm0, %v1421_v32  ;;  %v1353_v33 = vmul.f32 %v2518_v59, %v1256_v63  ;;  %v1813_v2 = vadd.f32 %v1812_v14, %v1811_v7  ;;  %v1259_v21 = vadd.f32 %v1258_v15, %v2505_v57  ;;  %v1135_v17 = vadd.f32 %v1810_v29, %v2507_v43 }
 0x172   :  { %v1394_v58 = vadd.f32 %v2524_v5, %v1355_v35  ;;  %v1356_v6 = vmul.f32 %v2518_v59, %v1267_v8 }
 0x173   :  { %v1392_v12 = vadd.f32 %v2524_v5, %v1353_v33  ;;  %v1354_v25 = vmul.f32 %v2518_v59, %v1259_v21  ;;  %v1138_v48 = vadd.f32 %v1813_v2, %v2509_v52 }
 0x174   :  { %v1426_v26 = vmax.f32 %v1394_v58, 0.0  ;;  %v1395_v9 = vadd.f32 %v2524_v5, %v1356_v6 }
 0x175   :  { %v1424_v27 = vmax.f32 %v1392_v12, 0.0  ;;  %v1393_v31 = vadd.f32 %v2524_v5, %v1354_v25  ;;  %v1814_v1 = vpop.f32.mrb[64].mxu1  ;;  %v1884_v57 = vpop.f32.mrb[64].mxu0 }
 0x176   :  { %1458 = vst.msk [vmem:[%s2771_s4 + $0x70] sm:$0xff] %vm802_vm0, %v1426_v26  ;;  %v1427_v43 = vmax.f32 %v1395_v9, 0.0  ;;  %v1280_v36 = vadd.f32 %v1884_v57, %v2566_v37  ;;  %v1815_v13 = vpop.f32.mrb[65].mxu1  ;;  %v1271_v49 = vpop.f32.mrb[65].mxu0 }
 0x177   :  { %1456 = vst.msk [vmem:[%s2771_s4 + $0x60] sm:$0xff] %vm802_vm0, %v1424_v27  ;;  %v1425_v52 = vmax.f32 %v1393_v31, 0.0  ;;  %v1816_v18 = vadd.f32 %v1815_v13, %v1814_v1  ;;  %v1272_v45 = vadd.f32 %v1271_v49, %v2532_v24  ;;  %v1817_v54 = vpop.f32.mrb[66].mxu1  ;;  %v1885_v40 = vpop.f32.mrb[66].mxu0 }
 0x178   :  { %1459 = vst.msk [vmem:[%s2771_s4 + $0x78] sm:$0xff] %vm802_vm0, %v1427_v43  ;;  %v1359_v37 = vmul.f32 %v2518_v59, %v1280_v36  ;;  %v1283_v23 = vadd.f32 %v1885_v40, %v2573_v47  ;;  %v1818_v44 = vpop.f32.mrb[67].mxu1  ;;  %v1274_v53 = vpop.f32.mrb[67].mxu0 }
 0x179   :  { %1457 = vst.msk [vmem:[%s2771_s4 + $0x68] sm:$0xff] %vm802_vm0, %v1425_v52  ;;  %v1357_v24 = vmul.f32 %v2518_v59, %v1272_v45  ;;  %v1819_v42 = vadd.f32 %v1818_v44, %v1817_v54  ;;  %v1275_v46 = vadd.f32 %v1274_v53, %v2539_v3  ;;  %v1143_v51 = vadd.f32 %v1816_v18, %v2451_v56 }
 0x17a   :  { %v1398_v19 = vadd.f32 %v2524_v5, %v1359_v37  ;;  %v1360_v38 = vmul.f32 %v2518_v59, %v1283_v23 }
 0x17b   :  { %v1396_v47 = vadd.f32 %v2524_v5, %v1357_v24  ;;  %v1358_v30 = vmul.f32 %v2518_v59, %v1275_v46  ;;  %v1146_v55 = vadd.f32 %v1819_v42, %v2453_v62 }
 0x17c   :  { %v1430_v11 = vmax.f32 %v1398_v19, 0.0  ;;  %v1399_v60 = vadd.f32 %v2524_v5, %v1360_v38 }
 0x17d   :  { %v1428_v61 = vmax.f32 %v1396_v47, 0.0  ;;  %v1397_v20 = vadd.f32 %v2524_v5, %v1358_v30  ;;  %v1820_v0 = vpop.f32.mrb[68].mxu1  ;;  %v1888_v3 = vpop.f32.mrb[68].mxu0 }
 0x17e   :  { %1462 = vst.msk [vmem:[%s2771_s4 + $0x90] sm:$0xff] %vm802_vm0, %v1430_v11  ;;  %v1431_v56 = vmax.f32 %v1399_v60, 0.0  ;;  %v1296_v32 = vadd.f32 %v1888_v3, %v1135_v17  ;;  %v1821_v29 = vpop.f32.mrb[69].mxu1  ;;  %v1287_v63 = vpop.f32.mrb[69].mxu0 }
 0x17f   :  { %1460 = vst.msk [vmem:[%s2771_s4 + $0x80] sm:$0xff] %vm802_vm0, %v1428_v61  ;;  %v1429_v62 = vmax.f32 %v1397_v20, 0.0  ;;  %v1822_v7 = vadd.f32 %v1821_v29, %v1820_v0  ;;  %v1288_v39 = vadd.f32 %v1287_v63, %v2600_v41  ;;  %v1823_v35 = vpop.f32.mrb[70].mxu1  ;;  %v1889_v8 = vpop.f32.mrb[70].mxu0 }
 0x180   :  { %1463 = vst.msk [vmem:[%s2771_s4 + $0x98] sm:$0xff] %vm802_vm0, %v1431_v56  ;;  %v1363_v14 = vmul.f32 %v2518_v59, %v1296_v32  ;;  %v1299_v15 = vadd.f32 %v1889_v8, %v1138_v48  ;;  %v1824_v33 = vpop.f32.mrb[71].mxu1  ;;  %v1290_v2 = vpop.f32.mrb[71].mxu0 }
 0x181   :  { %1461 = vst.msk [vmem:[%s2771_s4 + $0x88] sm:$0xff] %vm802_vm0, %v1429_v62  ;;  %v1361_v21 = vmul.f32 %v2518_v59, %v1288_v39  ;;  %v1825_v41 = vadd.f32 %v1824_v33, %v1823_v35  ;;  %v1291_v17 = vadd.f32 %v1290_v2, %v2607_v50  ;;  %v1151_v58 = vadd.f32 %v1822_v7, %v2455_v4 }
 0x182   :  { %v1402_v6 = vadd.f32 %v2524_v5, %v1363_v14  ;;  %v1364_v12 = vmul.f32 %v2518_v59, %v1299_v15 }
 0x183   :  { %v1400_v25 = vadd.f32 %v2524_v5, %v1361_v21  ;;  %v1362_v48 = vmul.f32 %v2518_v59, %v1291_v17  ;;  %v1154_v26 = vadd.f32 %v1825_v41, %v2457_v10 }
 0x184   :  { %v1434_v9 = vmax.f32 %v1402_v6, 0.0  ;;  %v1403_v27 = vadd.f32 %v2524_v5, %v1364_v12 }
 0x185   :  { %v1432_v31 = vmax.f32 %v1400_v25, 0.0  ;;  %v1401_v1 = vadd.f32 %v2524_v5, %v1362_v48  ;;  %v1826_v57 = vpop.f32.mrb[72].mxu1  ;;  %v1892_v50 = vpop.f32.mrb[72].mxu0 }
 0x186   :  { %1466 = vst.msk [vmem:[%s2771_s4 + $0xb0] sm:$0xff] %vm802_vm0, %v1434_v9  ;;  %v1435_v4 = vmax.f32 %v1403_v27, 0.0  ;;  %v1312_v43 = vadd.f32 %v1892_v50, %v1151_v58  ;;  %v1827_v36 = vpop.f32.mrb[73].mxu1  ;;  %v1303_v13 = vpop.f32.mrb[73].mxu0 }
 0x187   :  { %1464 = vst.msk [vmem:[%s2771_s4 + $0xa0] sm:$0xff] %vm802_vm0, %v1432_v31  ;;  %v1433_v10 = vmax.f32 %v1401_v1, 0.0  ;;  %v1828_v49 = vadd.f32 %v1827_v36, %v1826_v57  ;;  %v1304_v52 = vadd.f32 %v1303_v13, %v1143_v51  ;;  %v1829_v18 = vpop.f32.mrb[74].mxu1  ;;  %v1893_v45 = vpop.f32.mrb[74].mxu0 }
 0x188   :  { %1467 = vst.msk [vmem:[%s2771_s4 + $0xb8] sm:$0xff] %vm802_vm0, %v1435_v4  ;;  %v1367_v54 = vmul.f32 %v2518_v59, %v1312_v43  ;;  %v1315_v40 = vadd.f32 %v1893_v45, %v1154_v26  ;;  %v1830_v37 = vpop.f32.mrb[75].mxu1  ;;  %v1306_v23 = vpop.f32.mrb[75].mxu0 }
 0x189   :  { %1465 = vst.msk [vmem:[%s2771_s4 + $0xa8] sm:$0xff] %vm802_vm0, %v1433_v10  ;;  %v1365_v44 = vmul.f32 %v2518_v59, %v1304_v52  ;;  %v1831_v53 = vadd.f32 %v1830_v37, %v1829_v18  ;;  %v1307_v24 = vadd.f32 %v1306_v23, %v1146_v55  ;;  %v1159_v42 = vadd.f32 %v1828_v49, %v2459_v16 }
 0x18a   :  { %v1406_v46 = vadd.f32 %v2524_v5, %v1367_v54  ;;  %v1368_v51 = vmul.f32 %v2518_v59, %v1315_v40 }
 0x18b   :  { %v1404_v19 = vadd.f32 %v2524_v5, %v1365_v44  ;;  %v1366_v38 = vmul.f32 %v2518_v59, %v1307_v24  ;;  %v1162_v47 = vadd.f32 %v1831_v53, %v2461_v22 }
 0x18c   :  { %v1438_v30 = vmax.f32 %v1406_v46, 0.0  ;;  %v1407_v11 = vadd.f32 %v2524_v5, %v1368_v51 }
 0x18d   :  { %v1436_v60 = vmax.f32 %v1404_v19, 0.0  ;;  %v1405_v61 = vadd.f32 %v2524_v5, %v1366_v38  ;;  %v1832_v20 = vpop.f32.mrb[76].mxu1  ;;  %v1896_v55 = vpop.f32.mrb[76].mxu0 }
 0x18e   :  { %1470 = vst.msk [vmem:[%s2771_s4 + $0xd0] sm:$0xff] %vm802_vm0, %v1438_v30  ;;  %v1439_v16 = vmax.f32 %v1407_v11, 0.0  ;;  %v1833_v0 = vpop.f32.mrb[77].mxu1  ;;  %v1319_v3 = vpop.f32.mrb[77].mxu0 }
 0x18f   :  { %1468 = vst.msk [vmem:[%s2771_s4 + $0xc0] sm:$0xff] %vm802_vm0, %v1436_v60  ;;  %v1437_v22 = vmax.f32 %v1405_v61, 0.0  ;;  %v1834_v56 = vadd.f32 %v1833_v0, %v1832_v20  ;;  %v1320_v32 = vadd.f32 %v1319_v3, %v1159_v42  ;;  %v1835_v29 = vpop.f32.mrb[78].mxu1  ;;  %v1897_v63 = vpop.f32.mrb[78].mxu0 }
 0x190   :  { %1471 = vst.msk [vmem:[%s2771_s4 + $0xd8] sm:$0xff] %vm802_vm0, %v1439_v16  ;;  %v1836_v62 = vpop.f32.mrb[79].mxu1  ;;  %v1322_v7 = vpop.f32.mrb[79].mxu0 }
 0x191   :  { %1469 = vst.msk [vmem:[%s2771_s4 + $0xc8] sm:$0xff] %vm802_vm0, %v1437_v22  ;;  %v1167_v39 = vadd.f32 %v1834_v56, %v2463_v28  ;;  %v1369_v35 = vmul.f32 %v2518_v59, %v1320_v32  ;;  %v1837_v8 = vadd.f32 %v1836_v62, %v1835_v29  ;;  %v1323_v14 = vadd.f32 %v1322_v7, %v1162_v47 }
 0x193   :  { %v1328_v15 = vadd.f32 %v1896_v55, %v1167_v39  ;;  %v1408_v33 = vadd.f32 %v2524_v5, %v1369_v35  ;;  %v1170_v2 = vadd.f32 %v1837_v8, %v2465_v34  ;;  %v1370_v21 = vmul.f32 %v2518_v59, %v1323_v14 }
 0x195   :  { %v1371_v41 = vmul.f32 %v2518_v59, %v1328_v15  ;;  %v1440_v17 = vmax.f32 %v1408_v33, 0.0  ;;  %v1331_v58 = vadd.f32 %v1897_v63, %v1170_v2  ;;  %v1409_v6 = vadd.f32 %v2524_v5, %v1370_v21 }
 0x197   :  { %v1410_v12 = vadd.f32 %v2524_v5, %v1371_v41  ;;  %1472 = vst.msk [vmem:[%s2771_s4 + $0xe0] sm:$0xff] %vm802_vm0, %v1440_v17  ;;  %v1372_v28 = vmul.f32 %v2518_v59, %v1331_v58  ;;  %v1441_v25 = vmax.f32 %v1409_v6, 0.0 }
 0x199   :  { %v1442_v48 = vmax.f32 %v1410_v12, 0.0  ;;  %v1411_v34 = vadd.f32 %v2524_v5, %v1372_v28  ;;  %1473 = vst.msk [vmem:[%s2771_s4 + $0xe8] sm:$0xff] %vm802_vm0, %v1441_v25 }
 0x19b   :  { %1474 = vst.msk [vmem:[%s2771_s4 + $0xf0] sm:$0xff] %vm802_vm0, %v1442_v48  ;;  %v1443_v26 = vmax.f32 %v1411_v34, 0.0 }
 0x19d   :  { %1475 = vst.msk [vmem:[%s2771_s4 + $0xf8] sm:$0xff] %vm802_vm0, %v1443_v26 }

// kernel: cnn_net.28
= control target key start
LH: loop header
LB: loop body
LE: loop exit
PB: predicated region body
PF: predicated region fallthrough
CT: control target
= control target key end

     0   :  { %vm137_vm1 = vcmask 523264   ;;  %s380_s1 = inlined_call_operand.vmem [shape: f32[64,64], index: 1, kind: input, shape index: {}]   ;;  %s381_s2 = inlined_call_operand.vmem [shape: f32[1,64], index: 2, kind: input, shape index: {}]   ;;  %s382_s3 = inlined_call_operand.vmem [shape: f32[1,64], index: 3, kind: input, shape index: {}]   ;;  %s383_s0 = inlined_call_operand.vmem [shape: f32[64,64], index: 0, kind: input, shape index: {}]   ;;  %s384_s4 = inlined_call_operand.vmem [shape: f32[64,64], index: 4, kind: output, shape index: {0}]   ;;  %s385_s5 = inlined_call_operand.vmem [shape: f32[64,64], index: 5, kind: output, shape index: {1}]  }
   0x1   :  { %v19_v0 = vld [vmem:[%s380_s1] sm:$0xff]  ;;  %v20_v4 = vld [vmem:[%s380_s1 + $0x8] sm:$0xff]  ;;  %v21_v6 = vld [vmem:[%s380_s1 + $0x10] sm:$0xff] }
   0x2   :  { %v178_v1 = vld [vmem:[%s381_s2] ss:$0 sm:$0xff]  ;;  %v22_v7 = vld [vmem:[%s380_s1 + $0x18] sm:$0xff]  ;;  %v24_v14 = vld [vmem:[%s380_s1 + $0x28] sm:$0xff] }
   0x3   :  { %v179_v2 = vld [vmem:[%s382_s3] ss:$0 sm:$0xff]  ;;  %v34_v3 = vmul.f32 %v178_v1, %v19_v0  ;;  %v35_v5 = vmul.f32 %v178_v1, %v20_v4  ;;  %v36_v9 = vmul.f32 %v178_v1, %v21_v6  ;;  %v37_v10 = vmul.f32 %v178_v1, %v22_v7  ;;  %v25_v15 = vld [vmem:[%s380_s1 + $0x30] sm:$0xff]  ;;  %v26_v20 = vld [vmem:[%s380_s1 + $0x38] sm:$0xff] }
   0x4   :  { %v23_v11 = vld [vmem:[%s380_s1 + $0x20] sm:$0xff]  ;;  %v39_v19 = vmul.f32 %v178_v1, %v24_v14  ;;  %v40_v23 = vmul.f32 %v178_v1, %v25_v15  ;;  %v41_v24 = vmul.f32 %v178_v1, %v26_v20  ;;  %v114_v53 = vld [vmem:[%s383_s0 + $0x8] sm:$0xff]  ;;  %v115_v56 = vld [vmem:[%s383_s0 + $0x10] sm:$0xff] }
   0x5   :  { %v49_v8 = vadd.f32 %v179_v2, %v34_v3  ;;  %v50_v12 = vadd.f32 %v179_v2, %v35_v5  ;;  %v38_v13 = vmul.f32 %v178_v1, %v23_v11  ;;  %v51_v17 = vadd.f32 %v179_v2, %v36_v9  ;;  %v113_v51 = vld [vmem:[%s383_s0] sm:$0xff]  ;;  %v116_v61 = vld [vmem:[%s383_s0 + $0x18] sm:$0xff]  ;;  %v118_v7 = vld [vmem:[%s383_s0 + $0x28] sm:$0xff] }
   0x6   :  { %v52_v18 = vadd.f32 %v179_v2, %v37_v10  ;;  %v54_v27 = vadd.f32 %v179_v2, %v39_v19  ;;  %v55_v29 = vadd.f32 %v179_v2, %v40_v23  ;;  %v56_v30 = vadd.f32 %v179_v2, %v41_v24 }
   0x7   :  { %v180_v16 = vmul.f32 -1.442695, %v49_v8  ;;  %v181_v21 = vmul.f32 -1.442695, %v50_v12  ;;  %v53_v22 = vadd.f32 %v179_v2, %v38_v13  ;;  %v182_v25 = vmul.f32 -1.442695, %v51_v17 }
   0x8   :  { %v183_v26 = vmul.f32 -1.442695, %v52_v18  ;;  %v185_v31 = vmul.f32 -1.442695, %v54_v27  ;;  %v186_v32 = vmul.f32 -1.442695, %v55_v29 }
   0x9   :  { %188 = vpow2.f32 %v180_v16  ;;  %v184_v28 = vmul.f32 -1.442695, %v53_v22  ;;  %v187_v33 = vmul.f32 -1.442695, %v56_v30  ;;  %v117_v2 = vld [vmem:[%s383_s0 + $0x20] sm:$0xff]  ;;  %v119_v12 = vld [vmem:[%s383_s0 + $0x30] sm:$0xff] }
   0xa   :  { %190 = vpow2.f32 %v181_v21  ;;  %v120_v17 = vld [vmem:[%s383_s0 + $0x38] sm:$0xff] }
   0xb   :  { %192 = vpow2.f32 %v182_v25 }
   0xc   :  { %194 = vpow2.f32 %v183_v26 }
   0xd   :  { %196 = vpow2.f32 %v184_v28 }
   0xe   :  { %198 = vpow2.f32 %v185_v31 }
   0xf   :  { %200 = vpow2.f32 %v186_v32 }
  0x10   :  { %202 = vpow2.f32 %v187_v33 }
  0x13   :  { %v189_v34 = vpop.eup %188 }
  0x14   :  { %v191_v35 = vpop.eup %190  ;;  %v81_v36 = vadd.f32 1.0, %v189_v34 }
  0x15   :  { %v193_v37 = vpop.eup %192  ;;  %v82_v38 = vadd.f32 1.0, %v191_v35 }
  0x16   :  { %v195_v39 = vpop.eup %194  ;;  %204 = vrcp.f32 %v81_v36  ;;  %v83_v40 = vadd.f32 1.0, %v193_v37 }
  0x17   :  { %v197_v41 = vpop.eup %196  ;;  %206 = vrcp.f32 %v82_v38  ;;  %v84_v42 = vadd.f32 1.0, %v195_v39 }
  0x18   :  { %v199_v43 = vpop.eup %198  ;;  %208 = vrcp.f32 %v83_v40  ;;  %v85_v44 = vadd.f32 1.0, %v197_v41 }
  0x19   :  { %v201_v45 = vpop.eup %200  ;;  %210 = vrcp.f32 %v84_v42  ;;  %v86_v46 = vadd.f32 1.0, %v199_v43 }
  0x1a   :  { %v203_v47 = vpop.eup %202  ;;  %212 = vrcp.f32 %v85_v44  ;;  %v87_v48 = vadd.f32 1.0, %v201_v45 }
  0x1b   :  { %214 = vrcp.f32 %v86_v46  ;;  %v88_v49 = vadd.f32 1.0, %v203_v47 }
  0x1c   :  { %216 = vrcp.f32 %v87_v48 }
  0x1d   :  { %218 = vrcp.f32 %v88_v49 }
  0x20   :  { %v205_v50 = vpop.eup %204 }
  0x21   :  { %v207_v52 = vpop.eup %206  ;;  %vm105_vm0 = vcmp.gt.f32.partialorder %v205_v50, 0.5 }
  0x22   :  { %v209_v54 = vpop.eup %208  ;;  %v121_v55 = vsel %vm105_vm0, 1.0, %v205_v50  ;;  %vm106_vm2 = vcmp.gt.f32.partialorder %v207_v52, 0.5  ;;  %v146_v57 = vsel %vm105_vm0, 0.0, %v205_v50 }
  0x23   :  { %v211_v58 = vpop.eup %210  ;;  %v129_v59 = vmul.f32 %v121_v55, %v113_v51  ;;  %v122_v60 = vsel %vm106_vm2, 1.0, %v207_v52  ;;  %vm107_vm3 = vcmp.gt.f32.partialorder %v209_v54, 0.5  ;;  %v154_v62 = vmul.f32 %v146_v57, %v113_v51 }
  0x24   :  { %v213_v63 = vpop.eup %212  ;;  %v130_v0 = vmul.f32 %v122_v60, %v114_v53  ;;  %v123_v1 = vsel %vm107_vm3, 1.0, %v209_v54  ;;  %vm108_vm4 = vcmp.gt.f32.partialorder %v211_v58, 0.5  ;;  %v147_v3 = vsel %vm106_vm2, 0.0, %v207_v52 }
  0x25   :  { %v215_v4 = vpop.eup %214  ;;  %138 = vst.msk [vmem:[%s384_s4] sm:$0xff] %vm137_vm1, %v129_v59  ;;  %v131_v5 = vmul.f32 %v123_v1, %v115_v56  ;;  %v124_v6 = vsel %vm108_vm4, 1.0, %v211_v58  ;;  %vm109_vm5 = vcmp.gt.f32.partialorder %v213_v63, 0.5  ;;  %162 = vst.msk [vmem:[%s385_s5] sm:$0xff] %vm137_vm1, %v154_v62  ;;  %v155_v8 = vmul.f32 %v147_v3, %v114_v53 }
  0x26   :  { %v217_v9 = vpop.eup %216  ;;  %139 = vst.msk [vmem:[%s384_s4 + $0x8] sm:$0xff] %vm137_vm1, %v130_v0  ;;  %v132_v10 = vmul.f32 %v124_v6, %v116_v61  ;;  %v125_v11 = vsel %vm109_vm5, 1.0, %v213_v63  ;;  %vm110_vm6 = vcmp.gt.f32.partialorder %v215_v4, 0.5  ;;  %v148_v13 = vsel %vm107_vm3, 0.0, %v209_v54 }
  0x27   :  { %v219_v14 = vpop.eup %218  ;;  %140 = vst.msk [vmem:[%s384_s4 + $0x10] sm:$0xff] %vm137_vm1, %v131_v5  ;;  %v133_v15 = vmul.f32 %v125_v11, %v117_v2  ;;  %v126_v16 = vsel %vm110_vm6, 1.0, %v215_v4  ;;  %vm111_vm7 = vcmp.gt.f32.partialorder %v217_v9, 0.5  ;;  %163 = vst.msk [vmem:[%s385_s5 + $0x8] sm:$0xff] %vm137_vm1, %v155_v8  ;;  %v156_v18 = vmul.f32 %v148_v13, %v115_v56 }
  0x28   :  { %141 = vst.msk [vmem:[%s384_s4 + $0x18] sm:$0xff] %vm137_vm1, %v132_v10  ;;  %v134_v19 = vmul.f32 %v126_v16, %v118_v7  ;;  %v127_v20 = vsel %vm111_vm7, 1.0, %v217_v9  ;;  %vm112_vm8 = vcmp.gt.f32.partialorder %v219_v14, 0.5  ;;  %v149_v21 = vsel %vm108_vm4, 0.0, %v211_v58 }
  0x29   :  { %142 = vst.msk [vmem:[%s384_s4 + $0x20] sm:$0xff] %vm137_vm1, %v133_v15  ;;  %v135_v22 = vmul.f32 %v127_v20, %v119_v12  ;;  %v128_v23 = vsel %vm112_vm8, 1.0, %v219_v14  ;;  %164 = vst.msk [vmem:[%s385_s5 + $0x10] sm:$0xff] %vm137_vm1, %v156_v18  ;;  %v157_v24 = vmul.f32 %v149_v21, %v116_v61  ;;  %v150_v25 = vsel %vm109_vm5, 0.0, %v213_v63 }
  0x2a   :  { %143 = vst.msk [vmem:[%s384_s4 + $0x28] sm:$0xff] %vm137_vm1, %v134_v19  ;;  %v136_v26 = vmul.f32 %v128_v23, %v120_v17  ;;  %v158_v27 = vmul.f32 %v150_v25, %v117_v2  ;;  %v151_v28 = vsel %vm110_vm6, 0.0, %v215_v4  ;;  %v152_v29 = vsel %vm111_vm7, 0.0, %v217_v9 }
  0x2b   :  { %144 = vst.msk [vmem:[%s384_s4 + $0x30] sm:$0xff] %vm137_vm1, %v135_v22  ;;  %165 = vst.msk [vmem:[%s385_s5 + $0x18] sm:$0xff] %vm137_vm1, %v157_v24  ;;  %v159_v30 = vmul.f32 %v151_v28, %v118_v7  ;;  %v160_v31 = vmul.f32 %v152_v29, %v119_v12  ;;  %v153_v32 = vsel %vm112_vm8, 0.0, %v219_v14 }
  0x2c   :  { %145 = vst.msk [vmem:[%s384_s4 + $0x38] sm:$0xff] %vm137_vm1, %v136_v26  ;;  %166 = vst.msk [vmem:[%s385_s5 + $0x20] sm:$0xff] %vm137_vm1, %v158_v27  ;;  %v161_v33 = vmul.f32 %v153_v32, %v120_v17 }
  0x2d   :  { %167 = vst.msk [vmem:[%s385_s5 + $0x28] sm:$0xff] %vm137_vm1, %v159_v30  ;;  %168 = vst.msk [vmem:[%s385_s5 + $0x30] sm:$0xff] %vm137_vm1, %v160_v31 }
  0x2e   :  { %169 = vst.msk [vmem:[%s385_s5 + $0x38] sm:$0xff] %vm137_vm1, %v161_v33 }

// kernel: cnn_net.29
= control target key start
LH: loop header
LB: loop body
LE: loop exit
PB: predicated region body
PF: predicated region fallthrough
CT: control target
= control target key end

     0   :  { %vm78_vm0 = vcmask 523264   ;;  %vm186_vm1 = vcmask 261120   ;;  %s344_s1 = inlined_call_operand.vmem [shape: bf16[64,32], index: 1, kind: input, shape index: {}]   ;;  %s345_s0 = inlined_call_operand.vmem [shape: bf16[64,64], index: 0, kind: input, shape index: {}]   ;;  %s346_s2 = inlined_call_operand.vmem [shape: f32[1,32], index: 2, kind: input, shape index: {}]   ;;  %s347_s3 = inlined_call_operand.vmem [shape: f32[1,32], index: 3, kind: input, shape index: {}]   ;;  %s348_s4 = inlined_call_operand.vmem [shape: f32[64,32], index: 4, kind: output, shape index: {}]  }
   0x1   :  { %v245_v0 = vld [vmem:[%s344_s1] sm:$0xff]   ;;  %v246_v1 = vld [vmem:[%s344_s1 + $0x8] sm:$0xff]   ;;  %v247_v2 = vld [vmem:[%s344_s1 + $0x10] sm:$0xff]  }
   0x2   :  { %221 = vmatprep.subr.bf16.mxu0 %v245_v0  ;;  %237 = vmatprep.subr.bf16.mxu1 %v245_v0  ;;  %v249_v3 = vld [vmem:[%s345_s0] sm:$0xff]   ;;  %v250_v4 = vld [vmem:[%s345_s0 + $0x10] sm:$0xff]   ;;  %v248_v5 = vld [vmem:[%s344_s1 + $0x18] sm:$0xff]  }
   0x3   :  { %222 = vmatpush3.bf16.msra.mxu0 %v245_v0  ;;  %241 = vmatpush3.bf16.msra.mxu1 %v245_v0  ;;  %v251_v6 = vld [vmem:[%s345_s0 + $0x8] sm:$0xff]   ;;  %v252_v7 = vld [vmem:[%s345_s0 + $0x18] sm:$0xff]   ;;  %v211_v8 = vld [vmem:[%s346_s2] ss:$0 sm:$0xff] }
   0x4   :  { %223 = vmatprep.subr.bf16.mxu0 %v246_v1  ;;  %238 = vmatprep.subr.bf16.mxu1 %v246_v1  ;;  %v212_v10 = vld [vmem:[%s347_s3] ss:$0 sm:$0xff] }
   0x5   :  { %229 = vmatprep.mubr.msk.bf16.mxu0 %vm78_vm0, %v249_v3  ;;  %233 = vmatprep.mubr.msk.bf16.mxu1 %vm78_vm0, %v250_v4 }
   0x7   :  { %224 = vmatpush3.bf16.msra.mxu0 %v246_v1  ;;  %242 = vmatpush3.bf16.msra.mxu1 %v246_v1 }
   0x8   :  { %225 = vmatprep.subr.bf16.mxu0 %v247_v2  ;;  %239 = vmatprep.subr.bf16.mxu1 %v247_v2 }
   0xb   :  { %226 = vmatpush3.bf16.msra.mxu0 %v247_v2  ;;  %243 = vmatpush3.bf16.msra.mxu1 %v247_v2 }
   0xc   :  { %227 = vmatprep.subr.bf16.mxu0 %v248_v5  ;;  %240 = vmatprep.subr.bf16.mxu1 %v248_v5 }
   0xf   :  { %228 = vmatpush3.bf16.msra.mxu0 %v248_v5  ;;  %244 = vmatpush3.bf16.msra.mxu1 %v248_v5 }
  0x12   :  { %230 = vmatmul.mubr.msk.bf16.vlgmr.msra.gmra.mrb[0].mxu0 %vm78_vm0, %v251_v6  ;;  %234 = vmatmul.mubr.msk.bf16.vlgmr.msra.gmra.mrb[0].mxu1 %vm78_vm0, %v252_v7 }
  0xe5   :  { %v231_v9 = vpop.f32.mrb[0].mxu0  ;;  %v235_v11 = vpop.f32.mrb[0].mxu1 }
  0xe6   :  { %v165_v12 = vmul.f32 %v231_v9, %v211_v8  ;;  %v169_v13 = vmul.f32 %v235_v11, %v211_v8  ;;  %v125_v14 = vpop.f32.mrb[1].mxu0  ;;  %v141_v15 = vpop.f32.mrb[1].mxu1 }
  0xe7   :  { %v163_v16 = vmul.f32 %v211_v8, %v125_v14  ;;  %v167_v17 = vmul.f32 %v211_v8, %v141_v15  ;;  %v232_v18 = vpop.f32.mrb[2].mxu0  ;;  %v236_v19 = vpop.f32.mrb[2].mxu1 }
  0xe8   :  { %v180_v20 = vadd.f32 %v212_v10, %v165_v12  ;;  %v184_v21 = vadd.f32 %v212_v10, %v169_v13  ;;  %v166_v22 = vmul.f32 %v232_v18, %v211_v8  ;;  %v170_v23 = vmul.f32 %v236_v19, %v211_v8  ;;  %v128_v24 = vpop.f32.mrb[3].mxu0  ;;  %v144_v25 = vpop.f32.mrb[3].mxu1 }
  0xe9   :  { %v178_v26 = vadd.f32 %v212_v10, %v163_v16  ;;  %v182_v27 = vadd.f32 %v212_v10, %v167_v17  ;;  %v164_v28 = vmul.f32 %v211_v8, %v128_v24  ;;  %v168_v29 = vmul.f32 %v211_v8, %v144_v25 }
  0xea   :  { %189 = vst.msk [vmem:[%s348_s4 + $0x10] sm:$0xff] %vm186_vm1, %v180_v20  ;;  %193 = vst.msk [vmem:[%s348_s4 + $0x30] sm:$0xff] %vm186_vm1, %v184_v21  ;;  %v181_v30 = vadd.f32 %v212_v10, %v166_v22  ;;  %v185_v31 = vadd.f32 %v212_v10, %v170_v23 }
  0xeb   :  { %187 = vst.msk [vmem:[%s348_s4] sm:$0xff] %vm186_vm1, %v178_v26  ;;  %191 = vst.msk [vmem:[%s348_s4 + $0x20] sm:$0xff] %vm186_vm1, %v182_v27  ;;  %v179_v32 = vadd.f32 %v212_v10, %v164_v28  ;;  %v183_v33 = vadd.f32 %v212_v10, %v168_v29 }
  0xec   :  { %190 = vst.msk [vmem:[%s348_s4 + $0x18] sm:$0xff] %vm186_vm1, %v181_v30  ;;  %194 = vst.msk [vmem:[%s348_s4 + $0x38] sm:$0xff] %vm186_vm1, %v185_v31 }
  0xed   :  { %188 = vst.msk [vmem:[%s348_s4 + $0x8] sm:$0xff] %vm186_vm1, %v179_v32  ;;  %192 = vst.msk [vmem:[%s348_s4 + $0x28] sm:$0xff] %vm186_vm1, %v183_v33 }

// kernel: cnn_net.27
= control target key start
LH: loop header
LB: loop body
LE: loop exit
PB: predicated region body
PF: predicated region fallthrough
CT: control target
= control target key end

     0   :  { %vm2405_vm0 = vcmask 523264   ;;  %s4690_s1 = inlined_call_operand.vmem [shape: bf16[1152,64], index: 1, kind: input, shape index: {}]   ;;  %s4691_s0 = inlined_call_operand.vmem [shape: bf16[256,1152], index: 0, kind: input, shape index: {}]   ;;  %s4692_s2 = inlined_call_operand.vmem [shape: f32[1,64], index: 2, kind: input, shape index: {}]   ;;  %s4693_s3 = inlined_call_operand.vmem [shape: f32[1,64], index: 3, kind: input, shape index: {}]   ;;  %s4694_s4 = inlined_call_operand.vmem [shape: f32[256,64], index: 4, kind: output, shape index: {}]  }
   0x1   :  { %v3196_v0 = vld [vmem:[%s4690_s1 + $0x40] sm:$0xff]   ;;  %v3198_v2 = vld [vmem:[%s4690_s1 + $0x48] sm:$0xff]   ;;  %v3200_v4 = vld [vmem:[%s4690_s1 + $0x50] sm:$0xff]  }
   0x2   :  { %v3197_v1 = vld [vmem:[%s4690_s1] sm:$0xff]   ;;  %2660 = vmatprep.subr.bf16.mxu0 %v3196_v0  ;;  %3180 = vmatprep.subr.bf16.mxu1 %v3196_v0  ;;  %v3199_v3 = vld [vmem:[%s4690_s1 + $0x8] sm:$0xff]   ;;  %v3201_v5 = vld [vmem:[%s4690_s1 + $0x10] sm:$0xff]  }
   0x3   :  { %2661 = vmatpush3.bf16.msra.mxu0 %v3197_v1  ;;  %3188 = vmatpush3.bf16.msra.mxu1 %v3197_v1  ;;  %v3202_v6 = vld [vmem:[%s4690_s1 + $0x58] sm:$0xff]   ;;  %v3204_v8 = vld [vmem:[%s4690_s1 + $0x60] sm:$0xff]   ;;  %v3206_v10 = vld [vmem:[%s4690_s1 + $0x68] sm:$0xff]  }
   0x4   :  { %2662 = vmatprep.subr.bf16.mxu0 %v3198_v2  ;;  %3181 = vmatprep.subr.bf16.mxu1 %v3198_v2  ;;  %v3203_v7 = vld [vmem:[%s4690_s1 + $0x18] sm:$0xff]   ;;  %v3205_v9 = vld [vmem:[%s4690_s1 + $0x20] sm:$0xff]   ;;  %v3207_v13 = vld [vmem:[%s4690_s1 + $0x28] sm:$0xff]  }
   0x5   :  { %v3214_v11 = vld [vmem:[%s4691_s0 + $0x4] ss:$36 sps:$4 sm:$0xff]   ;;  %v3208_v14 = vld [vmem:[%s4690_s1 + $0x70] sm:$0xff]   ;;  %v3210_v16 = vld [vmem:[%s4690_s1 + $0x78] sm:$0xff]  }
   0x6   :  { %v3217_v12 = vld [vmem:[%s4691_s0 + $0x364] ss:$36 sps:$4 sm:$0xff]   ;;  %1522 = vmatprep.mubr.bf16.mxu0 %v3214_v11  ;;  %v3209_v15 = vld [vmem:[%s4690_s1 + $0x30] sm:$0xff]   ;;  %v3211_v17 = vld [vmem:[%s4690_s1 + $0x38] sm:$0xff]  }
   0x7   :  { %2663 = vmatpush3.bf16.msra.mxu0 %v3199_v3  ;;  %3189 = vmatpush3.bf16.msra.mxu1 %v3199_v3  ;;  %v3218_v18 = vld [vmem:[%s4690_s1 + $0xc0] sm:$0xff]   ;;  %v3220_v23 = vld [vmem:[%s4690_s1 + $0xc8] sm:$0xff]   ;;  %v3230_v31 = vld [vmem:[%s4690_s1 + $0xd0] sm:$0xff]  }
   0x8   :  { %2664 = vmatprep.subr.bf16.mxu0 %v3200_v4  ;;  %3182 = vmatprep.subr.bf16.mxu1 %v3200_v4  ;;  %v3212_v19 = vld [vmem:[%s4691_s0] ss:$36 sps:$4 sm:$0xff]   ;;  %v3224_v25 = vld [vmem:[%s4691_s0 + $0x4c] ss:$36 sps:$4 sm:$0xff]   ;;  %v3232_v34 = vld [vmem:[%s4690_s1 + $0xd8] sm:$0xff]  }
   0x9   :  { %1618 = vmatprep.mubr.bf16.mxu1 %v3217_v12  ;;  %v3215_v20 = vld [vmem:[%s4691_s0 + $0x360] ss:$36 sps:$4 sm:$0xff]   ;;  %v3226_v26 = vld [vmem:[%s4691_s0 + $0x3ac] ss:$36 sps:$4 sm:$0xff]   ;;  %v3234_v35 = vld [vmem:[%s4691_s0 + $0x94] ss:$36 sps:$4 sm:$0xff]  }
   0xa   :  { %v3221_v21 = vld [vmem:[%s4690_s1 + $0x140] sm:$0xff]   ;;  %v3222_v27 = vld [vmem:[%s4690_s1 + $0x88] sm:$0xff]   ;;  %v3231_v32 = vld [vmem:[%s4690_s1 + $0x90] sm:$0xff]  }
   0xb   :  { %2665 = vmatpush3.bf16.msra.mxu0 %v3201_v5  ;;  %3190 = vmatpush3.bf16.msra.mxu1 %v3201_v5  ;;  %v3219_v22 = vld [vmem:[%s4690_s1 + $0x80] sm:$0xff]   ;;  %v3241_v28 = vld [vmem:[%s4690_s1 + $0x148] sm:$0xff]   ;;  %v3236_v36 = vld [vmem:[%s4691_s0 + $0x3f4] ss:$36 sps:$4 sm:$0xff]  }
   0xc   :  { %2666 = vmatprep.subr.bf16.mxu0 %v3202_v6  ;;  %3183 = vmatprep.subr.bf16.mxu1 %v3202_v6  ;;  %v3223_v24 = vld [vmem:[%s4690_s1 + $0x100] sm:$0xff]   ;;  %v3228_v29 = vld [vmem:[%s4691_s0 + $0x48] ss:$36 sps:$4 sm:$0xff]   ;;  %v3233_v37 = vld [vmem:[%s4690_s1 + $0x98] sm:$0xff]  }
   0xd   :  { %v3229_v30 = vld [vmem:[%s4691_s0 + $0x3a8] ss:$36 sps:$4 sm:$0xff]   ;;  %v3238_v38 = vld [vmem:[%s4691_s0 + $0x90] ss:$36 sps:$4 sm:$0xff]   ;;  %v3240_v40 = vld [vmem:[%s4690_s1 + $0xe0] sm:$0xff]  }
   0xe   :  { %v3243_v33 = vld [vmem:[%s4690_s1 + $0x108] sm:$0xff]   ;;  %v3239_v39 = vld [vmem:[%s4691_s0 + $0x3f0] ss:$36 sps:$4 sm:$0xff]   ;;  %v3242_v41 = vld [vmem:[%s4690_s1 + $0xa0] sm:$0xff]  }
   0xf   :  { %2667 = vmatpush3.bf16.msra.mxu0 %v3203_v7  ;;  %3191 = vmatpush3.bf16.msra.mxu1 %v3203_v7  ;;  %v3244_v42 = vld [vmem:[%s4690_s1 + $0xe8] sm:$0xff]   ;;  %v3255_v43 = vld [vmem:[%s4690_s1 + $0x150] sm:$0xff]   ;;  %v3246_v44 = vld [vmem:[%s4691_s0 + $0xdc] ss:$36 sps:$4 sm:$0xff]  }
  0x10   :  { %2668 = vmatprep.subr.bf16.mxu0 %v3204_v8  ;;  %3184 = vmatprep.subr.bf16.mxu1 %v3204_v8  ;;  %v3248_v45 = vld [vmem:[%s4691_s0 + $0x43c] ss:$36 sps:$4 sm:$0xff]   ;;  %v3257_v46 = vld [vmem:[%s4690_s1 + $0x110] sm:$0xff]   ;;  %v3245_v47 = vld [vmem:[%s4690_s1 + $0xa8] sm:$0xff]  }
  0x11   :  { %v3252_v48 = vld [vmem:[%s4690_s1 + $0xf0] sm:$0xff]   ;;  %v3250_v49 = vld [vmem:[%s4691_s0 + $0xd8] ss:$36 sps:$4 sm:$0xff]   ;;  %v3258_v53 = vld [vmem:[%s4691_s0 + $0x124] ss:$36 sps:$4 sm:$0xff]  }
  0x12   :  { %v3251_v50 = vld [vmem:[%s4691_s0 + $0x438] ss:$36 sps:$4 sm:$0xff]   ;;  %v3253_v51 = vld [vmem:[%s4690_s1 + $0xb0] sm:$0xff]   ;;  %v3260_v58 = vld [vmem:[%s4691_s0 + $0x8] ss:$36 sps:$4 sm:$0xff]  }
  0x13   :  { %2669 = vmatpush3.bf16.msra.mxu0 %v3205_v9  ;;  %3192 = vmatpush3.bf16.msra.mxu1 %v3205_v9  ;;  %v3254_v52 = vld [vmem:[%s4690_s1 + $0xf8] sm:$0xff]   ;;  %v3262_v54 = vld [vmem:[%s4691_s0 + $0xc] ss:$36 sps:$4 sm:$0xff]   ;;  %v3263_v59 = vld [vmem:[%s4691_s0 + $0x120] ss:$36 sps:$4 sm:$0xff]  }
  0x14   :  { %2670 = vmatprep.subr.bf16.mxu0 %v3206_v10  ;;  %3185 = vmatprep.subr.bf16.mxu1 %v3206_v10  ;;  %v3272_v55 = vld [vmem:[%s4690_s1 + $0x158] sm:$0xff]   ;;  %v3264_v60 = vld [vmem:[%s4690_s1 + $0x1c0] sm:$0xff]   ;;  %v3266_v62 = vld [vmem:[%s4691_s0 + $0x16c] ss:$36 sps:$4 sm:$0xff]  }
  0x15   :  { %v3273_v56 = vld [vmem:[%s4690_s1 + $0x118] sm:$0xff]   ;;  %v3265_v61 = vld [vmem:[%s4690_s1 + $0x180] sm:$0xff]   ;;  %v3280_v1 = vld [vmem:[%s4690_s1 + $0x1c8] sm:$0xff]  }
  0x16   :  { %v3256_v57 = vld [vmem:[%s4690_s1 + $0xb8] sm:$0xff]   ;;  %v3282_v0 = vld [vmem:[%s4690_s1 + $0x160] sm:$0xff]   ;;  %v3281_v3 = vld [vmem:[%s4690_s1 + $0x188] sm:$0xff]  }
  0x17   :  { %2671 = vmatpush3.bf16.msra.mxu0 %v3207_v13  ;;  %3193 = vmatpush3.bf16.msra.mxu1 %v3207_v13  ;;  %v3268_v63 = vld [vmem:[%s4691_s0 + $0x54] ss:$36 sps:$4 sm:$0xff]   ;;  %v3283_v2 = vld [vmem:[%s4690_s1 + $0x120] sm:$0xff]   ;;  %v3270_v4 = vld [vmem:[%s4691_s0 + $0x168] ss:$36 sps:$4 sm:$0xff]  }
  0x18   :  { %2672 = vmatprep.subr.bf16.mxu0 %v3208_v14  ;;  %3186 = vmatprep.subr.bf16.mxu1 %v3208_v14  ;;  %v3271_v5 = vld [vmem:[%s4691_s0 + $0x50] ss:$36 sps:$4 sm:$0xff]   ;;  %v3276_v7 = vld [vmem:[%s4691_s0 + $0x9c] ss:$36 sps:$4 sm:$0xff]   ;;  %v3296_v8 = vld [vmem:[%s4690_s1 + $0x168] sm:$0xff]  }
  0x19   :  { %v3274_v6 = vld [vmem:[%s4691_s0 + $0x1b4] ss:$36 sps:$4 sm:$0xff]   ;;  %v3298_v10 = vld [vmem:[%s4690_s1 + $0x128] sm:$0xff]   ;;  %v3284_v14 = vld [vmem:[%s4691_s0 + $0x1fc] ss:$36 sps:$4 sm:$0xff]  }
  0x1a   :  { %v3297_v9 = vld [vmem:[%s4690_s1 + $0x1d0] sm:$0xff]   ;;  %v3279_v13 = vld [vmem:[%s4691_s0 + $0x98] ss:$36 sps:$4 sm:$0xff]  }
  0x1b   :  { %2673 = vmatpush3.bf16.msra.mxu0 %v3209_v15  ;;  %3194 = vmatpush3.bf16.msra.mxu1 %v3209_v15  ;;  %v3299_v11 = vld [vmem:[%s4690_s1 + $0x190] sm:$0xff]  }
  0x1c   :  { %2674 = vmatprep.subr.bf16.mxu0 %v3210_v16  ;;  %3187 = vmatprep.subr.bf16.mxu1 %v3210_v16  ;;  %v3278_v12 = vld [vmem:[%s4691_s0 + $0x1b0] ss:$36 sps:$4 sm:$0xff]  }
  0x1d   :  { %v3306_v15 = vld [vmem:[%s4690_s1 + $0x170] sm:$0xff]  }
  0x1e   :  { %v3307_v16 = vld [vmem:[%s4690_s1 + $0x130] sm:$0xff]  }
  0x1f   :  { %2675 = vmatpush3.bf16.msra.mxu0 %v3211_v17  ;;  %3195 = vmatpush3.bf16.msra.mxu1 %v3211_v17  ;;  %v3286_v17 = vld [vmem:[%s4691_s0 + $0xe4] ss:$36 sps:$4 sm:$0xff]  }
  0x20   :  { %2772 = vmatprep.subr.bf16.mxu1 %v3218_v18  ;;  %2884 = vmatprep.subr.bf16.mxu0 %v3221_v21  ;;  %v3314_v18 = vld [vmem:[%s4690_s1 + $0x1d8] sm:$0xff]   ;;  %v3289_v21 = vld [vmem:[%s4691_s0 + $0xe0] ss:$36 sps:$4 sm:$0xff]  }
  0x22   :  { %1523 = vmatmul.mubr.bf16.vlgmr.msra.gmra.mrb[0].mxu0 %v3212_v19  ;;  %1619 = vmatmul.mubr.bf16.vlgmr.msra.gmra.mrb[0].mxu1 %v3215_v20  ;;  %v3315_v19 = vld [vmem:[%s4690_s1 + $0x198] sm:$0xff]  }
  0x23   :  { %2773 = vmatpush3.bf16.msra.mxu1 %v3219_v22  ;;  %2885 = vmatpush3.bf16.msra.mxu0 %v3223_v24  ;;  %v3288_v20 = vld [vmem:[%s4691_s0 + $0x1f8] ss:$36 sps:$4 sm:$0xff]   ;;  %v3290_v22 = vld [vmem:[%s4691_s0 + $0x244] ss:$36 sps:$4 sm:$0xff]  }
  0x24   :  { %2774 = vmatprep.subr.bf16.mxu1 %v3220_v23  ;;  %1530 = vmatprep.mubr.bf16.mxu0 %v3224_v25  ;;  %v3292_v23 = vld [vmem:[%s4691_s0 + $0x12c] ss:$36 sps:$4 sm:$0xff]   ;;  %v3322_v24 = vld [vmem:[%s4690_s1 + $0x178] sm:$0xff]  }
  0x25   :  { %1626 = vmatprep.mubr.bf16.mxu1 %v3226_v26  ;;  %2886 = vmatprep.subr.bf16.mxu0 %v3241_v28  ;;  %v3323_v25 = vld [vmem:[%s4690_s1 + $0x138] sm:$0xff]   ;;  %v3330_v26 = vld [vmem:[%s4690_s1 + $0x1e0] sm:$0xff]  }
  0x26   :  { %v3331_v28 = vld [vmem:[%s4690_s1 + $0x1a0] sm:$0xff]  }
  0x27   :  { %2775 = vmatpush3.bf16.msra.mxu1 %v3222_v27  ;;  %2887 = vmatpush3.bf16.msra.mxu0 %v3243_v33  ;;  %v3294_v27 = vld [vmem:[%s4691_s0 + $0x240] ss:$36 sps:$4 sm:$0xff]   ;;  %v3345_v33 = vld [vmem:[%s4690_s1 + $0x1e8] sm:$0xff]  }
  0x28   :  { %2776 = vmatprep.subr.bf16.mxu1 %v3230_v31  ;;  %2888 = vmatprep.subr.bf16.mxu0 %v3255_v43  ;;  %v3300_v31 = vld [vmem:[%s4691_s0 + $0x28c] ss:$36 sps:$4 sm:$0xff]   ;;  %v3316_v43 = vld [vmem:[%s4691_s0 + $0x31c] ss:$36 sps:$4 sm:$0xff]  }
  0x2a   :  { %1531 = vmatmul.mubr.bf16.gmra.mrb[4].mxu0 %v3228_v29  ;;  %1627 = vmatmul.mubr.bf16.gmra.mrb[4].mxu1 %v3229_v30  ;;  %v3332_v29 = vld [vmem:[%s4690_s1 + $0x200] sm:$0xff]   ;;  %v3295_v30 = vld [vmem:[%s4691_s0 + $0x128] ss:$36 sps:$4 sm:$0xff]  }
  0x2b   :  { %2777 = vmatpush3.bf16.msra.mxu1 %v3231_v32  ;;  %1538 = vmatprep.mubr.bf16.mxu0 %v3234_v35  ;;  %v3302_v32 = vld [vmem:[%s4691_s0 + $0x174] ss:$36 sps:$4 sm:$0xff]   ;;  %v3346_v35 = vld [vmem:[%s4690_s1 + $0x1a8] sm:$0xff]  }
  0x2c   :  { %2778 = vmatprep.subr.bf16.mxu1 %v3232_v34  ;;  %1634 = vmatprep.mubr.bf16.mxu1 %v3236_v36  ;;  %v3304_v34 = vld [vmem:[%s4691_s0 + $0x288] ss:$36 sps:$4 sm:$0xff]   ;;  %v3305_v36 = vld [vmem:[%s4691_s0 + $0x170] ss:$36 sps:$4 sm:$0xff]  }
  0x2d   :  { %2889 = vmatpush3.bf16.msra.mxu0 %v3257_v46  ;;  %v3321_v46 = vld [vmem:[%s4691_s0 + $0x200] ss:$36 sps:$4 sm:$0xff]  }
  0x2e   :  { %2890 = vmatprep.subr.bf16.mxu0 %v3272_v55  ;;  %v3347_v55 = vld [vmem:[%s4690_s1 + $0x208] sm:$0xff]  }
  0x2f   :  { %2779 = vmatpush3.bf16.msra.mxu1 %v3233_v37  ;;  %v3308_v37 = vld [vmem:[%s4691_s0 + $0x2d4] ss:$36 sps:$4 sm:$0xff]  }
  0x30   :  { %2780 = vmatprep.subr.bf16.mxu1 %v3240_v40  ;;  %v3313_v40 = vld [vmem:[%s4691_s0 + $0x1b8] ss:$36 sps:$4 sm:$0xff]  }
  0x31   :  { %2891 = vmatpush3.bf16.msra.mxu0 %v3273_v56  ;;  %v3362_v56 = vld [vmem:[%s4690_s1 + $0x210] sm:$0xff]  }
  0x32   :  { %1539 = vmatmul.mubr.bf16.gmra.mrb[8].mxu0 %v3238_v38  ;;  %1635 = vmatmul.mubr.bf16.gmra.mrb[8].mxu1 %v3239_v39  ;;  %v3310_v38 = vld [vmem:[%s4691_s0 + $0x1bc] ss:$36 sps:$4 sm:$0xff]   ;;  %v3312_v39 = vld [vmem:[%s4691_s0 + $0x2d0] ss:$36 sps:$4 sm:$0xff]  }
  0x33   :  { %2781 = vmatpush3.bf16.msra.mxu1 %v3242_v41  ;;  %1546 = vmatprep.mubr.bf16.mxu0 %v3246_v44  ;;  %v3360_v41 = vld [vmem:[%s4690_s1 + $0x1f0] sm:$0xff]   ;;  %v3318_v44 = vld [vmem:[%s4691_s0 + $0x204] ss:$36 sps:$4 sm:$0xff]  }
  0x34   :  { %2782 = vmatprep.subr.bf16.mxu1 %v3244_v42  ;;  %1642 = vmatprep.mubr.bf16.mxu1 %v3248_v45  ;;  %v3361_v42 = vld [vmem:[%s4690_s1 + $0x1b0] sm:$0xff]   ;;  %v3320_v45 = vld [vmem:[%s4691_s0 + $0x318] ss:$36 sps:$4 sm:$0xff]  }
  0x35   :  { %2892 = vmatprep.subr.bf16.mxu0 %v3282_v0  ;;  %v3344_v0 = vld [vmem:[%s4691_s0 + $0xa0] ss:$36 sps:$4 sm:$0xff]  }
  0x36   :  { %2893 = vmatpush3.bf16.msra.mxu0 %v3283_v2  ;;  %v3350_v2 = vld [vmem:[%s4691_s0 + $0xec] ss:$36 sps:$4 sm:$0xff]  }
  0x37   :  { %2783 = vmatpush3.bf16.msra.mxu1 %v3245_v47  ;;  %2894 = vmatprep.subr.bf16.mxu0 %v3296_v8  ;;  %v3375_v47 = vld [vmem:[%s4690_s1 + $0x1f8] sm:$0xff]  }
  0x38   :  { %2784 = vmatprep.subr.bf16.mxu1 %v3252_v48  ;;  %v3376_v48 = vld [vmem:[%s4690_s1 + $0x1b8] sm:$0xff]  }
  0x39   :  { %v3356_v8 = vld [vmem:[%s4691_s0 + $0x134] ss:$36 sps:$4 sm:$0xff]  }
  0x3a   :  { %1547 = vmatmul.mubr.bf16.gmra.mrb[12].mxu0 %v3250_v49  ;;  %1643 = vmatmul.mubr.bf16.gmra.mrb[12].mxu1 %v3251_v50  ;;  %v3324_v49 = vld [vmem:[%s4691_s0 + $0x24c] ss:$36 sps:$4 sm:$0xff]   ;;  %v3328_v50 = vld [vmem:[%s4691_s0 + $0x14] ss:$36 sps:$4 sm:$0xff]  }
  0x3b   :  { %2785 = vmatpush3.bf16.msra.mxu1 %v3253_v51  ;;  %1554 = vmatprep.mubr.bf16.mxu0 %v3258_v53  ;;  %v3326_v51 = vld [vmem:[%s4691_s0 + $0x10] ss:$36 sps:$4 sm:$0xff]  }
  0x3c   :  { %2786 = vmatprep.subr.bf16.mxu1 %v3254_v52  ;;  %1683 = vmatprep.mubr.bf16.mxu1 %v3262_v54  ;;  %v3329_v52 = vld [vmem:[%s4691_s0 + $0x248] ss:$36 sps:$4 sm:$0xff]   ;;  %v3333_v53 = vld [vmem:[%s4691_s0 + $0x294] ss:$36 sps:$4 sm:$0xff]   ;;  %v3335_v54 = vld [vmem:[%s4691_s0 + $0x5c] ss:$36 sps:$4 sm:$0xff]  }
  0x3d   :  { %2895 = vmatpush3.bf16.msra.mxu0 %v3298_v10  ;;  %v3358_v10 = vld [vmem:[%s4691_s0 + $0x368] ss:$36 sps:$4 sm:$0xff]  }
  0x3e   :  { %2896 = vmatprep.subr.bf16.mxu0 %v3306_v15  ;;  %v3368_v15 = vld [vmem:[%s4691_s0 + $0x178] ss:$36 sps:$4 sm:$0xff]  }
  0x3f   :  { %2787 = vmatpush3.bf16.msra.mxu1 %v3256_v57  ;;  %v3337_v57 = vld [vmem:[%s4691_s0 + $0x290] ss:$36 sps:$4 sm:$0xff]  }
  0x40   :  { %2996 = vmatprep.subr.bf16.mxu1 %v3264_v60  ;;  %v3341_v60 = vld [vmem:[%s4691_s0 + $0xa4] ss:$36 sps:$4 sm:$0xff]  }
  0x41   :  { %2897 = vmatpush3.bf16.msra.mxu0 %v3307_v16  ;;  %v3369_v16 = vld [vmem:[%s4691_s0 + $0x3fc] ss:$36 sps:$4 sm:$0xff]  }
  0x42   :  { %1555 = vmatmul.mubr.bf16.gmra.mrb[16].mxu0 %v3263_v59  ;;  %1684 = vmatmul.mubr.bf16.vlgmr.msra.gmra.mrb[16].mxu1 %v3260_v58  ;;  %v3338_v58 = vld [vmem:[%s4691_s0 + $0x58] ss:$36 sps:$4 sm:$0xff]  }
  0x43   :  { %2997 = vmatpush3.bf16.msra.mxu1 %v3265_v61  ;;  %1562 = vmatprep.mubr.bf16.mxu0 %v3266_v62  ;;  %v3339_v59 = vld [vmem:[%s4691_s0 + $0x2dc] ss:$36 sps:$4 sm:$0xff]  }
  0x44   :  { %1691 = vmatprep.mubr.bf16.mxu1 %v3268_v63  ;;  %2998 = vmatprep.subr.bf16.mxu1 %v3280_v1  ;;  %v3377_v61 = vld [vmem:[%s4690_s1 + $0x218] sm:$0xff]   ;;  %v3390_v62 = vld [vmem:[%s4690_s1 + $0x220] sm:$0xff]  }
  0x45   :  { %2898 = vmatprep.subr.bf16.mxu0 %v3322_v24  ;;  %v3343_v63 = vld [vmem:[%s4691_s0 + $0x2d8] ss:$36 sps:$4 sm:$0xff]   ;;  %v3348_v1 = vld [vmem:[%s4691_s0 + $0x324] ss:$36 sps:$4 sm:$0xff]  }
  0x46   :  { %2899 = vmatpush3.bf16.msra.mxu0 %v3323_v25  ;;  %v3384_v24 = vld [vmem:[%s4691_s0 + $0x254] ss:$36 sps:$4 sm:$0xff]   ;;  %v3388_v25 = vld [vmem:[%s4691_s0 + $0x1c] ss:$36 sps:$4 sm:$0xff]  }
  0x47   :  { %2999 = vmatpush3.bf16.msra.mxu1 %v3281_v3  ;;  %3132 = vmatprep.subr.bf16.mxu0 %v3332_v29  ;;  %v3403_v3 = vld [vmem:[%s4690_s1 + $0x228] sm:$0xff]  }
  0x48   :  { %3000 = vmatprep.subr.bf16.mxu1 %v3297_v9  ;;  %v3429_v9 = vld [vmem:[%s4690_s1 + $0x238] sm:$0xff]  }
  0x4a   :  { %1563 = vmatmul.mubr.bf16.gmra.mrb[20].mxu0 %v3270_v4  ;;  %1692 = vmatmul.mubr.bf16.gmra.mrb[20].mxu1 %v3271_v5  ;;  %v3352_v4 = vld [vmem:[%s4691_s0 + $0x320] ss:$36 sps:$4 sm:$0xff]   ;;  %v3353_v5 = vld [vmem:[%s4691_s0 + $0xe8] ss:$36 sps:$4 sm:$0xff]  }
  0x4b   :  { %1570 = vmatprep.mubr.bf16.mxu0 %v3274_v6  ;;  %1699 = vmatprep.mubr.bf16.mxu1 %v3276_v7  ;;  %v3416_v6 = vld [vmem:[%s4690_s1 + $0x230] sm:$0xff]  }
  0x4c   :  { %3001 = vmatpush3.bf16.msra.mxu1 %v3299_v11  ;;  %v3354_v7 = vld [vmem:[%s4691_s0 + $0x36c] ss:$36 sps:$4 sm:$0xff]  }
  0x4d   :  { %3002 = vmatprep.subr.bf16.mxu1 %v3314_v18  ;;  %v3359_v11 = vld [vmem:[%s4691_s0 + $0x130] ss:$36 sps:$4 sm:$0xff]   ;;  %v3373_v18 = vld [vmem:[%s4691_s0 + $0x3f8] ss:$36 sps:$4 sm:$0xff]  }
  0x50   :  { %3003 = vmatpush3.bf16.msra.mxu1 %v3315_v19  ;;  %v3374_v19 = vld [vmem:[%s4691_s0 + $0x1c0] ss:$36 sps:$4 sm:$0xff]  }
  0x51   :  { %3004 = vmatprep.subr.bf16.mxu1 %v3330_v26  ;;  %v3386_v26 = vld [vmem:[%s4691_s0 + $0x18] ss:$36 sps:$4 sm:$0xff]  }
  0x52   :  { %1571 = vmatmul.mubr.bf16.gmra.mrb[24].mxu0 %v3278_v12  ;;  %1700 = vmatmul.mubr.bf16.gmra.mrb[24].mxu1 %v3279_v13  ;;  %v3363_v12 = vld [vmem:[%s4691_s0 + $0x3b4] ss:$36 sps:$4 sm:$0xff]   ;;  %v3365_v13 = vld [vmem:[%s4691_s0 + $0x17c] ss:$36 sps:$4 sm:$0xff]  }
  0x53   :  { %1578 = vmatprep.mubr.bf16.mxu0 %v3284_v14  ;;  %1707 = vmatprep.mubr.bf16.mxu1 %v3286_v17  ;;  %v3367_v14 = vld [vmem:[%s4691_s0 + $0x3b0] ss:$36 sps:$4 sm:$0xff]   ;;  %v3371_v17 = vld [vmem:[%s4691_s0 + $0x1c4] ss:$36 sps:$4 sm:$0xff]  }
  0x54   :  { %3005 = vmatpush3.bf16.msra.mxu1 %v3331_v28  ;;  %v3391_v28 = vld [vmem:[%s4691_s0 + $0x29c] ss:$36 sps:$4 sm:$0xff]  }
  0x55   :  { %3006 = vmatprep.subr.bf16.mxu1 %v3345_v33  ;;  %v3399_v33 = vld [vmem:[%s4691_s0 + $0xac] ss:$36 sps:$4 sm:$0xff]  }
  0x58   :  { %3007 = vmatpush3.bf16.msra.mxu1 %v3346_v35  ;;  %v3402_v35 = vld [vmem:[%s4691_s0 + $0xa8] ss:$36 sps:$4 sm:$0xff]  }
  0x59   :  { %3008 = vmatprep.subr.bf16.mxu1 %v3360_v41  ;;  %v3412_v41 = vld [vmem:[%s4691_s0 + $0x13c] ss:$36 sps:$4 sm:$0xff]  }
  0x5a   :  { %1579 = vmatmul.mubr.bf16.gmra.mrb[28].mxu0 %v3288_v20  ;;  %1708 = vmatmul.mubr.bf16.gmra.mrb[28].mxu1 %v3289_v21  ;;  %v3378_v20 = vld [vmem:[%s4691_s0 + $0x444] ss:$36 sps:$4 sm:$0xff]   ;;  %v3380_v21 = vld [vmem:[%s4691_s0 + $0x20c] ss:$36 sps:$4 sm:$0xff]  }
  0x5b   :  { %1586 = vmatprep.mubr.bf16.mxu0 %v3290_v22  ;;  %1715 = vmatprep.mubr.bf16.mxu1 %v3292_v23  ;;  %v3382_v22 = vld [vmem:[%s4691_s0 + $0x440] ss:$36 sps:$4 sm:$0xff]   ;;  %v3383_v23 = vld [vmem:[%s4691_s0 + $0x208] ss:$36 sps:$4 sm:$0xff]  }
  0x5c   :  { %3009 = vmatpush3.bf16.msra.mxu1 %v3361_v42  ;;  %v3414_v42 = vld [vmem:[%s4691_s0 + $0x370] ss:$36 sps:$4 sm:$0xff]  }
  0x5d   :  { %3010 = vmatprep.subr.bf16.mxu1 %v3375_v47  ;;  %v3422_v47 = vld [vmem:[%s4691_s0 + $0x180] ss:$36 sps:$4 sm:$0xff]  }
  0x60   :  { %3011 = vmatpush3.bf16.msra.mxu1 %v3376_v48  ;;  %v3423_v48 = vld [vmem:[%s4691_s0 + $0x404] ss:$36 sps:$4 sm:$0xff]  }
  0x62   :  { %1587 = vmatmul.mubr.bf16.gmra.mrb[32].mxu0 %v3294_v27  ;;  %1716 = vmatmul.mubr.bf16.gmra.mrb[32].mxu1 %v3295_v30  ;;  %v3389_v27 = vld [vmem:[%s4691_s0 + $0x250] ss:$36 sps:$4 sm:$0xff]   ;;  %v3395_v30 = vld [vmem:[%s4691_s0 + $0x298] ss:$36 sps:$4 sm:$0xff]  }
  0x63   :  { %1594 = vmatprep.mubr.bf16.mxu0 %v3300_v31  ;;  %1723 = vmatprep.mubr.bf16.mxu1 %v3302_v32  ;;  %v3396_v31 = vld [vmem:[%s4691_s0 + $0x60] ss:$36 sps:$4 sm:$0xff]  }
  0x64   :  { %v3397_v32 = vld [vmem:[%s4691_s0 + $0x2e4] ss:$36 sps:$4 sm:$0xff]  }
  0x6a   :  { %1595 = vmatmul.mubr.bf16.gmra.mrb[36].mxu0 %v3304_v34  ;;  %1724 = vmatmul.mubr.bf16.gmra.mrb[36].mxu1 %v3305_v36  ;;  %v3401_v34 = vld [vmem:[%s4691_s0 + $0x2e0] ss:$36 sps:$4 sm:$0xff]   ;;  %v3404_v36 = vld [vmem:[%s4691_s0 + $0x32c] ss:$36 sps:$4 sm:$0xff]  }
  0x6b   :  { %1602 = vmatprep.mubr.bf16.mxu0 %v3308_v37  ;;  %1731 = vmatprep.mubr.bf16.mxu1 %v3310_v38  ;;  %v3406_v37 = vld [vmem:[%s4691_s0 + $0xf4] ss:$36 sps:$4 sm:$0xff]   ;;  %v3408_v38 = vld [vmem:[%s4691_s0 + $0x328] ss:$36 sps:$4 sm:$0xff]  }
  0x72   :  { %1603 = vmatmul.mubr.bf16.gmra.mrb[40].mxu0 %v3312_v39  ;;  %1732 = vmatmul.mubr.bf16.gmra.mrb[40].mxu1 %v3313_v40  ;;  %v3409_v39 = vld [vmem:[%s4691_s0 + $0xf0] ss:$36 sps:$4 sm:$0xff]  }
  0x73   :  { %1610 = vmatprep.mubr.bf16.mxu0 %v3316_v43  ;;  %1739 = vmatprep.mubr.bf16.mxu1 %v3318_v44  ;;  %v3410_v40 = vld [vmem:[%s4691_s0 + $0x374] ss:$36 sps:$4 sm:$0xff]   ;;  %v3417_v44 = vld [vmem:[%s4691_s0 + $0x3bc] ss:$36 sps:$4 sm:$0xff]  }
  0x74   :  { %v3415_v43 = vld [vmem:[%s4691_s0 + $0x138] ss:$36 sps:$4 sm:$0xff]  }
  0x7a   :  { %1611 = vmatmul.mubr.bf16.gmra.mrb[44].mxu0 %v3320_v45  ;;  %1740 = vmatmul.mubr.bf16.gmra.mrb[44].mxu1 %v3321_v46  ;;  %v3419_v45 = vld [vmem:[%s4691_s0 + $0x184] ss:$36 sps:$4 sm:$0xff]   ;;  %v3421_v46 = vld [vmem:[%s4691_s0 + $0x3b8] ss:$36 sps:$4 sm:$0xff]  }
  0x7b   :  { %1747 = vmatprep.mubr.bf16.mxu1 %v3324_v49  ;;  %1844 = vmatprep.mubr.bf16.mxu0 %v3328_v50  ;;  %v3425_v49 = vld [vmem:[%s4691_s0 + $0x1cc] ss:$36 sps:$4 sm:$0xff]   ;;  %v3427_v50 = vld [vmem:[%s4691_s0 + $0x400] ss:$36 sps:$4 sm:$0xff]  }
  0x82   :  { %1748 = vmatmul.mubr.bf16.gmra.mrb[48].mxu1 %v3329_v52  ;;  %1845 = vmatmul.mubr.bf16.vlgmr.msra.gmra.mrb[48].mxu0 %v3326_v51  ;;  %v3428_v51 = vld [vmem:[%s4691_s0 + $0x1c8] ss:$36 sps:$4 sm:$0xff]  }
  0x83   :  { %3133 = vmatpush3.bf16.msra.mxu0 %v3332_v29  ;;  %1755 = vmatprep.mubr.bf16.mxu1 %v3333_v53  ;;  %v3393_v29 = vld [vmem:[%s4691_s0 + $0x64] ss:$36 sps:$4 sm:$0xff]   ;;  %v3430_v52 = vld [vmem:[%s4691_s0 + $0x44c] ss:$36 sps:$4 sm:$0xff]   ;;  %v3432_v53 = vld [vmem:[%s4691_s0 + $0x214] ss:$36 sps:$4 sm:$0xff]  }
  0x84   :  { %1852 = vmatprep.mubr.bf16.mxu0 %v3335_v54  ;;  %3134 = vmatprep.subr.bf16.mxu0 %v3347_v55 }
  0x87   :  { %3135 = vmatpush3.bf16.msra.mxu0 %v3347_v55 }
  0x88   :  { %3136 = vmatprep.subr.bf16.mxu0 %v3362_v56 }
  0x8a   :  { %1756 = vmatmul.mubr.bf16.gmra.mrb[52].mxu1 %v3337_v57  ;;  %1853 = vmatmul.mubr.bf16.gmra.mrb[52].mxu0 %v3338_v58  ;;  %v3434_v58 = vld [vmem:[%s4691_s0 + $0x448] ss:$36 sps:$4 sm:$0xff]  }
  0x8b   :  { %1763 = vmatprep.mubr.bf16.mxu1 %v3339_v59  ;;  %1860 = vmatprep.mubr.bf16.mxu0 %v3341_v60  ;;  %v3435_v59 = vld [vmem:[%s4691_s0 + $0x210] ss:$36 sps:$4 sm:$0xff]  }
  0x8c   :  { %3137 = vmatpush3.bf16.msra.mxu0 %v3362_v56 }
  0x8d   :  { %3138 = vmatprep.subr.bf16.mxu0 %v3377_v61 }
  0x90   :  { %3139 = vmatpush3.bf16.msra.mxu0 %v3377_v61 }
  0x91   :  { %3140 = vmatprep.subr.bf16.mxu0 %v3390_v62 }
  0x92   :  { %1764 = vmatmul.mubr.bf16.gmra.mrb[56].mxu1 %v3343_v63  ;;  %1861 = vmatmul.mubr.bf16.gmra.mrb[56].mxu0 %v3344_v0  ;;  %v3436_v0 = vld [vmem:[%s4691_s0 + $0x25c] ss:$36 sps:$4 sm:$0xff]  }
  0x93   :  { %1771 = vmatprep.mubr.bf16.mxu1 %v3348_v1  ;;  %1868 = vmatprep.mubr.bf16.mxu0 %v3350_v2  ;;  %v3438_v1 = vld [vmem:[%s4691_s0 + $0x20] ss:$36 sps:$4 sm:$0xff]  }
  0x94   :  { %3141 = vmatpush3.bf16.msra.mxu0 %v3390_v62 }
  0x95   :  { %3142 = vmatprep.subr.bf16.mxu0 %v3403_v3 }
  0x98   :  { %3143 = vmatpush3.bf16.msra.mxu0 %v3403_v3 }
  0x99   :  { %3144 = vmatprep.subr.bf16.mxu0 %v3416_v6 }
  0x9a   :  { %1772 = vmatmul.mubr.bf16.gmra.mrb[60].mxu1 %v3352_v4  ;;  %1869 = vmatmul.mubr.bf16.gmra.mrb[60].mxu0 %v3353_v5 }
  0x9b   :  { %1779 = vmatprep.mubr.bf16.mxu1 %v3354_v7  ;;  %1876 = vmatprep.mubr.bf16.mxu0 %v3356_v8 }
  0x9c   :  { %3145 = vmatpush3.bf16.msra.mxu0 %v3416_v6 }
  0x9d   :  { %3146 = vmatprep.subr.bf16.mxu0 %v3429_v9 }
  0xa0   :  { %3147 = vmatpush3.bf16.msra.mxu0 %v3429_v9 }
  0xa2   :  { %1780 = vmatmul.mubr.bf16.gmra.mrb[64].mxu1 %v3358_v10  ;;  %1877 = vmatmul.mubr.bf16.gmra.mrb[64].mxu0 %v3359_v11  ;;  %v3439_v10 = vld [vmem:[%s4691_s0 + $0x258] ss:$36 sps:$4 sm:$0xff]   ;;  %v3440_v11 = vld [vmem:[%s4691_s0 + $0x68] ss:$36 sps:$4 sm:$0xff]  }
  0xa3   :  { %1787 = vmatprep.mubr.bf16.mxu1 %v3363_v12  ;;  %1884 = vmatprep.mubr.bf16.mxu0 %v3365_v13 }
  0xaa   :  { %1788 = vmatmul.mubr.bf16.gmra.mrb[68].mxu1 %v3367_v14  ;;  %1885 = vmatmul.mubr.bf16.gmra.mrb[68].mxu0 %v3368_v15 }
  0xab   :  { %1795 = vmatprep.mubr.bf16.mxu1 %v3369_v16  ;;  %1892 = vmatprep.mubr.bf16.mxu0 %v3371_v17  ;;  %v3441_v16 = vld [vmem:[%s4691_s0 + $0x2a4] ss:$36 sps:$4 sm:$0xff]   ;;  %v3443_v17 = vld [vmem:[%s4691_s0 + $0xb0] ss:$36 sps:$4 sm:$0xff]  }
  0xb2   :  { %1796 = vmatmul.mubr.bf16.gmra.mrb[72].mxu1 %v3373_v18  ;;  %1893 = vmatmul.mubr.bf16.gmra.mrb[72].mxu0 %v3374_v19 }
  0xb3   :  { %1803 = vmatprep.mubr.bf16.mxu1 %v3378_v20  ;;  %1900 = vmatprep.mubr.bf16.mxu0 %v3380_v21 }
  0xba   :  { %1804 = vmatmul.mubr.bf16.gmra.mrb[76].mxu1 %v3382_v22  ;;  %1901 = vmatmul.mubr.bf16.gmra.mrb[76].mxu0 %v3383_v23 }
  0xbb   :  { %1908 = vmatprep.mubr.bf16.mxu0 %v3384_v24  ;;  %2005 = vmatprep.mubr.bf16.mxu1 %v3388_v25 }
  0xc2   :  { %1909 = vmatmul.mubr.bf16.gmra.mrb[80].mxu0 %v3389_v27  ;;  %2006 = vmatmul.mubr.bf16.vlgmr.msra.gmra.mrb[80].mxu1 %v3386_v26  ;;  %v3444_v26 = vld [vmem:[%s4691_s0 + $0x2a0] ss:$36 sps:$4 sm:$0xff]   ;;  %v3445_v27 = vld [vmem:[%s4691_s0 + $0xf8] ss:$36 sps:$4 sm:$0xff]  }
  0xc3   :  { %1916 = vmatprep.mubr.bf16.mxu0 %v3391_v28  ;;  %2013 = vmatprep.mubr.bf16.mxu1 %v3393_v29 }
  0xca   :  { %1917 = vmatmul.mubr.bf16.gmra.mrb[84].mxu0 %v3395_v30  ;;  %2014 = vmatmul.mubr.bf16.gmra.mrb[84].mxu1 %v3396_v31 }
  0xcb   :  { %1924 = vmatprep.mubr.bf16.mxu0 %v3397_v32  ;;  %2021 = vmatprep.mubr.bf16.mxu1 %v3399_v33  ;;  %v3446_v32 = vld [vmem:[%s4691_s0 + $0x2ec] ss:$36 sps:$4 sm:$0xff]   ;;  %v3448_v33 = vld [vmem:[%s4691_s0 + $0x140] ss:$36 sps:$4 sm:$0xff]  }
  0xd2   :  { %1925 = vmatmul.mubr.bf16.gmra.mrb[88].mxu0 %v3401_v34  ;;  %2022 = vmatmul.mubr.bf16.gmra.mrb[88].mxu1 %v3402_v35 }
  0xd3   :  { %1932 = vmatprep.mubr.bf16.mxu0 %v3404_v36  ;;  %2029 = vmatprep.mubr.bf16.mxu1 %v3406_v37 }
  0xda   :  { %1933 = vmatmul.mubr.bf16.gmra.mrb[92].mxu0 %v3408_v38  ;;  %2030 = vmatmul.mubr.bf16.gmra.mrb[92].mxu1 %v3409_v39 }
  0xdb   :  { %1940 = vmatprep.mubr.bf16.mxu0 %v3410_v40  ;;  %2037 = vmatprep.mubr.bf16.mxu1 %v3412_v41 }
  0xe2   :  { %1941 = vmatmul.mubr.bf16.gmra.mrb[96].mxu0 %v3414_v42  ;;  %2038 = vmatmul.mubr.bf16.gmra.mrb[96].mxu1 %v3415_v43  ;;  %v3449_v42 = vld [vmem:[%s4691_s0 + $0x2e8] ss:$36 sps:$4 sm:$0xff]  }
  0xe3   :  { %1948 = vmatprep.mubr.bf16.mxu0 %v3417_v44  ;;  %2045 = vmatprep.mubr.bf16.mxu1 %v3419_v45  ;;  %v3450_v43 = vld [vmem:[%s4691_s0 + $0x188] ss:$36 sps:$4 sm:$0xff]  }
  0xea   :  { %1949 = vmatmul.mubr.bf16.gmra.mrb[100].mxu0 %v3421_v46  ;;  %2046 = vmatmul.mubr.bf16.gmra.mrb[100].mxu1 %v3422_v47 }
  0xeb   :  { %1956 = vmatprep.mubr.bf16.mxu0 %v3423_v48  ;;  %2053 = vmatprep.mubr.bf16.mxu1 %v3425_v49  ;;  %v3451_v48 = vld [vmem:[%s4691_s0 + $0x334] ss:$36 sps:$4 sm:$0xff]  }
  0xec   :  { %v3453_v49 = vld [vmem:[%s4691_s0 + $0x1d0] ss:$36 sps:$4 sm:$0xff]  }
  0xf2   :  { %1957 = vmatmul.mubr.bf16.gmra.mrb[104].mxu0 %v3427_v50  ;;  %2054 = vmatmul.mubr.bf16.gmra.mrb[104].mxu1 %v3428_v51 }
  0xf3   :  { %1964 = vmatprep.mubr.bf16.mxu0 %v3430_v52  ;;  %2061 = vmatprep.mubr.bf16.mxu1 %v3432_v53 }
  0xf5   :  { %v2748_v54 = vpop.f32.mrb[0].mxu1  ;;  %v2676_v55 = vpop.f32.mrb[0].mxu0 }
  0xf6   :  { %v2749_v56 = vpop.f32.mrb[1].mxu1  ;;  %v2677_v57 = vpop.f32.mrb[1].mxu0 }
  0xf7   :  { %v4053_v60 = vadd.f32 %v2749_v56, %v2748_v54  ;;  %v2751_v61 = vpop.f32.mrb[2].mxu1  ;;  %v4055_v62 = vadd.f32 %v2677_v57, %v2676_v55  ;;  %v2679_v63 = vpop.f32.mrb[2].mxu0 }
  0xf8   :  { %v2752_v2 = vpop.f32.mrb[3].mxu1  ;;  %v2680_v3 = vpop.f32.mrb[3].mxu0 }
  0xf9   :  { %v4063_v4 = vadd.f32 %v2752_v2, %v2751_v61  ;;  %v4065_v5 = vadd.f32 %v2680_v3, %v2679_v63  ;;  %v3456_v2 = vld [vmem:[%s4691_s0 + $0x37c] ss:$36 sps:$4 sm:$0xff]  }
  0xfa   :  { %1965 = vmatmul.mubr.bf16.gmra.mrb[108].mxu0 %v3434_v58  ;;  %2062 = vmatmul.mubr.bf16.gmra.mrb[108].mxu1 %v3435_v59  ;;  %v3454_v58 = vld [vmem:[%s4691_s0 + $0x330] ss:$36 sps:$4 sm:$0xff]   ;;  %v3455_v59 = vld [vmem:[%s4691_s0 + $0x218] ss:$36 sps:$4 sm:$0xff]   ;;  %v3458_v3 = vld [vmem:[%s4691_s0 + $0x260] ss:$36 sps:$4 sm:$0xff]  }
  0xfb   :  { %2069 = vmatprep.mubr.bf16.mxu1 %v3436_v0  ;;  %3148 = vmatprep.mubr.bf16.mxu0 %v3438_v1 }
  0xfd   :  { %v2754_v6 = vpop.f32.mrb[4].mxu1  ;;  %v2682_v7 = vpop.f32.mrb[4].mxu0 }
  0xfe   :  { %v2755_v8 = vpop.f32.mrb[5].mxu1  ;;  %v2683_v9 = vpop.f32.mrb[5].mxu0 }
  0xff   :  { %v4073_v12 = vadd.f32 %v2755_v8, %v2754_v6  ;;  %v2757_v13 = vpop.f32.mrb[6].mxu1  ;;  %v4075_v14 = vadd.f32 %v2683_v9, %v2682_v7  ;;  %v2685_v15 = vpop.f32.mrb[6].mxu0 }
 0x100   :  { %v2758_v18 = vpop.f32.mrb[7].mxu1  ;;  %v2686_v19 = vpop.f32.mrb[7].mxu0 }
 0x101   :  { %v4083_v20 = vadd.f32 %v2758_v18, %v2757_v13  ;;  %v4085_v21 = vadd.f32 %v2686_v19, %v2685_v15  ;;  %v3459_v18 = vld [vmem:[%s4691_s0 + $0x378] ss:$36 sps:$4 sm:$0xff]  }
 0x102   :  { %2070 = vmatmul.mubr.bf16.gmra.mrb[112].mxu1 %v3439_v10  ;;  %3149 = vmatmul.mubr.bf16.vlgmr.msra.gmra.mrb[112].mxu0 %v3440_v11 }
 0x103   :  { %2077 = vmatprep.mubr.bf16.mxu1 %v3441_v16  ;;  %3152 = vmatprep.mubr.bf16.mxu0 %v3443_v17 }
 0x105   :  { %v2760_v22 = vpop.f32.mrb[8].mxu1  ;;  %v2688_v23 = vpop.f32.mrb[8].mxu0 }
 0x106   :  { %v2761_v24 = vpop.f32.mrb[9].mxu1  ;;  %v2689_v25 = vpop.f32.mrb[9].mxu0 }
 0x107   :  { %v4093_v28 = vadd.f32 %v2761_v24, %v2760_v22  ;;  %v2763_v29 = vpop.f32.mrb[10].mxu1  ;;  %v4095_v30 = vadd.f32 %v2689_v25, %v2688_v23  ;;  %v2691_v31 = vpop.f32.mrb[10].mxu0  ;;  %v3461_v24 = vld [vmem:[%s4691_s0 + $0x3c4] ss:$36 sps:$4 sm:$0xff]   ;;  %v3463_v25 = vld [vmem:[%s4691_s0 + $0x2f0] ss:$36 sps:$4 sm:$0xff]  }
 0x108   :  { %v2764_v34 = vpop.f32.mrb[11].mxu1  ;;  %v2692_v35 = vpop.f32.mrb[11].mxu0 }
 0x109   :  { %v4103_v36 = vadd.f32 %v2764_v34, %v2763_v29  ;;  %v4105_v37 = vadd.f32 %v2692_v35, %v2691_v31 }
 0x10a   :  { %2078 = vmatmul.mubr.bf16.gmra.mrb[116].mxu1 %v3444_v26  ;;  %3153 = vmatmul.mubr.bf16.gmra.mrb[116].mxu0 %v3445_v27 }
 0x10b   :  { %2085 = vmatprep.mubr.bf16.mxu1 %v3446_v32  ;;  %3156 = vmatprep.mubr.bf16.mxu0 %v3448_v33 }
 0x10d   :  { %v2766_v38 = vpop.f32.mrb[12].mxu1  ;;  %v2694_v39 = vpop.f32.mrb[12].mxu0 }
 0x10e   :  { %v2767_v40 = vpop.f32.mrb[13].mxu1  ;;  %v2695_v41 = vpop.f32.mrb[13].mxu0 }
 0x10f   :  { %v4113_v44 = vadd.f32 %v2767_v40, %v2766_v38  ;;  %v2769_v45 = vpop.f32.mrb[14].mxu1  ;;  %v4115_v46 = vadd.f32 %v2695_v41, %v2694_v39  ;;  %v2697_v47 = vpop.f32.mrb[14].mxu0  ;;  %v3464_v40 = vld [vmem:[%s4691_s0 + $0x3c0] ss:$36 sps:$4 sm:$0xff]  }
 0x110   :  { %v2770_v50 = vpop.f32.mrb[15].mxu1  ;;  %v2698_v51 = vpop.f32.mrb[15].mxu0 }
 0x111   :  { %v4123_v52 = vadd.f32 %v2770_v50, %v2769_v45  ;;  %v4125_v53 = vadd.f32 %v2698_v51, %v2697_v47  ;;  %v3466_v45 = vld [vmem:[%s4691_s0 + $0x40c] ss:$36 sps:$4 sm:$0xff]   ;;  %v3468_v47 = vld [vmem:[%s4691_s0 + $0x380] ss:$36 sps:$4 sm:$0xff]  }
 0x112   :  { %2086 = vmatmul.mubr.bf16.gmra.mrb[120].mxu1 %v3449_v42  ;;  %3157 = vmatmul.mubr.bf16.gmra.mrb[120].mxu0 %v3450_v43 }
 0x113   :  { %2093 = vmatprep.mubr.bf16.mxu1 %v3451_v48  ;;  %3160 = vmatprep.mubr.bf16.mxu0 %v3453_v49 }
 0x115   :  { %v2788_v54 = vpop.f32.mrb[16].mxu1  ;;  %v2700_v55 = vpop.f32.mrb[16].mxu0 }
 0x116   :  { %v2789_v56 = vpop.f32.mrb[17].mxu1  ;;  %v2701_v57 = vpop.f32.mrb[17].mxu0 }
 0x117   :  { %v2790_v61 = vadd.f32 %v2789_v56, %v2788_v54  ;;  %v2791_v63 = vpop.f32.mrb[18].mxu1  ;;  %v4133_v0 = vadd.f32 %v2701_v57, %v2700_v55  ;;  %v2703_v1 = vpop.f32.mrb[18].mxu0 }
 0x118   :  { %v2792_v6 = vpop.f32.mrb[19].mxu1  ;;  %v2704_v7 = vpop.f32.mrb[19].mxu0 }
 0x119   :  { %v4142_v8 = vadd.f32 %v2790_v61, %v4055_v62  ;;  %v2793_v9 = vadd.f32 %v2792_v6, %v2791_v63  ;;  %v4144_v10 = vadd.f32 %v2704_v7, %v2703_v1  ;;  %v3460_v62 = vld [vmem:[%s4691_s0 + $0x2a8] ss:$36 sps:$4 sm:$0xff]   ;;  %v3473_v6 = vld [vmem:[%s4691_s0 + $0x410] ss:$36 sps:$4 sm:$0xff]  }
 0x11a   :  { %2094 = vmatmul.mubr.bf16.gmra.mrb[124].mxu1 %v3454_v58  ;;  %3161 = vmatmul.mubr.bf16.gmra.mrb[124].mxu0 %v3455_v59  ;;  %v3469_v61 = vld [vmem:[%s4691_s0 + $0x408] ss:$36 sps:$4 sm:$0xff]  }
 0x11b   :  { %v4147_v11 = vadd.f32 %v2793_v9, %v4065_v5  ;;  %2101 = vmatprep.mubr.bf16.mxu1 %v3456_v2  ;;  %3164 = vmatprep.mubr.bf16.mxu0 %v3458_v3  ;;  %v3471_v3 = vld [vmem:[%s4691_s0 + $0x454] ss:$36 sps:$4 sm:$0xff]  }
 0x11d   :  { %v2794_v13 = vpop.f32.mrb[20].mxu1  ;;  %v2706_v15 = vpop.f32.mrb[20].mxu0 }
 0x11e   :  { %v2795_v16 = vpop.f32.mrb[21].mxu1  ;;  %v2707_v17 = vpop.f32.mrb[21].mxu0 }
 0x11f   :  { %v2796_v19 = vadd.f32 %v2795_v16, %v2794_v13  ;;  %v2797_v22 = vpop.f32.mrb[22].mxu1  ;;  %v4155_v23 = vadd.f32 %v2707_v17, %v2706_v15  ;;  %v2709_v5 = vpop.f32.mrb[22].mxu0 }
 0x120   :  { %v2798_v26 = vpop.f32.mrb[23].mxu1  ;;  %v2710_v27 = vpop.f32.mrb[23].mxu0 }
 0x121   :  { %v4164_v29 = vadd.f32 %v2796_v19, %v4075_v14  ;;  %v2799_v31 = vadd.f32 %v2798_v26, %v2797_v22  ;;  %v4166_v32 = vadd.f32 %v2710_v27, %v2709_v5  ;;  %v3465_v14 = vld [vmem:[%s4691_s0 + $0x338] ss:$36 sps:$4 sm:$0xff]   ;;  %v3474_v5 = vld [vmem:[%s4691_s0 + $0x450] ss:$36 sps:$4 sm:$0xff]  }
 0x122   :  { %2102 = vmatmul.mubr.bf16.gmra.mrb[128].mxu1 %v3459_v18  ;;  %3165 = vmatmul.mubr.bf16.gmra.mrb[128].mxu0 %v3460_v62 }
 0x123   :  { %v4169_v33 = vadd.f32 %v2799_v31, %v4085_v21  ;;  %2109 = vmatprep.mubr.bf16.mxu1 %v3461_v24  ;;  %3168 = vmatprep.mubr.bf16.mxu0 %v3463_v25 }
 0x125   :  { %v2800_v34 = vpop.f32.mrb[24].mxu1  ;;  %v2712_v35 = vpop.f32.mrb[24].mxu0 }
 0x126   :  { %v2801_v38 = vpop.f32.mrb[25].mxu1  ;;  %v2713_v39 = vpop.f32.mrb[25].mxu0 }
 0x127   :  { %v2802_v41 = vadd.f32 %v2801_v38, %v2800_v34  ;;  %v2803_v42 = vpop.f32.mrb[26].mxu1  ;;  %v4177_v43 = vadd.f32 %v2713_v39, %v2712_v35  ;;  %v2715_v21 = vpop.f32.mrb[26].mxu0 }
 0x128   :  { %v2804_v48 = vpop.f32.mrb[27].mxu1  ;;  %v2716_v49 = vpop.f32.mrb[27].mxu0 }
 0x129   :  { %v4186_v50 = vadd.f32 %v2802_v41, %v4095_v30  ;;  %v2805_v51 = vadd.f32 %v2804_v48, %v2803_v42  ;;  %v4188_v54 = vadd.f32 %v2716_v49, %v2715_v21  ;;  %v3470_v30 = vld [vmem:[%s4691_s0 + $0x3c8] ss:$36 sps:$4 sm:$0xff]  }
 0x12a   :  { %2110 = vmatmul.mubr.bf16.gmra.mrb[132].mxu1 %v3464_v40  ;;  %3169 = vmatmul.mubr.bf16.gmra.mrb[132].mxu0 %v3465_v14 }
 0x12b   :  { %v4191_v55 = vadd.f32 %v2805_v51, %v4105_v37  ;;  %2117 = vmatprep.mubr.bf16.mxu1 %v3466_v45  ;;  %3172 = vmatprep.mubr.bf16.mxu0 %v3468_v47 }
 0x12d   :  { %v2806_v56 = vpop.f32.mrb[28].mxu1  ;;  %v2718_v57 = vpop.f32.mrb[28].mxu0 }
 0x12e   :  { %v2807_v58 = vpop.f32.mrb[29].mxu1  ;;  %v2719_v59 = vpop.f32.mrb[29].mxu0 }
 0x12f   :  { %v2808_v63 = vadd.f32 %v2807_v58, %v2806_v56  ;;  %v2809_v1 = vpop.f32.mrb[30].mxu1  ;;  %v4199_v2 = vadd.f32 %v2719_v59, %v2718_v57  ;;  %v2721_v37 = vpop.f32.mrb[30].mxu0 }
 0x130   :  { %v2810_v7 = vpop.f32.mrb[31].mxu1  ;;  %v2722_v9 = vpop.f32.mrb[31].mxu0 }
 0x131   :  { %v4208_v13 = vadd.f32 %v2808_v63, %v4115_v46  ;;  %v2811_v15 = vadd.f32 %v2810_v7, %v2809_v1  ;;  %v4210_v16 = vadd.f32 %v2722_v9, %v2721_v37  ;;  %v3475_v46 = vld [vmem:[%s4691_s0 + $0x458] ss:$36 sps:$4 sm:$0xff]  }
 0x132   :  { %2118 = vmatmul.mubr.bf16.gmra.mrb[136].mxu1 %v3469_v61  ;;  %3173 = vmatmul.mubr.bf16.gmra.mrb[136].mxu0 %v3470_v30 }
 0x133   :  { %v4213_v17 = vadd.f32 %v2811_v15, %v4125_v53  ;;  %2125 = vmatprep.mubr.bf16.mxu1 %v3471_v3  ;;  %3176 = vmatprep.mubr.bf16.mxu0 %v3473_v6 }
 0x135   :  { %v2812_v18 = vpop.f32.mrb[32].mxu1  ;;  %v2724_v62 = vpop.f32.mrb[32].mxu0 }
 0x136   :  { %v2813_v19 = vpop.f32.mrb[33].mxu1  ;;  %v2725_v22 = vpop.f32.mrb[33].mxu0 }
 0x137   :  { %v2814_v24 = vadd.f32 %v2813_v19, %v2812_v18  ;;  %v2815_v25 = vpop.f32.mrb[34].mxu1  ;;  %v2726_v26 = vadd.f32 %v2725_v22, %v2724_v62  ;;  %v2727_v27 = vpop.f32.mrb[34].mxu0 }
 0x138   :  { %v2816_v53 = vpop.f32.mrb[35].mxu1  ;;  %v2728_v31 = vpop.f32.mrb[35].mxu0 }
 0x139   :  { %v4222_v34 = vadd.f32 %v2814_v24, %v4133_v0  ;;  %v2817_v35 = vadd.f32 %v2816_v53, %v2815_v25  ;;  %v2729_v38 = vadd.f32 %v2728_v31, %v2727_v27 }
 0x13a   :  { %2126 = vmatmul.mubr.bf16.gmra.mrb[140].mxu1 %v3474_v5  ;;  %3177 = vmatmul.mubr.bf16.gmra.mrb[140].mxu0 %v3475_v46 }
 0x13b   :  { %v4225_v39 = vadd.f32 %v2817_v35, %v4144_v10 }
 0x13d   :  { %v2818_v40 = vpop.f32.mrb[36].mxu1  ;;  %v2730_v14 = vpop.f32.mrb[36].mxu0 }
 0x13e   :  { %v2819_v41 = vpop.f32.mrb[37].mxu1  ;;  %v2731_v42 = vpop.f32.mrb[37].mxu0 }
 0x13f   :  { %v2820_v21 = vadd.f32 %v2819_v41, %v2818_v40  ;;  %v2821_v45 = vpop.f32.mrb[38].mxu1  ;;  %v2732_v47 = vadd.f32 %v2731_v42, %v2730_v14  ;;  %v2733_v48 = vpop.f32.mrb[38].mxu0 }
 0x140   :  { %v2822_v49 = vpop.f32.mrb[39].mxu1  ;;  %v2734_v51 = vpop.f32.mrb[39].mxu0 }
 0x141   :  { %v4228_v0 = vadd.f32 %v2820_v21, %v4155_v23  ;;  %v2823_v56 = vadd.f32 %v2822_v49, %v2821_v45  ;;  %v2735_v57 = vadd.f32 %v2734_v51, %v2733_v48 }
 0x143   :  { %v4231_v58 = vadd.f32 %v2823_v56, %v4166_v32 }
 0x145   :  { %v2824_v10 = vpop.f32.mrb[40].mxu1  ;;  %v2736_v59 = vpop.f32.mrb[40].mxu0 }
 0x146   :  { %v2825_v61 = vpop.f32.mrb[41].mxu1  ;;  %v2737_v30 = vpop.f32.mrb[41].mxu0 }
 0x147   :  { %v2826_v63 = vadd.f32 %v2825_v61, %v2824_v10  ;;  %v2827_v1 = vpop.f32.mrb[42].mxu1  ;;  %v4233_v37 = vadd.f32 %v2737_v30, %v2736_v59  ;;  %v2739_v3 = vpop.f32.mrb[42].mxu0 }
 0x148   :  { %v2828_v6 = vpop.f32.mrb[43].mxu1  ;;  %v2740_v7 = vpop.f32.mrb[43].mxu0 }
 0x149   :  { %v4236_v9 = vadd.f32 %v2826_v63, %v4177_v43  ;;  %v2829_v23 = vadd.f32 %v2828_v6, %v2827_v1  ;;  %v2741_v15 = vadd.f32 %v2740_v7, %v2739_v3 }
 0x14b   :  { %v4239_v18 = vadd.f32 %v2829_v23, %v4188_v54 }
 0x14d   :  { %v2830_v32 = vpop.f32.mrb[44].mxu1  ;;  %v2742_v62 = vpop.f32.mrb[44].mxu0 }
 0x14e   :  { %v2831_v19 = vpop.f32.mrb[45].mxu1  ;;  %v2743_v22 = vpop.f32.mrb[45].mxu0 }
 0x14f   :  { %v2832_v5 = vadd.f32 %v2831_v19, %v2830_v32  ;;  %v2833_v46 = vpop.f32.mrb[46].mxu1  ;;  %v4241_v24 = vadd.f32 %v2743_v22, %v2742_v62  ;;  %v2745_v25 = vpop.f32.mrb[46].mxu0 }
 0x150   :  { %v2834_v27 = vpop.f32.mrb[47].mxu1  ;;  %v2746_v53 = vpop.f32.mrb[47].mxu0 }
 0x151   :  { %v4244_v31 = vadd.f32 %v2832_v5, %v4199_v2  ;;  %v2835_v43 = vadd.f32 %v2834_v27, %v2833_v46  ;;  %v4246_v35 = vadd.f32 %v2746_v53, %v2745_v25 }
 0x153   :  { %v4249_v54 = vadd.f32 %v2835_v43, %v4210_v16 }
 0x155   :  { %v2836_v40 = vpop.f32.mrb[48].mxu1  ;;  %v2900_v14 = vpop.f32.mrb[48].mxu0 }
 0x156   :  { %v2837_v41 = vpop.f32.mrb[49].mxu1  ;;  %v2901_v42 = vpop.f32.mrb[49].mxu0 }
 0x157   :  { %v2838_v21 = vadd.f32 %v2837_v41, %v2836_v40  ;;  %v2902_v45 = vadd.f32 %v2901_v42, %v2900_v14  ;;  %v2839_v48 = vpop.f32.mrb[50].mxu1  ;;  %v2903_v49 = vpop.f32.mrb[50].mxu0 }
 0x158   :  { %v2840_v51 = vpop.f32.mrb[51].mxu1  ;;  %v2904_v56 = vpop.f32.mrb[51].mxu0 }
 0x159   :  { %v4251_v10 = vadd.f32 %v2838_v21, %v2726_v26  ;;  %v4254_v2 = vadd.f32 %v2902_v45, %v4142_v8  ;;  %v2841_v59 = vadd.f32 %v2840_v51, %v2839_v48  ;;  %v2905_v61 = vadd.f32 %v2904_v56, %v2903_v49 }
 0x15b   :  { %v4256_v30 = vadd.f32 %v2841_v59, %v2729_v38  ;;  %v4259_v16 = vadd.f32 %v2905_v61, %v4147_v11 }
 0x15d   :  { %v2842_v63 = vpop.f32.mrb[52].mxu1  ;;  %v2906_v1 = vpop.f32.mrb[52].mxu0 }
 0x15e   :  { %v2843_v3 = vpop.f32.mrb[53].mxu1  ;;  %v2907_v6 = vpop.f32.mrb[53].mxu0 }
 0x15f   :  { %v2844_v7 = vadd.f32 %v2843_v3, %v2842_v63  ;;  %v2908_v23 = vadd.f32 %v2907_v6, %v2906_v1  ;;  %v2845_v32 = vpop.f32.mrb[54].mxu1  ;;  %v2909_v62 = vpop.f32.mrb[54].mxu0 }
 0x160   :  { %v2846_v26 = vpop.f32.mrb[55].mxu1  ;;  %v2910_v19 = vpop.f32.mrb[55].mxu0 }
 0x161   :  { %v4261_v22 = vadd.f32 %v2844_v7, %v2732_v47  ;;  %v4264_v8 = vadd.f32 %v2908_v23, %v4164_v29  ;;  %v2847_v38 = vadd.f32 %v2846_v26, %v2845_v32  ;;  %v2911_v5 = vadd.f32 %v2910_v19, %v2909_v62 }
 0x163   :  { %v4266_v46 = vadd.f32 %v2847_v38, %v2735_v57  ;;  %v4269_v11 = vadd.f32 %v2911_v5, %v4169_v33 }
 0x165   :  { %v2848_v25 = vpop.f32.mrb[56].mxu1  ;;  %v2912_v27 = vpop.f32.mrb[56].mxu0 }
 0x166   :  { %v2849_v53 = vpop.f32.mrb[57].mxu1  ;;  %v2913_v43 = vpop.f32.mrb[57].mxu0 }
 0x167   :  { %v2850_v40 = vadd.f32 %v2849_v53, %v2848_v25  ;;  %v2914_v14 = vadd.f32 %v2913_v43, %v2912_v27  ;;  %v2851_v41 = vpop.f32.mrb[58].mxu1  ;;  %v2915_v42 = vpop.f32.mrb[58].mxu0 }
 0x168   :  { %v2852_v47 = vpop.f32.mrb[59].mxu1  ;;  %v2916_v21 = vpop.f32.mrb[59].mxu0 }
 0x169   :  { %v4272_v29 = vadd.f32 %v2850_v40, %v4233_v37  ;;  %v4275_v45 = vadd.f32 %v2914_v14, %v4186_v50  ;;  %v2853_v57 = vadd.f32 %v2852_v47, %v2851_v41  ;;  %v2917_v48 = vadd.f32 %v2916_v21, %v2915_v42 }
 0x16b   :  { %v4277_v33 = vadd.f32 %v2853_v57, %v2741_v15  ;;  %v4280_v49 = vadd.f32 %v2917_v48, %v4191_v55 }
 0x16d   :  { %v2854_v51 = vpop.f32.mrb[60].mxu1  ;;  %v2918_v56 = vpop.f32.mrb[60].mxu0 }
 0x16e   :  { %v2855_v59 = vpop.f32.mrb[61].mxu1  ;;  %v2919_v61 = vpop.f32.mrb[61].mxu0 }
 0x16f   :  { %v2856_v63 = vadd.f32 %v2855_v59, %v2854_v51  ;;  %v2920_v1 = vadd.f32 %v2919_v61, %v2918_v56  ;;  %v2857_v3 = vpop.f32.mrb[62].mxu1  ;;  %v2921_v6 = vpop.f32.mrb[62].mxu0 }
 0x170   :  { %v2858_v37 = vpop.f32.mrb[63].mxu1  ;;  %v2922_v7 = vpop.f32.mrb[63].mxu0 }
 0x171   :  { %v4283_v50 = vadd.f32 %v2856_v63, %v4241_v24  ;;  %v4286_v23 = vadd.f32 %v2920_v1, %v4208_v13  ;;  %v2859_v15 = vadd.f32 %v2858_v37, %v2857_v3  ;;  %v2923_v32 = vadd.f32 %v2922_v7, %v2921_v6 }
 0x173   :  { %v4289_v55 = vadd.f32 %v2859_v15, %v4246_v35  ;;  %v4292_v62 = vadd.f32 %v2923_v32, %v4213_v17 }
 0x175   :  { %v2860_v26 = vpop.f32.mrb[64].mxu1  ;;  %v2924_v19 = vpop.f32.mrb[64].mxu0 }
 0x176   :  { %v2861_v38 = vpop.f32.mrb[65].mxu1  ;;  %v2925_v5 = vpop.f32.mrb[65].mxu0 }
 0x177   :  { %v2862_v25 = vadd.f32 %v2861_v38, %v2860_v26  ;;  %v2926_v27 = vadd.f32 %v2925_v5, %v2924_v19  ;;  %v2863_v53 = vpop.f32.mrb[66].mxu1  ;;  %v2927_v24 = vpop.f32.mrb[66].mxu0 }
 0x178   :  { %v2864_v43 = vpop.f32.mrb[67].mxu1  ;;  %v2928_v40 = vpop.f32.mrb[67].mxu0 }
 0x179   :  { %v4295_v13 = vadd.f32 %v2862_v25, %v4053_v60  ;;  %v4298_v14 = vadd.f32 %v2926_v27, %v4222_v34  ;;  %v2865_v35 = vadd.f32 %v2864_v43, %v2863_v53  ;;  %v2929_v41 = vadd.f32 %v2928_v40, %v2927_v24 }
 0x17b   :  { %v4301_v17 = vadd.f32 %v2865_v35, %v4063_v4  ;;  %v4304_v42 = vadd.f32 %v2929_v41, %v4225_v39 }
 0x17d   :  { %v2866_v47 = vpop.f32.mrb[68].mxu1  ;;  %v2930_v21 = vpop.f32.mrb[68].mxu0 }
 0x17e   :  { %v2867_v57 = vpop.f32.mrb[69].mxu1  ;;  %v2931_v48 = vpop.f32.mrb[69].mxu0 }
 0x17f   :  { %v2868_v51 = vadd.f32 %v2867_v57, %v2866_v47  ;;  %v2932_v56 = vadd.f32 %v2931_v48, %v2930_v21  ;;  %v2869_v59 = vpop.f32.mrb[70].mxu1  ;;  %v2933_v60 = vpop.f32.mrb[70].mxu0 }
 0x180   :  { %v2870_v61 = vpop.f32.mrb[71].mxu1  ;;  %v2934_v63 = vpop.f32.mrb[71].mxu0 }
 0x181   :  { %v4307_v34 = vadd.f32 %v2868_v51, %v4073_v12  ;;  %v4310_v1 = vadd.f32 %v2932_v56, %v4228_v0  ;;  %v2871_v4 = vadd.f32 %v2870_v61, %v2869_v59  ;;  %v2935_v3 = vadd.f32 %v2934_v63, %v2933_v60 }
 0x183   :  { %v4313_v39 = vadd.f32 %v2871_v4, %v4083_v20  ;;  %v4316_v6 = vadd.f32 %v2935_v3, %v4231_v58 }
 0x185   :  { %v2872_v37 = vpop.f32.mrb[72].mxu1  ;;  %v2936_v7 = vpop.f32.mrb[72].mxu0 }
 0x186   :  { %v2873_v15 = vpop.f32.mrb[73].mxu1  ;;  %v2937_v32 = vpop.f32.mrb[73].mxu0 }
 0x187   :  { %v2874_v26 = vadd.f32 %v2873_v15, %v2872_v37  ;;  %v2938_v19 = vadd.f32 %v2937_v32, %v2936_v7  ;;  %v2875_v38 = vpop.f32.mrb[74].mxu1  ;;  %v2939_v12 = vpop.f32.mrb[74].mxu0 }
 0x188   :  { %v2876_v5 = vpop.f32.mrb[75].mxu1  ;;  %v2940_v25 = vpop.f32.mrb[75].mxu0 }
 0x189   :  { %v4319_v0 = vadd.f32 %v2874_v26, %v4093_v28  ;;  %v4322_v27 = vadd.f32 %v2938_v19, %v4236_v9  ;;  %v2877_v20 = vadd.f32 %v2876_v5, %v2875_v38  ;;  %v2941_v53 = vadd.f32 %v2940_v25, %v2939_v12 }
 0x18b   :  { %v4325_v58 = vadd.f32 %v2877_v20, %v4103_v36  ;;  %v4328_v24 = vadd.f32 %v2941_v53, %v4239_v18 }
 0x18d   :  { %v2878_v43 = vpop.f32.mrb[76].mxu1  ;;  %v2942_v40 = vpop.f32.mrb[76].mxu0 }
 0x18e   :  { %v2879_v35 = vpop.f32.mrb[77].mxu1  ;;  %v2943_v41 = vpop.f32.mrb[77].mxu0 }
 0x18f   :  { %v2880_v47 = vadd.f32 %v2879_v35, %v2878_v43  ;;  %v2944_v21 = vadd.f32 %v2943_v41, %v2942_v40  ;;  %v2881_v57 = vpop.f32.mrb[78].mxu1  ;;  %v2945_v28 = vpop.f32.mrb[78].mxu0 }
 0x190   :  { %v2882_v48 = vpop.f32.mrb[79].mxu1  ;;  %v2946_v51 = vpop.f32.mrb[79].mxu0 }
 0x191   :  { %v4331_v9 = vadd.f32 %v2880_v47, %v4113_v44  ;;  %v4334_v56 = vadd.f32 %v2944_v21, %v4244_v31  ;;  %v2883_v36 = vadd.f32 %v2882_v48, %v2881_v57  ;;  %v2947_v59 = vadd.f32 %v2946_v51, %v2945_v28 }
 0x193   :  { %v4337_v18 = vadd.f32 %v2883_v36, %v4123_v52  ;;  %v4340_v60 = vadd.f32 %v2947_v59, %v4249_v54 }
 0x195   :  { %v2948_v61 = vpop.f32.mrb[80].mxu0  ;;  %v3012_v63 = vpop.f32.mrb[80].mxu1 }
 0x196   :  { %v2949_v4 = vpop.f32.mrb[81].mxu0  ;;  %v3013_v3 = vpop.f32.mrb[81].mxu1 }
 0x197   :  { %v2950_v37 = vadd.f32 %v2949_v4, %v2948_v61  ;;  %v3014_v7 = vadd.f32 %v3013_v3, %v3012_v63  ;;  %v2951_v15 = vpop.f32.mrb[82].mxu0  ;;  %v3015_v44 = vpop.f32.mrb[82].mxu1 }
 0x198   :  { %v2952_v32 = vpop.f32.mrb[83].mxu0  ;;  %v3016_v26 = vpop.f32.mrb[83].mxu1 }
 0x199   :  { %v4343_v31 = vadd.f32 %v2950_v37, %v4251_v10  ;;  %v2953_v19 = vadd.f32 %v2952_v32, %v2951_v15  ;;  %v3017_v38 = vadd.f32 %v3016_v26, %v3015_v44  ;;  %v4346_v52 = vadd.f32 %v3014_v7, %v4254_v2 }
 0x19b   :  { %v4349_v54 = vadd.f32 %v2953_v19, %v4256_v30  ;;  %v4352_v12 = vadd.f32 %v3017_v38, %v4259_v16 }
 0x19d   :  { %v2954_v5 = vpop.f32.mrb[84].mxu0  ;;  %v3018_v25 = vpop.f32.mrb[84].mxu1 }
 0x19e   :  { %v2955_v20 = vpop.f32.mrb[85].mxu0  ;;  %v3019_v53 = vpop.f32.mrb[85].mxu1 }
 0x19f   :  { %v2956_v43 = vadd.f32 %v2955_v20, %v2954_v5  ;;  %v3020_v40 = vadd.f32 %v3019_v53, %v3018_v25  ;;  %v2957_v35 = vpop.f32.mrb[86].mxu0  ;;  %v3021_v10 = vpop.f32.mrb[86].mxu1 }
 0x1a0   :  { %v2958_v41 = vpop.f32.mrb[87].mxu0  ;;  %v3022_v47 = vpop.f32.mrb[87].mxu1 }
 0x1a1   :  { %v4355_v21 = vadd.f32 %v2956_v43, %v4261_v22  ;;  %v2959_v2 = vadd.f32 %v2958_v41, %v2957_v35  ;;  %v3023_v57 = vadd.f32 %v3022_v47, %v3021_v10  ;;  %v4358_v30 = vadd.f32 %v3020_v40, %v4264_v8 }
 0x1a3   :  { %v4361_v16 = vadd.f32 %v2959_v2, %v4266_v46  ;;  %v4364_v28 = vadd.f32 %v3023_v57, %v4269_v11 }
 0x1a5   :  { %v2960_v48 = vpop.f32.mrb[88].mxu0  ;;  %v3024_v51 = vpop.f32.mrb[88].mxu1 }
 0x1a6   :  { %v2961_v36 = vpop.f32.mrb[89].mxu0  ;;  %v3025_v59 = vpop.f32.mrb[89].mxu1 }
 0x1a7   :  { %v2962_v61 = vadd.f32 %v2961_v36, %v2960_v48  ;;  %v3026_v63 = vadd.f32 %v3025_v59, %v3024_v51  ;;  %v2963_v4 = vpop.f32.mrb[90].mxu0  ;;  %v3027_v22 = vpop.f32.mrb[90].mxu1 }
 0x1a8   :  { %v2964_v3 = vpop.f32.mrb[91].mxu0  ;;  %v3028_v37 = vpop.f32.mrb[91].mxu1 }
 0x1a9   :  { %v4367_v7 = vadd.f32 %v2962_v61, %v4272_v29  ;;  %v2965_v8 = vadd.f32 %v2964_v3, %v2963_v4  ;;  %v3029_v15 = vadd.f32 %v3028_v37, %v3027_v22  ;;  %v4370_v46 = vadd.f32 %v3026_v63, %v4275_v45 }
 0x1ab   :  { %v4373_v11 = vadd.f32 %v2965_v8, %v4277_v33  ;;  %v4376_v44 = vadd.f32 %v3029_v15, %v4280_v49 }
 0x1ad   :  { %v2966_v32 = vpop.f32.mrb[92].mxu0  ;;  %v3030_v26 = vpop.f32.mrb[92].mxu1 }
 0x1ae   :  { %v2967_v19 = vpop.f32.mrb[93].mxu0  ;;  %v3031_v38 = vpop.f32.mrb[93].mxu1 }
 0x1af   :  { %v2968_v5 = vadd.f32 %v2967_v19, %v2966_v32  ;;  %v3032_v25 = vadd.f32 %v3031_v38, %v3030_v26  ;;  %v2969_v20 = vpop.f32.mrb[94].mxu0  ;;  %v3033_v29 = vpop.f32.mrb[94].mxu1 }
 0x1b0   :  { %v2970_v53 = vpop.f32.mrb[95].mxu0  ;;  %v3034_v43 = vpop.f32.mrb[95].mxu1 }
 0x1b1   :  { %v4379_v40 = vadd.f32 %v2968_v5, %v4283_v50  ;;  %v2971_v45 = vadd.f32 %v2970_v53, %v2969_v20  ;;  %v3035_v35 = vadd.f32 %v3034_v43, %v3033_v29  ;;  %v4382_v33 = vadd.f32 %v3032_v25, %v4286_v23 }
 0x1b3   :  { %v4385_v49 = vadd.f32 %v2971_v45, %v4289_v55  ;;  %v4388_v10 = vadd.f32 %v3035_v35, %v4292_v62 }
 0x1b5   :  { %v2972_v41 = vpop.f32.mrb[96].mxu0  ;;  %v3036_v47 = vpop.f32.mrb[96].mxu1 }
 0x1b6   :  { %v2973_v2 = vpop.f32.mrb[97].mxu0  ;;  %v3037_v57 = vpop.f32.mrb[97].mxu1 }
 0x1b7   :  { %v2974_v48 = vadd.f32 %v2973_v2, %v2972_v41  ;;  %v3038_v51 = vadd.f32 %v3037_v57, %v3036_v47  ;;  %v2975_v36 = vpop.f32.mrb[98].mxu0  ;;  %v3039_v50 = vpop.f32.mrb[98].mxu1 }
 0x1b8   :  { %v2976_v59 = vpop.f32.mrb[99].mxu0  ;;  %v3040_v61 = vpop.f32.mrb[99].mxu1 }
 0x1b9   :  { %v4391_v63 = vadd.f32 %v2974_v48, %v4295_v13  ;;  %v2977_v23 = vadd.f32 %v2976_v59, %v2975_v36  ;;  %v3041_v4 = vadd.f32 %v3040_v61, %v3039_v50  ;;  %v4394_v55 = vadd.f32 %v3038_v51, %v4298_v14 }
 0x1bb   :  { %v4397_v62 = vadd.f32 %v2977_v23, %v4301_v17  ;;  %v4400_v22 = vadd.f32 %v3041_v4, %v4304_v42 }
 0x1bd   :  { %v2978_v3 = vpop.f32.mrb[100].mxu0  ;;  %v3042_v37 = vpop.f32.mrb[100].mxu1 }
 0x1be   :  { %v2979_v8 = vpop.f32.mrb[101].mxu0  ;;  %v3043_v15 = vpop.f32.mrb[101].mxu1 }
 0x1bf   :  { %v2980_v32 = vadd.f32 %v2979_v8, %v2978_v3  ;;  %v3044_v26 = vadd.f32 %v3043_v15, %v3042_v37  ;;  %v2981_v19 = vpop.f32.mrb[102].mxu0  ;;  %v3045_v13 = vpop.f32.mrb[102].mxu1 }
 0x1c0   :  { %v2982_v38 = vpop.f32.mrb[103].mxu0  ;;  %v3046_v5 = vpop.f32.mrb[103].mxu1 }
 0x1c1   :  { %v4403_v25 = vadd.f32 %v2980_v32, %v4307_v34  ;;  %v2983_v14 = vadd.f32 %v2982_v38, %v2981_v19  ;;  %v3047_v20 = vadd.f32 %v3046_v5, %v3045_v13  ;;  %v4406_v17 = vadd.f32 %v3044_v26, %v4310_v1 }
 0x1c3   :  { %v4409_v42 = vadd.f32 %v2983_v14, %v4313_v39  ;;  %v4412_v29 = vadd.f32 %v3047_v20, %v4316_v6  ;;  %v4441_v14 = vld [vmem:[%s4692_s2] ss:$0 sm:$0xff] }
 0x1c5   :  { %v2984_v53 = vpop.f32.mrb[104].mxu0  ;;  %v3048_v43 = vpop.f32.mrb[104].mxu1 }
 0x1c6   :  { %v2985_v45 = vpop.f32.mrb[105].mxu0  ;;  %v3049_v35 = vpop.f32.mrb[105].mxu1 }
 0x1c7   :  { %v2986_v41 = vadd.f32 %v2985_v45, %v2984_v53  ;;  %v3050_v47 = vadd.f32 %v3049_v35, %v3048_v43  ;;  %v2987_v2 = vpop.f32.mrb[106].mxu0  ;;  %v3051_v34 = vpop.f32.mrb[106].mxu1 }
 0x1c8   :  { %v2988_v57 = vpop.f32.mrb[107].mxu0  ;;  %v3052_v48 = vpop.f32.mrb[107].mxu1 }
 0x1c9   :  { %v4415_v51 = vadd.f32 %v2986_v41, %v4319_v0  ;;  %v2989_v1 = vadd.f32 %v2988_v57, %v2987_v2  ;;  %v3053_v36 = vadd.f32 %v3052_v48, %v3051_v34  ;;  %v4418_v39 = vadd.f32 %v3050_v47, %v4322_v27 }
 0x1cb   :  { %v4421_v6 = vadd.f32 %v2989_v1, %v4325_v58  ;;  %v4424_v50 = vadd.f32 %v3053_v36, %v4328_v24 }
 0x1cd   :  { %v2990_v59 = vpop.f32.mrb[108].mxu0  ;;  %v3054_v61 = vpop.f32.mrb[108].mxu1 }
 0x1ce   :  { %v2991_v23 = vpop.f32.mrb[109].mxu0  ;;  %v3055_v4 = vpop.f32.mrb[109].mxu1 }
 0x1cf   :  { %v2992_v3 = vadd.f32 %v2991_v23, %v2990_v59  ;;  %v3056_v37 = vadd.f32 %v3055_v4, %v3054_v61  ;;  %v2993_v8 = vpop.f32.mrb[110].mxu0  ;;  %v3057_v0 = vpop.f32.mrb[110].mxu1 }
 0x1d0   :  { %v2994_v15 = vpop.f32.mrb[111].mxu0  ;;  %v3058_v32 = vpop.f32.mrb[111].mxu1 }
 0x1d1   :  { %v4427_v26 = vadd.f32 %v2992_v3, %v4331_v9  ;;  %v2995_v27 = vadd.f32 %v2994_v15, %v2993_v8  ;;  %v3059_v19 = vadd.f32 %v3058_v32, %v3057_v0  ;;  %v4430_v58 = vadd.f32 %v3056_v37, %v4334_v56  ;;  %v4447_v56 = vld [vmem:[%s4693_s3] ss:$0 sm:$0xff] }
 0x1d3   :  { %v4433_v24 = vadd.f32 %v2995_v27, %v4337_v18  ;;  %v4436_v13 = vadd.f32 %v3059_v19, %v4340_v60 }
 0x1d5   :  { %v3060_v38 = vpop.f32.mrb[112].mxu1  ;;  %v3150_v5 = vpop.f32.mrb[112].mxu0 }
 0x1d6   :  { %v2177_v9 = vadd.f32 %v3150_v5, %v4358_v30  ;;  %v3061_v20 = vpop.f32.mrb[113].mxu1  ;;  %v2168_v53 = vpop.f32.mrb[113].mxu0 }
 0x1d7   :  { %v3062_v18 = vadd.f32 %v3061_v20, %v3060_v38  ;;  %v2169_v60 = vadd.f32 %v2168_v53, %v4346_v52  ;;  %v3063_v43 = vpop.f32.mrb[114].mxu1  ;;  %v3151_v45 = vpop.f32.mrb[114].mxu0 }
 0x1d8   :  { %v2304_v35 = vmul.f32 %v4441_v14, %v2177_v9  ;;  %v2180_v41 = vadd.f32 %v3151_v45, %v4364_v28  ;;  %v3064_v47 = vpop.f32.mrb[115].mxu1  ;;  %v2171_v2 = vpop.f32.mrb[115].mxu0 }
 0x1d9   :  { %v2302_v30 = vmul.f32 %v4441_v14, %v2169_v60  ;;  %v3065_v34 = vadd.f32 %v3064_v47, %v3063_v43  ;;  %v2172_v57 = vadd.f32 %v2171_v2, %v4352_v12  ;;  %v4455_v48 = vadd.f32 %v3062_v18, %v4343_v31 }
 0x1da   :  { %v2343_v1 = vadd.f32 %v4447_v56, %v2304_v35  ;;  %v2305_v52 = vmul.f32 %v4441_v14, %v2180_v41 }
 0x1db   :  { %v2341_v36 = vadd.f32 %v4447_v56, %v2302_v30  ;;  %v2303_v59 = vmul.f32 %v4441_v14, %v2172_v57  ;;  %v4462_v28 = vadd.f32 %v3065_v34, %v4349_v54 }
 0x1dc   :  { %v2375_v61 = vmax.f32 %v2343_v1, 0.0  ;;  %v2344_v23 = vadd.f32 %v4447_v56, %v2305_v52 }
 0x1dd   :  { %v2373_v4 = vmax.f32 %v2341_v36, 0.0  ;;  %v2342_v12 = vadd.f32 %v4447_v56, %v2303_v59  ;;  %v3066_v31 = vpop.f32.mrb[116].mxu1  ;;  %v3154_v3 = vpop.f32.mrb[116].mxu0 }
 0x1de   :  { %2408 = vst.msk [vmem:[%s4694_s4 + $0x10] sm:$0xff] %vm2405_vm0, %v2375_v61  ;;  %v2376_v37 = vmax.f32 %v2344_v23, 0.0  ;;  %v2193_v8 = vadd.f32 %v3154_v3, %v4382_v33  ;;  %v3067_v0 = vpop.f32.mrb[117].mxu1  ;;  %v2184_v15 = vpop.f32.mrb[117].mxu0 }
 0x1df   :  { %2406 = vst.msk [vmem:[%s4694_s4] sm:$0xff] %vm2405_vm0, %v2373_v4  ;;  %v2374_v54 = vmax.f32 %v2342_v12, 0.0  ;;  %v3068_v32 = vadd.f32 %v3067_v0, %v3066_v31  ;;  %v2185_v27 = vadd.f32 %v2184_v15, %v4370_v46  ;;  %v3069_v19 = vpop.f32.mrb[118].mxu1  ;;  %v3155_v38 = vpop.f32.mrb[118].mxu0 }
 0x1e0   :  { %2409 = vst.msk [vmem:[%s4694_s4 + $0x18] sm:$0xff] %vm2405_vm0, %v2376_v37  ;;  %v2308_v33 = vmul.f32 %v4441_v14, %v2193_v8  ;;  %v2196_v5 = vadd.f32 %v3155_v38, %v4388_v10  ;;  %v3070_v9 = vpop.f32.mrb[119].mxu1  ;;  %v2187_v20 = vpop.f32.mrb[119].mxu0 }
 0x1e1   :  { %2407 = vst.msk [vmem:[%s4694_s4 + $0x8] sm:$0xff] %vm2405_vm0, %v2374_v54  ;;  %v2306_v46 = vmul.f32 %v4441_v14, %v2185_v27  ;;  %v3071_v53 = vadd.f32 %v3070_v9, %v3069_v19  ;;  %v2188_v18 = vadd.f32 %v2187_v20, %v4376_v44  ;;  %v4489_v60 = vadd.f32 %v3068_v32, %v4355_v21 }
 0x1e2   :  { %v2347_v43 = vadd.f32 %v4447_v56, %v2308_v33  ;;  %v2309_v45 = vmul.f32 %v4441_v14, %v2196_v5 }
 0x1e3   :  { %v2345_v10 = vadd.f32 %v4447_v56, %v2306_v46  ;;  %v2307_v35 = vmul.f32 %v4441_v14, %v2188_v18  ;;  %v4496_v41 = vadd.f32 %v3071_v53, %v4361_v16 }
 0x1e4   :  { %v2379_v47 = vmax.f32 %v2347_v43, 0.0  ;;  %v2348_v2 = vadd.f32 %v4447_v56, %v2309_v45 }
 0x1e5   :  { %v2377_v30 = vmax.f32 %v2345_v10, 0.0  ;;  %v2346_v44 = vadd.f32 %v4447_v56, %v2307_v35  ;;  %v3072_v34 = vpop.f32.mrb[120].mxu1  ;;  %v3158_v21 = vpop.f32.mrb[120].mxu0 }
 0x1e6   :  { %2412 = vst.msk [vmem:[%s4694_s4 + $0x30] sm:$0xff] %vm2405_vm0, %v2379_v47  ;;  %v2380_v57 = vmax.f32 %v2348_v2, 0.0  ;;  %v2209_v1 = vadd.f32 %v3158_v21, %v4406_v17  ;;  %v3073_v52 = vpop.f32.mrb[121].mxu1  ;;  %v2200_v36 = vpop.f32.mrb[121].mxu0 }
 0x1e7   :  { %2410 = vst.msk [vmem:[%s4694_s4 + $0x20] sm:$0xff] %vm2405_vm0, %v2377_v30  ;;  %v2378_v16 = vmax.f32 %v2346_v44, 0.0  ;;  %v3074_v59 = vadd.f32 %v3073_v52, %v3072_v34  ;;  %v2201_v61 = vadd.f32 %v2200_v36, %v4394_v55  ;;  %v3075_v23 = vpop.f32.mrb[122].mxu1  ;;  %v3159_v4 = vpop.f32.mrb[122].mxu0 }
 0x1e8   :  { %2413 = vst.msk [vmem:[%s4694_s4 + $0x38] sm:$0xff] %vm2405_vm0, %v2380_v57  ;;  %v2312_v17 = vmul.f32 %v4441_v14, %v2209_v1  ;;  %v2212_v12 = vadd.f32 %v3159_v4, %v4412_v29  ;;  %v3076_v31 = vpop.f32.mrb[123].mxu1  ;;  %v2203_v3 = vpop.f32.mrb[123].mxu0 }
 0x1e9   :  { %2411 = vst.msk [vmem:[%s4694_s4 + $0x28] sm:$0xff] %vm2405_vm0, %v2378_v16  ;;  %v2310_v55 = vmul.f32 %v4441_v14, %v2201_v61  ;;  %v3077_v37 = vadd.f32 %v3076_v31, %v3075_v23  ;;  %v2204_v8 = vadd.f32 %v2203_v3, %v4400_v22  ;;  %v4523_v0 = vadd.f32 %v3074_v59, %v4367_v7 }
 0x1ea   :  { %v2351_v15 = vadd.f32 %v4447_v56, %v2312_v17  ;;  %v2313_v54 = vmul.f32 %v4441_v14, %v2212_v12 }
 0x1eb   :  { %v2349_v29 = vadd.f32 %v4447_v56, %v2310_v55  ;;  %v2311_v32 = vmul.f32 %v4441_v14, %v2204_v8  ;;  %v4530_v27 = vadd.f32 %v3077_v37, %v4373_v11 }
 0x1ec   :  { %v2383_v19 = vmax.f32 %v2351_v15, 0.0  ;;  %v2352_v38 = vadd.f32 %v4447_v56, %v2313_v54 }
 0x1ed   :  { %v2381_v33 = vmax.f32 %v2349_v29, 0.0  ;;  %v2350_v22 = vadd.f32 %v4447_v56, %v2311_v32  ;;  %v3078_v5 = vpop.f32.mrb[124].mxu1  ;;  %v3162_v7 = vpop.f32.mrb[124].mxu0 }
 0x1ee   :  { %2416 = vst.msk [vmem:[%s4694_s4 + $0x50] sm:$0xff] %vm2405_vm0, %v2383_v19  ;;  %v2384_v9 = vmax.f32 %v2352_v38, 0.0  ;;  %v2225_v20 = vadd.f32 %v3162_v7, %v4430_v58  ;;  %v3079_v46 = vpop.f32.mrb[125].mxu1  ;;  %v2216_v53 = vpop.f32.mrb[125].mxu0 }
 0x1ef   :  { %2414 = vst.msk [vmem:[%s4694_s4 + $0x40] sm:$0xff] %vm2405_vm0, %v2381_v33  ;;  %v2382_v11 = vmax.f32 %v2350_v22, 0.0  ;;  %v3080_v18 = vadd.f32 %v3079_v46, %v3078_v5  ;;  %v2217_v43 = vadd.f32 %v2216_v53, %v4418_v39  ;;  %v3081_v45 = vpop.f32.mrb[126].mxu1  ;;  %v3163_v10 = vpop.f32.mrb[126].mxu0 }
 0x1f0   :  { %2417 = vst.msk [vmem:[%s4694_s4 + $0x58] sm:$0xff] %vm2405_vm0, %v2384_v9  ;;  %v2316_v58 = vmul.f32 %v4441_v14, %v2225_v20  ;;  %v2228_v35 = vadd.f32 %v3163_v10, %v4436_v13  ;;  %v3082_v47 = vpop.f32.mrb[127].mxu1  ;;  %v2219_v2 = vpop.f32.mrb[127].mxu0 }
 0x1f1   :  { %2415 = vst.msk [vmem:[%s4694_s4 + $0x48] sm:$0xff] %vm2405_vm0, %v2382_v11  ;;  %v2314_v39 = vmul.f32 %v4441_v14, %v2217_v43  ;;  %v3083_v30 = vadd.f32 %v3082_v47, %v3081_v45  ;;  %v2220_v44 = vadd.f32 %v2219_v2, %v4424_v50  ;;  %v2096_v34 = vadd.f32 %v3080_v18, %v4379_v40 }
 0x1f2   :  { %v2355_v21 = vadd.f32 %v4447_v56, %v2316_v58  ;;  %v2317_v57 = vmul.f32 %v4441_v14, %v2228_v35 }
 0x1f3   :  { %v2353_v13 = vadd.f32 %v4447_v56, %v2314_v39  ;;  %v2315_v1 = vmul.f32 %v4441_v14, %v2220_v44  ;;  %v2099_v52 = vadd.f32 %v3083_v30, %v4385_v49 }
 0x1f4   :  { %v2387_v36 = vmax.f32 %v2355_v21, 0.0  ;;  %v2356_v16 = vadd.f32 %v4447_v56, %v2317_v57 }
 0x1f5   :  { %v2385_v59 = vmax.f32 %v2353_v13, 0.0  ;;  %v2354_v61 = vadd.f32 %v4447_v56, %v2315_v1  ;;  %v3084_v23 = vpop.f32.mrb[128].mxu1  ;;  %v3166_v50 = vpop.f32.mrb[128].mxu0 }
 0x1f6   :  { %2420 = vst.msk [vmem:[%s4694_s4 + $0x70] sm:$0xff] %vm2405_vm0, %v2387_v36  ;;  %v2388_v40 = vmax.f32 %v2356_v16, 0.0  ;;  %v2241_v4 = vadd.f32 %v3166_v50, %v4489_v60  ;;  %v3085_v17 = vpop.f32.mrb[129].mxu1  ;;  %v2232_v12 = vpop.f32.mrb[129].mxu0 }
 0x1f7   :  { %2418 = vst.msk [vmem:[%s4694_s4 + $0x60] sm:$0xff] %vm2405_vm0, %v2385_v59  ;;  %v2386_v49 = vmax.f32 %v2354_v61, 0.0  ;;  %v3086_v31 = vadd.f32 %v3085_v17, %v3084_v23  ;;  %v2233_v3 = vadd.f32 %v2232_v12, %v4455_v48  ;;  %v3087_v55 = vpop.f32.mrb[130].mxu1  ;;  %v3167_v37 = vpop.f32.mrb[130].mxu0 }
 0x1f8   :  { %2421 = vst.msk [vmem:[%s4694_s4 + $0x78] sm:$0xff] %vm2405_vm0, %v2388_v40  ;;  %v2320_v60 = vmul.f32 %v4441_v14, %v2241_v4  ;;  %v2244_v8 = vadd.f32 %v3167_v37, %v4496_v41  ;;  %v3088_v15 = vpop.f32.mrb[131].mxu1  ;;  %v2235_v54 = vpop.f32.mrb[131].mxu0 }
 0x1f9   :  { %2419 = vst.msk [vmem:[%s4694_s4 + $0x68] sm:$0xff] %vm2405_vm0, %v2386_v49  ;;  %v2318_v48 = vmul.f32 %v4441_v14, %v2233_v3  ;;  %v3089_v29 = vadd.f32 %v3088_v15, %v3087_v55  ;;  %v2236_v32 = vadd.f32 %v2235_v54, %v4462_v28  ;;  %v2104_v19 = vadd.f32 %v3086_v31, %v4391_v63 }
 0x1fa   :  { %v2359_v38 = vadd.f32 %v4447_v56, %v2320_v60  ;;  %v2321_v33 = vmul.f32 %v4441_v14, %v2244_v8 }
 0x1fb   :  { %v2357_v41 = vadd.f32 %v4447_v56, %v2318_v48  ;;  %v2319_v22 = vmul.f32 %v4441_v14, %v2236_v32  ;;  %v2107_v5 = vadd.f32 %v3089_v29, %v4397_v62 }
 0x1fc   :  { %v2391_v7 = vmax.f32 %v2359_v38, 0.0  ;;  %v2360_v9 = vadd.f32 %v4447_v56, %v2321_v33 }
 0x1fd   :  { %v2389_v20 = vmax.f32 %v2357_v41, 0.0  ;;  %v2358_v46 = vadd.f32 %v4447_v56, %v2319_v22  ;;  %v3090_v53 = vpop.f32.mrb[132].mxu1  ;;  %v3170_v28 = vpop.f32.mrb[132].mxu0 }
 0x1fe   :  { %2424 = vst.msk [vmem:[%s4694_s4 + $0x90] sm:$0xff] %vm2405_vm0, %v2391_v7  ;;  %v2392_v63 = vmax.f32 %v2360_v9, 0.0  ;;  %v2257_v11 = vadd.f32 %v3170_v28, %v2096_v34  ;;  %v3091_v18 = vpop.f32.mrb[133].mxu1  ;;  %v2248_v43 = vpop.f32.mrb[133].mxu0 }
 0x1ff   :  { %2422 = vst.msk [vmem:[%s4694_s4 + $0x80] sm:$0xff] %vm2405_vm0, %v2389_v20  ;;  %v2390_v62 = vmax.f32 %v2358_v46, 0.0  ;;  %v3092_v45 = vadd.f32 %v3091_v18, %v3090_v53  ;;  %v2249_v10 = vadd.f32 %v2248_v43, %v4523_v0  ;;  %v3093_v58 = vpop.f32.mrb[134].mxu1  ;;  %v3171_v35 = vpop.f32.mrb[134].mxu0 }
 0x200   :  { %2425 = vst.msk [vmem:[%s4694_s4 + $0x98] sm:$0xff] %vm2405_vm0, %v2392_v63  ;;  %v2324_v47 = vmul.f32 %v4441_v14, %v2257_v11  ;;  %v2260_v2 = vadd.f32 %v3171_v35, %v2099_v52  ;;  %v3094_v39 = vpop.f32.mrb[135].mxu1  ;;  %v2251_v30 = vpop.f32.mrb[135].mxu0 }
 0x201   :  { %2423 = vst.msk [vmem:[%s4694_s4 + $0x88] sm:$0xff] %vm2405_vm0, %v2390_v62  ;;  %v2322_v44 = vmul.f32 %v4441_v14, %v2249_v10  ;;  %v3095_v0 = vadd.f32 %v3094_v39, %v3093_v58  ;;  %v2252_v34 = vadd.f32 %v2251_v30, %v4530_v27  ;;  %v2112_v21 = vadd.f32 %v3092_v45, %v4403_v25 }
 0x202   :  { %v2363_v57 = vadd.f32 %v4447_v56, %v2324_v47  ;;  %v2325_v13 = vmul.f32 %v4441_v14, %v2260_v2 }
 0x203   :  { %v2361_v1 = vadd.f32 %v4447_v56, %v2322_v44  ;;  %v2323_v52 = vmul.f32 %v4441_v14, %v2252_v34  ;;  %v2115_v36 = vadd.f32 %v3095_v0, %v4409_v42 }
 0x204   :  { %v2395_v16 = vmax.f32 %v2363_v57, 0.0  ;;  %v2364_v59 = vadd.f32 %v4447_v56, %v2325_v13 }
 0x205   :  { %v2393_v61 = vmax.f32 %v2361_v1, 0.0  ;;  %v2362_v23 = vadd.f32 %v4447_v56, %v2323_v52  ;;  %v3096_v50 = vpop.f32.mrb[136].mxu1  ;;  %v3174_v27 = vpop.f32.mrb[136].mxu0 }
 0x206   :  { %2428 = vst.msk [vmem:[%s4694_s4 + $0xb0] sm:$0xff] %vm2405_vm0, %v2395_v16  ;;  %v2396_v25 = vmax.f32 %v2364_v59, 0.0  ;;  %v2273_v40 = vadd.f32 %v3174_v27, %v2112_v21  ;;  %v3097_v4 = vpop.f32.mrb[137].mxu1  ;;  %v2264_v17 = vpop.f32.mrb[137].mxu0 }
 0x207   :  { %2426 = vst.msk [vmem:[%s4694_s4 + $0xa0] sm:$0xff] %vm2405_vm0, %v2393_v61  ;;  %v2394_v42 = vmax.f32 %v2362_v23, 0.0  ;;  %v3098_v12 = vadd.f32 %v3097_v4, %v3096_v50  ;;  %v2265_v49 = vadd.f32 %v2264_v17, %v2104_v19  ;;  %v3099_v31 = vpop.f32.mrb[138].mxu1  ;;  %v3175_v3 = vpop.f32.mrb[138].mxu0 }
 0x208   :  { %2429 = vst.msk [vmem:[%s4694_s4 + $0xb8] sm:$0xff] %vm2405_vm0, %v2396_v25  ;;  %v2328_v55 = vmul.f32 %v4441_v14, %v2273_v40  ;;  %v2276_v37 = vadd.f32 %v3175_v3, %v2115_v36  ;;  %v3100_v60 = vpop.f32.mrb[139].mxu1  ;;  %v2267_v8 = vpop.f32.mrb[139].mxu0 }
 0x209   :  { %2427 = vst.msk [vmem:[%s4694_s4 + $0xa8] sm:$0xff] %vm2405_vm0, %v2394_v42  ;;  %v2326_v15 = vmul.f32 %v4441_v14, %v2265_v49  ;;  %v3101_v54 = vadd.f32 %v3100_v60, %v3099_v31  ;;  %v2268_v48 = vadd.f32 %v2267_v8, %v2107_v5  ;;  %v2120_v29 = vadd.f32 %v3098_v12, %v4415_v51 }
 0x20a   :  { %v2367_v32 = vadd.f32 %v4447_v56, %v2328_v55  ;;  %v2329_v19 = vmul.f32 %v4441_v14, %v2276_v37 }
 0x20b   :  { %v2365_v38 = vadd.f32 %v4447_v56, %v2326_v15  ;;  %v2327_v33 = vmul.f32 %v4441_v14, %v2268_v48  ;;  %v2123_v41 = vadd.f32 %v3101_v54, %v4421_v6 }
 0x20c   :  { %v2399_v22 = vmax.f32 %v2367_v32, 0.0  ;;  %v2368_v7 = vadd.f32 %v4447_v56, %v2329_v19 }
 0x20d   :  { %v2397_v9 = vmax.f32 %v2365_v38, 0.0  ;;  %v2366_v20 = vadd.f32 %v4447_v56, %v2327_v33  ;;  %v3102_v46 = vpop.f32.mrb[140].mxu1  ;;  %v3178_v5 = vpop.f32.mrb[140].mxu0 }
 0x20e   :  { %2432 = vst.msk [vmem:[%s4694_s4 + $0xd0] sm:$0xff] %vm2405_vm0, %v2399_v22  ;;  %v2400_v51 = vmax.f32 %v2368_v7, 0.0  ;;  %v3103_v53 = vpop.f32.mrb[141].mxu1  ;;  %v2280_v28 = vpop.f32.mrb[141].mxu0 }
 0x20f   :  { %2430 = vst.msk [vmem:[%s4694_s4 + $0xc0] sm:$0xff] %vm2405_vm0, %v2397_v9  ;;  %v2398_v6 = vmax.f32 %v2366_v20, 0.0  ;;  %v3104_v63 = vadd.f32 %v3103_v53, %v3102_v46  ;;  %v2281_v11 = vadd.f32 %v2280_v28, %v2120_v29  ;;  %v3105_v18 = vpop.f32.mrb[142].mxu1  ;;  %v3179_v43 = vpop.f32.mrb[142].mxu0 }
 0x210   :  { %2433 = vst.msk [vmem:[%s4694_s4 + $0xd8] sm:$0xff] %vm2405_vm0, %v2400_v51  ;;  %v3106_v62 = vpop.f32.mrb[143].mxu1  ;;  %v2283_v45 = vpop.f32.mrb[143].mxu0 }
 0x211   :  { %2431 = vst.msk [vmem:[%s4694_s4 + $0xc8] sm:$0xff] %vm2405_vm0, %v2398_v6  ;;  %v2128_v10 = vadd.f32 %v3104_v63, %v4427_v26  ;;  %v2330_v58 = vmul.f32 %v4441_v14, %v2281_v11  ;;  %v3107_v35 = vadd.f32 %v3106_v62, %v3105_v18  ;;  %v2284_v47 = vadd.f32 %v2283_v45, %v2123_v41 }
 0x213   :  { %v2289_v2 = vadd.f32 %v3178_v5, %v2128_v10  ;;  %v2369_v39 = vadd.f32 %v4447_v56, %v2330_v58  ;;  %v2131_v30 = vadd.f32 %v3107_v35, %v4433_v24  ;;  %v2331_v44 = vmul.f32 %v4441_v14, %v2284_v47 }
 0x215   :  { %v2332_v0 = vmul.f32 %v4441_v14, %v2289_v2  ;;  %v2401_v34 = vmax.f32 %v2369_v39, 0.0  ;;  %v2292_v21 = vadd.f32 %v3179_v43, %v2131_v30  ;;  %v2370_v57 = vadd.f32 %v4447_v56, %v2331_v44 }
 0x217   :  { %v2371_v13 = vadd.f32 %v4447_v56, %v2332_v0  ;;  %2434 = vst.msk [vmem:[%s4694_s4 + $0xe0] sm:$0xff] %vm2405_vm0, %v2401_v34  ;;  %v2333_v26 = vmul.f32 %v4441_v14, %v2292_v21  ;;  %v2402_v1 = vmax.f32 %v2370_v57, 0.0 }
 0x219   :  { %v2403_v52 = vmax.f32 %v2371_v13, 0.0  ;;  %v2372_v24 = vadd.f32 %v4447_v56, %v2333_v26  ;;  %2435 = vst.msk [vmem:[%s4694_s4 + $0xe8] sm:$0xff] %vm2405_vm0, %v2402_v1 }
 0x21b   :  { %2436 = vst.msk [vmem:[%s4694_s4 + $0xf0] sm:$0xff] %vm2405_vm0, %v2403_v52  ;;  %v2404_v36 = vmax.f32 %v2372_v24, 0.0 }
 0x21d   :  { %2437 = vst.msk [vmem:[%s4694_s4 + $0xf8] sm:$0xff] %vm2405_vm0, %v2404_v36 }

// kernel: cnn_net.30
= control target key start
LH: loop header
LB: loop body
LE: loop exit
PB: predicated region body
PF: predicated region fallthrough
CT: control target
= control target key end

     0   :  { %v318_v0 = vmov 0   ;;  %vm134_vm0 = vcmask 130048   ;;  %vm242_vm1 = vcmask 523264   ;;  %s437_s1 = inlined_call_operand.vmem [shape: bf16[144,64], index: 1, kind: input, shape index: {}]   ;;  %s438_s0 = inlined_call_operand.vmem [shape: bf16[64,144], index: 0, kind: input, shape index: {}]   ;;  %s439_s2 = inlined_call_operand.vmem [shape: f32[1,64], index: 2, kind: input, shape index: {}]   ;;  %s440_s3 = inlined_call_operand.vmem [shape: f32[1,64], index: 3, kind: input, shape index: {}]   ;;  %s441_s4 = inlined_call_operand.vmem [shape: f32[64,64], index: 4, kind: output, shape index: {}]  }
   0x1   :  { %147 = vmatprep.subr.bf16.mxu0 %v318_v0  ;;  %278 = vmatprep.subr.bf16.mxu1 %v318_v0  ;;  %v297_v1 = vld [vmem:[%s437_s1] sm:$0xff]   ;;  %v298_v2 = vld [vmem:[%s437_s1 + $0x8] sm:$0xff]   ;;  %v299_v3 = vld [vmem:[%s437_s1 + $0x10] sm:$0xff]  }
   0x2   :  { %148 = vmatpush1.bf16.msra.mxu0 %v297_v1  ;;  %287 = vmatpush1.bf16.msra.mxu1 %v297_v1  ;;  %v300_v4 = vld [vmem:[%s437_s1 + $0x18] sm:$0xff]   ;;  %v308_v5 = vld [vmem:[%s438_s0 + $0x4] ss:$8 sps:$4 sm:$0xff]   ;;  %v303_v9 = vld [vmem:[%s437_s1 + $0x30] sm:$0xff]  }
   0x3   :  { %149 = vmatprep.subr.bf16.mxu0 %v318_v0  ;;  %279 = vmatprep.subr.bf16.mxu1 %v318_v0  ;;  %v311_v6 = vld [vmem:[%s438_s0 + $0x24] ss:$8 sps:$4 sm:$0xff]   ;;  %v304_v10 = vld [vmem:[%s437_s1 + $0x38] sm:$0xff]   ;;  %v306_v12 = vld [vmem:[%s438_s0] ss:$8 sps:$4 sm:$0xff]  }
   0x4   :  { %272 = vmatprep.mubr.msk.bf16.mxu0 %vm134_vm0, %v308_v5  ;;  %274 = vmatprep.mubr.msk.bf16.mxu1 %vm134_vm0, %v311_v6  ;;  %v301_v7 = vld [vmem:[%s437_s1 + $0x20] sm:$0xff]   ;;  %v302_v8 = vld [vmem:[%s437_s1 + $0x28] sm:$0xff]   ;;  %v312_v14 = vld [vmem:[%s438_s0 + $0x14] ss:$8 sps:$4 sm:$0xff]  }
   0x5   :  { %v305_v11 = vld [vmem:[%s437_s1 + $0x40] sm:$0xff]   ;;  %v314_v15 = vld [vmem:[%s438_s0 + $0x34] ss:$8 sps:$4 sm:$0xff]   ;;  %v316_v16 = vld [vmem:[%s438_s0 + $0x10] ss:$8 sps:$4 sm:$0xff]  }
   0x6   :  { %150 = vmatpush1.bf16.msra.mxu0 %v298_v2  ;;  %288 = vmatpush1.bf16.msra.mxu1 %v298_v2  ;;  %v309_v13 = vld [vmem:[%s438_s0 + $0x20] ss:$8 sps:$4 sm:$0xff]   ;;  %v317_v17 = vld [vmem:[%s438_s0 + $0x30] ss:$8 sps:$4 sm:$0xff]  }
   0x7   :  { %151 = vmatprep.subr.bf16.mxu0 %v318_v0  ;;  %280 = vmatprep.subr.bf16.mxu1 %v318_v0  ;;  %v276_v18 = vld [vmem:[%s439_s2] ss:$0 sm:$0xff] }
   0x8   :  { %v277_v20 = vld [vmem:[%s440_s3] ss:$0 sm:$0xff] }
   0xa   :  { %152 = vmatpush1.bf16.msra.mxu0 %v299_v3  ;;  %289 = vmatpush1.bf16.msra.mxu1 %v299_v3 }
   0xb   :  { %153 = vmatprep.subr.bf16.mxu0 %v318_v0  ;;  %281 = vmatprep.subr.bf16.mxu1 %v318_v0 }
   0xe   :  { %154 = vmatpush1.bf16.msra.mxu0 %v300_v4  ;;  %290 = vmatpush1.bf16.msra.mxu1 %v300_v4 }
   0xf   :  { %155 = vmatprep.subr.bf16.mxu0 %v318_v0  ;;  %282 = vmatprep.subr.bf16.mxu1 %v318_v0 }
  0x12   :  { %156 = vmatpush1.bf16.msra.mxu0 %v301_v7  ;;  %291 = vmatpush1.bf16.msra.mxu1 %v301_v7 }
  0x13   :  { %157 = vmatprep.subr.bf16.mxu0 %v318_v0  ;;  %283 = vmatprep.subr.bf16.mxu1 %v318_v0 }
  0x16   :  { %158 = vmatpush1.bf16.msra.mxu0 %v302_v8  ;;  %292 = vmatpush1.bf16.msra.mxu1 %v302_v8 }
  0x17   :  { %159 = vmatprep.subr.bf16.mxu0 %v318_v0  ;;  %284 = vmatprep.subr.bf16.mxu1 %v318_v0 }
  0x1a   :  { %160 = vmatpush1.bf16.msra.mxu0 %v303_v9  ;;  %293 = vmatpush1.bf16.msra.mxu1 %v303_v9 }
  0x1b   :  { %161 = vmatprep.subr.bf16.mxu0 %v318_v0  ;;  %285 = vmatprep.subr.bf16.mxu1 %v318_v0 }
  0x1e   :  { %162 = vmatpush1.bf16.msra.mxu0 %v304_v10  ;;  %294 = vmatpush1.bf16.msra.mxu1 %v304_v10 }
  0x1f   :  { %163 = vmatprep.subr.bf16.mxu0 %v318_v0  ;;  %286 = vmatprep.subr.bf16.mxu1 %v318_v0 }
  0x22   :  { %164 = vmatpush1.bf16.msra.mxu0 %v305_v11  ;;  %295 = vmatpush1.bf16.msra.mxu1 %v305_v11 }
  0x25   :  { %180 = vmatmul.mubr.bf16.vlgmr.msra.gmra.mrb[0].mxu0 %v306_v12  ;;  %196 = vmatmul.mubr.bf16.vlgmr.msra.gmra.mrb[0].mxu1 %v309_v13 }
  0x26   :  { %273 = vmatprep.mubr.msk.bf16.mxu0 %vm134_vm0, %v312_v14  ;;  %275 = vmatprep.mubr.msk.bf16.mxu1 %vm134_vm0, %v314_v15 }
  0x2d   :  { %188 = vmatmul.mubr.bf16.gmra.mrb[4].mxu0 %v316_v16  ;;  %204 = vmatmul.mubr.bf16.gmra.mrb[4].mxu1 %v317_v17 }
  0xf8   :  { %v181_v19 = vpop.f32.mrb[0].mxu0  ;;  %v197_v21 = vpop.f32.mrb[0].mxu1 }
  0xf9   :  { %v219_v22 = vmul.f32 %v276_v18, %v181_v19  ;;  %v223_v23 = vmul.f32 %v276_v18, %v197_v21  ;;  %v183_v24 = vpop.f32.mrb[1].mxu0  ;;  %v199_v25 = vpop.f32.mrb[1].mxu1 }
  0xfa   :  { %v184_v26 = vpop.f32.mrb[2].mxu0  ;;  %v200_v27 = vpop.f32.mrb[2].mxu1 }
  0xfb   :  { %v234_v28 = vadd.f32 %v277_v20, %v219_v22  ;;  %v238_v29 = vadd.f32 %v277_v20, %v223_v23  ;;  %v220_v30 = vmul.f32 %v276_v18, %v184_v26  ;;  %v224_v31 = vmul.f32 %v276_v18, %v200_v27  ;;  %v186_v32 = vpop.f32.mrb[3].mxu0  ;;  %v202_v33 = vpop.f32.mrb[3].mxu1 }
  0xfd   :  { %243 = vst.msk [vmem:[%s441_s4] sm:$0xff] %vm242_vm1, %v234_v28  ;;  %247 = vst.msk [vmem:[%s441_s4 + $0x20] sm:$0xff] %vm242_vm1, %v238_v29  ;;  %v235_v34 = vadd.f32 %v277_v20, %v220_v30  ;;  %v239_v35 = vadd.f32 %v277_v20, %v224_v31 }
  0xff   :  { %244 = vst.msk [vmem:[%s441_s4 + $0x8] sm:$0xff] %vm242_vm1, %v235_v34  ;;  %248 = vst.msk [vmem:[%s441_s4 + $0x28] sm:$0xff] %vm242_vm1, %v239_v35 }
 0x100   :  { %v189_v36 = vpop.f32.mrb[4].mxu0  ;;  %v205_v37 = vpop.f32.mrb[4].mxu1 }
 0x101   :  { %v221_v38 = vmul.f32 %v276_v18, %v189_v36  ;;  %v225_v39 = vmul.f32 %v276_v18, %v205_v37  ;;  %v191_v40 = vpop.f32.mrb[5].mxu0  ;;  %v207_v41 = vpop.f32.mrb[5].mxu1 }
 0x102   :  { %v192_v42 = vpop.f32.mrb[6].mxu0  ;;  %v208_v43 = vpop.f32.mrb[6].mxu1 }
 0x103   :  { %v236_v44 = vadd.f32 %v277_v20, %v221_v38  ;;  %v240_v45 = vadd.f32 %v277_v20, %v225_v39  ;;  %v222_v46 = vmul.f32 %v276_v18, %v192_v42  ;;  %v226_v47 = vmul.f32 %v276_v18, %v208_v43  ;;  %v194_v48 = vpop.f32.mrb[7].mxu0  ;;  %v210_v49 = vpop.f32.mrb[7].mxu1 }
 0x105   :  { %245 = vst.msk [vmem:[%s441_s4 + $0x10] sm:$0xff] %vm242_vm1, %v236_v44  ;;  %249 = vst.msk [vmem:[%s441_s4 + $0x30] sm:$0xff] %vm242_vm1, %v240_v45  ;;  %v237_v50 = vadd.f32 %v277_v20, %v222_v46  ;;  %v241_v51 = vadd.f32 %v277_v20, %v226_v47 }
 0x107   :  { %246 = vst.msk [vmem:[%s441_s4 + $0x18] sm:$0xff] %vm242_vm1, %v237_v50  ;;  %250 = vst.msk [vmem:[%s441_s4 + $0x38] sm:$0xff] %vm242_vm1, %v241_v51 }

// kernel: cnn_net.31
= control target key start
LH: loop header
LB: loop body
LE: loop exit
PB: predicated region body
PF: predicated region fallthrough
CT: control target
= control target key end

     0   :  { %vm54_vm0 = vcmask 130048   ;;  %vm162_vm1 = vcmask 392192   ;;  %s286_s1 = inlined_call_operand.vmem [shape: bf16[16,48], index: 1, kind: input, shape index: {}]   ;;  %s287_s0 = inlined_call_operand.vmem [shape: bf16[64,16], index: 0, kind: input, shape index: {}]   ;;  %s288_s2 = inlined_call_operand.vmem [shape: f32[1,48], index: 2, kind: input, shape index: {}]   ;;  %s289_s3 = inlined_call_operand.vmem [shape: f32[1,48], index: 3, kind: input, shape index: {}]   ;;  %s290_s4 = inlined_call_operand.vmem [shape: f32[64,48], index: 4, kind: output, shape index: {}]  }
   0x1   :  { %v203_v0 = vld [vmem:[%s286_s1] sm:$0xff]   ;;  %v205_v2 = vld [vmem:[%s287_s0 + $0x10] sm:$0xff]   ;;  %v206_v3 = vld [vmem:[%s287_s0 + $0x8] sm:$0xff]  }
   0x2   :  { %v204_v1 = vld [vmem:[%s287_s0] sm:$0xff]   ;;  %191 = vmatprep.subr.bf16.mxu0 %v203_v0  ;;  %201 = vmatprep.subr.bf16.mxu1 %v203_v0  ;;  %v207_v4 = vld [vmem:[%s287_s0 + $0x18] sm:$0xff]  }
   0x3   :  { %192 = vmatpush3.bf16.msra.mxu0 %v203_v0  ;;  %202 = vmatpush3.bf16.msra.mxu1 %v203_v0  ;;  %v184_v5 = vld [vmem:[%s288_s2] ss:$0 sm:$0xff] }
   0x4   :  { %193 = vmatprep.mubr.msk.bf16.mxu0 %vm54_vm0, %v204_v1  ;;  %197 = vmatprep.mubr.msk.bf16.mxu1 %vm54_vm0, %v205_v2  ;;  %v185_v7 = vld [vmem:[%s289_s3] ss:$0 sm:$0xff] }
   0x6   :  { %194 = vmatmul.mubr.msk.bf16.vlgmr.msra.gmra.mrb[0].mxu0 %vm54_vm0, %v206_v3  ;;  %198 = vmatmul.mubr.msk.bf16.vlgmr.msra.gmra.mrb[0].mxu1 %vm54_vm0, %v207_v4 }
  0xd9   :  { %v195_v6 = vpop.f32.mrb[0].mxu0  ;;  %v199_v8 = vpop.f32.mrb[0].mxu1 }
  0xda   :  { %v141_v9 = vmul.f32 %v195_v6, %v184_v5  ;;  %v145_v10 = vmul.f32 %v199_v8, %v184_v5  ;;  %v101_v11 = vpop.f32.mrb[1].mxu0  ;;  %v117_v12 = vpop.f32.mrb[1].mxu1 }
  0xdb   :  { %v139_v13 = vmul.f32 %v184_v5, %v101_v11  ;;  %v143_v14 = vmul.f32 %v184_v5, %v117_v12  ;;  %v196_v15 = vpop.f32.mrb[2].mxu0  ;;  %v200_v16 = vpop.f32.mrb[2].mxu1 }
  0xdc   :  { %v156_v17 = vadd.f32 %v185_v7, %v141_v9  ;;  %v160_v18 = vadd.f32 %v185_v7, %v145_v10  ;;  %v142_v19 = vmul.f32 %v196_v15, %v184_v5  ;;  %v146_v20 = vmul.f32 %v200_v16, %v184_v5  ;;  %v104_v21 = vpop.f32.mrb[3].mxu0  ;;  %v120_v22 = vpop.f32.mrb[3].mxu1 }
  0xdd   :  { %v154_v23 = vadd.f32 %v185_v7, %v139_v13  ;;  %v158_v24 = vadd.f32 %v185_v7, %v143_v14  ;;  %v140_v25 = vmul.f32 %v184_v5, %v104_v21  ;;  %v144_v26 = vmul.f32 %v184_v5, %v120_v22 }
  0xde   :  { %165 = vst.msk [vmem:[%s290_s4 + $0x10] sm:$0xff] %vm162_vm1, %v156_v17  ;;  %169 = vst.msk [vmem:[%s290_s4 + $0x30] sm:$0xff] %vm162_vm1, %v160_v18  ;;  %v157_v27 = vadd.f32 %v185_v7, %v142_v19  ;;  %v161_v28 = vadd.f32 %v185_v7, %v146_v20 }
  0xdf   :  { %163 = vst.msk [vmem:[%s290_s4] sm:$0xff] %vm162_vm1, %v154_v23  ;;  %167 = vst.msk [vmem:[%s290_s4 + $0x20] sm:$0xff] %vm162_vm1, %v158_v24  ;;  %v155_v29 = vadd.f32 %v185_v7, %v140_v25  ;;  %v159_v30 = vadd.f32 %v185_v7, %v144_v26 }
  0xe0   :  { %166 = vst.msk [vmem:[%s290_s4 + $0x18] sm:$0xff] %vm162_vm1, %v157_v27  ;;  %170 = vst.msk [vmem:[%s290_s4 + $0x38] sm:$0xff] %vm162_vm1, %v161_v28 }
  0xe1   :  { %164 = vst.msk [vmem:[%s290_s4 + $0x8] sm:$0xff] %vm162_vm1, %v155_v29  ;;  %168 = vst.msk [vmem:[%s290_s4 + $0x28] sm:$0xff] %vm162_vm1, %v159_v30 }

// kernel: cnn_net.32
= control target key start
LH: loop header
LB: loop body
LE: loop exit
PB: predicated region body
PF: predicated region fallthrough
CT: control target
= control target key end

     0   :  { %vm60_vm0 = vcmask 523264   ;;  %s157_s0 = inlined_call_operand.vmem [shape: f32[64,64], index: 0, kind: input, shape index: {}]   ;;  %s158_s1 = inlined_call_operand.vmem [shape: f32[1,64], index: 1, kind: input, shape index: {}]   ;;  %s159_s2 = inlined_call_operand.vmem [shape: f32[1,64], index: 2, kind: input, shape index: {}]   ;;  %s160_s3 = inlined_call_operand.vmem [shape: f32[64,64], index: 3, kind: output, shape index: {}]  }
   0x1   :  { %v14_v0 = vld [vmem:[%s157_s0] sm:$0xff]  ;;  %v15_v4 = vld [vmem:[%s157_s0 + $0x8] sm:$0xff]  ;;  %v16_v5 = vld [vmem:[%s157_s0 + $0x10] sm:$0xff] }
   0x2   :  { %v73_v1 = vld [vmem:[%s158_s1] ss:$0 sm:$0xff]  ;;  %v17_v6 = vld [vmem:[%s157_s0 + $0x18] sm:$0xff]  ;;  %v19_v11 = vld [vmem:[%s157_s0 + $0x28] sm:$0xff] }
   0x3   :  { %v74_v2 = vld [vmem:[%s159_s2] ss:$0 sm:$0xff]  ;;  %v29_v3 = vmul.f32 %v73_v1, %v14_v0  ;;  %v30_v7 = vmul.f32 %v73_v1, %v15_v4  ;;  %v31_v8 = vmul.f32 %v73_v1, %v16_v5  ;;  %v32_v9 = vmul.f32 %v73_v1, %v17_v6  ;;  %v20_v12 = vld [vmem:[%s157_s0 + $0x30] sm:$0xff]  ;;  %v21_v17 = vld [vmem:[%s157_s0 + $0x38] sm:$0xff] }
   0x4   :  { %v18_v10 = vld [vmem:[%s157_s0 + $0x20] sm:$0xff]  ;;  %v34_v15 = vmul.f32 %v73_v1, %v19_v11  ;;  %v35_v16 = vmul.f32 %v73_v1, %v20_v12  ;;  %v36_v21 = vmul.f32 %v73_v1, %v21_v17 }
   0x5   :  { %v44_v13 = vadd.f32 %v74_v2, %v29_v3  ;;  %v33_v14 = vmul.f32 %v73_v1, %v18_v10  ;;  %v45_v18 = vadd.f32 %v74_v2, %v30_v7  ;;  %v46_v19 = vadd.f32 %v74_v2, %v31_v8 }
   0x6   :  { %v47_v20 = vadd.f32 %v74_v2, %v32_v9  ;;  %v49_v24 = vadd.f32 %v74_v2, %v34_v15  ;;  %v50_v25 = vadd.f32 %v74_v2, %v35_v16  ;;  %v51_v29 = vadd.f32 %v74_v2, %v36_v21 }
   0x7   :  { %v52_v22 = vmax.f32 %v44_v13, 0.0  ;;  %v48_v23 = vadd.f32 %v74_v2, %v33_v14  ;;  %v53_v26 = vmax.f32 %v45_v18, 0.0  ;;  %v54_v27 = vmax.f32 %v46_v19, 0.0 }
   0x8   :  { %v55_v28 = vmax.f32 %v47_v20, 0.0  ;;  %v57_v31 = vmax.f32 %v49_v24, 0.0  ;;  %v58_v32 = vmax.f32 %v50_v25, 0.0  ;;  %v59_v33 = vmax.f32 %v51_v29, 0.0 }
   0x9   :  { %61 = vst.msk [vmem:[%s160_s3] sm:$0xff] %vm60_vm0, %v52_v22  ;;  %v56_v30 = vmax.f32 %v48_v23, 0.0  ;;  %62 = vst.msk [vmem:[%s160_s3 + $0x8] sm:$0xff] %vm60_vm0, %v53_v26 }
   0xa   :  { %63 = vst.msk [vmem:[%s160_s3 + $0x10] sm:$0xff] %vm60_vm0, %v54_v27  ;;  %64 = vst.msk [vmem:[%s160_s3 + $0x18] sm:$0xff] %vm60_vm0, %v55_v28 }
   0xb   :  { %65 = vst.msk [vmem:[%s160_s3 + $0x20] sm:$0xff] %vm60_vm0, %v56_v30  ;;  %66 = vst.msk [vmem:[%s160_s3 + $0x28] sm:$0xff] %vm60_vm0, %v57_v31 }
   0xc   :  { %67 = vst.msk [vmem:[%s160_s3 + $0x30] sm:$0xff] %vm60_vm0, %v58_v32  ;;  %68 = vst.msk [vmem:[%s160_s3 + $0x38] sm:$0xff] %vm60_vm0, %v59_v33 }

// kernel: cnn_net.37
= control target key start
LH: loop header
LB: loop body
LE: loop exit
PB: predicated region body
PF: predicated region fallthrough
CT: control target
= control target key end

     0   :  { %vm79_vm0 = vcmask 523264   ;;  %s205_s0 = inlined_call_operand.vmem [shape: f32[64,64], index: 0, kind: input, shape index: {}]   ;;  %s206_s1 = inlined_call_operand.vmem [shape: f32[64,64], index: 1, kind: input, shape index: {}]   ;;  %s207_s2 = inlined_call_operand.vmem [shape: f32[1,64], index: 2, kind: input, shape index: {}]   ;;  %s208_s3 = inlined_call_operand.vmem [shape: f32[1,64], index: 3, kind: input, shape index: {}]   ;;  %s209_s4 = inlined_call_operand.vmem [shape: f32[64,64], index: 4, kind: output, shape index: {}]  }
   0x1   :  { %v17_v0 = vld [vmem:[%s205_s0] sm:$0xff]  ;;  %v18_v4 = vld [vmem:[%s205_s0 + $0x8] sm:$0xff]  ;;  %v19_v7 = vld [vmem:[%s205_s0 + $0x10] sm:$0xff] }
   0x2   :  { %v92_v1 = vld [vmem:[%s207_s2] ss:$0 sm:$0xff]  ;;  %v20_v8 = vld [vmem:[%s205_s0 + $0x18] sm:$0xff]  ;;  %v56_v10 = vld [vmem:[%s206_s1 + $0x8] sm:$0xff] }
   0x3   :  { %v93_v2 = vld [vmem:[%s208_s3] ss:$0 sm:$0xff]  ;;  %v32_v3 = vmul.f32 %v92_v1, %v17_v0  ;;  %v33_v6 = vmul.f32 %v92_v1, %v18_v4  ;;  %v34_v11 = vmul.f32 %v92_v1, %v19_v7  ;;  %v57_v12 = vld [vmem:[%s206_s1 + $0x10] sm:$0xff]  ;;  %v35_v13 = vmul.f32 %v92_v1, %v20_v8  ;;  %v58_v16 = vld [vmem:[%s206_s1 + $0x18] sm:$0xff] }
   0x4   :  { %v55_v5 = vld [vmem:[%s206_s1] sm:$0xff]  ;;  %v22_v18 = vld [vmem:[%s205_s0 + $0x28] sm:$0xff]  ;;  %v23_v19 = vld [vmem:[%s205_s0 + $0x30] sm:$0xff] }
   0x5   :  { %v47_v9 = vadd.f32 %v93_v2, %v32_v3  ;;  %v21_v14 = vld [vmem:[%s205_s0 + $0x20] sm:$0xff]  ;;  %v48_v15 = vadd.f32 %v93_v2, %v33_v6  ;;  %v49_v21 = vadd.f32 %v93_v2, %v34_v11  ;;  %v50_v22 = vadd.f32 %v93_v2, %v35_v13  ;;  %v24_v25 = vld [vmem:[%s205_s0 + $0x38] sm:$0xff]  ;;  %v60_v28 = vld [vmem:[%s206_s1 + $0x28] sm:$0xff] }
   0x6   :  { %v36_v17 = vmul.f32 %v92_v1, %v21_v14  ;;  %v59_v23 = vld [vmem:[%s206_s1 + $0x20] sm:$0xff]  ;;  %v37_v24 = vmul.f32 %v92_v1, %v22_v18  ;;  %v38_v29 = vmul.f32 %v92_v1, %v23_v19  ;;  %v39_v30 = vmul.f32 %v92_v1, %v24_v25  ;;  %v61_v35 = vld [vmem:[%s206_s1 + $0x30] sm:$0xff]  ;;  %v62_v36 = vld [vmem:[%s206_s1 + $0x38] sm:$0xff] }
   0x7   :  { %v63_v20 = vadd.f32 %v55_v5, %v47_v9  ;;  %v64_v26 = vadd.f32 %v56_v10, %v48_v15  ;;  %v65_v32 = vadd.f32 %v57_v12, %v49_v21  ;;  %v66_v33 = vadd.f32 %v58_v16, %v50_v22 }
   0x8   :  { %v51_v27 = vadd.f32 %v93_v2, %v36_v17  ;;  %v52_v34 = vadd.f32 %v93_v2, %v37_v24  ;;  %v53_v39 = vadd.f32 %v93_v2, %v38_v29  ;;  %v54_v40 = vadd.f32 %v93_v2, %v39_v30 }
   0x9   :  { %v71_v31 = vmax.f32 %v63_v20, 0.0  ;;  %v72_v37 = vmax.f32 %v64_v26, 0.0  ;;  %v73_v41 = vmax.f32 %v65_v32, 0.0  ;;  %v74_v42 = vmax.f32 %v66_v33, 0.0 }
   0xa   :  { %v67_v38 = vadd.f32 %v59_v23, %v51_v27  ;;  %v68_v43 = vadd.f32 %v60_v28, %v52_v34  ;;  %v69_v45 = vadd.f32 %v61_v35, %v53_v39  ;;  %v70_v46 = vadd.f32 %v62_v36, %v54_v40 }
   0xb   :  { %80 = vst.msk [vmem:[%s209_s4] sm:$0xff] %vm79_vm0, %v71_v31  ;;  %81 = vst.msk [vmem:[%s209_s4 + $0x8] sm:$0xff] %vm79_vm0, %v72_v37 }
   0xc   :  { %v75_v44 = vmax.f32 %v67_v38, 0.0  ;;  %82 = vst.msk [vmem:[%s209_s4 + $0x10] sm:$0xff] %vm79_vm0, %v73_v41  ;;  %83 = vst.msk [vmem:[%s209_s4 + $0x18] sm:$0xff] %vm79_vm0, %v74_v42  ;;  %v76_v47 = vmax.f32 %v68_v43, 0.0  ;;  %v77_v48 = vmax.f32 %v69_v45, 0.0  ;;  %v78_v49 = vmax.f32 %v70_v46, 0.0 }
   0xe   :  { %84 = vst.msk [vmem:[%s209_s4 + $0x20] sm:$0xff] %vm79_vm0, %v75_v44  ;;  %85 = vst.msk [vmem:[%s209_s4 + $0x28] sm:$0xff] %vm79_vm0, %v76_v47 }
   0xf   :  { %86 = vst.msk [vmem:[%s209_s4 + $0x30] sm:$0xff] %vm79_vm0, %v77_v48  ;;  %87 = vst.msk [vmem:[%s209_s4 + $0x38] sm:$0xff] %vm79_vm0, %v78_v49 }

// kernel: cnn_net.38
= control target key start
LH: loop header
LB: loop body
LE: loop exit
PB: predicated region body
PF: predicated region fallthrough
CT: control target
= control target key end

     0   :  { %vm430_vm0 = vcmask 523264   ;;  %vm676_vm1 = vcmask 261120   ;;  %s1161_s1 = inlined_call_operand.vmem [shape: bf16[576,32], index: 1, kind: input, shape index: {}]   ;;  %s1162_s0 = inlined_call_operand.vmem [shape: bf16[64,576], index: 0, kind: input, shape index: {}]   ;;  %s1163_s2 = inlined_call_operand.vmem [shape: f32[1,32], index: 2, kind: input, shape index: {}]   ;;  %s1164_s3 = inlined_call_operand.vmem [shape: f32[1,32], index: 3, kind: input, shape index: {}]   ;;  %s1165_s4 = inlined_call_operand.vmem [shape: f32[64,32], index: 4, kind: output, shape index: {}]  }
   0x1   :  { %v863_v0 = vld [vmem:[%s1161_s1 + $0x40] sm:$0xff]   ;;  %v867_v4 = vld [vmem:[%s1161_s1 + $0x48] sm:$0xff]   ;;  %v871_v8 = vld [vmem:[%s1161_s1 + $0x50] sm:$0xff]  }
   0x2   :  { %v864_v1 = vld [vmem:[%s1161_s1 + $0xc0] sm:$0xff]   ;;  %751 = vmatprep.subr.bf16.mxu0 %v863_v0  ;;  %v868_v5 = vld [vmem:[%s1161_s1 + $0xc8] sm:$0xff]   ;;  %v872_v9 = vld [vmem:[%s1161_s1 + $0xd0] sm:$0xff]  }
   0x3   :  { %v865_v2 = vld [vmem:[%s1161_s1] sm:$0xff]   ;;  %791 = vmatprep.subr.bf16.mxu1 %v864_v1  ;;  %v869_v6 = vld [vmem:[%s1161_s1 + $0x8] sm:$0xff]   ;;  %v873_v10 = vld [vmem:[%s1161_s1 + $0x10] sm:$0xff]  }
   0x4   :  { %v866_v3 = vld [vmem:[%s1161_s1 + $0x80] sm:$0xff]   ;;  %752 = vmatpush3.bf16.msra.mxu0 %v865_v2  ;;  %v870_v7 = vld [vmem:[%s1161_s1 + $0x88] sm:$0xff]   ;;  %v874_v11 = vld [vmem:[%s1161_s1 + $0x90] sm:$0xff]  }
   0x5   :  { %792 = vmatpush3.bf16.msra.mxu1 %v866_v3  ;;  %753 = vmatprep.subr.bf16.mxu0 %v867_v4  ;;  %v875_v12 = vld [vmem:[%s1161_s1 + $0x58] sm:$0xff]   ;;  %v879_v16 = vld [vmem:[%s1161_s1 + $0x60] sm:$0xff]   ;;  %v883_v20 = vld [vmem:[%s1161_s1 + $0x68] sm:$0xff]  }
   0x6   :  { %793 = vmatprep.subr.bf16.mxu1 %v868_v5  ;;  %v876_v13 = vld [vmem:[%s1161_s1 + $0xd8] sm:$0xff]   ;;  %v880_v17 = vld [vmem:[%s1161_s1 + $0xe0] sm:$0xff]   ;;  %v884_v21 = vld [vmem:[%s1161_s1 + $0xe8] sm:$0xff]  }
   0x7   :  { %v877_v14 = vld [vmem:[%s1161_s1 + $0x18] sm:$0xff]   ;;  %v881_v18 = vld [vmem:[%s1161_s1 + $0x20] sm:$0xff]   ;;  %v885_v22 = vld [vmem:[%s1161_s1 + $0x28] sm:$0xff]  }
   0x8   :  { %754 = vmatpush3.bf16.msra.mxu0 %v869_v6  ;;  %v878_v15 = vld [vmem:[%s1161_s1 + $0x98] sm:$0xff]   ;;  %v882_v19 = vld [vmem:[%s1161_s1 + $0xa0] sm:$0xff]   ;;  %v886_v23 = vld [vmem:[%s1161_s1 + $0xa8] sm:$0xff]  }
   0x9   :  { %794 = vmatpush3.bf16.msra.mxu1 %v870_v7  ;;  %755 = vmatprep.subr.bf16.mxu0 %v871_v8  ;;  %v887_v24 = vld [vmem:[%s1161_s1 + $0x70] sm:$0xff]   ;;  %v891_v28 = vld [vmem:[%s1161_s1 + $0x78] sm:$0xff]   ;;  %v900_v35 = vld [vmem:[%s1162_s0 + $0xc] ss:$20 sps:$4 sm:$0xff]  }
   0xa   :  { %795 = vmatprep.subr.bf16.mxu1 %v872_v9  ;;  %v888_v25 = vld [vmem:[%s1161_s1 + $0xf0] sm:$0xff]   ;;  %v892_v29 = vld [vmem:[%s1161_s1 + $0xf8] sm:$0xff]   ;;  %v901_v36 = vld [vmem:[%s1161_s1 + $0x100] sm:$0xff]   ;;  %540 = vmatprep.mubr.bf16.mxu1 %v900_v35 }
   0xb   :  { %v889_v26 = vld [vmem:[%s1161_s1 + $0x30] sm:$0xff]   ;;  %v893_v30 = vld [vmem:[%s1161_s1 + $0x38] sm:$0xff]   ;;  %v902_v37 = vld [vmem:[%s1162_s0 + $0x2c] ss:$20 sps:$4 sm:$0xff]  }
   0xc   :  { %756 = vmatpush3.bf16.msra.mxu0 %v873_v10  ;;  %v890_v27 = vld [vmem:[%s1161_s1 + $0xb0] sm:$0xff]   ;;  %v894_v31 = vld [vmem:[%s1161_s1 + $0xb8] sm:$0xff]   ;;  %v908_v39 = vld [vmem:[%s1161_s1 + $0x108] sm:$0xff]  }
   0xd   :  { %796 = vmatpush3.bf16.msra.mxu1 %v874_v11  ;;  %757 = vmatprep.subr.bf16.mxu0 %v875_v12  ;;  %v895_v32 = vld [vmem:[%s1162_s0] ss:$20 sps:$4 sm:$0xff]   ;;  %v897_v33 = vld [vmem:[%s1162_s0 + $0x4] ss:$20 sps:$4 sm:$0xff]   ;;  %v898_v34 = vld [vmem:[%s1162_s0 + $0x8] ss:$20 sps:$4 sm:$0xff]  }
   0xe   :  { %797 = vmatprep.subr.bf16.mxu1 %v876_v13  ;;  %475 = vmatprep.mubr.bf16.mxu0 %v897_v33  ;;  %v904_v38 = vld [vmem:[%s1162_s0 + $0x34] ss:$20 sps:$4 sm:$0xff]   ;;  %v907_v41 = vld [vmem:[%s1162_s0 + $0x30] ss:$20 sps:$4 sm:$0xff]   ;;  %v922_v45 = vld [vmem:[%s1161_s1 + $0x118] sm:$0xff]  }
   0xf   :  { %v906_v40 = vld [vmem:[%s1162_s0 + $0x28] ss:$20 sps:$4 sm:$0xff]   ;;  %v915_v44 = vld [vmem:[%s1161_s1 + $0x110] sm:$0xff]   ;;  %v914_v47 = vld [vmem:[%s1162_s0 + $0x58] ss:$20 sps:$4 sm:$0xff]  }
  0x10   :  { %758 = vmatpush3.bf16.msra.mxu0 %v877_v14  ;;  %v909_v42 = vld [vmem:[%s1162_s0 + $0x54] ss:$20 sps:$4 sm:$0xff]   ;;  %v911_v43 = vld [vmem:[%s1162_s0 + $0x5c] ss:$20 sps:$4 sm:$0xff]   ;;  %v918_v49 = vld [vmem:[%s1162_s0 + $0x84] ss:$20 sps:$4 sm:$0xff]  }
  0x11   :  { %798 = vmatpush3.bf16.msra.mxu1 %v878_v15  ;;  %759 = vmatprep.subr.bf16.mxu0 %v879_v16  ;;  %v913_v46 = vld [vmem:[%s1162_s0 + $0x50] ss:$20 sps:$4 sm:$0xff]   ;;  %v920_v50 = vld [vmem:[%s1162_s0 + $0x78] ss:$20 sps:$4 sm:$0xff]   ;;  %v921_v51 = vld [vmem:[%s1162_s0 + $0x80] ss:$20 sps:$4 sm:$0xff]  }
  0x12   :  { %799 = vmatprep.subr.bf16.mxu1 %v880_v17  ;;  %v916_v48 = vld [vmem:[%s1162_s0 + $0x7c] ss:$20 sps:$4 sm:$0xff]   ;;  %v924_v53 = vld [vmem:[%s1162_s0 + $0x60] ss:$20 sps:$4 sm:$0xff]   ;;  %v925_v54 = vld [vmem:[%s1162_s0 + $0x38] ss:$20 sps:$4 sm:$0xff]  }
  0x13   :  { %v923_v52 = vld [vmem:[%s1162_s0 + $0x10] ss:$20 sps:$4 sm:$0xff]   ;;  %v926_v55 = vld [vmem:[%s1162_s0 + $0x88] ss:$20 sps:$4 sm:$0xff]  }
  0x14   :  { %760 = vmatpush3.bf16.msra.mxu0 %v881_v18 }
  0x15   :  { %800 = vmatpush3.bf16.msra.mxu1 %v882_v19  ;;  %761 = vmatprep.subr.bf16.mxu0 %v883_v20 }
  0x16   :  { %801 = vmatprep.subr.bf16.mxu1 %v884_v21 }
  0x18   :  { %762 = vmatpush3.bf16.msra.mxu0 %v885_v22 }
  0x19   :  { %802 = vmatpush3.bf16.msra.mxu1 %v886_v23  ;;  %763 = vmatprep.subr.bf16.mxu0 %v887_v24 }
  0x1a   :  { %803 = vmatprep.subr.bf16.mxu1 %v888_v25 }
  0x1c   :  { %764 = vmatpush3.bf16.msra.mxu0 %v889_v26 }
  0x1d   :  { %804 = vmatpush3.bf16.msra.mxu1 %v890_v27  ;;  %765 = vmatprep.subr.bf16.mxu0 %v891_v28 }
  0x1e   :  { %805 = vmatprep.subr.bf16.mxu1 %v892_v29 }
  0x20   :  { %766 = vmatpush3.bf16.msra.mxu0 %v893_v30 }
  0x21   :  { %806 = vmatpush3.bf16.msra.mxu1 %v894_v31  ;;  %839 = vmatprep.subr.bf16.mxu0 %v901_v36 }
  0x22   :  { %855 = vmatprep.subr.bf16.mxu1 %v901_v36 }
  0x23   :  { %476 = vmatmul.mubr.bf16.vlgmr.msra.gmra.mrb[0].mxu0 %v895_v32 }
  0x24   :  { %541 = vmatmul.mubr.bf16.vlgmr.msra.gmra.mrb[0].mxu1 %v898_v34  ;;  %840 = vmatpush3.bf16.msra.mxu0 %v901_v36 }
  0x25   :  { %859 = vmatpush3.bf16.msra.mxu1 %v901_v36  ;;  %483 = vmatprep.mubr.bf16.mxu0 %v902_v37 }
  0x26   :  { %548 = vmatprep.mubr.bf16.mxu1 %v904_v38  ;;  %841 = vmatprep.subr.bf16.mxu0 %v908_v39 }
  0x27   :  { %856 = vmatprep.subr.bf16.mxu1 %v908_v39 }
  0x28   :  { %842 = vmatpush3.bf16.msra.mxu0 %v908_v39 }
  0x29   :  { %860 = vmatpush3.bf16.msra.mxu1 %v908_v39  ;;  %843 = vmatprep.subr.bf16.mxu0 %v915_v44 }
  0x2a   :  { %857 = vmatprep.subr.bf16.mxu1 %v915_v44 }
  0x2b   :  { %484 = vmatmul.mubr.bf16.gmra.mrb[4].mxu0 %v906_v40 }
  0x2c   :  { %549 = vmatmul.mubr.bf16.gmra.mrb[4].mxu1 %v907_v41  ;;  %491 = vmatprep.mubr.bf16.mxu0 %v909_v42 }
  0x2d   :  { %556 = vmatprep.mubr.bf16.mxu1 %v911_v43  ;;  %844 = vmatpush3.bf16.msra.mxu0 %v915_v44 }
  0x2e   :  { %861 = vmatpush3.bf16.msra.mxu1 %v915_v44  ;;  %845 = vmatprep.subr.bf16.mxu0 %v922_v45 }
  0x2f   :  { %858 = vmatprep.subr.bf16.mxu1 %v922_v45 }
  0x31   :  { %846 = vmatpush3.bf16.msra.mxu0 %v922_v45 }
  0x32   :  { %862 = vmatpush3.bf16.msra.mxu1 %v922_v45 }
  0x33   :  { %492 = vmatmul.mubr.bf16.gmra.mrb[8].mxu0 %v913_v46 }
  0x34   :  { %557 = vmatmul.mubr.bf16.gmra.mrb[8].mxu1 %v914_v47  ;;  %499 = vmatprep.mubr.bf16.mxu0 %v916_v48 }
  0x35   :  { %564 = vmatprep.mubr.bf16.mxu1 %v918_v49  ;;  %v749_v49 = vld [vmem:[%s1163_s2] ss:$0 sm:$0xff] }
  0x3b   :  { %500 = vmatmul.mubr.bf16.gmra.mrb[12].mxu0 %v920_v50 }
  0x3c   :  { %565 = vmatmul.mubr.bf16.gmra.mrb[12].mxu1 %v921_v51  ;;  %847 = vmatprep.mubr.msk.bf16.mxu0 %vm430_vm0, %v923_v52 }
  0x3d   :  { %851 = vmatprep.mubr.msk.bf16.mxu1 %vm430_vm0, %v924_v53  ;;  %v750_v53 = vld [vmem:[%s1164_s3] ss:$0 sm:$0xff] }
  0x43   :  { %848 = vmatmul.mubr.msk.bf16.vlgmr.msra.gmra.mrb[16].mxu0 %vm430_vm0, %v925_v54 }
  0x44   :  { %852 = vmatmul.mubr.msk.bf16.vlgmr.msra.gmra.mrb[16].mxu1 %vm430_vm0, %v926_v55 }
  0xf6   :  { %v767_v56 = vpop.f32.mrb[0].mxu0 }
  0xf7   :  { %v807_v57 = vpop.f32.mrb[0].mxu1  ;;  %v768_v58 = vpop.f32.mrb[1].mxu0 }
  0xf8   :  { %v769_v59 = vadd.f32 %v768_v58, %v767_v56  ;;  %v808_v60 = vpop.f32.mrb[1].mxu1  ;;  %v770_v61 = vpop.f32.mrb[2].mxu0 }
  0xf9   :  { %v809_v62 = vadd.f32 %v808_v60, %v807_v57  ;;  %v810_v63 = vpop.f32.mrb[2].mxu1  ;;  %v771_v0 = vpop.f32.mrb[3].mxu0 }
  0xfa   :  { %v772_v1 = vadd.f32 %v771_v0, %v770_v61  ;;  %v811_v2 = vpop.f32.mrb[3].mxu1 }
  0xfb   :  { %v812_v3 = vadd.f32 %v811_v2, %v810_v63  ;;  %v543_v4 = vadd.f32 %v809_v62, %v769_v59 }
  0xfd   :  { %v1120_v5 = vadd.f32 %v812_v3, %v772_v1 }
  0xfe   :  { %v773_v6 = vpop.f32.mrb[4].mxu0 }
  0xff   :  { %v813_v7 = vpop.f32.mrb[4].mxu1  ;;  %v774_v8 = vpop.f32.mrb[5].mxu0 }
 0x100   :  { %v775_v9 = vadd.f32 %v774_v8, %v773_v6  ;;  %v814_v10 = vpop.f32.mrb[5].mxu1  ;;  %v776_v11 = vpop.f32.mrb[6].mxu0 }
 0x101   :  { %v815_v12 = vadd.f32 %v814_v10, %v813_v7  ;;  %v816_v13 = vpop.f32.mrb[6].mxu1  ;;  %v777_v14 = vpop.f32.mrb[7].mxu0 }
 0x102   :  { %v778_v15 = vadd.f32 %v777_v14, %v776_v11  ;;  %v817_v16 = vpop.f32.mrb[7].mxu1 }
 0x103   :  { %v818_v17 = vadd.f32 %v817_v16, %v816_v13  ;;  %v551_v18 = vadd.f32 %v815_v12, %v775_v9 }
 0x105   :  { %v554_v19 = vadd.f32 %v818_v17, %v778_v15 }
 0x106   :  { %v779_v20 = vpop.f32.mrb[8].mxu0 }
 0x107   :  { %v819_v21 = vpop.f32.mrb[8].mxu1  ;;  %v780_v22 = vpop.f32.mrb[9].mxu0 }
 0x108   :  { %v781_v23 = vadd.f32 %v780_v22, %v779_v20  ;;  %v820_v24 = vpop.f32.mrb[9].mxu1  ;;  %v782_v25 = vpop.f32.mrb[10].mxu0 }
 0x109   :  { %v821_v26 = vadd.f32 %v820_v24, %v819_v21  ;;  %v822_v27 = vpop.f32.mrb[10].mxu1  ;;  %v783_v28 = vpop.f32.mrb[11].mxu0 }
 0x10a   :  { %v784_v29 = vadd.f32 %v783_v28, %v782_v25  ;;  %v823_v30 = vpop.f32.mrb[11].mxu1 }
 0x10b   :  { %v824_v31 = vadd.f32 %v823_v30, %v822_v27  ;;  %v559_v32 = vadd.f32 %v821_v26, %v781_v23 }
 0x10d   :  { %v562_v33 = vadd.f32 %v824_v31, %v784_v29 }
 0x10e   :  { %v785_v34 = vpop.f32.mrb[12].mxu0 }
 0x10f   :  { %v825_v35 = vpop.f32.mrb[12].mxu1  ;;  %v786_v36 = vpop.f32.mrb[13].mxu0 }
 0x110   :  { %v787_v37 = vadd.f32 %v786_v36, %v785_v34  ;;  %v826_v38 = vpop.f32.mrb[13].mxu1  ;;  %v788_v39 = vpop.f32.mrb[14].mxu0 }
 0x111   :  { %v827_v40 = vadd.f32 %v826_v38, %v825_v35  ;;  %v828_v41 = vpop.f32.mrb[14].mxu1  ;;  %v789_v42 = vpop.f32.mrb[15].mxu0 }
 0x112   :  { %v790_v43 = vadd.f32 %v789_v42, %v788_v39  ;;  %v829_v44 = vpop.f32.mrb[15].mxu1 }
 0x113   :  { %v830_v45 = vadd.f32 %v829_v44, %v828_v41  ;;  %v567_v46 = vadd.f32 %v827_v40, %v787_v37 }
 0x115   :  { %v570_v47 = vadd.f32 %v830_v45, %v790_v43 }
 0x116   :  { %v849_v48 = vpop.f32.mrb[16].mxu0 }
 0x117   :  { %v616_v50 = vadd.f32 %v849_v48, %v551_v18  ;;  %v853_v51 = vpop.f32.mrb[16].mxu1  ;;  %v607_v52 = vpop.f32.mrb[17].mxu0 }
 0x118   :  { %v632_v54 = vadd.f32 %v853_v51, %v567_v46  ;;  %v608_v55 = vadd.f32 %v607_v52, %v543_v4  ;;  %v623_v56 = vpop.f32.mrb[17].mxu1  ;;  %v850_v57 = vpop.f32.mrb[18].mxu0 }
 0x119   :  { %v647_v58 = vmul.f32 %v749_v49, %v616_v50  ;;  %v624_v59 = vadd.f32 %v623_v56, %v559_v32  ;;  %v619_v60 = vadd.f32 %v850_v57, %v554_v19  ;;  %v854_v61 = vpop.f32.mrb[18].mxu1  ;;  %v610_v62 = vpop.f32.mrb[19].mxu0 }
 0x11a   :  { %v651_v63 = vmul.f32 %v749_v49, %v632_v54  ;;  %v645_v0 = vmul.f32 %v749_v49, %v608_v55  ;;  %v635_v1 = vadd.f32 %v854_v61, %v570_v47  ;;  %v611_v2 = vadd.f32 %v610_v62, %v1120_v5  ;;  %v626_v3 = vpop.f32.mrb[19].mxu1 }
 0x11b   :  { %v662_v6 = vadd.f32 %v750_v53, %v647_v58  ;;  %v649_v7 = vmul.f32 %v749_v49, %v624_v59  ;;  %v648_v8 = vmul.f32 %v749_v49, %v619_v60  ;;  %v627_v9 = vadd.f32 %v626_v3, %v562_v33 }
 0x11c   :  { %v666_v10 = vadd.f32 %v750_v53, %v651_v63  ;;  %v660_v4 = vadd.f32 %v750_v53, %v645_v0  ;;  %v652_v11 = vmul.f32 %v749_v49, %v635_v1  ;;  %v646_v12 = vmul.f32 %v749_v49, %v611_v2 }
 0x11d   :  { %v670_v13 = vmax.f32 %v662_v6, 0.0  ;;  %v664_v14 = vadd.f32 %v750_v53, %v649_v7  ;;  %v663_v15 = vadd.f32 %v750_v53, %v648_v8  ;;  %v650_v16 = vmul.f32 %v749_v49, %v627_v9 }
 0x11e   :  { %v674_v17 = vmax.f32 %v666_v10, 0.0  ;;  %v668_v18 = vmax.f32 %v660_v4, 0.0  ;;  %v667_v19 = vadd.f32 %v750_v53, %v652_v11  ;;  %v661_v20 = vadd.f32 %v750_v53, %v646_v12 }
 0x11f   :  { %679 = vst.msk [vmem:[%s1165_s4 + $0x10] sm:$0xff] %vm676_vm1, %v670_v13  ;;  %v672_v5 = vmax.f32 %v664_v14, 0.0  ;;  %v671_v21 = vmax.f32 %v663_v15, 0.0  ;;  %v665_v22 = vadd.f32 %v750_v53, %v650_v16 }
 0x120   :  { %683 = vst.msk [vmem:[%s1165_s4 + $0x30] sm:$0xff] %vm676_vm1, %v674_v17  ;;  %677 = vst.msk [vmem:[%s1165_s4] sm:$0xff] %vm676_vm1, %v668_v18  ;;  %v675_v23 = vmax.f32 %v667_v19, 0.0  ;;  %v669_v24 = vmax.f32 %v661_v20, 0.0 }
 0x121   :  { %681 = vst.msk [vmem:[%s1165_s4 + $0x20] sm:$0xff] %vm676_vm1, %v672_v5  ;;  %680 = vst.msk [vmem:[%s1165_s4 + $0x18] sm:$0xff] %vm676_vm1, %v671_v21  ;;  %v673_v25 = vmax.f32 %v665_v22, 0.0 }
 0x122   :  { %684 = vst.msk [vmem:[%s1165_s4 + $0x38] sm:$0xff] %vm676_vm1, %v675_v23  ;;  %678 = vst.msk [vmem:[%s1165_s4 + $0x8] sm:$0xff] %vm676_vm1, %v669_v24 }
 0x123   :  { %682 = vst.msk [vmem:[%s1165_s4 + $0x28] sm:$0xff] %vm676_vm1, %v673_v25 }

// kernel: cnn_net.39
= control target key start
LH: loop header
LB: loop body
LE: loop exit
PB: predicated region body
PF: predicated region fallthrough
CT: control target
= control target key end

     0   :  { %s360_s1 = inlined_call_operand.vmem [shape: bf16[256,128], index: 1, kind: input, shape index: {}]   ;;  %s361_s0 = inlined_call_operand.vmem [shape: bf16[8,256], index: 0, kind: input, shape index: {}]   ;;  %s362_s2 = inlined_call_operand.vmem [shape: f32[1,128], index: 2, kind: input, shape index: {}]   ;;  %s363_s3 = inlined_call_operand.vmem [shape: f32[1,128], index: 3, kind: input, shape index: {}]   ;;  %s364_s4 = inlined_call_operand.vmem [shape: f32[8,128], index: 4, kind: output, shape index: {}]  }
   0x1   :  { %v257_v0 = vld [vmem:[%s360_s1 + $0x40] sm:$0xff]   ;;  %v259_v2 = vld [vmem:[%s360_s1 + $0x48] sm:$0xff]   ;;  %v261_v4 = vld [vmem:[%s360_s1 + $0x50] sm:$0xff]  }
   0x2   :  { %v258_v1 = vld [vmem:[%s360_s1] sm:$0xff]   ;;  %235 = vmatprep.subr.bf16.mxu0 %v257_v0  ;;  %v260_v3 = vld [vmem:[%s360_s1 + $0x8] sm:$0xff]   ;;  %v262_v5 = vld [vmem:[%s360_s1 + $0x10] sm:$0xff]  }
   0x3   :  { %236 = vmatpush3.bf16.msra.mxu0 %v258_v1  ;;  %v263_v6 = vld [vmem:[%s360_s1 + $0x58] sm:$0xff]   ;;  %v265_v8 = vld [vmem:[%s360_s1 + $0x60] sm:$0xff]   ;;  %v267_v10 = vld [vmem:[%s360_s1 + $0x68] sm:$0xff]  }
   0x4   :  { %237 = vmatprep.subr.bf16.mxu0 %v259_v2  ;;  %v264_v7 = vld [vmem:[%s360_s1 + $0x18] sm:$0xff]   ;;  %v266_v9 = vld [vmem:[%s360_s1 + $0x20] sm:$0xff]   ;;  %v268_v13 = vld [vmem:[%s360_s1 + $0x28] sm:$0xff]  }
   0x5   :  { %v18_v11 = vld [vmem:[%s361_s0] sm:$0xff]  ;;  %v269_v14 = vld [vmem:[%s360_s1 + $0x70] sm:$0xff]   ;;  %v271_v16 = vld [vmem:[%s360_s1 + $0x78] sm:$0xff]  }
   0x6   :  { %v216_v12 = vcombine.high %v18_v11, %v18_v11  ;;  %v270_v15 = vld [vmem:[%s360_s1 + $0x30] sm:$0xff]   ;;  %v272_v17 = vld [vmem:[%s360_s1 + $0x38] sm:$0xff]   ;;  %v215_v18 = vcombine.low %v18_v11, %v18_v11  ;;  %v233_v21 = vld [vmem:[%s362_s2] ss:$0 sm:$0xff] }
   0x7   :  { %238 = vmatpush3.bf16.msra.mxu0 %v260_v3  ;;  %v234_v24 = vld [vmem:[%s363_s3] ss:$0 sm:$0xff] }
   0x8   :  { %239 = vmatprep.subr.bf16.mxu0 %v261_v4  ;;  %186 = vmatprep.mubr.bf16.mxu0 %v216_v12 }
   0xb   :  { %240 = vmatpush3.bf16.msra.mxu0 %v262_v5 }
   0xc   :  { %241 = vmatprep.subr.bf16.mxu0 %v263_v6 }
   0xf   :  { %242 = vmatpush3.bf16.msra.mxu0 %v264_v7 }
  0x10   :  { %243 = vmatprep.subr.bf16.mxu0 %v265_v8 }
  0x13   :  { %244 = vmatpush3.bf16.msra.mxu0 %v266_v9 }
  0x14   :  { %245 = vmatprep.subr.bf16.mxu0 %v267_v10 }
  0x17   :  { %246 = vmatpush3.bf16.msra.mxu0 %v268_v13 }
  0x18   :  { %247 = vmatprep.subr.bf16.mxu0 %v269_v14 }
  0x1b   :  { %248 = vmatpush3.bf16.msra.mxu0 %v270_v15 }
  0x1c   :  { %249 = vmatprep.subr.bf16.mxu0 %v271_v16 }
  0x1f   :  { %250 = vmatpush3.bf16.msra.mxu0 %v272_v17 }
  0x22   :  { %187 = vmatmul.mubr.bf16.vlgmr.msra.gmra.mrb[0].mxu0 %v215_v18 }
  0xf5   :  { %v251_v19 = vpop.f32.mrb[0].mxu0 }
  0xf6   :  { %v252_v20 = vpop.f32.mrb[1].mxu0 }
  0xf7   :  { %v253_v22 = vadd.f32 %v252_v20, %v251_v19  ;;  %v254_v23 = vpop.f32.mrb[2].mxu0 }
  0xf8   :  { %v255_v25 = vpop.f32.mrb[3].mxu0 }
  0xf9   :  { %v201_v26 = vmul.f32 %v253_v22, %v233_v21 }
  0xfb   :  { %v209_v27 = vadd.f32 %v234_v24, %v201_v26 }
  0xfd   :  { %210 = vst [vmem:[%s364_s4] sm:$0xff] %v209_v27 }

</bundles_post_ra>
